<compile_context>
chip_gen: v7x
topology: tpu7x:2x2x1
jax: 0.10.0
libtpu: 0.0.40
codegen_flags: <defaults>
</compile_context>

<pallas_src>
import jax
import jax.numpy as jnp
from jax import lax
from jax.experimental import pallas as pl
from jax.experimental.pallas import tpu as pltpu

B, CIN, H, W = 2, 14, 32, 3
C1, C2, C3 = 16, 64, 128
CP = 128                    # conv input channels zero-padded to one lane tile
ROWS = B * W * H            # 192 im2col rows
FLAT = C3 * H * W           # 128 * 32 * 3 = 12288
F1, F2, F3 = 256, 128, 1
TK = 2048                   # fc1 contraction tile
KT = FLAT // TK             # 6 grid steps


def _vmem():
    # whole array resident in VMEM, single kernel invocation (no grid)
    return pl.BlockSpec(memory_space=pltpu.MemorySpace.VMEM)


# ---------------------------- Pallas kernels ----------------------------

def conv_stack_kernel(x_ref, w1_ref, b1_ref, w2_ref, b2_ref, w3_ref, b3_ref,
                      out_ref, pad_sc, patch_sc):
    """Fused conv1/2/3 (+ReLU), activations & im2col kept in VMEM scratch.

    pad_sc:   [B, W+2, H+2, CP]  zero-bordered activation buffer (shared).
    patch_sc: [ROWS, 9*CP]       im2col matrix (shared across the 3 convs).
    w*_ref:   [9*CP, Cout]       zero-padded tap-major conv weights.
    out_ref:  [ROWS, C3]         conv3 output, rows ordered (b, w, h).
    """
    # Zero once: spatial border stays zero; padded channels stay zero too
    # (and their weight rows are zero, so they never contribute).
    pad_sc[...] = jnp.zeros_like(pad_sc)
    pad_sc[:, 1:W + 1, 1:H + 1, :CIN] = x_ref[...]

    def conv3x3(w_ref, b_ref):
        # Fat-K im2col: tap kk = kh*3 + kw occupies lanes [kk*CP, (kk+1)*CP).
        for kh in range(3):
            for kw in range(3):
                kk = kh * 3 + kw
                tap = pad_sc[:, kw:kw + W, kh:kh + H, :]        # [B, W, H, CP]
                patch_sc[:, kk * CP:(kk + 1) * CP] = tap.reshape(ROWS, CP)
        y = jnp.dot(patch_sc[...], w_ref[...],
                    preferred_element_type=jnp.float32)          # [ROWS, Cout]
        return jnp.maximum(y + b_ref[...], 0.0)

    y1 = conv3x3(w1_ref, b1_ref)                                 # [192, 16]
    pad_sc[:, 1:W + 1, 1:H + 1, :C1] = y1.reshape(B, W, H, C1)
    y2 = conv3x3(w2_ref, b2_ref)                                 # [192, 64]
    pad_sc[:, 1:W + 1, 1:H + 1, :C2] = y2.reshape(B, W, H, C2)
    out_ref[...] = conv3x3(w3_ref, b3_ref)                       # [192, 128]


def mlp_kernel(x_ref, w1_ref, b1_ref, w2_ref, b2_ref, w3_ref, b3_ref,
               out_ref, acc_sc):
    """fc1 (K-tiled, bf16 weight stream, f32 accumulate) -> relu -> fc2 -> relu -> fc3."""
    k = pl.program_id(0)

    @pl.when(k == 0)
    def _init():
        acc_sc[...] = jnp.zeros_like(acc_sc)

    acc_sc[...] += jnp.dot(x_ref[...].astype(jnp.bfloat16), w1_ref[...],
                           preferred_element_type=jnp.float32)

    @pl.when(k == KT - 1)
    def _finalize():
        h1 = jnp.maximum(acc_sc[...] + b1_ref[...], 0.0)
        h2 = jnp.dot(h1, w2_ref[...], preferred_element_type=jnp.float32)
        h2 = jnp.maximum(h2 + b2_ref[...], 0.0)
        out_ref[...] = (jnp.dot(h2, w3_ref[...],
                                preferred_element_type=jnp.float32)
                        + b3_ref[...])


# ------------------------------ wrappers --------------------------------

def conv_stack(x_whc, kp):
    return pl.pallas_call(
        conv_stack_kernel,
        out_shape=jax.ShapeDtypeStruct((ROWS, C3), jnp.float32),
        in_specs=[_vmem()] * 7,
        out_specs=_vmem(),
        scratch_shapes=[pltpu.VMEM((B, W + 2, H + 2, CP), jnp.float32),
                        pltpu.VMEM((ROWS, 9 * CP), jnp.float32)],
    )(x_whc, kp['w1'], kp['b1'], kp['w2'], kp['b2'], kp['w3'], kp['b3'])


def mlp_head(flat, kp):
    return pl.pallas_call(
        mlp_kernel,
        out_shape=jax.ShapeDtypeStruct((B, F3), jnp.float32),
        grid=(KT,),
        in_specs=[
            pl.BlockSpec((B, TK), lambda k: (0, k)),      # streamed activations
            pl.BlockSpec((TK, F1), lambda k: (k, 0)),     # streamed bf16 fc1 tile
            pl.BlockSpec((1, F1), lambda k: (0, 0)),
            pl.BlockSpec((F1, F2), lambda k: (0, 0)),
            pl.BlockSpec((1, F2), lambda k: (0, 0)),
            pl.BlockSpec((F2, F3), lambda k: (0, 0)),
            pl.BlockSpec((1, F3), lambda k: (0, 0)),
        ],
        out_specs=pl.BlockSpec((B, F3), lambda k: (0, 0)),
        scratch_shapes=[pltpu.VMEM((B, F1), jnp.float32)],
        compiler_params=pltpu.CompilerParams(
            dimension_semantics=("arbitrary",)),
    )(flat, kp['fw1'], kp['fb1'], kp['fw2'], kp['fb2'], kp['fw3'], kp['fb3'])


@jax.jit
def cnn_regressor_forward(x_nchw, kp):
    # NCHW -> [B, W, H, C]: channels on lanes, H=32 on sublanes (tiny glue).
    x_whc = jnp.transpose(x_nchw, (0, 3, 2, 1))
    y3 = conv_stack(x_whc, kp)                 # [B*W*H, 128], rows (b, w, h)
    flat = y3.reshape(B, FLAT)                 # free row-major reshape
    return mlp_head(flat, kp)                  # [B, 1]


# ----------------------- deterministic parameters -----------------------

def init_torch_params(key):
    """PyTorch-convention shapes, torch-default-style uniform init."""
    def u(k, shape, fan_in):
        bound = 1.0 / float(fan_in) ** 0.5
        return jax.random.uniform(k, shape, jnp.float32, -bound, bound)
    ks = jax.random.split(key, 12)
    return {
        'conv1_w': u(ks[0], (C1, CIN, 3, 3), CIN * 9), 'conv1_b': u(ks[1], (C1,), CIN * 9),
        'conv2_w': u(ks[2], (C2, C1, 3, 3), C1 * 9),   'conv2_b': u(ks[3], (C2,), C1 * 9),
        'conv3_w': u(ks[4], (C3, C2, 3, 3), C2 * 9),   'conv3_b': u(ks[5], (C3,), C2 * 9),
        'fc1_w': u(ks[6], (F1, FLAT), FLAT),           'fc1_b': u(ks[7], (F1,), FLAT),
        'fc2_w': u(ks[8], (F2, F1), F1),               'fc2_b': u(ks[9], (F2,), F1),
        'fc3_w': u(ks[10], (F3, F2), F2),              'fc3_b': u(ks[11], (F3,), F2),
    }


def to_kernel_params(tp):
    def conv_w(w):  # [Cout, Cin, 3, 3] -> [9*CP, Cout], tap-major, Cin 0-padded
        cout, cin = w.shape[0], w.shape[1]
        w = jnp.transpose(w, (2, 3, 1, 0))                       # [3, 3, Cin, Cout]
        w = jnp.pad(w, ((0, 0), (0, 0), (0, CP - cin), (0, 0)))
        return w.reshape(9 * CP, cout)
    # torch flattens (C, H, W); the kernel flattens rows (w, h) with C on
    # lanes, so permute the fc1 weight to (W, H, C) row order.  bf16 halves
    # the only large HBM transfer; accumulation stays f32 in-kernel.
    fw1 = jnp.transpose(tp['fc1_w'].reshape(F1, C3, H, W),
                        (3, 2, 1, 0)).reshape(FLAT, F1).astype(jnp.bfloat16)
    return {
        'w1': conv_w(tp['conv1_w']), 'b1': tp['conv1_b'].reshape(1, C1),
        'w2': conv_w(tp['conv2_w']), 'b2': tp['conv2_b'].reshape(1, C2),
        'w3': conv_w(tp['conv3_w']), 'b3': tp['conv3_b'].reshape(1, C3),
        'fw1': fw1, 'fb1': tp['fc1_b'].reshape(1, F1),
        'fw2': tp['fc2_w'].T, 'fb2': tp['fc2_b'].reshape(1, F2),
        'fw3': tp['fc3_w'].T, 'fb3': tp['fc3_b'].reshape(1, F3),
    }


# --------------------- pure-JAX reference (torch semantics) ---------------------

def reference_forward(x_nchw, tp):
    def conv(h, w, b):
        y = lax.conv_general_dilated(
            h, w, window_strides=(1, 1), padding=((1, 1), (1, 1)),
            dimension_numbers=('NCHW', 'OIHW', 'NCHW'),
            precision=lax.Precision.HIGHEST)
        return jax.nn.relu(y + b[None, :, None, None])
    h = conv(x_nchw, tp['conv1_w'], tp['conv1_b'])
    h = conv(h, tp['conv2_w'], tp['conv2_b'])
    h = conv(h, tp['conv3_w'], tp['conv3_b'])
    flat = h.reshape(h.shape[0], -1)                  # NCHW flatten, like torch .view
    h = jax.nn.relu(jnp.dot(flat, tp['fc1_w'].T,
                            precision=lax.Precision.HIGHEST) + tp['fc1_b'])
    h = jax.nn.relu(jnp.dot(h, tp['fc2_w'].T,
                            precision=lax.Precision.HIGHEST) + tp['fc2_b'])
    return jnp.dot(h, tp['fc3_w'].T,
                   precision=lax.Precision.HIGHEST) + tp['fc3_b']


if __name__ == "__main__":
    key = jax.random.PRNGKey(0)
    kx, kparams = jax.random.split(key)
    x = jax.random.normal(kx, (B, CIN, H, W), jnp.float32)   # NCHW like PyTorch

    tp = init_torch_params(kparams)
    kp = to_kernel_params(tp)

    out = cnn_regressor_forward(x, kp)
    out = jax.block_until_ready(out)
    assert out.shape == (B, 1) and out.dtype == jnp.float32

    ref = reference_forward(x, tp)
    max_err = float(jnp.max(jnp.abs(out - ref)))
    if max_err > 2e-2:
        raise AssertionError(f"Pallas output mismatch vs reference: {max_err}")
    print("KERNEL_OK")
</pallas_src>

<mosaic_0001>
module attributes {stable_mosaic.version = 11 : i64} {
  func.func @conv_stack_kernel(%arg0: memref<2x3x32x14xf32, #tpu.memory_space<vmem>>, %arg1: memref<1152x16xf32, #tpu.memory_space<vmem>>, %arg2: memref<1x16xf32, #tpu.memory_space<vmem>>, %arg3: memref<1152x64xf32, #tpu.memory_space<vmem>>, %arg4: memref<1x64xf32, #tpu.memory_space<vmem>>, %arg5: memref<1152x128xf32, #tpu.memory_space<vmem>>, %arg6: memref<1x128xf32, #tpu.memory_space<vmem>>, %arg7: memref<192x128xf32, #tpu.memory_space<vmem>>, %arg8: memref<2x5x34x128xf32, #tpu.memory_space<vmem>>, %arg9: memref<192x1152xf32, #tpu.memory_space<vmem>>) attributes {dimension_semantics = [], scalar_prefetch = 0 : i64, scratch_operands = 2 : i64, tpu.core_type = #tpu.core_type<tc>} {
    %cst = arith.constant 0.000000e+00 : f32
    %0 = vector.broadcast %cst : f32 to vector<2x5x34x128xf32>
    %c0 = arith.constant 0 : index
    %c0_0 = arith.constant 0 : index
    %c0_1 = arith.constant 0 : index
    %c0_2 = arith.constant 0 : index
    %1 = vector.load %arg8[%c0, %c0_0, %c0_1, %c0_2] : memref<2x5x34x128xf32, #tpu.memory_space<vmem>>, vector<2x5x34x128xf32>
    tpu.vector_store %arg8[%c0, %c0_0, %c0_1, %c0_2], %0 {strides = array<i32>} : memref<2x5x34x128xf32, #tpu.memory_space<vmem>>, vector<2x5x34x128xf32>,
    %c0_3 = arith.constant 0 : index
    %c0_4 = arith.constant 0 : index
    %c0_5 = arith.constant 0 : index
    %c0_6 = arith.constant 0 : index
    %2 = vector.load %arg0[%c0_3, %c0_4, %c0_5, %c0_6] : memref<2x3x32x14xf32, #tpu.memory_space<vmem>>, vector<2x3x32x14xf32>
    %c0_7 = arith.constant 0 : index
    %c1 = arith.constant 1 : index
    %c1_8 = arith.constant 1 : index
    %c0_9 = arith.constant 0 : index
    %3 = vector.load %arg8[%c0_7, %c1, %c1_8, %c0_9] : memref<2x5x34x128xf32, #tpu.memory_space<vmem>>, vector<2x3x32x14xf32>
    tpu.vector_store %arg8[%c0_7, %c1, %c1_8, %c0_9], %2 {strides = array<i32>} : memref<2x5x34x128xf32, #tpu.memory_space<vmem>>, vector<2x3x32x14xf32>,
    %c0_10 = arith.constant 0 : index
    %c0_11 = arith.constant 0 : index
    %c0_12 = arith.constant 0 : index
    %c0_13 = arith.constant 0 : index
    %4 = vector.load %arg8[%c0_10, %c0_11, %c0_12, %c0_13] : memref<2x5x34x128xf32, #tpu.memory_space<vmem>>, vector<2x3x32x128xf32>
    %5 = vector.shape_cast %4 : vector<2x3x32x128xf32> to vector<192x128xf32>
    %c0_14 = arith.constant 0 : index
    %c0_15 = arith.constant 0 : index
    %6 = vector.load %arg9[%c0_14, %c0_15] : memref<192x1152xf32, #tpu.memory_space<vmem>>, vector<192x128xf32>
    tpu.vector_store %arg9[%c0_14, %c0_15], %5 {strides = array<i32>} : memref<192x1152xf32, #tpu.memory_space<vmem>>, vector<192x128xf32>,
    %c0_16 = arith.constant 0 : index
    %c1_17 = arith.constant 1 : index
    %c0_18 = arith.constant 0 : index
    %c0_19 = arith.constant 0 : index
    %7 = vector.load %arg8[%c0_16, %c1_17, %c0_18, %c0_19] : memref<2x5x34x128xf32, #tpu.memory_space<vmem>>, vector<2x3x32x128xf32>
    %8 = vector.shape_cast %7 : vector<2x3x32x128xf32> to vector<192x128xf32>
    %c0_20 = arith.constant 0 : index
    %c128 = arith.constant 128 : index
    %9 = vector.load %arg9[%c0_20, %c128] : memref<192x1152xf32, #tpu.memory_space<vmem>>, vector<192x128xf32>
    tpu.vector_store %arg9[%c0_20, %c128], %8 {strides = array<i32>} : memref<192x1152xf32, #tpu.memory_space<vmem>>, vector<192x128xf32>,
    %c0_21 = arith.constant 0 : index
    %c2 = arith.constant 2 : index
    %c0_22 = arith.constant 0 : index
    %c0_23 = arith.constant 0 : index
    %10 = vector.load %arg8[%c0_21, %c2, %c0_22, %c0_23] : memref<2x5x34x128xf32, #tpu.memory_space<vmem>>, vector<2x3x32x128xf32>
    %11 = vector.shape_cast %10 : vector<2x3x32x128xf32> to vector<192x128xf32>
    %c0_24 = arith.constant 0 : index
    %c256 = arith.constant 256 : index
    %12 = vector.load %arg9[%c0_24, %c256] : memref<192x1152xf32, #tpu.memory_space<vmem>>, vector<192x128xf32>
    tpu.vector_store %arg9[%c0_24, %c256], %11 {strides = array<i32>} : memref<192x1152xf32, #tpu.memory_space<vmem>>, vector<192x128xf32>,
    %c0_25 = arith.constant 0 : index
    %c0_26 = arith.constant 0 : index
    %c1_27 = arith.constant 1 : index
    %c0_28 = arith.constant 0 : index
    %13 = vector.load %arg8[%c0_25, %c0_26, %c1_27, %c0_28] : memref<2x5x34x128xf32, #tpu.memory_space<vmem>>, vector<2x3x32x128xf32>
    %14 = vector.shape_cast %13 : vector<2x3x32x128xf32> to vector<192x128xf32>
    %c0_29 = arith.constant 0 : index
    %c384 = arith.constant 384 : index
    %15 = vector.load %arg9[%c0_29, %c384] : memref<192x1152xf32, #tpu.memory_space<vmem>>, vector<192x128xf32>
    tpu.vector_store %arg9[%c0_29, %c384], %14 {strides = array<i32>} : memref<192x1152xf32, #tpu.memory_space<vmem>>, vector<192x128xf32>,
    %c0_30 = arith.constant 0 : index
    %c1_31 = arith.constant 1 : index
    %c1_32 = arith.constant 1 : index
    %c0_33 = arith.constant 0 : index
    %16 = vector.load %arg8[%c0_30, %c1_31, %c1_32, %c0_33] : memref<2x5x34x128xf32, #tpu.memory_space<vmem>>, vector<2x3x32x128xf32>
    %17 = vector.shape_cast %16 : vector<2x3x32x128xf32> to vector<192x128xf32>
    %c0_34 = arith.constant 0 : index
    %c512 = arith.constant 512 : index
    %18 = vector.load %arg9[%c0_34, %c512] : memref<192x1152xf32, #tpu.memory_space<vmem>>, vector<192x128xf32>
    tpu.vector_store %arg9[%c0_34, %c512], %17 {strides = array<i32>} : memref<192x1152xf32, #tpu.memory_space<vmem>>, vector<192x128xf32>,
    %c0_35 = arith.constant 0 : index
    %c2_36 = arith.constant 2 : index
    %c1_37 = arith.constant 1 : index
    %c0_38 = arith.constant 0 : index
    %19 = vector.load %arg8[%c0_35, %c2_36, %c1_37, %c0_38] : memref<2x5x34x128xf32, #tpu.memory_space<vmem>>, vector<2x3x32x128xf32>
    %20 = vector.shape_cast %19 : vector<2x3x32x128xf32> to vector<192x128xf32>
    %c0_39 = arith.constant 0 : index
    %c640 = arith.constant 640 : index
    %21 = vector.load %arg9[%c0_39, %c640] : memref<192x1152xf32, #tpu.memory_space<vmem>>, vector<192x128xf32>
    tpu.vector_store %arg9[%c0_39, %c640], %20 {strides = array<i32>} : memref<192x1152xf32, #tpu.memory_space<vmem>>, vector<192x128xf32>,
    %c0_40 = arith.constant 0 : index
    %c0_41 = arith.constant 0 : index
    %c2_42 = arith.constant 2 : index
    %c0_43 = arith.constant 0 : index
    %22 = vector.load %arg8[%c0_40, %c0_41, %c2_42, %c0_43] : memref<2x5x34x128xf32, #tpu.memory_space<vmem>>, vector<2x3x32x128xf32>
    %23 = vector.shape_cast %22 : vector<2x3x32x128xf32> to vector<192x128xf32>
    %c0_44 = arith.constant 0 : index
    %c768 = arith.constant 768 : index
    %24 = vector.load %arg9[%c0_44, %c768] : memref<192x1152xf32, #tpu.memory_space<vmem>>, vector<192x128xf32>
    tpu.vector_store %arg9[%c0_44, %c768], %23 {strides = array<i32>} : memref<192x1152xf32, #tpu.memory_space<vmem>>, vector<192x128xf32>,
    %c0_45 = arith.constant 0 : index
    %c1_46 = arith.constant 1 : index
    %c2_47 = arith.constant 2 : index
    %c0_48 = arith.constant 0 : index
    %25 = vector.load %arg8[%c0_45, %c1_46, %c2_47, %c0_48] : memref<2x5x34x128xf32, #tpu.memory_space<vmem>>, vector<2x3x32x128xf32>
    %26 = vector.shape_cast %25 : vector<2x3x32x128xf32> to vector<192x128xf32>
    %c0_49 = arith.constant 0 : index
    %c896 = arith.constant 896 : index
    %27 = vector.load %arg9[%c0_49, %c896] : memref<192x1152xf32, #tpu.memory_space<vmem>>, vector<192x128xf32>
    tpu.vector_store %arg9[%c0_49, %c896], %26 {strides = array<i32>} : memref<192x1152xf32, #tpu.memory_space<vmem>>, vector<192x128xf32>,
    %c0_50 = arith.constant 0 : index
    %c2_51 = arith.constant 2 : index
    %c2_52 = arith.constant 2 : index
    %c0_53 = arith.constant 0 : index
    %28 = vector.load %arg8[%c0_50, %c2_51, %c2_52, %c0_53] : memref<2x5x34x128xf32, #tpu.memory_space<vmem>>, vector<2x3x32x128xf32>
    %29 = vector.shape_cast %28 : vector<2x3x32x128xf32> to vector<192x128xf32>
    %c0_54 = arith.constant 0 : index
    %c1024 = arith.constant 1024 : index
    %30 = vector.load %arg9[%c0_54, %c1024] : memref<192x1152xf32, #tpu.memory_space<vmem>>, vector<192x128xf32>
    tpu.vector_store %arg9[%c0_54, %c1024], %29 {strides = array<i32>} : memref<192x1152xf32, #tpu.memory_space<vmem>>, vector<192x128xf32>,
    %c0_55 = arith.constant 0 : index
    %c0_56 = arith.constant 0 : index
    %31 = vector.load %arg9[%c0_55, %c0_56] : memref<192x1152xf32, #tpu.memory_space<vmem>>, vector<192x1152xf32>
    %c0_57 = arith.constant 0 : index
    %c0_58 = arith.constant 0 : index
    %32 = vector.load %arg1[%c0_57, %c0_58] : memref<1152x16xf32, #tpu.memory_space<vmem>>, vector<1152x16xf32>
    %cst_59 = arith.constant dense<0.000000e+00> : vector<192x16xf32>
    %33 = tpu.matmul %31, %32, %cst_59 {dimension_numbers = #tpu.dot_dimension_numbers<[1], [0], [0], [1], [0, 0, 1, 1], [], []>} : vector<192x1152xf32>, vector<1152x16xf32>, vector<192x16xf32> -> vector<192x16xf32>
    %c0_60 = arith.constant 0 : index
    %c0_61 = arith.constant 0 : index
    %34 = vector.load %arg2[%c0_60, %c0_61] : memref<1x16xf32, #tpu.memory_space<vmem>>, vector<1x16xf32>
    %35 = vector.broadcast %34 : vector<1x16xf32> to vector<192x16xf32>
    %36 = arith.addf %33, %35 : vector<192x16xf32>
    %cst_62 = arith.constant 0.000000e+00 : f32
    %37 = vector.broadcast %cst_62 : f32 to vector<192x16xf32>
    %38 = arith.maximumf %36, %37 : vector<192x16xf32>
    %39 = vector.shape_cast %38 : vector<192x16xf32> to vector<2x3x32x16xf32>
    %c0_63 = arith.constant 0 : index
    %c1_64 = arith.constant 1 : index
    %c1_65 = arith.constant 1 : index
    %c0_66 = arith.constant 0 : index
    %40 = vector.load %arg8[%c0_63, %c1_64, %c1_65, %c0_66] : memref<2x5x34x128xf32, #tpu.memory_space<vmem>>, vector<2x3x32x16xf32>
    tpu.vector_store %arg8[%c0_63, %c1_64, %c1_65, %c0_66], %39 {strides = array<i32>} : memref<2x5x34x128xf32, #tpu.memory_space<vmem>>, vector<2x3x32x16xf32>,
    %c0_67 = arith.constant 0 : index
    %c0_68 = arith.constant 0 : index
    %c0_69 = arith.constant 0 : index
    %c0_70 = arith.constant 0 : index
    %41 = vector.load %arg8[%c0_67, %c0_68, %c0_69, %c0_70] : memref<2x5x34x128xf32, #tpu.memory_space<vmem>>, vector<2x3x32x128xf32>
    %42 = vector.shape_cast %41 : vector<2x3x32x128xf32> to vector<192x128xf32>
    %c0_71 = arith.constant 0 : index
    %c0_72 = arith.constant 0 : index
    %43 = vector.load %arg9[%c0_71, %c0_72] : memref<192x1152xf32, #tpu.memory_space<vmem>>, vector<192x128xf32>
    tpu.vector_store %arg9[%c0_71, %c0_72], %42 {strides = array<i32>} : memref<192x1152xf32, #tpu.memory_space<vmem>>, vector<192x128xf32>,
    %c0_73 = arith.constant 0 : index
    %c1_74 = arith.constant 1 : index
    %c0_75 = arith.constant 0 : index
    %c0_76 = arith.constant 0 : index
    %44 = vector.load %arg8[%c0_73, %c1_74, %c0_75, %c0_76] : memref<2x5x34x128xf32, #tpu.memory_space<vmem>>, vector<2x3x32x128xf32>
    %45 = vector.shape_cast %44 : vector<2x3x32x128xf32> to vector<192x128xf32>
    %c0_77 = arith.constant 0 : index
    %c128_78 = arith.constant 128 : index
    %46 = vector.load %arg9[%c0_77, %c128_78] : memref<192x1152xf32, #tpu.memory_space<vmem>>, vector<192x128xf32>
    tpu.vector_store %arg9[%c0_77, %c128_78], %45 {strides = array<i32>} : memref<192x1152xf32, #tpu.memory_space<vmem>>, vector<192x128xf32>,
    %c0_79 = arith.constant 0 : index
    %c2_80 = arith.constant 2 : index
    %c0_81 = arith.constant 0 : index
    %c0_82 = arith.constant 0 : index
    %47 = vector.load %arg8[%c0_79, %c2_80, %c0_81, %c0_82] : memref<2x5x34x128xf32, #tpu.memory_space<vmem>>, vector<2x3x32x128xf32>
    %48 = vector.shape_cast %47 : vector<2x3x32x128xf32> to vector<192x128xf32>
    %c0_83 = arith.constant 0 : index
    %c256_84 = arith.constant 256 : index
    %49 = vector.load %arg9[%c0_83, %c256_84] : memref<192x1152xf32, #tpu.memory_space<vmem>>, vector<192x128xf32>
    tpu.vector_store %arg9[%c0_83, %c256_84], %48 {strides = array<i32>} : memref<192x1152xf32, #tpu.memory_space<vmem>>, vector<192x128xf32>,
    %c0_85 = arith.constant 0 : index
    %c0_86 = arith.constant 0 : index
    %c1_87 = arith.constant 1 : index
    %c0_88 = arith.constant 0 : index
    %50 = vector.load %arg8[%c0_85, %c0_86, %c1_87, %c0_88] : memref<2x5x34x128xf32, #tpu.memory_space<vmem>>, vector<2x3x32x128xf32>
    %51 = vector.shape_cast %50 : vector<2x3x32x128xf32> to vector<192x128xf32>
    %c0_89 = arith.constant 0 : index
    %c384_90 = arith.constant 384 : index
    %52 = vector.load %arg9[%c0_89, %c384_90] : memref<192x1152xf32, #tpu.memory_space<vmem>>, vector<192x128xf32>
    tpu.vector_store %arg9[%c0_89, %c384_90], %51 {strides = array<i32>} : memref<192x1152xf32, #tpu.memory_space<vmem>>, vector<192x128xf32>,
    %c0_91 = arith.constant 0 : index
    %c1_92 = arith.constant 1 : index
    %c1_93 = arith.constant 1 : index
    %c0_94 = arith.constant 0 : index
    %53 = vector.load %arg8[%c0_91, %c1_92, %c1_93, %c0_94] : memref<2x5x34x128xf32, #tpu.memory_space<vmem>>, vector<2x3x32x128xf32>
    %54 = vector.shape_cast %53 : vector<2x3x32x128xf32> to vector<192x128xf32>
    %c0_95 = arith.constant 0 : index
    %c512_96 = arith.constant 512 : index
    %55 = vector.load %arg9[%c0_95, %c512_96] : memref<192x1152xf32, #tpu.memory_space<vmem>>, vector<192x128xf32>
    tpu.vector_store %arg9[%c0_95, %c512_96], %54 {strides = array<i32>} : memref<192x1152xf32, #tpu.memory_space<vmem>>, vector<192x128xf32>,
    %c0_97 = arith.constant 0 : index
    %c2_98 = arith.constant 2 : index
    %c1_99 = arith.constant 1 : index
    %c0_100 = arith.constant 0 : index
    %56 = vector.load %arg8[%c0_97, %c2_98, %c1_99, %c0_100] : memref<2x5x34x128xf32, #tpu.memory_space<vmem>>, vector<2x3x32x128xf32>
    %57 = vector.shape_cast %56 : vector<2x3x32x128xf32> to vector<192x128xf32>
    %c0_101 = arith.constant 0 : index
    %c640_102 = arith.constant 640 : index
    %58 = vector.load %arg9[%c0_101, %c640_102] : memref<192x1152xf32, #tpu.memory_space<vmem>>, vector<192x128xf32>
    tpu.vector_store %arg9[%c0_101, %c640_102], %57 {strides = array<i32>} : memref<192x1152xf32, #tpu.memory_space<vmem>>, vector<192x128xf32>,
    %c0_103 = arith.constant 0 : index
    %c0_104 = arith.constant 0 : index
    %c2_105 = arith.constant 2 : index
    %c0_106 = arith.constant 0 : index
    %59 = vector.load %arg8[%c0_103, %c0_104, %c2_105, %c0_106] : memref<2x5x34x128xf32, #tpu.memory_space<vmem>>, vector<2x3x32x128xf32>
    %60 = vector.shape_cast %59 : vector<2x3x32x128xf32> to vector<192x128xf32>
    %c0_107 = arith.constant 0 : index
    %c768_108 = arith.constant 768 : index
    %61 = vector.load %arg9[%c0_107, %c768_108] : memref<192x1152xf32, #tpu.memory_space<vmem>>, vector<192x128xf32>
    tpu.vector_store %arg9[%c0_107, %c768_108], %60 {strides = array<i32>} : memref<192x1152xf32, #tpu.memory_space<vmem>>, vector<192x128xf32>,
    %c0_109 = arith.constant 0 : index
    %c1_110 = arith.constant 1 : index
    %c2_111 = arith.constant 2 : index
    %c0_112 = arith.constant 0 : index
    %62 = vector.load %arg8[%c0_109, %c1_110, %c2_111, %c0_112] : memref<2x5x34x128xf32, #tpu.memory_space<vmem>>, vector<2x3x32x128xf32>
    %63 = vector.shape_cast %62 : vector<2x3x32x128xf32> to vector<192x128xf32>
    %c0_113 = arith.constant 0 : index
    %c896_114 = arith.constant 896 : index
    %64 = vector.load %arg9[%c0_113, %c896_114] : memref<192x1152xf32, #tpu.memory_space<vmem>>, vector<192x128xf32>
    tpu.vector_store %arg9[%c0_113, %c896_114], %63 {strides = array<i32>} : memref<192x1152xf32, #tpu.memory_space<vmem>>, vector<192x128xf32>,
    %c0_115 = arith.constant 0 : index
    %c2_116 = arith.constant 2 : index
    %c2_117 = arith.constant 2 : index
    %c0_118 = arith.constant 0 : index
    %65 = vector.load %arg8[%c0_115, %c2_116, %c2_117, %c0_118] : memref<2x5x34x128xf32, #tpu.memory_space<vmem>>, vector<2x3x32x128xf32>
    %66 = vector.shape_cast %65 : vector<2x3x32x128xf32> to vector<192x128xf32>
    %c0_119 = arith.constant 0 : index
    %c1024_120 = arith.constant 1024 : index
    %67 = vector.load %arg9[%c0_119, %c1024_120] : memref<192x1152xf32, #tpu.memory_space<vmem>>, vector<192x128xf32>
    tpu.vector_store %arg9[%c0_119, %c1024_120], %66 {strides = array<i32>} : memref<192x1152xf32, #tpu.memory_space<vmem>>, vector<192x128xf32>,
    %c0_121 = arith.constant 0 : index
    %c0_122 = arith.constant 0 : index
    %68 = vector.load %arg9[%c0_121, %c0_122] : memref<192x1152xf32, #tpu.memory_space<vmem>>, vector<192x1152xf32>
    %c0_123 = arith.constant 0 : index
    %c0_124 = arith.constant 0 : index
    %69 = vector.load %arg3[%c0_123, %c0_124] : memref<1152x64xf32, #tpu.memory_space<vmem>>, vector<1152x64xf32>
    %cst_125 = arith.constant dense<0.000000e+00> : vector<192x64xf32>
    %70 = tpu.matmul %68, %69, %cst_125 {dimension_numbers = #tpu.dot_dimension_numbers<[1], [0], [0], [1], [0, 0, 1, 1], [], []>} : vector<192x1152xf32>, vector<1152x64xf32>, vector<192x64xf32> -> vector<192x64xf32>
    %c0_126 = arith.constant 0 : index
    %c0_127 = arith.constant 0 : index
    %71 = vector.load %arg4[%c0_126, %c0_127] : memref<1x64xf32, #tpu.memory_space<vmem>>, vector<1x64xf32>
    %72 = vector.broadcast %71 : vector<1x64xf32> to vector<192x64xf32>
    %73 = arith.addf %70, %72 : vector<192x64xf32>
    %cst_128 = arith.constant 0.000000e+00 : f32
    %74 = vector.broadcast %cst_128 : f32 to vector<192x64xf32>
    %75 = arith.maximumf %73, %74 : vector<192x64xf32>
    %76 = vector.shape_cast %75 : vector<192x64xf32> to vector<2x3x32x64xf32>
    %c0_129 = arith.constant 0 : index
    %c1_130 = arith.constant 1 : index
    %c1_131 = arith.constant 1 : index
    %c0_132 = arith.constant 0 : index
    %77 = vector.load %arg8[%c0_129, %c1_130, %c1_131, %c0_132] : memref<2x5x34x128xf32, #tpu.memory_space<vmem>>, vector<2x3x32x64xf32>
    tpu.vector_store %arg8[%c0_129, %c1_130, %c1_131, %c0_132], %76 {strides = array<i32>} : memref<2x5x34x128xf32, #tpu.memory_space<vmem>>, vector<2x3x32x64xf32>,
    %c0_133 = arith.constant 0 : index
    %c0_134 = arith.constant 0 : index
    %c0_135 = arith.constant 0 : index
    %c0_136 = arith.constant 0 : index
    %78 = vector.load %arg8[%c0_133, %c0_134, %c0_135, %c0_136] : memref<2x5x34x128xf32, #tpu.memory_space<vmem>>, vector<2x3x32x128xf32>
    %79 = vector.shape_cast %78 : vector<2x3x32x128xf32> to vector<192x128xf32>
    %c0_137 = arith.constant 0 : index
    %c0_138 = arith.constant 0 : index
    %80 = vector.load %arg9[%c0_137, %c0_138] : memref<192x1152xf32, #tpu.memory_space<vmem>>, vector<192x128xf32>
    tpu.vector_store %arg9[%c0_137, %c0_138], %79 {strides = array<i32>} : memref<192x1152xf32, #tpu.memory_space<vmem>>, vector<192x128xf32>,
    %c0_139 = arith.constant 0 : index
    %c1_140 = arith.constant 1 : index
    %c0_141 = arith.constant 0 : index
    %c0_142 = arith.constant 0 : index
    %81 = vector.load %arg8[%c0_139, %c1_140, %c0_141, %c0_142] : memref<2x5x34x128xf32, #tpu.memory_space<vmem>>, vector<2x3x32x128xf32>
    %82 = vector.shape_cast %81 : vector<2x3x32x128xf32> to vector<192x128xf32>
    %c0_143 = arith.constant 0 : index
    %c128_144 = arith.constant 128 : index
    %83 = vector.load %arg9[%c0_143, %c128_144] : memref<192x1152xf32, #tpu.memory_space<vmem>>, vector<192x128xf32>
    tpu.vector_store %arg9[%c0_143, %c128_144], %82 {strides = array<i32>} : memref<192x1152xf32, #tpu.memory_space<vmem>>, vector<192x128xf32>,
    %c0_145 = arith.constant 0 : index
    %c2_146 = arith.constant 2 : index
    %c0_147 = arith.constant 0 : index
    %c0_148 = arith.constant 0 : index
    %84 = vector.load %arg8[%c0_145, %c2_146, %c0_147, %c0_148] : memref<2x5x34x128xf32, #tpu.memory_space<vmem>>, vector<2x3x32x128xf32>
    %85 = vector.shape_cast %84 : vector<2x3x32x128xf32> to vector<192x128xf32>
    %c0_149 = arith.constant 0 : index
    %c256_150 = arith.constant 256 : index
    %86 = vector.load %arg9[%c0_149, %c256_150] : memref<192x1152xf32, #tpu.memory_space<vmem>>, vector<192x128xf32>
    tpu.vector_store %arg9[%c0_149, %c256_150], %85 {strides = array<i32>} : memref<192x1152xf32, #tpu.memory_space<vmem>>, vector<192x128xf32>,
    %c0_151 = arith.constant 0 : index
    %c0_152 = arith.constant 0 : index
    %c1_153 = arith.constant 1 : index
    %c0_154 = arith.constant 0 : index
    %87 = vector.load %arg8[%c0_151, %c0_152, %c1_153, %c0_154] : memref<2x5x34x128xf32, #tpu.memory_space<vmem>>, vector<2x3x32x128xf32>
    %88 = vector.shape_cast %87 : vector<2x3x32x128xf32> to vector<192x128xf32>
    %c0_155 = arith.constant 0 : index
    %c384_156 = arith.constant 384 : index
    %89 = vector.load %arg9[%c0_155, %c384_156] : memref<192x1152xf32, #tpu.memory_space<vmem>>, vector<192x128xf32>
    tpu.vector_store %arg9[%c0_155, %c384_156], %88 {strides = array<i32>} : memref<192x1152xf32, #tpu.memory_space<vmem>>, vector<192x128xf32>,
    %c0_157 = arith.constant 0 : index
    %c1_158 = arith.constant 1 : index
    %c1_159 = arith.constant 1 : index
    %c0_160 = arith.constant 0 : index
    %90 = vector.load %arg8[%c0_157, %c1_158, %c1_159, %c0_160] : memref<2x5x34x128xf32, #tpu.memory_space<vmem>>, vector<2x3x32x128xf32>
    %91 = vector.shape_cast %90 : vector<2x3x32x128xf32> to vector<192x128xf32>
    %c0_161 = arith.constant 0 : index
    %c512_162 = arith.constant 512 : index
    %92 = vector.load %arg9[%c0_161, %c512_162] : memref<192x1152xf32, #tpu.memory_space<vmem>>, vector<192x128xf32>
    tpu.vector_store %arg9[%c0_161, %c512_162], %91 {strides = array<i32>} : memref<192x1152xf32, #tpu.memory_space<vmem>>, vector<192x128xf32>,
    %c0_163 = arith.constant 0 : index
    %c2_164 = arith.constant 2 : index
    %c1_165 = arith.constant 1 : index
    %c0_166 = arith.constant 0 : index
    %93 = vector.load %arg8[%c0_163, %c2_164, %c1_165, %c0_166] : memref<2x5x34x128xf32, #tpu.memory_space<vmem>>, vector<2x3x32x128xf32>
    %94 = vector.shape_cast %93 : vector<2x3x32x128xf32> to vector<192x128xf32>
    %c0_167 = arith.constant 0 : index
    %c640_168 = arith.constant 640 : index
    %95 = vector.load %arg9[%c0_167, %c640_168] : memref<192x1152xf32, #tpu.memory_space<vmem>>, vector<192x128xf32>
    tpu.vector_store %arg9[%c0_167, %c640_168], %94 {strides = array<i32>} : memref<192x1152xf32, #tpu.memory_space<vmem>>, vector<192x128xf32>,
    %c0_169 = arith.constant 0 : index
    %c0_170 = arith.constant 0 : index
    %c2_171 = arith.constant 2 : index
    %c0_172 = arith.constant 0 : index
    %96 = vector.load %arg8[%c0_169, %c0_170, %c2_171, %c0_172] : memref<2x5x34x128xf32, #tpu.memory_space<vmem>>, vector<2x3x32x128xf32>
    %97 = vector.shape_cast %96 : vector<2x3x32x128xf32> to vector<192x128xf32>
    %c0_173 = arith.constant 0 : index
    %c768_174 = arith.constant 768 : index
    %98 = vector.load %arg9[%c0_173, %c768_174] : memref<192x1152xf32, #tpu.memory_space<vmem>>, vector<192x128xf32>
    tpu.vector_store %arg9[%c0_173, %c768_174], %97 {strides = array<i32>} : memref<192x1152xf32, #tpu.memory_space<vmem>>, vector<192x128xf32>,
    %c0_175 = arith.constant 0 : index
    %c1_176 = arith.constant 1 : index
    %c2_177 = arith.constant 2 : index
    %c0_178 = arith.constant 0 : index
    %99 = vector.load %arg8[%c0_175, %c1_176, %c2_177, %c0_178] : memref<2x5x34x128xf32, #tpu.memory_space<vmem>>, vector<2x3x32x128xf32>
    %100 = vector.shape_cast %99 : vector<2x3x32x128xf32> to vector<192x128xf32>
    %c0_179 = arith.constant 0 : index
    %c896_180 = arith.constant 896 : index
    %101 = vector.load %arg9[%c0_179, %c896_180] : memref<192x1152xf32, #tpu.memory_space<vmem>>, vector<192x128xf32>
    tpu.vector_store %arg9[%c0_179, %c896_180], %100 {strides = array<i32>} : memref<192x1152xf32, #tpu.memory_space<vmem>>, vector<192x128xf32>,
    %c0_181 = arith.constant 0 : index
    %c2_182 = arith.constant 2 : index
    %c2_183 = arith.constant 2 : index
    %c0_184 = arith.constant 0 : index
    %102 = vector.load %arg8[%c0_181, %c2_182, %c2_183, %c0_184] : memref<2x5x34x128xf32, #tpu.memory_space<vmem>>, vector<2x3x32x128xf32>
    %103 = vector.shape_cast %102 : vector<2x3x32x128xf32> to vector<192x128xf32>
    %c0_185 = arith.constant 0 : index
    %c1024_186 = arith.constant 1024 : index
    %104 = vector.load %arg9[%c0_185, %c1024_186] : memref<192x1152xf32, #tpu.memory_space<vmem>>, vector<192x128xf32>
    tpu.vector_store %arg9[%c0_185, %c1024_186], %103 {strides = array<i32>} : memref<192x1152xf32, #tpu.memory_space<vmem>>, vector<192x128xf32>,
    %c0_187 = arith.constant 0 : index
    %c0_188 = arith.constant 0 : index
    %105 = vector.load %arg9[%c0_187, %c0_188] : memref<192x1152xf32, #tpu.memory_space<vmem>>, vector<192x1152xf32>
    %c0_189 = arith.constant 0 : index
    %c0_190 = arith.constant 0 : index
    %106 = vector.load %arg5[%c0_189, %c0_190] : memref<1152x128xf32, #tpu.memory_space<vmem>>, vector<1152x128xf32>
    %cst_191 = arith.constant dense<0.000000e+00> : vector<192x128xf32>
    %107 = tpu.matmul %105, %106, %cst_191 {dimension_numbers = #tpu.dot_dimension_numbers<[1], [0], [0], [1], [0, 0, 1, 1], [], []>} : vector<192x1152xf32>, vector<1152x128xf32>, vector<192x128xf32> -> vector<192x128xf32>
    %c0_192 = arith.constant 0 : index
    %c0_193 = arith.constant 0 : index
    %108 = vector.load %arg6[%c0_192, %c0_193] : memref<1x128xf32, #tpu.memory_space<vmem>>, vector<1x128xf32>
    %109 = vector.broadcast %108 : vector<1x128xf32> to vector<192x128xf32>
    %110 = arith.addf %107, %109 : vector<192x128xf32>
    %cst_194 = arith.constant 0.000000e+00 : f32
    %111 = vector.broadcast %cst_194 : f32 to vector<192x128xf32>
    %112 = arith.maximumf %110, %111 : vector<192x128xf32>
    %c0_195 = arith.constant 0 : index
    %c0_196 = arith.constant 0 : index
    %113 = vector.load %arg7[%c0_195, %c0_196] : memref<192x128xf32, #tpu.memory_space<vmem>>, vector<192x128xf32>
    tpu.vector_store %arg7[%c0_195, %c0_196], %112 {strides = array<i32>} : memref<192x128xf32, #tpu.memory_space<vmem>>, vector<192x128xf32>,
    return
  }
}

module attributes {stable_mosaic.version = 11 : i64} {
  func.func @mlp_kernel(%arg0: i32, %arg1: memref<2x2048xf32, #tpu.memory_space<vmem>>, %arg2: memref<2048x256xbf16, #tpu.memory_space<vmem>>, %arg3: memref<1x256xf32, #tpu.memory_space<vmem>>, %arg4: memref<256x128xf32, #tpu.memory_space<vmem>>, %arg5: memref<1x128xf32, #tpu.memory_space<vmem>>, %arg6: memref<128x1xf32, #tpu.memory_space<vmem>>, %arg7: memref<1x1xf32, #tpu.memory_space<vmem>>, %arg8: memref<2x1xf32, #tpu.memory_space<vmem>>, %arg9: memref<2x256xf32, #tpu.memory_space<vmem>>) attributes {dimension_semantics = [#tpu.dimension_semantics<arbitrary>], iteration_bounds = array<i64: 6>, scalar_prefetch = 0 : i64, scratch_operands = 1 : i64, tpu.core_type = #tpu.core_type<tc>, window_params = [{transform_indices = @transform_0, window_bounds = array<i64: 2, 2048>}, {transform_indices = @transform_1, window_bounds = array<i64: 2048, 256>}, {pipeline_mode = #tpu.pipeline_mode<synchronous>, transform_indices = @transform_2, window_bounds = array<i64: 1, 256>}, {pipeline_mode = #tpu.pipeline_mode<synchronous>, transform_indices = @transform_3, window_bounds = array<i64: 256, 128>}, {pipeline_mode = #tpu.pipeline_mode<synchronous>, transform_indices = @transform_4, window_bounds = array<i64: 1, 128>}, {pipeline_mode = #tpu.pipeline_mode<synchronous>, transform_indices = @transform_5, window_bounds = array<i64: 128, 1>}, {pipeline_mode = #tpu.pipeline_mode<synchronous>, transform_indices = @transform_6, window_bounds = array<i64: 1, 1>}, {pipeline_mode = #tpu.pipeline_mode<synchronous>, transform_indices = @transform_7, window_bounds = array<i64: 2, 1>}]} {
    %c0_i32 = arith.constant 0 : i32
    %0 = arith.cmpi eq, %arg0, %c0_i32 : i32
    %1 = arith.extui %0 : i1 to i32
    %c0_i32_0 = arith.constant 0 : i32
    %2 = arith.cmpi ne, %1, %c0_i32_0 : i32
    scf.if %2 {
      %cst_9 = arith.constant 0.000000e+00 : f32
      %13 = vector.broadcast %cst_9 : f32 to vector<2x256xf32>
      %c0_10 = arith.constant 0 : index
      %c0_11 = arith.constant 0 : index
      %14 = vector.load %arg9[%c0_10, %c0_11] : memref<2x256xf32, #tpu.memory_space<vmem>>, vector<2x256xf32>
      tpu.vector_store %arg9[%c0_10, %c0_11], %13 {strides = array<i32>} : memref<2x256xf32, #tpu.memory_space<vmem>>, vector<2x256xf32>,
    } else {
    }
    %c0 = arith.constant 0 : index
    %c0_1 = arith.constant 0 : index
    %3 = vector.load %arg9[%c0, %c0_1] : memref<2x256xf32, #tpu.memory_space<vmem>>, vector<2x256xf32>
    %c0_2 = arith.constant 0 : index
    %c0_3 = arith.constant 0 : index
    %4 = vector.load %arg1[%c0_2, %c0_3] : memref<2x2048xf32, #tpu.memory_space<vmem>>, vector<2x2048xf32>
    %5 = arith.truncf %4 : vector<2x2048xf32> to vector<2x2048xbf16>
    %c0_4 = arith.constant 0 : index
    %c0_5 = arith.constant 0 : index
    %6 = vector.load %arg2[%c0_4, %c0_5] : memref<2048x256xbf16, #tpu.memory_space<vmem>>, vector<2048x256xbf16>
    %cst = arith.constant dense<0.000000e+00> : vector<2x256xf32>
    %7 = tpu.matmul %5, %6, %cst {dimension_numbers = #tpu.dot_dimension_numbers<[1], [0], [0], [1], [0, 0, 1, 1], [], []>} : vector<2x2048xbf16>, vector<2048x256xbf16>, vector<2x256xf32> -> vector<2x256xf32>
    %8 = arith.addf %3, %7 : vector<2x256xf32>
    %c0_6 = arith.constant 0 : index
    %c0_7 = arith.constant 0 : index
    %9 = vector.load %arg9[%c0_6, %c0_7] : memref<2x256xf32, #tpu.memory_space<vmem>>, vector<2x256xf32>
    tpu.vector_store %arg9[%c0_6, %c0_7], %8 {strides = array<i32>} : memref<2x256xf32, #tpu.memory_space<vmem>>, vector<2x256xf32>,
    %c5_i32 = arith.constant 5 : i32
    %10 = arith.cmpi eq, %arg0, %c5_i32 : i32
    %11 = arith.extui %10 : i1 to i32
    %c0_i32_8 = arith.constant 0 : i32
    %12 = arith.cmpi ne, %11, %c0_i32_8 : i32
    scf.if %12 {
      %c0_9 = arith.constant 0 : index
      %c0_10 = arith.constant 0 : index
      %13 = vector.load %arg9[%c0_9, %c0_10] : memref<2x256xf32, #tpu.memory_space<vmem>>, vector<2x256xf32>
      %c0_11 = arith.constant 0 : index
      %c0_12 = arith.constant 0 : index
      %14 = vector.load %arg3[%c0_11, %c0_12] : memref<1x256xf32, #tpu.memory_space<vmem>>, vector<1x256xf32>
      %15 = vector.broadcast %14 : vector<1x256xf32> to vector<2x256xf32>
      %16 = arith.addf %13, %15 : vector<2x256xf32>
      %cst_13 = arith.constant 0.000000e+00 : f32
      %17 = vector.broadcast %cst_13 : f32 to vector<2x256xf32>
      %18 = arith.maximumf %16, %17 : vector<2x256xf32>
      %c0_14 = arith.constant 0 : index
      %c0_15 = arith.constant 0 : index
      %19 = vector.load %arg4[%c0_14, %c0_15] : memref<256x128xf32, #tpu.memory_space<vmem>>, vector<256x128xf32>
      %cst_16 = arith.constant dense<0.000000e+00> : vector<2x128xf32>
      %20 = tpu.matmul %18, %19, %cst_16 {dimension_numbers = #tpu.dot_dimension_numbers<[1], [0], [0], [1], [0, 0, 1, 1], [], []>} : vector<2x256xf32>, vector<256x128xf32>, vector<2x128xf32> -> vector<2x128xf32>
      %c0_17 = arith.constant 0 : index
      %c0_18 = arith.constant 0 : index
      %21 = vector.load %arg5[%c0_17, %c0_18] : memref<1x128xf32, #tpu.memory_space<vmem>>, vector<1x128xf32>
      %22 = vector.broadcast %21 : vector<1x128xf32> to vector<2x128xf32>
      %23 = arith.addf %20, %22 : vector<2x128xf32>
      %cst_19 = arith.constant 0.000000e+00 : f32
      %24 = vector.broadcast %cst_19 : f32 to vector<2x128xf32>
      %25 = arith.maximumf %23, %24 : vector<2x128xf32>
      %c0_20 = arith.constant 0 : index
      %c0_21 = arith.constant 0 : index
      %26 = vector.load %arg6[%c0_20, %c0_21] : memref<128x1xf32, #tpu.memory_space<vmem>>, vector<128x1xf32>
      %cst_22 = arith.constant dense<0.000000e+00> : vector<2x1xf32>
      %27 = tpu.matmul %25, %26, %cst_22 {dimension_numbers = #tpu.dot_dimension_numbers<[1], [0], [0], [1], [0, 0, 1, 1], [], []>} : vector<2x128xf32>, vector<128x1xf32>, vector<2x1xf32> -> vector<2x1xf32>
      %c0_23 = arith.constant 0 : index
      %c0_24 = arith.constant 0 : index
      %28 = vector.load %arg7[%c0_23, %c0_24] : memref<1x1xf32, #tpu.memory_space<vmem>>, vector<1x1xf32>
      %29 = vector.broadcast %28 : vector<1x1xf32> to vector<2x1xf32>
      %30 = arith.addf %27, %29 : vector<2x1xf32>
      %c0_25 = arith.constant 0 : index
      %c0_26 = arith.constant 0 : index
      %31 = vector.load %arg8[%c0_25, %c0_26] : memref<2x1xf32, #tpu.memory_space<vmem>>, vector<2x1xf32>
      tpu.vector_store %arg8[%c0_25, %c0_26], %30 {strides = array<i32>} : memref<2x1xf32, #tpu.memory_space<vmem>>, vector<2x1xf32>,
    } else {
    }
    return
  }
  func.func @transform_0(%arg0: i32) -> (i32, i32) {
    %c0_i32 = arith.constant 0 : i32
    %c0_i32_0 = arith.constant 0 : i32
    return %c0_i32, %arg0 : i32, i32
  }
  func.func @transform_1(%arg0: i32) -> (i32, i32) {
    %c0_i32 = arith.constant 0 : i32
    %c0_i32_0 = arith.constant 0 : i32
    return %arg0, %c0_i32 : i32, i32
  }
  func.func @transform_2(%arg0: i32) -> (i32, i32) {
    %c0_i32 = arith.constant 0 : i32
    %c0_i32_0 = arith.constant 0 : i32
    %c0_i32_1 = arith.constant 0 : i32
    return %c0_i32, %c0_i32_0 : i32, i32
  }
  func.func @transform_3(%arg0: i32) -> (i32, i32) {
    %c0_i32 = arith.constant 0 : i32
    %c0_i32_0 = arith.constant 0 : i32
    %c0_i32_1 = arith.constant 0 : i32
    return %c0_i32, %c0_i32_0 : i32, i32
  }
  func.func @transform_4(%arg0: i32) -> (i32, i32) {
    %c0_i32 = arith.constant 0 : i32
    %c0_i32_0 = arith.constant 0 : i32
    %c0_i32_1 = arith.constant 0 : i32
    return %c0_i32, %c0_i32_0 : i32, i32
  }
  func.func @transform_5(%arg0: i32) -> (i32, i32) {
    %c0_i32 = arith.constant 0 : i32
    %c0_i32_0 = arith.constant 0 : i32
    %c0_i32_1 = arith.constant 0 : i32
    return %c0_i32, %c0_i32_0 : i32, i32
  }
  func.func @transform_6(%arg0: i32) -> (i32, i32) {
    %c0_i32 = arith.constant 0 : i32
    %c0_i32_0 = arith.constant 0 : i32
    %c0_i32_1 = arith.constant 0 : i32
    return %c0_i32, %c0_i32_0 : i32, i32
  }
  func.func @transform_7(%arg0: i32) -> (i32, i32) {
    %c0_i32 = arith.constant 0 : i32
    %c0_i32_0 = arith.constant 0 : i32
    %c0_i32_1 = arith.constant 0 : i32
    return %c0_i32, %c0_i32_0 : i32, i32
  }
}

</mosaic_0001>

<bundles_post_ra>
// kernel: cnn_regressor_forward.3
= control target key start
LH: loop header
LB: loop body
LE: loop exit
PB: predicated region body
PF: predicated region fallthrough
CT: control target
= control target key end

     0   :  { %s4392_s0 = inlined_call_operand.vmem [shape: f32[2,12288], index: 0, kind: input, shape index: {}]   ;;  %s4393_s1 = inlined_call_operand.hbm [shape: bf16[12288,256], index: 1, kind: input, shape index: {}]   ;;  %s4394_s2 = inlined_call_operand.hbm [shape: f32[1,256], index: 2, kind: input, shape index: {}]   ;;  %s4395_s3 = inlined_call_operand.hbm [shape: f32[256,128], index: 3, kind: input, shape index: {}]   ;;  %s4396_s4 = inlined_call_operand.hbm [shape: f32[1,128], index: 4, kind: input, shape index: {}]   ;;  %s4397_s5 = inlined_call_operand.vmem [shape: f32[128,1], index: 5, kind: input, shape index: {}]   ;;  %s4398_s6 = inlined_call_operand.<no memory space> [shape: f32[1,1], index: 6, kind: input, shape index: {}]   ;;  %s4399_s7 = inlined_call_operand.vmem [shape: f32[2,1], index: 7, kind: output, shape index: {}]  }
   0x1   :  { %v12_v0 = vstv %s4398_s6 }
   0x2   :  { %13 = vst [vmem:[#allocation3] sm:$0x1] %v12_v0 }
   0x3   :  { %14 = vsyncpa [#allocation5], 0 }
   0x4   :  { %16 = vsyncpa [#allocation5 + $0x1], 0 }
   0x5   :  { %17 = vsyncpa [#allocation7], 0 }
   0x6   :  { %18 = vsyncpa [#allocation10], 0  ;;  %s3790_s26 = smov 0   ;;  %s3792_s27 = smov 0  }
   0x7   :  { %s3794_s28 = smov 0   ;;  %s3796_s29 = smov 0  }
   0x8 LB: > { %s3809_s6 = sadd.s32 4294967295, %s3734_s29   ;;  %p70_p0 = scmp.ne.s32.totalorder %s3726_s27, %s3722_s26  ;;  %s3734_s29 = sphi %s3796_s29, %s4418_s29   ;;  %s3730_s28 = sphi %s3794_s28, %s4417_s28   ;;  %s3726_s27 = sphi %s3792_s27, %s4416_s27   ;;  %s3722_s26 = sphi %s3790_s26, %s4415_s26  }
   0x9   : > { %p4400_p1 = scmp.eq.s32.totalorder %s3809_s6, 0  ;;  %p2664_p2 = scmp.ge.s32.totalorder %s3734_s29, 1 }
   0xa   : > { %p207_p3 = scmp.lt.s32.totalorder %s3734_s29, 7  ;;  %s3736_s9 = smov [#allocation6]  }
   0xb   : > { %p3818_p5 = por %p4400_p1, %p70_p0  ;;  %s220_s10 = sshll.u32 %s3736_s9, 4  ;;  %s221_s10 = int_to_ptr.vmem [resolvable:$true] %s220_s10 }
   0xc   : > { %p3822_p6 = pnand %p2664_p2, %p207_p3  ;;  %s3737_s11 = smov [#allocation8]  }
   0xd   : > { %s4403_s30 = scalar_select %p3818_p5, 1, 0 }
   0xe   : > { %s4404_s8 = scalar_select %p3822_p6, 1, 0 }
   0xf   : > { %p3127_p7 = pneg %p3822_p6  ;;  %s230_s12 = sshll.u32 %s3737_s11, 4  ;;  %s3834_s12 = int_to_ptr.vmem [resolvable:$true] %s230_s12 }
  0x10   : > { %s3738_s14 = smov [#allocation9]   ;;  %s3578_s18 = scalar_lea.hbm %s4394_s2, 32 }
  0x11   : > { %p3830_p8 = pnand %p3127_p7, %p4400_p1  ;;  %s3836_s15 = sshll.u32 %s3738_s14, 4  ;;  %s245_s15 = int_to_ptr.vmem [resolvable:$true] %s3836_s15 }
  0x12   : > { %p3579_p9 = scmp.ne.s32.totalorder %s4394_s2, %s3578_s18  ;;  %p3585_p13 = scmp.lt.u32.totalorder %s3578_s18, %s4394_s2 }
  0x13   : > { %p3846_p10 = pneg %p3830_p8 }
  0x15   : > { %p3581_p11 = pnand %p3846_p10, %p3579_p9 }
  0x17   : > { %p3582_p12 = pneg %p3581_p11 }
  0x19   : > { %p3587_p0 = pnand %p3585_p13, %p3582_p12 }
  0x1b   : > { %3590 = shalt.err (!%p3587_p0)
}
  0x1c   : > { %s3591_s24 = scalar_lea.vmem %s221_s10, 32  ;;  %p3599_p4 = scmp.lt.s32.totalorder %s221_s10, %s221_s10 }
  0x1d   : > { %p3592_p2 = scmp.ne.s32.totalorder %s221_s10, %s3591_s24  ;;  %p3600_p1 = scmp.lt.s32.totalorder %s3591_s24, %s3591_s24 }
  0x1f   : > { %p3594_p3 = pnand %p3592_p2, %p3846_p10  ;;  %p3601_p5 = por %p3600_p1, %p3599_p4 }
  0x21   : > { %p3595_p7 = pneg %p3594_p3 }
  0x23   : > { %p3602_p6 = pnand %p3601_p5, %p3595_p7 }
  0x25   : > { %3605 = shalt.err (!%p3602_p6)
}
  0x26   : > { %3130 = dma.hbm_to_vmem [thread:$0]  (!%p3830_p8), %s4394_s2, 32, %s221_s10, [#allocation7]  }
  0x27   : > { %s3606_s14 = scalar_lea.hbm %s4395_s3, 4096 }
  0x28   : > { %p3607_p9 = scmp.ne.s32.totalorder %s4395_s3, %s3606_s14  ;;  %p3613_p4 = scmp.lt.u32.totalorder %s3606_s14, %s4395_s3 }
  0x2a   : > { %p3609_p11 = pnand %p3607_p9, %p3846_p10 }
  0x2c   : > { %p3610_p1 = pneg %p3609_p11 }
  0x2e   : > { %p3615_p5 = pnand %p3613_p4, %p3610_p1 }
  0x30   : > { %3618 = shalt.err (!%p3615_p5)
}
  0x31   : > { %s3619_s10 = scalar_lea.vmem %s3834_s12, 4096  ;;  %p3627_p0 = scmp.lt.s32.totalorder %s3834_s12, %s3834_s12 }
  0x32   : > { %p3620_p6 = scmp.ne.s32.totalorder %s3834_s12, %s3619_s10  ;;  %p3628_p2 = scmp.lt.s32.totalorder %s3619_s10, %s3619_s10 }
  0x34   : > { %p3622_p12 = pnand %p3620_p6, %p3846_p10  ;;  %p3629_p3 = por %p3628_p2, %p3627_p0 }
  0x36   : > { %p3623_p13 = pneg %p3622_p12 }
  0x38   : > { %p3630_p7 = pnand %p3629_p3, %p3623_p13 }
  0x3a   : > { %3633 = shalt.err (!%p3630_p7)
}
  0x3b   : > { %s3739_s20 = smov 128   ;;  %s3740_s22 = smov 8  }
  0x3c   : > { %3133 = dma.hbm_to_vmem [thread:$0]  (!%p3830_p8), %s4395_s3, 4096, %s3834_s12, [#allocation7], %s3739_s20, %s3739_s20, %s3740_s22  }
  0x3d   : > { %s3634_s9 = scalar_lea.hbm %s4396_s4, 16 }
  0x3e   : > { %p3635_p9 = scmp.ne.s32.totalorder %s4396_s4, %s3634_s9  ;;  %p3641_p4 = scmp.lt.u32.totalorder %s3634_s9, %s4396_s4 }
  0x40   : > { %p3637_p11 = pnand %p3635_p9, %p3846_p10 }
  0x42   : > { %p3638_p1 = pneg %p3637_p11 }
  0x44   : > { %p3643_p5 = pnand %p3641_p4, %p3638_p1 }
  0x46   : > { %3646 = shalt.err (!%p3643_p5)
}
  0x47   : > { %s3647_s18 = scalar_lea.vmem %s245_s15, 16  ;;  %s3654_s12 = scalar_lea.vmem %s245_s15, 32 }
  0x48   : > { %p3648_p6 = scmp.ne.s32.totalorder %s245_s15, %s3647_s18  ;;  %p3655_p0 = scmp.lt.s32.totalorder %s245_s15, %s245_s15 }
  0x49   : > { %p3656_p2 = scmp.lt.s32.totalorder %s3654_s12, %s3647_s18 }
  0x4a   : > { %p3650_p12 = pnand %p3648_p6, %p3846_p10 }
  0x4b   : > { %p3657_p3 = por %p3656_p2, %p3655_p0 }
  0x4c   : > { %p3651_p13 = pneg %p3650_p12 }
  0x4e   : > { %p3658_p7 = pnand %p3657_p3, %p3651_p13 }
  0x50   : > { %3661 = shalt.err (!%p3658_p7)
}
  0x51   : > { %3136 = dma.hbm_to_vmem [thread:$0]  (!%p3830_p8), %s4396_s4, 16, %s245_s15, [#allocation10]  }
  0x52   : > { %s3908_s21 = sadd.s32 1, %s3734_s29   ;;  %s57_s24 = sadd.s32 1, %s3730_s28 }
  0x53   : > { %s54_s23 = ssub.s32 %s3734_s29, %s3908_s21  ;;  %p64_p9 = scmp.ne.s32.totalorder %s3730_s28, %s3726_s27 }
  0x54   : > { %p55_p10 = scmp.eq.s32.totalorder %s54_s23, 0  ;;  %p65_p11 = scmp.eq.s32.totalorder %s3734_s29, 0 }
  0x55   : > { %p3144_p1 = scmp.lt.s32.totalorder %s3734_s29, 6  ;;  %s270_s25 = sand.u32 1, %s3730_s28  }
  0x56   : > { %s3918_s13 = scalar_select %p55_p10, %s3730_s28, %s57_s24  }
  0x57   : > { %p66_p4 = por %p65_p11, %p64_p9  ;;  %s2669_s26 = sshll.u32 %s270_s25, 11 }
  0x58   : > { %s2943_s9 = sshll.u32 %s3734_s29, 15  ;;  %s274_s15 = scalar_lea.vmem [#allocation4], %s2669_s26 }
  0x59   : > { %s3925_s16 = scalar_lea.hbm %s4393_s1, %s2943_s9  ;;  %s282_s17 = sshll.u32 %s274_s15, 4  ;;  %s3927_s17 = int_to_ptr.vmem [resolvable:$true] %s282_s17 }
  0x5a   : > { %p3929_p8 = pnand %p3144_p1, %p66_p4  ;;  %s3933_s29 = scalar_lea.sflag [#allocation5], %s270_s25 }
  0x5b   : > { %s3662_s12 = scalar_lea.hbm %s3925_s16, 32768  ;;  %s3667_s23 = scalar_lea.hbm %s4393_s1, 196608 }
  0x5c   : > { %p3663_p5 = scmp.ne.s32.totalorder %s3925_s16, %s3662_s12  ;;  %p3664_p6 = pneg %p3929_p8 }
  0x5d   : > { %p3668_p0 = scmp.lt.u32.totalorder %s3925_s16, %s4393_s1  ;;  %p3669_p2 = scmp.lt.u32.totalorder %s3667_s23, %s3662_s12 }
  0x5e   : > { %p3665_p12 = pnand %p3664_p6, %p3663_p5  ;;  %p3671_p7 = scmp.lt.u32.totalorder %s3662_s12, %s3925_s16 }
  0x5f   : > { %p3670_p3 = por %p3669_p2, %p3668_p0 }
  0x60   : > { %p3666_p13 = pneg %p3665_p12 }
  0x61   : > { %p3672_p10 = por %p3671_p7, %p3670_p3 }
  0x63   : > { %p3673_p9 = pnand %p3672_p10, %p3666_p13 }
  0x65   : > { %3676 = shalt.err (!%p3673_p9)
}
  0x66   : > { %s3677_s25 = scalar_lea.vmem %s3927_s17, 32768  ;;  %s3741_s9 = smov [#allocation4]  }
  0x67   : > { %p3678_p11 = scmp.ne.s32.totalorder %s3927_s17, %s3677_s25  ;;  %s3682_s11 = sshll.u32 %s3741_s9, 4  ;;  %s3683_s11 = int_to_ptr.vmem [resolvable:$false] %s3682_s11 }
  0x68   : > { %s3684_s14 = scalar_lea.vmem %s3683_s11, 65536  ;;  %p3685_p5 = scmp.lt.s32.totalorder %s3927_s17, %s3683_s11 }
  0x69   : > { %p3680_p1 = pnand %p3678_p11, %p3664_p6  ;;  %p3686_p12 = scmp.lt.s32.totalorder %s3684_s14, %s3677_s25 }
  0x6b   : > { %p3681_p4 = pneg %p3680_p1  ;;  %p3687_p0 = por %p3686_p12, %p3685_p5 }
  0x6d   : > { %p3688_p2 = pnand %p3687_p0, %p3681_p4 }
  0x6f   : > { %3691 = shalt.err (!%p3688_p2)
}
  0x70   : > { %3140 = dma.hbm_to_vmem [thread:$0]  (!%p3929_p8), %s3925_s16, 32768, %s3927_s17, %s3933_s29, %s3739_s20, %s3739_s20, %s3740_s22  }
  0x71   : > { %p4408_p6 = scmp.ne.s32.totalorder %s4404_s8, 0 }
  0x72   : > { %s296_s15 = sand.u32 (!%p4408_p6), 1, %s3726_s27   ;;  %p4409_p13 = scmp.ne.s32.totalorder (!%p4408_p6), %s4403_s30, 0 }
  0x73   : > { %294 = sbr.rel (%p4408_p6) target bundleno = 1068 (0x42c), region = 48  ;;  %s2674_s12 = sshll.u32 (!%p4408_p6), %s296_s15, 11 }
  0x74   : > { %s297_s19 = scalar_lea.sflag (!%p4408_p6), [#allocation5], %s296_s15  ;;  %s3967_s10 = scalar_lea.vmem (!%p4408_p6), [#allocation4], %s2674_s12 }
  0x7a   : > { %3709 = dma.done.wait (%p4409_p13), %s297_s19, 32768  }
  0x7b   : > { %3711 = vsyncadd (%p4409_p13), %s297_s19, 4294934528  ;;  %p4410_p3 = scmp.eq.s32.totalorder %s3809_s6, 0 }
  0x7d   : > { %3713 = dma.done.wait (%p4410_p3), [#allocation7], 4128   ;;  %p4411_p8 = pmov %p4410_p3 }
  0x7e   : > { %p4412_p7 = pmov %p4410_p3 }
  0x7f   : > { %3715 = vsyncadd (%p4411_p8), [#allocation7], 4294963168 }
  0x80   : > { %3717 = dma.done.wait (%p4412_p7), [#allocation10], 16   ;;  %p4413_p10 = pmov %p4410_p3 }
  0x81   : > { %s2678_s8 = sshll.u32 %s3809_s6, 4  ;;  %p4414_p11 = scmp.ne.s32.totalorder %s3809_s6, 0 }
  0x82   : > { %3719 = vsyncadd (%p4413_p10), [#allocation10], 4294967280  ;;  %p344_p9 = scmp.lt.s32.totalorder %s2678_s8, 95  ;;  %v3742_v1 = vmov (!%p4414_p11), 0.0  }
  0x83   : > { %353 = sbr.rel (%p4414_p11) target bundleno = 138 (0x8a), region = 68  ;;  %354 = vst [vmem:[#allocation2] sm:$0xf] (!%p4414_p11), %v3742_v1 }
  0x84   : > { %s4420_s8 = smov (!%p344_p9, %s2678_s8), 95 }
  0x85   : > { %s2679_s20 = sshll.u32 %s4420_s8, 1 }
  0x86   : > { %s3985_s16 = scalar_lea.vmem %s4392_s0, %s2679_s20 }
  0x8a PF: > { %v3190_v2 = vld [vmem:[%s3967_s10 + $0x4] ss:$8 sps:$4 sm:$0xff]   ;;  %v3194_v4 = vld [vmem:[%s3967_s10] ss:$8 sps:$4 sm:$0xff]   ;;  %v3196_v6 = vld [vmem:[%s3967_s10 + $0x14] ss:$8 sps:$4 sm:$0xff]   ;;  %v368_v40 = vlaneseq }
  0x8b   : > { %v3192_v3 = vld [vmem:[%s3967_s10 + $0x404] ss:$8 sps:$4 sm:$0xff]   ;;  %2000 = vmatprep.subr.bf16.mxu1 %v3190_v2  ;;  %v3195_v5 = vld [vmem:[%s3967_s10 + $0x400] ss:$8 sps:$4 sm:$0xff]   ;;  %v3198_v7 = vld [vmem:[%s3967_s10 + $0x414] ss:$8 sps:$4 sm:$0xff]  }
  0x8c   : > { %2164 = vmatprep.subr.bf16.mxu0 %v3192_v3  ;;  %2001 = vmatpush1.bf16.msra.mxu1 %v3194_v4  ;;  %v3200_v8 = vld [vmem:[%s3967_s10 + $0x10] ss:$8 sps:$4 sm:$0xff]   ;;  %v3202_v10 = vld [vmem:[%s3967_s10 + $0x24] ss:$8 sps:$4 sm:$0xff]   ;;  %v3206_v12 = vld [vmem:[%s3967_s10 + $0x20] ss:$8 sps:$4 sm:$0xff]  }
  0x8d   : > { %2165 = vmatpush1.bf16.msra.mxu0 %v3195_v5  ;;  %2002 = vmatprep.subr.bf16.mxu1 %v3196_v6  ;;  %v3201_v9 = vld [vmem:[%s3967_s10 + $0x410] ss:$8 sps:$4 sm:$0xff]   ;;  %v3204_v11 = vld [vmem:[%s3967_s10 + $0x424] ss:$8 sps:$4 sm:$0xff]   ;;  %v3207_v13 = vld [vmem:[%s3967_s10 + $0x420] ss:$8 sps:$4 sm:$0xff]  }
  0x8e   : > { %2166 = vmatprep.subr.bf16.mxu0 %v3198_v7  ;;  %v3208_v14 = vld [vmem:[%s3967_s10 + $0x34] ss:$8 sps:$4 sm:$0xff]   ;;  %v3212_v16 = vld [vmem:[%s3967_s10 + $0x30] ss:$8 sps:$4 sm:$0xff]   ;;  %v3214_v18 = vld [vmem:[%s3967_s10 + $0x44] ss:$8 sps:$4 sm:$0xff]  }
  0x8f   : > { %v3210_v15 = vld [vmem:[%s3967_s10 + $0x434] ss:$8 sps:$4 sm:$0xff]   ;;  %v3213_v17 = vld [vmem:[%s3967_s10 + $0x430] ss:$8 sps:$4 sm:$0xff]   ;;  %v3216_v19 = vld [vmem:[%s3967_s10 + $0x444] ss:$8 sps:$4 sm:$0xff]  }
  0x90   : > { %2003 = vmatpush1.bf16.msra.mxu1 %v3200_v8  ;;  %v3218_v20 = vld [vmem:[%s3967_s10 + $0x40] ss:$8 sps:$4 sm:$0xff]   ;;  %v3220_v22 = vld [vmem:[%s3967_s10 + $0x54] ss:$8 sps:$4 sm:$0xff]   ;;  %v3224_v24 = vld [vmem:[%s3967_s10 + $0x50] ss:$8 sps:$4 sm:$0xff]  }
  0x91   : > { %2167 = vmatpush1.bf16.msra.mxu0 %v3201_v9  ;;  %2004 = vmatprep.subr.bf16.mxu1 %v3202_v10  ;;  %v3219_v21 = vld [vmem:[%s3967_s10 + $0x440] ss:$8 sps:$4 sm:$0xff]   ;;  %v3222_v23 = vld [vmem:[%s3967_s10 + $0x454] ss:$8 sps:$4 sm:$0xff]   ;;  %v3225_v25 = vld [vmem:[%s3967_s10 + $0x450] ss:$8 sps:$4 sm:$0xff]  }
  0x92   : > { %2168 = vmatprep.subr.bf16.mxu0 %v3204_v11  ;;  %v3226_v26 = vld [vmem:[%s3967_s10 + $0x64] ss:$8 sps:$4 sm:$0xff]   ;;  %v3230_v28 = vld [vmem:[%s3967_s10 + $0x60] ss:$8 sps:$4 sm:$0xff]   ;;  %v3232_v30 = vld [vmem:[%s3967_s10 + $0x74] ss:$8 sps:$4 sm:$0xff]  }
  0x93   : > { %v3228_v27 = vld [vmem:[%s3967_s10 + $0x464] ss:$8 sps:$4 sm:$0xff]   ;;  %v3231_v29 = vld [vmem:[%s3967_s10 + $0x460] ss:$8 sps:$4 sm:$0xff]   ;;  %v3234_v31 = vld [vmem:[%s3967_s10 + $0x474] ss:$8 sps:$4 sm:$0xff]  }
  0x94   : > { %2005 = vmatpush1.bf16.msra.mxu1 %v3206_v12  ;;  %v3236_v32 = vld [vmem:[%s3967_s10 + $0x70] ss:$8 sps:$4 sm:$0xff]   ;;  %v3238_v34 = vld [vmem:[%s3967_s10 + $0x84] ss:$8 sps:$4 sm:$0xff]   ;;  %v3242_v36 = vld [vmem:[%s3967_s10 + $0x80] ss:$8 sps:$4 sm:$0xff]  }
  0x95   : > { %2169 = vmatpush1.bf16.msra.mxu0 %v3207_v13  ;;  %2006 = vmatprep.subr.bf16.mxu1 %v3208_v14  ;;  %v3237_v33 = vld [vmem:[%s3967_s10 + $0x470] ss:$8 sps:$4 sm:$0xff]   ;;  %v3240_v35 = vld [vmem:[%s3967_s10 + $0x484] ss:$8 sps:$4 sm:$0xff]   ;;  %v3243_v37 = vld [vmem:[%s3967_s10 + $0x480] ss:$8 sps:$4 sm:$0xff]  }
  0x96   : > { %2170 = vmatprep.subr.bf16.mxu0 %v3210_v15  ;;  %v3743_v38 = vmov 1983009808   ;;  %v3244_v41 = vld [vmem:[%s3967_s10 + $0x94] ss:$8 sps:$4 sm:$0xff]   ;;  %v3248_v43 = vld [vmem:[%s3967_s10 + $0x90] ss:$8 sps:$4 sm:$0xff]  }
  0x97   : > { %v366_v39 = vunpack.c.l.s4 %v3743_v38  ;;  %v3246_v42 = vld [vmem:[%s3967_s10 + $0x494] ss:$8 sps:$4 sm:$0xff]   ;;  %v4028_v45 = vshrl.u32 %v368_v40, 7  ;;  %v3249_v46 = vld [vmem:[%s3967_s10 + $0x490] ss:$8 sps:$4 sm:$0xff]   ;;  %p2937_p1 = scmp.ne.s32.totalorder %s3809_s6, 5 }
  0x98   : > { %2007 = vmatpush1.bf16.msra.mxu1 %v3212_v16  ;;  %v3250_v47 = vld [vmem:[%s3967_s10 + $0xa4] ss:$8 sps:$4 sm:$0xff]   ;;  %v3254_v49 = vld [vmem:[%s3967_s10 + $0xa0] ss:$8 sps:$4 sm:$0xff]   ;;  %v3256_v52 = vld [vmem:[%s3967_s10 + $0xb4] ss:$8 sps:$4 sm:$0xff]  }
  0x99   : > { %2171 = vmatpush1.bf16.msra.mxu0 %v3213_v17  ;;  %2008 = vmatprep.subr.bf16.mxu1 %v3214_v18  ;;  %v367_v44 = vunpack.c.0.s8 %v366_v39  ;;  %v3252_v48 = vld [vmem:[%s3967_s10 + $0x4a4] ss:$8 sps:$4 sm:$0xff]   ;;  %v3255_v50 = vld [vmem:[%s3967_s10 + $0x4a0] ss:$8 sps:$4 sm:$0xff]   ;;  %v3258_v53 = vld [vmem:[%s3967_s10 + $0x4b4] ss:$8 sps:$4 sm:$0xff]  }
  0x9a   : > { %2172 = vmatprep.subr.bf16.mxu0 %v3216_v19  ;;  %v356_v54 = vld [vmem:[%s3985_s16] sm:$0xff]  ;;  %v358_v58 = vld [vmem:[%s3985_s16 + $0x10] sm:$0xff]  ;;  %vm3745_vm0 = vmmov (!%p2937_p1), 0   ;;  %vm2581_vm1 = vcmask (!%p2937_p1), 1024  }
  0x9b   : > { %v4036_v51 = vsub.s32 %v367_v44, %v4028_v45  ;;  %v3260_v55 = vld [vmem:[%s3967_s10 + $0xb0] ss:$8 sps:$4 sm:$0xff]   ;;  %v3262_v59 = vld [vmem:[%s3967_s10 + $0xc4] ss:$8 sps:$4 sm:$0xff]   ;;  %v3266_v1 = vld [vmem:[%s3967_s10 + $0xc0] ss:$8 sps:$4 sm:$0xff]   ;;  %v364_v10 = vcombine.high %v356_v54, %v356_v54  ;;  %v398_v11 = vcombine.high %v358_v58, %v358_v58 }
  0x9c   : > { %2009 = vmatpush1.bf16.msra.mxu1 %v3218_v20  ;;  %v3261_v57 = vld [vmem:[%s3967_s10 + $0x4b0] ss:$8 sps:$4 sm:$0xff]   ;;  %v3264_v60 = vld [vmem:[%s3967_s10 + $0x4c4] ss:$8 sps:$4 sm:$0xff]   ;;  %v3267_v2 = vld [vmem:[%s3967_s10 + $0x4c0] ss:$8 sps:$4 sm:$0xff]  }
  0x9d   : > { %2173 = vmatpush1.bf16.msra.mxu0 %v3219_v21  ;;  %2010 = vmatprep.subr.bf16.mxu1 %v3220_v22  ;;  %v4043_v56 = vrot.slane %v356_v54, %v4036_v51  ;;  %v405_v62 = vrot.slane %v358_v58, %v4036_v51  ;;  %v3268_v3 = vld [vmem:[%s3967_s10 + $0xd4] ss:$8 sps:$4 sm:$0xff]   ;;  %v3272_v6 = vld [vmem:[%s3967_s10 + $0xd0] ss:$8 sps:$4 sm:$0xff]   ;;  %v3274_v8 = vld [vmem:[%s3967_s10 + $0xe4] ss:$8 sps:$4 sm:$0xff]   ;;  %v4065_v16 = vrot.slane %v364_v10, %v4036_v51 }
  0x9e   : > { %2174 = vmatprep.subr.bf16.mxu0 %v3222_v23  ;;  %v3270_v4 = vld [vmem:[%s3967_s10 + $0x4d4] ss:$8 sps:$4 sm:$0xff]   ;;  %v3273_v7 = vld [vmem:[%s3967_s10 + $0x4d0] ss:$8 sps:$4 sm:$0xff]   ;;  %v3276_v9 = vld [vmem:[%s3967_s10 + $0x4e4] ss:$8 sps:$4 sm:$0xff]   ;;  %v4068_v17 = vrot.slane %v398_v11, %v4036_v51 }
  0x9f   : > { %v379_v61 = vcombine.high %v4043_v56, %v4043_v56  ;;  %v413_v0 = vcombine.high %v405_v62, %v405_v62  ;;  %v3278_v12 = vld [vmem:[%s3967_s10 + $0xe0] ss:$8 sps:$4 sm:$0xff]   ;;  %v3280_v14 = vld [vmem:[%s3967_s10 + $0xf4] ss:$8 sps:$4 sm:$0xff]   ;;  %v3284_v18 = vld [vmem:[%s3967_s10 + $0xf0] ss:$8 sps:$4 sm:$0xff]   ;;  %v380_v22 = vcombine.high %v4065_v16, %v4065_v16 }
  0xa0   : > { %2011 = vmatpush1.bf16.msra.mxu1 %v3224_v24  ;;  %v3279_v13 = vld [vmem:[%s3967_s10 + $0x4e0] ss:$8 sps:$4 sm:$0xff]   ;;  %v3282_v15 = vld [vmem:[%s3967_s10 + $0x4f4] ss:$8 sps:$4 sm:$0xff]   ;;  %v3285_v19 = vld [vmem:[%s3967_s10 + $0x4f0] ss:$8 sps:$4 sm:$0xff]   ;;  %v414_v23 = vcombine.high %v4068_v17, %v4068_v17  ;;  %v448_v24 = vpack.c.bf16 %v4043_v56, %v4043_v56 }
  0xa1   : > { %2175 = vmatpush1.bf16.msra.mxu0 %v3225_v25  ;;  %2012 = vmatprep.subr.bf16.mxu1 %v3226_v26  ;;  %v449_v63 = vpack.c.bf16 %v379_v61, %v379_v61  ;;  %v457_v5 = vpack.c.bf16 %v413_v0, %v413_v0  ;;  %v3289_v20 = vld [vmem:[%s3967_s10 + $0x104] ss:$8 sps:$4 sm:$0xff]   ;;  %v456_v25 = vpack.c.bf16 %v405_v62, %v405_v62  ;;  %v3287_v26 = vld [vmem:[%s3967_s10 + $0x100] ss:$8 sps:$4 sm:$0xff]   ;;  %v3308_v38 = vld [vmem:[%s3967_s10 + $0x134] ss:$8 sps:$4 sm:$0xff]  }
  0xa2   : > { %2176 = vmatprep.subr.bf16.mxu0 %v3228_v27  ;;  %v3293_v21 = vld [vmem:[%s3967_s10 + $0x504] ss:$8 sps:$4 sm:$0xff]   ;;  %v3291_v27 = vld [vmem:[%s3967_s10 + $0x500] ss:$8 sps:$4 sm:$0xff]   ;;  %v3311_v39 = vld [vmem:[%s3967_s10 + $0x534] ss:$8 sps:$4 sm:$0xff]  }
  0xa3   : > { %2032 = vmatprep.mubr.bf16.mxu1 %v449_v63  ;;  %2196 = vmatprep.mubr.bf16.mxu0 %v457_v5  ;;  %v3306_v40 = vld [vmem:[%s3967_s10 + $0x130] ss:$8 sps:$4 sm:$0xff]   ;;  %v3312_v44 = vld [vmem:[%s3967_s10 + $0x140] ss:$8 sps:$4 sm:$0xff]   ;;  %v3332_v56 = vld [vmem:[%s3967_s10 + $0x174] ss:$8 sps:$4 sm:$0xff]  }
  0xa4   : > { %2013 = vmatpush1.bf16.msra.mxu1 %v3230_v28  ;;  %v3296_v28 = vld [vmem:[%s3967_s10 + $0x114] ss:$8 sps:$4 sm:$0xff]   ;;  %v3324_v54 = vld [vmem:[%s3967_s10 + $0x160] ss:$8 sps:$4 sm:$0xff]   ;;  %v3330_v58 = vld [vmem:[%s3967_s10 + $0x170] ss:$8 sps:$4 sm:$0xff]  }
  0xa5   : > { %2177 = vmatpush1.bf16.msra.mxu0 %v3231_v29  ;;  %2014 = vmatprep.subr.bf16.mxu1 %v3232_v30  ;;  %v3299_v29 = vld [vmem:[%s3967_s10 + $0x514] ss:$8 sps:$4 sm:$0xff]   ;;  %v451_v30 = vpack.c.bf16 %v380_v22, %v380_v22  ;;  %v3341_v61 = vld [vmem:[%s3967_s10 + $0x584] ss:$8 sps:$4 sm:$0xff]   ;;  %v3336_v62 = vld [vmem:[%s3967_s10 + $0x180] ss:$8 sps:$4 sm:$0xff]  }
  0xa6   : > { %2178 = vmatprep.subr.bf16.mxu0 %v3234_v31  ;;  %v459_v31 = vpack.c.bf16 %v414_v23, %v414_v23  ;;  %v3339_v63 = vld [vmem:[%s3967_s10 + $0x580] ss:$8 sps:$4 sm:$0xff]   ;;  %v3344_v0 = vld [vmem:[%s3967_s10 + $0x194] ss:$8 sps:$4 sm:$0xff]   ;;  %v3353_v5 = vld [vmem:[%s3967_s10 + $0x5a4] ss:$8 sps:$4 sm:$0xff]  }
  0xa7   : > { %v3354_v10 = vld [vmem:[%s3967_s10 + $0x1b0] ss:$8 sps:$4 sm:$0xff]   ;;  %v3374_v22 = vld [vmem:[%s3967_s10 + $0x1e4] ss:$8 sps:$4 sm:$0xff]  }
  0xa8   : > { %2015 = vmatpush1.bf16.msra.mxu1 %v3236_v32  ;;  %v3294_v32 = vld [vmem:[%s3967_s10 + $0x110] ss:$8 sps:$4 sm:$0xff]   ;;  %v3377_v23 = vld [vmem:[%s3967_s10 + $0x5e4] ss:$8 sps:$4 sm:$0xff]  }
  0xa9   : > { %2179 = vmatpush1.bf16.msra.mxu0 %v3237_v33  ;;  %2016 = vmatprep.subr.bf16.mxu1 %v3238_v34  ;;  %v3297_v33 = vld [vmem:[%s3967_s10 + $0x510] ss:$8 sps:$4 sm:$0xff]   ;;  %v3302_v34 = vld [vmem:[%s3967_s10 + $0x124] ss:$8 sps:$4 sm:$0xff]  }
  0xaa   : > { %2180 = vmatprep.subr.bf16.mxu0 %v3240_v35  ;;  %v3305_v35 = vld [vmem:[%s3967_s10 + $0x524] ss:$8 sps:$4 sm:$0xff]   ;;  %v3357_v11 = vld [vmem:[%s3967_s10 + $0x5b0] ss:$8 sps:$4 sm:$0xff]  }
  0xac   : > { %2017 = vmatpush1.bf16.msra.mxu1 %v3242_v36  ;;  %v3300_v36 = vld [vmem:[%s3967_s10 + $0x120] ss:$8 sps:$4 sm:$0xff]  }
  0xad   : > { %2181 = vmatpush1.bf16.msra.mxu0 %v3243_v37  ;;  %2018 = vmatprep.subr.bf16.mxu1 %v3244_v41  ;;  %v3303_v37 = vld [vmem:[%s3967_s10 + $0x520] ss:$8 sps:$4 sm:$0xff]   ;;  %v3309_v41 = vld [vmem:[%s3967_s10 + $0x530] ss:$8 sps:$4 sm:$0xff]  }
  0xae   : > { %2182 = vmatprep.subr.bf16.mxu0 %v3246_v42  ;;  %v3314_v42 = vld [vmem:[%s3967_s10 + $0x144] ss:$8 sps:$4 sm:$0xff]  }
  0xb0   : > { %2019 = vmatpush1.bf16.msra.mxu1 %v3248_v43  ;;  %v3317_v43 = vld [vmem:[%s3967_s10 + $0x544] ss:$8 sps:$4 sm:$0xff]  }
  0xb1   : > { %2183 = vmatpush1.bf16.msra.mxu0 %v3249_v46  ;;  %2020 = vmatprep.subr.bf16.mxu1 %v3250_v47  ;;  %v3315_v46 = vld [vmem:[%s3967_s10 + $0x540] ss:$8 sps:$4 sm:$0xff]   ;;  %v3320_v47 = vld [vmem:[%s3967_s10 + $0x154] ss:$8 sps:$4 sm:$0xff]  }
  0xb2   : > { %2184 = vmatprep.subr.bf16.mxu0 %v3252_v48  ;;  %v3323_v48 = vld [vmem:[%s3967_s10 + $0x554] ss:$8 sps:$4 sm:$0xff]  }
  0xb4   : > { %2021 = vmatpush1.bf16.msra.mxu1 %v3254_v49  ;;  %v3318_v49 = vld [vmem:[%s3967_s10 + $0x150] ss:$8 sps:$4 sm:$0xff]  }
  0xb5   : > { %2185 = vmatpush1.bf16.msra.mxu0 %v3255_v50  ;;  %2022 = vmatprep.subr.bf16.mxu1 %v3256_v52  ;;  %v3321_v50 = vld [vmem:[%s3967_s10 + $0x550] ss:$8 sps:$4 sm:$0xff]   ;;  %v3326_v52 = vld [vmem:[%s3967_s10 + $0x164] ss:$8 sps:$4 sm:$0xff]  }
  0xb6   : > { %2186 = vmatprep.subr.bf16.mxu0 %v3258_v53  ;;  %v3329_v53 = vld [vmem:[%s3967_s10 + $0x564] ss:$8 sps:$4 sm:$0xff]  }
  0xb8   : > { %2023 = vmatpush1.bf16.msra.mxu1 %v3260_v55  ;;  %v3327_v55 = vld [vmem:[%s3967_s10 + $0x560] ss:$8 sps:$4 sm:$0xff]  }
  0xb9   : > { %2187 = vmatpush1.bf16.msra.mxu0 %v3261_v57  ;;  %2024 = vmatprep.subr.bf16.mxu1 %v3262_v59  ;;  %v3335_v57 = vld [vmem:[%s3967_s10 + $0x574] ss:$8 sps:$4 sm:$0xff]   ;;  %v3333_v59 = vld [vmem:[%s3967_s10 + $0x570] ss:$8 sps:$4 sm:$0xff]  }
  0xba   : > { %2188 = vmatprep.subr.bf16.mxu0 %v3264_v60  ;;  %v3338_v60 = vld [vmem:[%s3967_s10 + $0x184] ss:$8 sps:$4 sm:$0xff]  }
  0xbc   : > { %2025 = vmatpush1.bf16.msra.mxu1 %v3266_v1  ;;  %v3347_v1 = vld [vmem:[%s3967_s10 + $0x594] ss:$8 sps:$4 sm:$0xff]  }
  0xbd   : > { %2189 = vmatpush1.bf16.msra.mxu0 %v3267_v2  ;;  %2026 = vmatprep.subr.bf16.mxu1 %v3268_v3  ;;  %v3342_v2 = vld [vmem:[%s3967_s10 + $0x190] ss:$8 sps:$4 sm:$0xff]  }
  0xbe   : > { %2190 = vmatprep.subr.bf16.mxu0 %v3270_v4  ;;  %v3345_v3 = vld [vmem:[%s3967_s10 + $0x590] ss:$8 sps:$4 sm:$0xff]   ;;  %v3350_v4 = vld [vmem:[%s3967_s10 + $0x1a4] ss:$8 sps:$4 sm:$0xff]  }
  0xc0   : > { %2027 = vmatpush1.bf16.msra.mxu1 %v3272_v6  ;;  %v3348_v6 = vld [vmem:[%s3967_s10 + $0x1a0] ss:$8 sps:$4 sm:$0xff]  }
  0xc1   : > { %2191 = vmatpush1.bf16.msra.mxu0 %v3273_v7  ;;  %2028 = vmatprep.subr.bf16.mxu1 %v3274_v8  ;;  %v3351_v7 = vld [vmem:[%s3967_s10 + $0x5a0] ss:$8 sps:$4 sm:$0xff]   ;;  %v3356_v8 = vld [vmem:[%s3967_s10 + $0x1b4] ss:$8 sps:$4 sm:$0xff]  }
  0xc2   : > { %2192 = vmatprep.subr.bf16.mxu0 %v3276_v9  ;;  %v3359_v9 = vld [vmem:[%s3967_s10 + $0x5b4] ss:$8 sps:$4 sm:$0xff]  }
  0xc4   : > { %2029 = vmatpush1.bf16.msra.mxu1 %v3278_v12  ;;  %v3362_v12 = vld [vmem:[%s3967_s10 + $0x1c4] ss:$8 sps:$4 sm:$0xff]  }
  0xc5   : > { %2193 = vmatpush1.bf16.msra.mxu0 %v3279_v13  ;;  %2030 = vmatprep.subr.bf16.mxu1 %v3280_v14  ;;  %v3365_v13 = vld [vmem:[%s3967_s10 + $0x5c4] ss:$8 sps:$4 sm:$0xff]   ;;  %v3360_v14 = vld [vmem:[%s3967_s10 + $0x1c0] ss:$8 sps:$4 sm:$0xff]  }
  0xc6   : > { %2194 = vmatprep.subr.bf16.mxu0 %v3282_v15  ;;  %v3363_v15 = vld [vmem:[%s3967_s10 + $0x5c0] ss:$8 sps:$4 sm:$0xff]  }
  0xc8   : > { %2031 = vmatpush1.bf16.msra.mxu1 %v3284_v18  ;;  %v3368_v18 = vld [vmem:[%s3967_s10 + $0x1d4] ss:$8 sps:$4 sm:$0xff]  }
  0xc9   : > { %2195 = vmatpush1.bf16.msra.mxu0 %v3285_v19  ;;  %2041 = vmatprep.subr.bf16.mxu1 %v3289_v20  ;;  %v3371_v19 = vld [vmem:[%s3967_s10 + $0x5d4] ss:$8 sps:$4 sm:$0xff]   ;;  %v3366_v20 = vld [vmem:[%s3967_s10 + $0x1d0] ss:$8 sps:$4 sm:$0xff]  }
  0xca   : > { %2205 = vmatprep.subr.bf16.mxu0 %v3293_v21  ;;  %v3369_v21 = vld [vmem:[%s3967_s10 + $0x5d0] ss:$8 sps:$4 sm:$0xff]  }
  0xcb   : > { %2033 = vmatmul.mubr.bf16.vlgmr.msra.gmra.mrb[0].mxu1 %v448_v24  ;;  %v3372_v24 = vld [vmem:[%s3967_s10 + $0x1e0] ss:$8 sps:$4 sm:$0xff]  }
  0xcc   : > { %2197 = vmatmul.mubr.bf16.vlgmr.msra.gmra.mrb[0].mxu0 %v456_v25  ;;  %2042 = vmatpush1.bf16.msra.mxu1 %v3287_v26  ;;  %v3375_v25 = vld [vmem:[%s3967_s10 + $0x5e0] ss:$8 sps:$4 sm:$0xff]   ;;  %v3380_v26 = vld [vmem:[%s3967_s10 + $0x1f4] ss:$8 sps:$4 sm:$0xff]  }
  0xcd   : > { %2206 = vmatpush1.bf16.msra.mxu0 %v3291_v27  ;;  %2043 = vmatprep.subr.bf16.mxu1 %v3296_v28  ;;  %v3383_v27 = vld [vmem:[%s3967_s10 + $0x5f4] ss:$8 sps:$4 sm:$0xff]   ;;  %v3378_v28 = vld [vmem:[%s3967_s10 + $0x1f0] ss:$8 sps:$4 sm:$0xff]  }
  0xce   : > { %2207 = vmatprep.subr.bf16.mxu0 %v3299_v29  ;;  %2073 = vmatprep.mubr.bf16.mxu1 %v451_v30  ;;  %v3381_v29 = vld [vmem:[%s3967_s10 + $0x5f0] ss:$8 sps:$4 sm:$0xff]   ;;  %v3386_v30 = vld [vmem:[%s3967_s10 + $0x204] ss:$8 sps:$4 sm:$0xff]  }
  0xcf   : > { %2237 = vmatprep.mubr.bf16.mxu0 %v459_v31  ;;  %v3389_v31 = vld [vmem:[%s3967_s10 + $0x604] ss:$8 sps:$4 sm:$0xff]  }
  0xd0   : > { %2044 = vmatpush1.bf16.msra.mxu1 %v3294_v32  ;;  %v3384_v32 = vld [vmem:[%s3967_s10 + $0x200] ss:$8 sps:$4 sm:$0xff]  }
  0xd1   : > { %2208 = vmatpush1.bf16.msra.mxu0 %v3297_v33  ;;  %2045 = vmatprep.subr.bf16.mxu1 %v3302_v34  ;;  %v450_v33 = vpack.c.bf16 %v4065_v16, %v4065_v16  ;;  %v458_v34 = vpack.c.bf16 %v4068_v17, %v4068_v17  ;;  %v4160_v16 = vld [vmem:[%s3985_s16 + $0x18] sm:$0xff] }
  0xd2   : > { %2209 = vmatprep.subr.bf16.mxu0 %v3305_v35  ;;  %v3387_v35 = vld [vmem:[%s3967_s10 + $0x600] ss:$8 sps:$4 sm:$0xff]   ;;  %v3390_v17 = vld [vmem:[%s3967_s10 + $0x210] ss:$8 sps:$4 sm:$0xff]  }
  0xd4   : > { %2046 = vmatpush1.bf16.msra.mxu1 %v3300_v36  ;;  %v3392_v36 = vld [vmem:[%s3967_s10 + $0x214] ss:$8 sps:$4 sm:$0xff]  }
  0xd5   : > { %2210 = vmatpush1.bf16.msra.mxu0 %v3303_v37  ;;  %2047 = vmatprep.subr.bf16.mxu1 %v3308_v38  ;;  %v4152_v37 = vld [vmem:[%s3985_s16 + $0x8] sm:$0xff]  ;;  %v3395_v38 = vld [vmem:[%s3967_s10 + $0x614] ss:$8 sps:$4 sm:$0xff]  }
  0xd6   : > { %2211 = vmatprep.subr.bf16.mxu0 %v3311_v39  ;;  %v4157_v39 = vrot.slane %v4152_v37, %v4036_v51 }
  0xd8   : > { %2048 = vmatpush1.bf16.msra.mxu1 %v3306_v40  ;;  %v3393_v40 = vld [vmem:[%s3967_s10 + $0x610] ss:$8 sps:$4 sm:$0xff]  }
  0xd9   : > { %2212 = vmatpush1.bf16.msra.mxu0 %v3309_v41  ;;  %2049 = vmatprep.subr.bf16.mxu1 %v3314_v42  ;;  %v396_v41 = vcombine.high %v4157_v39, %v4157_v39  ;;  %v4168_v42 = vrot.slane %v4160_v16, %v4036_v51 }
  0xda   : > { %2213 = vmatprep.subr.bf16.mxu0 %v3317_v43  ;;  %v3398_v43 = vld [vmem:[%s3967_s10 + $0x224] ss:$8 sps:$4 sm:$0xff]  }
  0xdc   : > { %2050 = vmatpush1.bf16.msra.mxu1 %v3312_v44  ;;  %v3401_v44 = vld [vmem:[%s3967_s10 + $0x624] ss:$8 sps:$4 sm:$0xff]  }
  0xdd   : > { %2214 = vmatpush1.bf16.msra.mxu0 %v3315_v46  ;;  %2051 = vmatprep.subr.bf16.mxu1 %v3320_v47  ;;  %v453_v46 = vpack.c.bf16 %v396_v41, %v396_v41  ;;  %v430_v47 = vcombine.high %v4168_v42, %v4168_v42  ;;  %v3476_v41 = vld [vmem:[%s3967_s10 + $0x2f4] ss:$8 sps:$4 sm:$0xff]  }
  0xde   : > { %2215 = vmatprep.subr.bf16.mxu0 %v3323_v48  ;;  %v3396_v48 = vld [vmem:[%s3967_s10 + $0x220] ss:$8 sps:$4 sm:$0xff]  }
  0xe0   : > { %2052 = vmatpush1.bf16.msra.mxu1 %v3318_v49  ;;  %v3399_v49 = vld [vmem:[%s3967_s10 + $0x620] ss:$8 sps:$4 sm:$0xff]  }
  0xe1   : > { %2216 = vmatpush1.bf16.msra.mxu0 %v3321_v50  ;;  %2053 = vmatprep.subr.bf16.mxu1 %v3326_v52  ;;  %v461_v50 = vpack.c.bf16 %v430_v47, %v430_v47  ;;  %v3404_v52 = vld [vmem:[%s3967_s10 + $0x234] ss:$8 sps:$4 sm:$0xff]   ;;  %v3482_v47 = vld [vmem:[%s3967_s10 + $0x304] ss:$8 sps:$4 sm:$0xff]  }
  0xe2   : > { %2217 = vmatprep.subr.bf16.mxu0 %v3329_v53  ;;  %v3407_v53 = vld [vmem:[%s3967_s10 + $0x634] ss:$8 sps:$4 sm:$0xff]  }
  0xe4   : > { %2054 = vmatpush1.bf16.msra.mxu1 %v3324_v54  ;;  %v3402_v54 = vld [vmem:[%s3967_s10 + $0x230] ss:$8 sps:$4 sm:$0xff]  }
  0xe5   : > { %2218 = vmatpush1.bf16.msra.mxu0 %v3327_v55  ;;  %2055 = vmatprep.subr.bf16.mxu1 %v3332_v56  ;;  %v3405_v55 = vld [vmem:[%s3967_s10 + $0x630] ss:$8 sps:$4 sm:$0xff]   ;;  %v3410_v56 = vld [vmem:[%s3967_s10 + $0x244] ss:$8 sps:$4 sm:$0xff]  }
  0xe6   : > { %2219 = vmatprep.subr.bf16.mxu0 %v3335_v57  ;;  %v3413_v57 = vld [vmem:[%s3967_s10 + $0x644] ss:$8 sps:$4 sm:$0xff]  }
  0xe8   : > { %2056 = vmatpush1.bf16.msra.mxu1 %v3330_v58  ;;  %v3408_v58 = vld [vmem:[%s3967_s10 + $0x240] ss:$8 sps:$4 sm:$0xff]  }
  0xe9   : > { %2220 = vmatpush1.bf16.msra.mxu0 %v3333_v59  ;;  %2057 = vmatprep.subr.bf16.mxu1 %v3338_v60  ;;  %v3411_v59 = vld [vmem:[%s3967_s10 + $0x640] ss:$8 sps:$4 sm:$0xff]   ;;  %v3416_v60 = vld [vmem:[%s3967_s10 + $0x254] ss:$8 sps:$4 sm:$0xff]  }
  0xea   : > { %2221 = vmatprep.subr.bf16.mxu0 %v3341_v61  ;;  %v3419_v61 = vld [vmem:[%s3967_s10 + $0x654] ss:$8 sps:$4 sm:$0xff]  }
  0xec   : > { %2058 = vmatpush1.bf16.msra.mxu1 %v3336_v62  ;;  %v3414_v62 = vld [vmem:[%s3967_s10 + $0x250] ss:$8 sps:$4 sm:$0xff]  }
  0xed   : > { %2222 = vmatpush1.bf16.msra.mxu0 %v3339_v63  ;;  %2059 = vmatprep.subr.bf16.mxu1 %v3344_v0  ;;  %v3417_v63 = vld [vmem:[%s3967_s10 + $0x650] ss:$8 sps:$4 sm:$0xff]   ;;  %v3422_v0 = vld [vmem:[%s3967_s10 + $0x264] ss:$8 sps:$4 sm:$0xff]  }
  0xee   : > { %2223 = vmatprep.subr.bf16.mxu0 %v3347_v1  ;;  %v3425_v1 = vld [vmem:[%s3967_s10 + $0x664] ss:$8 sps:$4 sm:$0xff]  }
  0xf0   : > { %2060 = vmatpush1.bf16.msra.mxu1 %v3342_v2  ;;  %v3420_v2 = vld [vmem:[%s3967_s10 + $0x260] ss:$8 sps:$4 sm:$0xff]  }
  0xf1   : > { %2224 = vmatpush1.bf16.msra.mxu0 %v3345_v3  ;;  %2061 = vmatprep.subr.bf16.mxu1 %v3350_v4  ;;  %v3423_v3 = vld [vmem:[%s3967_s10 + $0x660] ss:$8 sps:$4 sm:$0xff]   ;;  %v3428_v4 = vld [vmem:[%s3967_s10 + $0x274] ss:$8 sps:$4 sm:$0xff]  }
  0xf2   : > { %2225 = vmatprep.subr.bf16.mxu0 %v3353_v5  ;;  %v3431_v5 = vld [vmem:[%s3967_s10 + $0x674] ss:$8 sps:$4 sm:$0xff]  }
  0xf4   : > { %2062 = vmatpush1.bf16.msra.mxu1 %v3348_v6  ;;  %v3426_v6 = vld [vmem:[%s3967_s10 + $0x270] ss:$8 sps:$4 sm:$0xff]  }
  0xf5   : > { %2226 = vmatpush1.bf16.msra.mxu0 %v3351_v7  ;;  %2063 = vmatprep.subr.bf16.mxu1 %v3356_v8  ;;  %v3429_v7 = vld [vmem:[%s3967_s10 + $0x670] ss:$8 sps:$4 sm:$0xff]   ;;  %v3434_v8 = vld [vmem:[%s3967_s10 + $0x284] ss:$8 sps:$4 sm:$0xff]  }
  0xf6   : > { %2227 = vmatprep.subr.bf16.mxu0 %v3359_v9  ;;  %v3437_v9 = vld [vmem:[%s3967_s10 + $0x684] ss:$8 sps:$4 sm:$0xff]  }
  0xf8   : > { %2064 = vmatpush1.bf16.msra.mxu1 %v3354_v10  ;;  %v3432_v10 = vld [vmem:[%s3967_s10 + $0x280] ss:$8 sps:$4 sm:$0xff]  }
  0xf9   : > { %2228 = vmatpush1.bf16.msra.mxu0 %v3357_v11  ;;  %2065 = vmatprep.subr.bf16.mxu1 %v3362_v12  ;;  %v3435_v11 = vld [vmem:[%s3967_s10 + $0x680] ss:$8 sps:$4 sm:$0xff]   ;;  %v3440_v12 = vld [vmem:[%s3967_s10 + $0x294] ss:$8 sps:$4 sm:$0xff]  }
  0xfa   : > { %2229 = vmatprep.subr.bf16.mxu0 %v3365_v13  ;;  %v3443_v13 = vld [vmem:[%s3967_s10 + $0x694] ss:$8 sps:$4 sm:$0xff]  }
  0xfc   : > { %2066 = vmatpush1.bf16.msra.mxu1 %v3360_v14  ;;  %v3438_v14 = vld [vmem:[%s3967_s10 + $0x290] ss:$8 sps:$4 sm:$0xff]  }
  0xfd   : > { %2230 = vmatpush1.bf16.msra.mxu0 %v3363_v15  ;;  %2067 = vmatprep.subr.bf16.mxu1 %v3368_v18  ;;  %v3441_v15 = vld [vmem:[%s3967_s10 + $0x690] ss:$8 sps:$4 sm:$0xff]   ;;  %v3446_v18 = vld [vmem:[%s3967_s10 + $0x2a4] ss:$8 sps:$4 sm:$0xff]  }
  0xfe   : > { %2231 = vmatprep.subr.bf16.mxu0 %v3371_v19  ;;  %v3449_v19 = vld [vmem:[%s3967_s10 + $0x6a4] ss:$8 sps:$4 sm:$0xff]  }
 0x100   : > { %2068 = vmatpush1.bf16.msra.mxu1 %v3366_v20  ;;  %v3444_v20 = vld [vmem:[%s3967_s10 + $0x2a0] ss:$8 sps:$4 sm:$0xff]  }
 0x101   : > { %2232 = vmatpush1.bf16.msra.mxu0 %v3369_v21  ;;  %2069 = vmatprep.subr.bf16.mxu1 %v3374_v22  ;;  %v3447_v21 = vld [vmem:[%s3967_s10 + $0x6a0] ss:$8 sps:$4 sm:$0xff]   ;;  %v3452_v22 = vld [vmem:[%s3967_s10 + $0x2b4] ss:$8 sps:$4 sm:$0xff]  }
 0x102   : > { %2233 = vmatprep.subr.bf16.mxu0 %v3377_v23  ;;  %v3455_v23 = vld [vmem:[%s3967_s10 + $0x6b4] ss:$8 sps:$4 sm:$0xff]  }
 0x104   : > { %2070 = vmatpush1.bf16.msra.mxu1 %v3372_v24  ;;  %v3450_v24 = vld [vmem:[%s3967_s10 + $0x2b0] ss:$8 sps:$4 sm:$0xff]  }
 0x105   : > { %2234 = vmatpush1.bf16.msra.mxu0 %v3375_v25  ;;  %2071 = vmatprep.subr.bf16.mxu1 %v3380_v26  ;;  %v3453_v25 = vld [vmem:[%s3967_s10 + $0x6b0] ss:$8 sps:$4 sm:$0xff]   ;;  %v3458_v26 = vld [vmem:[%s3967_s10 + $0x2c4] ss:$8 sps:$4 sm:$0xff]  }
 0x106   : > { %2235 = vmatprep.subr.bf16.mxu0 %v3383_v27  ;;  %v3461_v27 = vld [vmem:[%s3967_s10 + $0x6c4] ss:$8 sps:$4 sm:$0xff]  }
 0x108   : > { %2072 = vmatpush1.bf16.msra.mxu1 %v3378_v28  ;;  %v3456_v28 = vld [vmem:[%s3967_s10 + $0x2c0] ss:$8 sps:$4 sm:$0xff]  }
 0x109   : > { %2236 = vmatpush1.bf16.msra.mxu0 %v3381_v29  ;;  %2082 = vmatprep.subr.bf16.mxu1 %v3386_v30  ;;  %v3459_v29 = vld [vmem:[%s3967_s10 + $0x6c0] ss:$8 sps:$4 sm:$0xff]   ;;  %v3464_v30 = vld [vmem:[%s3967_s10 + $0x2d4] ss:$8 sps:$4 sm:$0xff]  }
 0x10a   : > { %2246 = vmatprep.subr.bf16.mxu0 %v3389_v31  ;;  %v3467_v31 = vld [vmem:[%s3967_s10 + $0x6d4] ss:$8 sps:$4 sm:$0xff]  }
 0x10b   : > { %2074 = vmatmul.mubr.bf16.vlgmr.msra.gmra.mrb[0].mxu1 %v450_v33  ;;  %v3465_v33 = vld [vmem:[%s3967_s10 + $0x6d0] ss:$8 sps:$4 sm:$0xff]  }
 0x10c   : > { %2238 = vmatmul.mubr.bf16.vlgmr.msra.gmra.mrb[0].mxu0 %v458_v34  ;;  %2083 = vmatpush1.bf16.msra.mxu1 %v3384_v32  ;;  %v3462_v32 = vld [vmem:[%s3967_s10 + $0x2d0] ss:$8 sps:$4 sm:$0xff]   ;;  %v3470_v34 = vld [vmem:[%s3967_s10 + $0x2e4] ss:$8 sps:$4 sm:$0xff]  }
 0x10d   : > { %2247 = vmatpush1.bf16.msra.mxu0 %v3387_v35  ;;  %2084 = vmatprep.subr.bf16.mxu1 %v3392_v36  ;;  %v3473_v35 = vld [vmem:[%s3967_s10 + $0x6e4] ss:$8 sps:$4 sm:$0xff]   ;;  %v381_v36 = vcombine.high %v4152_v37, %v4152_v37  ;;  %v3474_v37 = vld [vmem:[%s3967_s10 + $0x2f0] ss:$8 sps:$4 sm:$0xff]  }
 0x10e   : > { %2248 = vmatprep.subr.bf16.mxu0 %v3395_v38  ;;  %2114 = vmatprep.mubr.bf16.mxu1 %v453_v46  ;;  %v415_v38 = vcombine.high %v4160_v16, %v4160_v16  ;;  %v3477_v16 = vld [vmem:[%s3967_s10 + $0x6f0] ss:$8 sps:$4 sm:$0xff]  }
 0x10f   : > { %2278 = vmatprep.mubr.bf16.mxu0 %v461_v50 }
 0x110   : > { %2085 = vmatpush1.bf16.msra.mxu1 %v3390_v17  ;;  %v3468_v17 = vld [vmem:[%s3967_s10 + $0x2e0] ss:$8 sps:$4 sm:$0xff]   ;;  %v4234_v46 = vrot.slane %v415_v38, %v4036_v51  ;;  %v3549_v38 = vld [vmem:[%s3967_s10 + $0x7b0] ss:$8 sps:$4 sm:$0xff]  }
 0x111   : > { %2249 = vmatpush1.bf16.msra.mxu0 %v3393_v40  ;;  %2086 = vmatprep.subr.bf16.mxu1 %v3398_v43  ;;  %v3471_v40 = vld [vmem:[%s3967_s10 + $0x6e0] ss:$8 sps:$4 sm:$0xff]   ;;  %v3479_v43 = vld [vmem:[%s3967_s10 + $0x6f4] ss:$8 sps:$4 sm:$0xff]  }
 0x112   : > { %2250 = vmatprep.subr.bf16.mxu0 %v3401_v44  ;;  %v4231_v44 = vrot.slane %v381_v36, %v4036_v51  ;;  %v431_v50 = vcombine.high %v4234_v46, %v4234_v46  ;;  %v3546_v36 = vld [vmem:[%s3967_s10 + $0x3b0] ss:$8 sps:$4 sm:$0xff]  }
 0x114   : > { %2087 = vmatpush1.bf16.msra.mxu1 %v3396_v48  ;;  %v3485_v48 = vld [vmem:[%s3967_s10 + $0x704] ss:$8 sps:$4 sm:$0xff]  }
 0x115   : > { %2251 = vmatpush1.bf16.msra.mxu0 %v3399_v49  ;;  %2088 = vmatprep.subr.bf16.mxu1 %v3404_v52  ;;  %v397_v49 = vcombine.high %v4231_v44, %v4231_v44  ;;  %v452_v52 = vpack.c.bf16 %v4157_v39, %v4157_v39  ;;  %v3486_v39 = vld [vmem:[%s3967_s10 + $0x310] ss:$8 sps:$4 sm:$0xff]  }
 0x116   : > { %2252 = vmatprep.subr.bf16.mxu0 %v3407_v53  ;;  %v460_v53 = vpack.c.bf16 %v4168_v42, %v4168_v42  ;;  %v3489_v42 = vld [vmem:[%s3967_s10 + $0x710] ss:$8 sps:$4 sm:$0xff]  }
 0x118   : > { %2089 = vmatpush1.bf16.msra.mxu1 %v3402_v54  ;;  %v3480_v54 = vld [vmem:[%s3967_s10 + $0x300] ss:$8 sps:$4 sm:$0xff]  }
 0x119   : > { %2253 = vmatpush1.bf16.msra.mxu0 %v3405_v55  ;;  %2090 = vmatprep.subr.bf16.mxu1 %v3410_v56  ;;  %v3483_v55 = vld [vmem:[%s3967_s10 + $0x700] ss:$8 sps:$4 sm:$0xff]   ;;  %v3488_v56 = vld [vmem:[%s3967_s10 + $0x314] ss:$8 sps:$4 sm:$0xff]  }
 0x11a   : > { %2254 = vmatprep.subr.bf16.mxu0 %v3413_v57  ;;  %v3491_v57 = vld [vmem:[%s3967_s10 + $0x714] ss:$8 sps:$4 sm:$0xff]  }
 0x11c   : > { %2091 = vmatpush1.bf16.msra.mxu1 %v3408_v58  ;;  %v455_v58 = vpack.c.bf16 %v397_v49, %v397_v49  ;;  %v3566_v49 = vld [vmem:[%s3967_s10 + $0x3e4] ss:$8 sps:$4 sm:$0xff]  }
 0x11d   : > { %2255 = vmatpush1.bf16.msra.mxu0 %v3411_v59  ;;  %2092 = vmatprep.subr.bf16.mxu1 %v3416_v60  ;;  %v463_v59 = vpack.c.bf16 %v431_v50, %v431_v50  ;;  %v3494_v60 = vld [vmem:[%s3967_s10 + $0x324] ss:$8 sps:$4 sm:$0xff]  }
 0x11e   : > { %2256 = vmatprep.subr.bf16.mxu0 %v3419_v61  ;;  %v3497_v61 = vld [vmem:[%s3967_s10 + $0x724] ss:$8 sps:$4 sm:$0xff]  }
 0x11f   : > { %v3569_v50 = vld [vmem:[%s3967_s10 + $0x7e4] ss:$8 sps:$4 sm:$0xff]  }
 0x120   : > { %2093 = vmatpush1.bf16.msra.mxu1 %v3414_v62  ;;  %v3492_v62 = vld [vmem:[%s3967_s10 + $0x320] ss:$8 sps:$4 sm:$0xff]  }
 0x121   : > { %2257 = vmatpush1.bf16.msra.mxu0 %v3417_v63  ;;  %2094 = vmatprep.subr.bf16.mxu1 %v3422_v0  ;;  %v3495_v63 = vld [vmem:[%s3967_s10 + $0x720] ss:$8 sps:$4 sm:$0xff]   ;;  %v3500_v0 = vld [vmem:[%s3967_s10 + $0x334] ss:$8 sps:$4 sm:$0xff]  }
 0x122   : > { %2258 = vmatprep.subr.bf16.mxu0 %v3425_v1  ;;  %v3503_v1 = vld [vmem:[%s3967_s10 + $0x734] ss:$8 sps:$4 sm:$0xff]  }
 0x124   : > { %2095 = vmatpush1.bf16.msra.mxu1 %v3420_v2  ;;  %v3498_v2 = vld [vmem:[%s3967_s10 + $0x330] ss:$8 sps:$4 sm:$0xff]  }
 0x125   : > { %2259 = vmatpush1.bf16.msra.mxu0 %v3423_v3  ;;  %2096 = vmatprep.subr.bf16.mxu1 %v3428_v4  ;;  %v3501_v3 = vld [vmem:[%s3967_s10 + $0x730] ss:$8 sps:$4 sm:$0xff]   ;;  %v3506_v4 = vld [vmem:[%s3967_s10 + $0x344] ss:$8 sps:$4 sm:$0xff]  }
 0x126   : > { %2260 = vmatprep.subr.bf16.mxu0 %v3431_v5  ;;  %v3509_v5 = vld [vmem:[%s3967_s10 + $0x744] ss:$8 sps:$4 sm:$0xff]  }
 0x128   : > { %2097 = vmatpush1.bf16.msra.mxu1 %v3426_v6  ;;  %v3504_v6 = vld [vmem:[%s3967_s10 + $0x340] ss:$8 sps:$4 sm:$0xff]  }
 0x129   : > { %2261 = vmatpush1.bf16.msra.mxu0 %v3429_v7  ;;  %2098 = vmatprep.subr.bf16.mxu1 %v3434_v8  ;;  %v3507_v7 = vld [vmem:[%s3967_s10 + $0x740] ss:$8 sps:$4 sm:$0xff]   ;;  %v3512_v8 = vld [vmem:[%s3967_s10 + $0x354] ss:$8 sps:$4 sm:$0xff]  }
 0x12a   : > { %2262 = vmatprep.subr.bf16.mxu0 %v3437_v9  ;;  %v3515_v9 = vld [vmem:[%s3967_s10 + $0x754] ss:$8 sps:$4 sm:$0xff]  }
 0x12c   : > { %2099 = vmatpush1.bf16.msra.mxu1 %v3432_v10  ;;  %v3510_v10 = vld [vmem:[%s3967_s10 + $0x350] ss:$8 sps:$4 sm:$0xff]  }
 0x12d   : > { %2263 = vmatpush1.bf16.msra.mxu0 %v3435_v11  ;;  %2100 = vmatprep.subr.bf16.mxu1 %v3440_v12  ;;  %v3513_v11 = vld [vmem:[%s3967_s10 + $0x750] ss:$8 sps:$4 sm:$0xff]   ;;  %v3518_v12 = vld [vmem:[%s3967_s10 + $0x364] ss:$8 sps:$4 sm:$0xff]  }
 0x12e   : > { %2264 = vmatprep.subr.bf16.mxu0 %v3443_v13  ;;  %v3521_v13 = vld [vmem:[%s3967_s10 + $0x764] ss:$8 sps:$4 sm:$0xff]  }
 0x130   : > { %2101 = vmatpush1.bf16.msra.mxu1 %v3438_v14  ;;  %v3516_v14 = vld [vmem:[%s3967_s10 + $0x360] ss:$8 sps:$4 sm:$0xff]  }
 0x131   : > { %2265 = vmatpush1.bf16.msra.mxu0 %v3441_v15  ;;  %2102 = vmatprep.subr.bf16.mxu1 %v3446_v18  ;;  %v3519_v15 = vld [vmem:[%s3967_s10 + $0x760] ss:$8 sps:$4 sm:$0xff]   ;;  %v3524_v18 = vld [vmem:[%s3967_s10 + $0x374] ss:$8 sps:$4 sm:$0xff]  }
 0x132   : > { %2266 = vmatprep.subr.bf16.mxu0 %v3449_v19  ;;  %v3527_v19 = vld [vmem:[%s3967_s10 + $0x774] ss:$8 sps:$4 sm:$0xff]  }
 0x134   : > { %2103 = vmatpush1.bf16.msra.mxu1 %v3444_v20  ;;  %v3522_v20 = vld [vmem:[%s3967_s10 + $0x370] ss:$8 sps:$4 sm:$0xff]  }
 0x135   : > { %2267 = vmatpush1.bf16.msra.mxu0 %v3447_v21  ;;  %2104 = vmatprep.subr.bf16.mxu1 %v3452_v22  ;;  %v3525_v21 = vld [vmem:[%s3967_s10 + $0x770] ss:$8 sps:$4 sm:$0xff]   ;;  %v3530_v22 = vld [vmem:[%s3967_s10 + $0x384] ss:$8 sps:$4 sm:$0xff]  }
 0x136   : > { %2268 = vmatprep.subr.bf16.mxu0 %v3455_v23  ;;  %v3533_v23 = vld [vmem:[%s3967_s10 + $0x784] ss:$8 sps:$4 sm:$0xff]  }
 0x138   : > { %2105 = vmatpush1.bf16.msra.mxu1 %v3450_v24  ;;  %v3528_v24 = vld [vmem:[%s3967_s10 + $0x380] ss:$8 sps:$4 sm:$0xff]  }
 0x139   : > { %2269 = vmatpush1.bf16.msra.mxu0 %v3453_v25  ;;  %2106 = vmatprep.subr.bf16.mxu1 %v3458_v26  ;;  %v3531_v25 = vld [vmem:[%s3967_s10 + $0x780] ss:$8 sps:$4 sm:$0xff]   ;;  %v3536_v26 = vld [vmem:[%s3967_s10 + $0x394] ss:$8 sps:$4 sm:$0xff]  }
 0x13a   : > { %2270 = vmatprep.subr.bf16.mxu0 %v3461_v27  ;;  %v3539_v27 = vld [vmem:[%s3967_s10 + $0x794] ss:$8 sps:$4 sm:$0xff]  }
 0x13c   : > { %2107 = vmatpush1.bf16.msra.mxu1 %v3456_v28  ;;  %v3534_v28 = vld [vmem:[%s3967_s10 + $0x390] ss:$8 sps:$4 sm:$0xff]  }
 0x13d   : > { %2271 = vmatpush1.bf16.msra.mxu0 %v3459_v29  ;;  %2108 = vmatprep.subr.bf16.mxu1 %v3464_v30  ;;  %v3537_v29 = vld [vmem:[%s3967_s10 + $0x790] ss:$8 sps:$4 sm:$0xff]   ;;  %v3542_v30 = vld [vmem:[%s3967_s10 + $0x3a4] ss:$8 sps:$4 sm:$0xff]  }
 0x13e   : > { %2272 = vmatprep.subr.bf16.mxu0 %v3467_v31  ;;  %v3545_v31 = vld [vmem:[%s3967_s10 + $0x7a4] ss:$8 sps:$4 sm:$0xff]  }
 0x140   : > { %2109 = vmatpush1.bf16.msra.mxu1 %v3462_v32  ;;  %v3540_v32 = vld [vmem:[%s3967_s10 + $0x3a0] ss:$8 sps:$4 sm:$0xff]  }
 0x141   : > { %2273 = vmatpush1.bf16.msra.mxu0 %v3465_v33  ;;  %2110 = vmatprep.subr.bf16.mxu1 %v3470_v34  ;;  %v3543_v33 = vld [vmem:[%s3967_s10 + $0x7a0] ss:$8 sps:$4 sm:$0xff]   ;;  %v3548_v34 = vld [vmem:[%s3967_s10 + $0x3b4] ss:$8 sps:$4 sm:$0xff]  }
 0x142   : > { %2274 = vmatprep.subr.bf16.mxu0 %v3473_v35  ;;  %v3551_v35 = vld [vmem:[%s3967_s10 + $0x7b4] ss:$8 sps:$4 sm:$0xff]  }
 0x144   : > { %2111 = vmatpush1.bf16.msra.mxu1 %v3468_v17  ;;  %v3554_v17 = vld [vmem:[%s3967_s10 + $0x3c4] ss:$8 sps:$4 sm:$0xff]  }
 0x145   : > { %2275 = vmatpush1.bf16.msra.mxu0 %v3471_v40  ;;  %2112 = vmatprep.subr.bf16.mxu1 %v3476_v41  ;;  %v3557_v40 = vld [vmem:[%s3967_s10 + $0x7c4] ss:$8 sps:$4 sm:$0xff]   ;;  %v3552_v41 = vld [vmem:[%s3967_s10 + $0x3c0] ss:$8 sps:$4 sm:$0xff]  }
 0x146   : > { %2276 = vmatprep.subr.bf16.mxu0 %v3479_v43  ;;  %v3555_v43 = vld [vmem:[%s3967_s10 + $0x7c0] ss:$8 sps:$4 sm:$0xff]  }
 0x148   : > { %2113 = vmatpush1.bf16.msra.mxu1 %v3474_v37  ;;  %v3560_v37 = vld [vmem:[%s3967_s10 + $0x3d4] ss:$8 sps:$4 sm:$0xff]  }
 0x149   : > { %2277 = vmatpush1.bf16.msra.mxu0 %v3477_v16  ;;  %2123 = vmatprep.subr.bf16.mxu1 %v3482_v47  ;;  %v3563_v16 = vld [vmem:[%s3967_s10 + $0x7d4] ss:$8 sps:$4 sm:$0xff]   ;;  %v3558_v47 = vld [vmem:[%s3967_s10 + $0x3d0] ss:$8 sps:$4 sm:$0xff]  }
 0x14a   : > { %2287 = vmatprep.subr.bf16.mxu0 %v3485_v48  ;;  %v3561_v48 = vld [vmem:[%s3967_s10 + $0x7d0] ss:$8 sps:$4 sm:$0xff]  }
 0x14b   : > { %2115 = vmatmul.mubr.bf16.vlgmr.msra.gmra.mrb[0].mxu1 %v452_v52  ;;  %v3564_v52 = vld [vmem:[%s3967_s10 + $0x3e0] ss:$8 sps:$4 sm:$0xff]  }
 0x14c   : > { %2279 = vmatmul.mubr.bf16.vlgmr.msra.gmra.mrb[0].mxu0 %v460_v53  ;;  %2124 = vmatpush1.bf16.msra.mxu1 %v3480_v54  ;;  %v3567_v53 = vld [vmem:[%s3967_s10 + $0x7e0] ss:$8 sps:$4 sm:$0xff]   ;;  %v3572_v54 = vld [vmem:[%s3967_s10 + $0x3f4] ss:$8 sps:$4 sm:$0xff]  }
 0x14d   : > { %2288 = vmatpush1.bf16.msra.mxu0 %v3483_v55  ;;  %2125 = vmatprep.subr.bf16.mxu1 %v3488_v56  ;;  %v3575_v55 = vld [vmem:[%s3967_s10 + $0x7f4] ss:$8 sps:$4 sm:$0xff]   ;;  %v3570_v56 = vld [vmem:[%s3967_s10 + $0x3f0] ss:$8 sps:$4 sm:$0xff]  }
 0x14e   : > { %2289 = vmatprep.subr.bf16.mxu0 %v3491_v57  ;;  %2155 = vmatprep.mubr.bf16.mxu1 %v455_v58  ;;  %v3573_v57 = vld [vmem:[%s3967_s10 + $0x7f0] ss:$8 sps:$4 sm:$0xff]   ;;  %v454_v58 = vpack.c.bf16 %v4231_v44, %v4231_v44 }
 0x14f   : > { %2319 = vmatprep.mubr.bf16.mxu0 %v463_v59  ;;  %v462_v59 = vpack.c.bf16 %v4234_v46, %v4234_v46  ;;  %v2383_v46 = vld [vmem:[#allocation8 + $0x80] sm:$0xff] (!%p2937_p1) }
 0x150   : > { %2126 = vmatpush1.bf16.msra.mxu1 %v3486_v39 }
 0x151   : > { %2290 = vmatpush1.bf16.msra.mxu0 %v3489_v42  ;;  %2127 = vmatprep.subr.bf16.mxu1 %v3494_v60 }
 0x152   : > { %2291 = vmatprep.subr.bf16.mxu0 %v3497_v61 }
 0x154   : > { %2128 = vmatpush1.bf16.msra.mxu1 %v3492_v62 }
 0x155   : > { %2292 = vmatpush1.bf16.msra.mxu0 %v3495_v63  ;;  %2129 = vmatprep.subr.bf16.mxu1 %v3500_v0 }
 0x156   : > { %2293 = vmatprep.subr.bf16.mxu0 %v3503_v1 }
 0x158   : > { %2130 = vmatpush1.bf16.msra.mxu1 %v3498_v2 }
 0x159   : > { %2294 = vmatpush1.bf16.msra.mxu0 %v3501_v3  ;;  %2131 = vmatprep.subr.bf16.mxu1 %v3506_v4 }
 0x15a   : > { %2295 = vmatprep.subr.bf16.mxu0 %v3509_v5  ;;  %v355_v5 = vld [vmem:[#allocation2] sm:$0xf] }
 0x15c   : > { %2132 = vmatpush1.bf16.msra.mxu1 %v3504_v6 }
 0x15d   : > { %2296 = vmatpush1.bf16.msra.mxu0 %v3507_v7  ;;  %2133 = vmatprep.subr.bf16.mxu1 %v3512_v8  ;;  %v2384_v7 = vld [vmem:[#allocation8 + $0x88] sm:$0xff] (!%p2937_p1)  ;;  %v2367_v8 = vld [vmem:[#allocation8] sm:$0xff] (!%p2937_p1) }
 0x15e   : > { %2297 = vmatprep.subr.bf16.mxu0 %v3515_v9  ;;  %v3031_v9 = vpack.c.bf16 (!%p2937_p1), %v2384_v7, %v2383_v46  ;;  %v2397_v46 = vld [vmem:[#allocation8 + $0xf0] sm:$0xff] (!%p2937_p1)  ;;  %v2398_v7 = vld [vmem:[#allocation8 + $0xf8] sm:$0xff] (!%p2937_p1) }
 0x160   : > { %2134 = vmatpush1.bf16.msra.mxu1 %v3510_v10  ;;  %v2368_v10 = vld [vmem:[#allocation8 + $0x8] sm:$0xff] (!%p2937_p1) }
 0x161   : > { %2298 = vmatpush1.bf16.msra.mxu0 %v3513_v11  ;;  %2135 = vmatprep.subr.bf16.mxu1 %v3518_v12  ;;  %v2385_v11 = vld [vmem:[#allocation8 + $0x90] sm:$0xff] (!%p2937_p1)  ;;  %v2386_v12 = vld [vmem:[#allocation8 + $0x98] sm:$0xff] (!%p2937_p1) }
 0x162   : > { %2299 = vmatprep.subr.bf16.mxu0 %v3521_v13  ;;  %v3744_v13 = vmov (!%p2937_p1), 0.0|0.0  }
 0x164   : > { %2136 = vmatpush1.bf16.msra.mxu1 %v3516_v14  ;;  %v3033_v14 = vpack.c.bf16 (!%p2937_p1), %v2368_v10, %v2367_v8  ;;  %v2496_v10 = vld [vmem:[%s4397_s5 + $0x40] sm:$0xff] (!%p2937_p1) }
 0x165   : > { %2300 = vmatpush1.bf16.msra.mxu0 %v3519_v15  ;;  %2137 = vmatprep.subr.bf16.mxu1 %v3524_v18  ;;  %v3035_v15 = vpack.c.bf16 (!%p2937_p1), %v2386_v12, %v2385_v11  ;;  %v2369_v18 = vld [vmem:[#allocation8 + $0x10] sm:$0xff] (!%p2937_p1)  ;;  %v2497_v11 = vld [vmem:[%s4397_s5 + $0x48] sm:$0xff] (!%p2937_p1) }
 0x166   : > { %2301 = vmatprep.subr.bf16.mxu0 %v3527_v19  ;;  %v2370_v19 = vld [vmem:[#allocation8 + $0x18] sm:$0xff] (!%p2937_p1) }
 0x168   : > { %2138 = vmatpush1.bf16.msra.mxu1 %v3522_v20  ;;  %v2387_v20 = vld [vmem:[#allocation8 + $0xa0] sm:$0xff] (!%p2937_p1) }
 0x169   : > { %2302 = vmatpush1.bf16.msra.mxu0 %v3525_v21  ;;  %2139 = vmatprep.subr.bf16.mxu1 %v3530_v22  ;;  %v2388_v21 = vld [vmem:[#allocation8 + $0xa8] sm:$0xff] (!%p2937_p1)  ;;  %v3037_v22 = vpack.c.bf16 (!%p2937_p1), %v2370_v19, %v2369_v18  ;;  %v2381_v18 = vld [vmem:[#allocation8 + $0x70] sm:$0xff] (!%p2937_p1)  ;;  %v2382_v19 = vld [vmem:[#allocation8 + $0x78] sm:$0xff] (!%p2937_p1) }
 0x16a   : > { %2303 = vmatprep.subr.bf16.mxu0 %v3533_v23  ;;  %v3039_v23 = vpack.c.bf16 (!%p2937_p1), %v2388_v21, %v2387_v20  ;;  %v2498_v20 = vld [vmem:[%s4397_s5 + $0x50] sm:$0xff] (!%p2937_p1)  ;;  %v2499_v21 = vld [vmem:[%s4397_s5 + $0x58] sm:$0xff] (!%p2937_p1) }
 0x16c   : > { %2140 = vmatpush1.bf16.msra.mxu1 %v3528_v24  ;;  %v2371_v24 = vld [vmem:[#allocation8 + $0x20] sm:$0xff] (!%p2937_p1) }
 0x16d   : > { %2304 = vmatpush1.bf16.msra.mxu0 %v3531_v25  ;;  %2141 = vmatprep.subr.bf16.mxu1 %v3536_v26  ;;  %v2372_v25 = vld [vmem:[#allocation8 + $0x28] sm:$0xff] (!%p2937_p1)  ;;  %v2389_v26 = vld [vmem:[#allocation8 + $0xb0] sm:$0xff] (!%p2937_p1) }
 0x16e   : > { %2305 = vmatprep.subr.bf16.mxu0 %v3539_v27  ;;  %v2390_v27 = vld [vmem:[#allocation8 + $0xb8] sm:$0xff] (!%p2937_p1) }
 0x170   : > { %2142 = vmatpush1.bf16.msra.mxu1 %v3534_v28  ;;  %v3041_v28 = vpack.c.bf16 (!%p2937_p1), %v2372_v25, %v2371_v24  ;;  %v2500_v24 = vld [vmem:[%s4397_s5 + $0x60] sm:$0xff] (!%p2937_p1)  ;;  %v2501_v25 = vld [vmem:[%s4397_s5 + $0x68] sm:$0xff] (!%p2937_p1) }
 0x171   : > { %2306 = vmatpush1.bf16.msra.mxu0 %v3537_v29  ;;  %2143 = vmatprep.subr.bf16.mxu1 %v3542_v30  ;;  %v2350_v29 = vsub.s32 (!%p2937_p1), 0, %v4028_v45  ;;  %v2354_v30 = vsub.s32 (!%p2937_p1), 1, %v4028_v45 }
 0x172   : > { %2307 = vmatprep.subr.bf16.mxu0 %v3545_v31  ;;  %v3043_v31 = vpack.c.bf16 (!%p2937_p1), %v2390_v27, %v2389_v26  ;;  %v3082_v26 = vpack.c.bf16 (!%p2937_p1), %v2501_v25, %v2500_v24  ;;  %v2502_v27 = vld [vmem:[%s4397_s5 + $0x70] sm:$0xff] (!%p2937_p1) }
 0x174   : > { %2144 = vmatpush1.bf16.msra.mxu1 %v3540_v32  ;;  %v2373_v32 = vld [vmem:[#allocation8 + $0x30] sm:$0xff] (!%p2937_p1) }
 0x175   : > { %2308 = vmatpush1.bf16.msra.mxu0 %v3543_v33  ;;  %2145 = vmatprep.subr.bf16.mxu1 %v3548_v34  ;;  %v2374_v33 = vld [vmem:[#allocation8 + $0x38] sm:$0xff] (!%p2937_p1)  ;;  %v2391_v34 = vld [vmem:[#allocation8 + $0xc0] sm:$0xff] (!%p2937_p1) }
 0x176   : > { %2309 = vmatprep.subr.bf16.mxu0 %v3551_v35  ;;  %v2392_v35 = vld [vmem:[#allocation8 + $0xc8] sm:$0xff] (!%p2937_p1) }
 0x178   : > { %2146 = vmatpush1.bf16.msra.mxu1 %v3546_v36  ;;  %v2346_v36 = vld [vmem:[#allocation6] sm:$0x3] (!%p2937_p1) }
 0x179   : > { %2310 = vmatpush1.bf16.msra.mxu0 %v3549_v38  ;;  %2147 = vmatprep.subr.bf16.mxu1 %v3554_v17  ;;  %v2488_v38 = vld [vmem:[%s4397_s5] sm:$0xff] (!%p2937_p1)  ;;  %v2489_v17 = vld [vmem:[%s4397_s5 + $0x8] sm:$0xff] (!%p2937_p1) }
 0x17a   : > { %2311 = vmatprep.subr.bf16.mxu0 %v3557_v40  ;;  %v3045_v40 = vpack.c.bf16 (!%p2937_p1), %v2374_v33, %v2373_v32  ;;  %v3064_v45 = vpack.c.bf16 (!%p2937_p1), %v2489_v17, %v2488_v38  ;;  %v2938_v32 = vld [vmem:[#allocation9] ss:$0 sm:$0xff] (!%p2937_p1) }
 0x17c   : > { %2148 = vmatpush1.bf16.msra.mxu1 %v3552_v41  ;;  %v2351_v41 = vrot.slane (!%p2937_p1), %v2346_v36, %v2350_v29 }
 0x17d   : > { %2312 = vmatpush1.bf16.msra.mxu0 %v3555_v43  ;;  %2149 = vmatprep.subr.bf16.mxu1 %v3560_v37  ;;  %v2355_v43 = vrot.slane (!%p2937_p1), %v2346_v36, %v2354_v30  ;;  %v2490_v37 = vld [vmem:[%s4397_s5 + $0x10] sm:$0xff] (!%p2937_p1)  ;;  %v3746_v30 = vmov (!%p2937_p1), 0.0  }
 0x17e   : > { %2313 = vmatprep.subr.bf16.mxu0 %v3563_v16  ;;  %v2491_v16 = vld [vmem:[%s4397_s5 + $0x18] sm:$0xff] (!%p2937_p1) }
 0x180   : > { %2150 = vmatpush1.bf16.msra.mxu1 %v3558_v47  ;;  %v3047_v47 = vpack.c.bf16 (!%p2937_p1), %v2392_v35, %v2391_v34 }
 0x181   : > { %2314 = vmatpush1.bf16.msra.mxu0 %v3561_v48  ;;  %2151 = vmatprep.subr.bf16.mxu1 %v3566_v49  ;;  %v2375_v48 = vld [vmem:[#allocation8 + $0x40] sm:$0xff] (!%p2937_p1)  ;;  %v2376_v49 = vld [vmem:[#allocation8 + $0x48] sm:$0xff] (!%p2937_p1) }
 0x182   : > { %2315 = vmatprep.subr.bf16.mxu0 %v3569_v50  ;;  %v2393_v50 = vld [vmem:[#allocation8 + $0xd0] sm:$0xff] (!%p2937_p1) }
 0x184   : > { %2152 = vmatpush1.bf16.msra.mxu1 %v3564_v52  ;;  %v2394_v52 = vld [vmem:[#allocation8 + $0xd8] sm:$0xff] (!%p2937_p1) }
 0x185   : > { %2316 = vmatpush1.bf16.msra.mxu0 %v3567_v53  ;;  %2153 = vmatprep.subr.bf16.mxu1 %v3572_v54  ;;  %v2356_v53 = vcombine.low (!%p2937_p1), %v2351_v41, %v2355_v43  ;;  %v3067_v54 = vpack.c.bf16 (!%p2937_p1), %v2491_v16, %v2490_v37 }
 0x186   : > { %2317 = vmatprep.subr.bf16.mxu0 %v3575_v55 }
 0x188   : > { %2154 = vmatpush1.bf16.msra.mxu1 %v3570_v56  ;;  %v2492_v56 = vld [vmem:[%s4397_s5 + $0x20] sm:$0xff] (!%p2937_p1) }
 0x189   : > { %2318 = vmatpush1.bf16.msra.mxu0 %v3573_v57  ;;  %3063 = vmatprep.subr.bf16.mxu1 (!%p2937_p1), %v3744_v13  ;;  %v2493_v57 = vld [vmem:[%s4397_s5 + $0x28] sm:$0xff] (!%p2937_p1) }
 0x18a   : > { %3032 = vmatprep.subr.bf16.mxu0 (!%p2937_p1), %v3031_v9 }
 0x18b   : > { %2156 = vmatmul.mubr.bf16.vlgmr.msra.gmra.mrb[0].mxu1 %v454_v58  ;;  %v3049_v58 = vpack.c.bf16 (!%p2937_p1), %v2376_v49, %v2375_v48 }
 0x18c   : > { %2320 = vmatmul.mubr.bf16.vlgmr.msra.gmra.mrb[0].mxu0 %v462_v59  ;;  %3065 = vmatpush3.bf16.msra.mxu1 (!%p2937_p1), %v3064_v45  ;;  %v2363_v59 = vrot.slane (!%p2937_p1), %v2356_v53, %v4036_v51 }
 0x18d   : > { %3034 = vmatpush3.bf16.msra.mxu0 (!%p2937_p1), %v3033_v14  ;;  %3066 = vmatprep.subr.bf16.mxu1 (!%p2937_p1), %v3744_v13 }
 0x18e   : > { %3036 = vmatprep.subr.bf16.mxu0 (!%p2937_p1), %v3035_v15  ;;  %v3059_v15 = vpack.c.bf16 (!%p2937_p1), %v2398_v7, %v2397_v46  ;;  %3028 = vmatprep.mubr.msk.f32.mxu1 (!%p2937_p1), %vm3745_vm0, %v3746_v30 }
 0x190   : > { %3068 = vmatpush3.bf16.msra.mxu1 (!%p2937_p1), %v3067_v54 }
 0x191   : > { %3038 = vmatpush3.bf16.msra.mxu0 (!%p2937_p1), %v3037_v22  ;;  %3069 = vmatprep.subr.bf16.mxu1 (!%p2937_p1), %v3744_v13  ;;  %v3061_v22 = vpack.c.bf16 (!%p2937_p1), %v2382_v19, %v2381_v18 }
 0x192   : > { %3040 = vmatprep.subr.bf16.mxu0 (!%p2937_p1), %v3039_v23  ;;  %v3079_v23 = vpack.c.bf16 (!%p2937_p1), %v2499_v21, %v2498_v20 }
 0x195   : > { %3042 = vmatpush3.bf16.msra.mxu0 (!%p2937_p1), %v3041_v28  ;;  %v2503_v28 = vld [vmem:[%s4397_s5 + $0x78] sm:$0xff] (!%p2937_p1) }
 0x196   : > { %3044 = vmatprep.subr.bf16.mxu0 (!%p2937_p1), %v3043_v31  ;;  %v3085_v29 = vpack.c.bf16 (!%p2937_p1), %v2503_v28, %v2502_v27 }
 0x199   : > { %3046 = vmatpush3.bf16.msra.mxu0 (!%p2937_p1), %v3045_v40 }
 0x19a   : > { %3048 = vmatprep.subr.bf16.mxu0 (!%p2937_p1), %v3047_v47 }
 0x19d   : > { %3050 = vmatpush3.bf16.msra.mxu0 (!%p2937_p1), %v3049_v58 }
 0x25e   : > { %v2157_v39 = vpop.f32.mrb[0].mxu1 }
 0x25f   : > { %v2321_v42 = vpop.f32.mrb[0].mxu0  ;;  %v2159_v61 = vpop.f32.mrb[1].mxu1 }
 0x260   : > { %v3087_v60 = vadd.f32 %v2321_v42, %v2157_v39  ;;  %v2323_v62 = vpop.f32.mrb[1].mxu0  ;;  %v2161_v0 = vpop.f32.mrb[2].mxu1  ;;  %v3051_v39 = vpack.c.bf16 (!%p2937_p1), %v2394_v52, %v2393_v50  ;;  %v2377_v42 = vld [vmem:[#allocation8 + $0x50] sm:$0xff] (!%p2937_p1) }
 0x261   : > { %v3088_v63 = vadd.f32 %v2323_v62, %v2159_v61  ;;  %v2325_v1 = vpop.f32.mrb[2].mxu0  ;;  %v2162_v2 = vpop.f32.mrb[3].mxu1  ;;  %v2395_v61 = vld [vmem:[#allocation8 + $0xe0] sm:$0xff] (!%p2937_p1)  ;;  %v2396_v62 = vld [vmem:[#allocation8 + $0xe8] sm:$0xff] (!%p2937_p1)  ;;  %v3070_v0 = vpack.c.bf16 (!%p2937_p1), %v2493_v57, %v2492_v56 }
 0x262   : > { %v2326_v3 = vpop.f32.mrb[3].mxu0  ;;  %v2494_v1 = vld [vmem:[%s4397_s5 + $0x30] sm:$0xff] (!%p2937_p1)  ;;  %v2495_v2 = vld [vmem:[%s4397_s5 + $0x38] sm:$0xff] (!%p2937_p1)  ;;  %3052 = vmatprep.subr.bf16.mxu0 (!%p2937_p1), %v3051_v39 }
 0x263   : > { %v2330_v4 = vcombine.low %v3087_v60, %v3088_v63  ;;  %2344 = sbr.rel (%p2937_p1) target bundleno = 1068 (0x42c), region = 72  ;;  %v2378_v60 = vld [vmem:[#allocation8 + $0x58] sm:$0xff] (!%p2937_p1)  ;;  %3071 = vmatpush3.bf16.msra.mxu1 (!%p2937_p1), %v3070_v0  ;;  %v3073_v9 = vpack.c.bf16 (!%p2937_p1), %v2495_v2, %v2494_v1 }
 0x264   : > { %v3053_v3 = vpack.c.bf16 (!%p2937_p1), %v2378_v60, %v2377_v42  ;;  %3072 = vmatprep.subr.bf16.mxu1 (!%p2937_p1), %v3744_v13 }
 0x265   : > { %v2337_v44 = vrot.slane %v2330_v4, %v4036_v51 }
 0x266   : > { %3054 = vmatpush3.bf16.msra.mxu0 (!%p2937_p1), %v3053_v3 }
 0x267   : > { %v2339_v6 = vadd.f32 %v2337_v44, %v355_v5  ;;  %v3055_v5 = vpack.c.bf16 (!%p2937_p1), %v2396_v62, %v2395_v61  ;;  %v2379_v44 = vld [vmem:[#allocation8 + $0x60] sm:$0xff] (!%p2937_p1)  ;;  %3074 = vmatpush3.bf16.msra.mxu1 (!%p2937_p1), %v3073_v9 }
 0x268   : > { %3075 = vmatprep.subr.bf16.mxu1 (!%p2937_p1), %v3744_v13 }
 0x269   : > { %2340 = vst [vmem:[#allocation2] sm:$0xf] %v2339_v6  ;;  %v2380_v6 = vld [vmem:[#allocation8 + $0x68] sm:$0xff] (!%p2937_p1)  ;;  %3056 = vmatprep.subr.bf16.mxu0 (!%p2937_p1), %v3055_v5 }
 0x26a   : > { %v3057_v12 = vpack.c.bf16 %v2380_v6, %v2379_v44 }
 0x26c   : > { %3058 = vmatpush3.bf16.msra.mxu0 %v3057_v12 }
 0x26d   : > { %3060 = vmatprep.subr.bf16.mxu0 %v3059_v15 }
 0x270   : > { %v2345_v55 = vld [vmem:[#allocation2] sm:$0xf]  ;;  %3062 = vmatpush3.bf16.msra.mxu0 %v3061_v22 }
 0x271   : > { %v2365_v63 = vadd.f32 %v2363_v59, %v2345_v55 }
 0x273   : > { %v2366_v4 = vmax.f32 %v2365_v63, 0.0 }
 0x275   : > { %v2413_v8 = vrot.slane %v2366_v4, %v4036_v51  ;;  %v3076_v51 = vpack.c.bf16 %v2497_v11, %v2496_v10 }
 0x277   : > { %v2414_v14 = vcombine.high %v2413_v8, %v2413_v8  ;;  %3077 = vmatpush3.bf16.msra.mxu1 %v3076_v51 }
 0x278   : > { %3078 = vmatprep.subr.bf16.mxu1 %v3744_v13 }
 0x279   : > { %2481 = vmatprep.mubr.f32.mxu0 %v2414_v14 }
 0x27a   : > { %2482 = vmatmul.mubr.f32.vlgmr.msra.gmra.mrb[0].mxu0 %v2413_v8 }
 0x27b   : > { %3080 = vmatpush3.bf16.msra.mxu1 %v3079_v23 }
 0x27c   : > { %3081 = vmatprep.subr.bf16.mxu1 %v3744_v13 }
 0x27f   : > { %3083 = vmatpush3.bf16.msra.mxu1 %v3082_v26 }
 0x280   : > { %3084 = vmatprep.subr.bf16.mxu1 %v3744_v13  ;;  %v2939_v13 = vld [vmem:[#allocation3] ss:$0 sm:$0xff] }
 0x283   : > { %3086 = vmatpush3.bf16.msra.mxu1 %v3085_v29 }
 0x34d   : > { %v2976_v31 = vpop.f32.mrb[0].mxu0 }
 0x34e   : > { %v2977_v33 = vpop.f32.mrb[1].mxu0 }
 0x34f   : > { %v2978_v34 = vadd.f32 %v2977_v33, %v2976_v31 }
 0x351   : > { %v2484_v35 = vadd.f32 %v2978_v34, %v2938_v32 }
 0x353   : > { %v2487_v36 = vmax.f32 %v2484_v35, 0.0 }
 0x355   : > { %3029 = vmatmul.mubr.f32.vlgmr.msra.gmra.mrb[0].mxu1 %v2487_v36 }
 0x428   : > { %v2577_v38 = vpop.f32.mrb[0].mxu1 }
 0x429   : > { %v2578_v17 = vadd.f32 %v2939_v13, %v2577_v38  ;;  %v3030_v40 = vpop.f32.mrb[1].mxu1 }
 0x42b   : > { %2582 = vst.msk [vmem:[%s4399_s7] sm:$0x3] %vm2581_vm1, %v2578_v17 }
 0x42c PF: > { %p21_p4 = scmp.ge.s32.totalorder %s3908_s21, 8   ;;  %s4415_s26 = smov %s3726_s27 }
 0x42d   : > { %s4416_s27 = smov %s3730_s28  ;;  %s4417_s28 = smov %s3918_s13 }
 0x42e   : > { %s4418_s29 = smov %s3908_s21  ;;  %23 = sbr.rel (!%p21_p4) target bundleno = 8 (0x8), region = 107 }
 0x435   :  { %2594 = vsyncpa [#allocation5], 1 }
 0x436   :  { %2596 = vsyncpa [#allocation5 + $0x1], 1 }
 0x437   :  { %2597 = vsyncpa [#allocation7], 1 }
 0x438   :  { %2598 = vsyncpa [#allocation10], 1 }

// kernel: cnn_regressor_forward.2
= control target key start
LH: loop header
LB: loop body
LE: loop exit
PB: predicated region body
PF: predicated region fallthrough
CT: control target
= control target key end

     0   :  { %12 = vsyncpa [#allocation5], 0  ;;  %s9757_s0 = inlined_call_operand.vmem [shape: f32[2,3,32,14], index: 0, kind: input, shape index: {}]   ;;  %s9758_s1 = inlined_call_operand.vmem [shape: f32[1152,16], index: 1, kind: input, shape index: {}]   ;;  %s9759_s2 = inlined_call_operand.hbm [shape: f32[1,16], index: 2, kind: input, shape index: {}]   ;;  %s9760_s3 = inlined_call_operand.vmem [shape: f32[1152,64], index: 3, kind: input, shape index: {}]   ;;  %s9761_s4 = inlined_call_operand.hbm [shape: f32[1,64], index: 4, kind: input, shape index: {}]   ;;  %s9762_s5 = inlined_call_operand.hbm [shape: f32[1152,128], index: 5, kind: input, shape index: {}]   ;;  %s9763_s6 = inlined_call_operand.hbm [shape: f32[1,128], index: 6, kind: input, shape index: {}]   ;;  %s9764_s7 = inlined_call_operand.vmem [shape: f32[192,128], index: 7, kind: output, shape index: {}]  }
   0x1   :  { %13 = vsyncpa [#allocation7], 0 }
   0x2   :  { %14 = vsyncpa [#allocation10], 0  ;;  %s7104_s24 = smov [#allocation6]   ;;  %s7105_s26 = smov [#allocation4]  }
   0x3   :  { %s37_s25 = sshll.u32 %s7104_s24, 4  ;;  %s25_s27 = sshll.u32 %s7105_s26, 4  ;;  %s38_s25 = int_to_ptr.vmem [resolvable:$true] %s37_s25  ;;  %s26_s27 = int_to_ptr.vmem [resolvable:$true] %s25_s27 }
   0x4   :  { %s7010_s30 = scalar_lea.hbm %s9761_s4, 16 }
   0x5   :  { %p7011_p0 = scmp.ne.s32.totalorder %s9761_s4, %s7010_s30  ;;  %p7014_p1 = scmp.lt.u32.totalorder %s7010_s30, %s9761_s4 }
   0x7   :  { %p7016_p2 = pnand %p7014_p1, %p7011_p0 }
   0x9   :  { %7019 = shalt.err (!%p7016_p2)
}
   0xa   :  { %s7020_s12 = scalar_lea.vmem %s38_s25, 16  ;;  %s7024_s13 = scalar_lea.vmem %s38_s25, 32 }
   0xb   :  { %p7021_p3 = scmp.ne.s32.totalorder %s38_s25, %s7020_s12  ;;  %p7025_p4 = scmp.lt.s32.totalorder %s38_s25, %s38_s25 }
   0xc   :  { %p7026_p5 = scmp.lt.s32.totalorder %s7024_s13, %s7020_s12 }
   0xe   :  { %p7027_p6 = por %p7026_p5, %p7025_p4 }
  0x10   :  { %p7028_p7 = pnand %p7027_p6, %p7021_p3 }
  0x12   :  { %7031 = shalt.err (!%p7028_p7)
}
  0x13   :  { %40 = dma.hbm_to_vmem [thread:$0]  %s9761_s4, 16, %s38_s25, [#allocation7]  }
  0x14   :  { %s7032_s18 = scalar_lea.hbm %s9759_s2, 16 }
  0x15   :  { %p7033_p8 = scmp.ne.s32.totalorder %s9759_s2, %s7032_s18  ;;  %p7036_p9 = scmp.lt.u32.totalorder %s7032_s18, %s9759_s2 }
  0x17   :  { %p7038_p10 = pnand %p7036_p9, %p7033_p8 }
  0x19   :  { %7041 = shalt.err (!%p7038_p10)
}
  0x1a   :  { %s7042_s23 = scalar_lea.vmem %s26_s27, 16  ;;  %s7046_s24 = scalar_lea.vmem %s26_s27, 32 }
  0x1b   :  { %p7043_p11 = scmp.ne.s32.totalorder %s26_s27, %s7042_s23  ;;  %p7047_p12 = scmp.lt.s32.totalorder %s26_s27, %s26_s27 }
  0x1c   :  { %p7048_p13 = scmp.lt.s32.totalorder %s7046_s24, %s7042_s23 }
  0x1e   :  { %p7049_p0 = por %p7048_p13, %p7047_p12 }
  0x20   :  { %p7050_p1 = pnand %p7049_p0, %p7043_p11 }
  0x22   :  { %7053 = shalt.err (!%p7050_p1)
}
  0x23   :  { %28 = dma.hbm_to_vmem [thread:$0]  %s9759_s2, 16, %s26_s27, [#allocation5]  }
  0x24   :  { %s7106_s26 = smov [#allocation8]   ;;  %s7054_s8 = scalar_lea.hbm %s9762_s5, 18432 }
  0x25   :  { %s46_s28 = sshll.u32 %s7106_s26, 4  ;;  %p7055_p2 = scmp.ne.s32.totalorder %s9762_s5, %s7054_s8  ;;  %s47_s28 = int_to_ptr.vmem [resolvable:$true] %s46_s28 }
  0x26   :  { %p7058_p3 = scmp.lt.u32.totalorder %s7054_s8, %s9762_s5 }
  0x28   :  { %p7060_p4 = pnand %p7058_p3, %p7055_p2 }
  0x2a   :  { %7063 = shalt.err (!%p7060_p4)
}
  0x2b   :  { %s7064_s13 = scalar_lea.vmem %s47_s28, 18432  ;;  %p7069_p6 = scmp.lt.s32.totalorder %s47_s28, %s47_s28 }
  0x2c   :  { %p7065_p5 = scmp.ne.s32.totalorder %s47_s28, %s7064_s13  ;;  %p7070_p7 = scmp.lt.s32.totalorder %s7064_s13, %s7064_s13 }
  0x2e   :  { %p7071_p8 = por %p7070_p7, %p7069_p6 }
  0x30   :  { %p7072_p9 = pnand %p7071_p8, %p7065_p5 }
  0x32   :  { %7075 = shalt.err (!%p7072_p9)
}
  0x33   :  { %s7107_s2 = smov 128   ;;  %s7108_s27 = smov 8  }
  0x34   :  { %52 = dma.hbm_to_vmem [thread:$0]  %s9762_s5, 18432, %s47_s28, [#allocation7], %s7107_s2, %s7107_s2, %s7108_s27  }
  0x35   :  { %s7109_s16 = smov [#allocation9]   ;;  %s7076_s20 = scalar_lea.hbm %s9763_s6, 16 }
  0x36   :  { %s59_s17 = sshll.u32 %s7109_s16, 4  ;;  %p7077_p10 = scmp.ne.s32.totalorder %s9763_s6, %s7076_s20  ;;  %s60_s17 = int_to_ptr.vmem [resolvable:$true] %s59_s17 }
  0x37   :  { %p7080_p11 = scmp.lt.u32.totalorder %s7076_s20, %s9763_s6 }
  0x39   :  { %p7082_p12 = pnand %p7080_p11, %p7077_p10 }
  0x3b   :  { %7085 = shalt.err (!%p7082_p12)
}
  0x3c   :  { %s7086_s4 = scalar_lea.vmem %s60_s17, 16  ;;  %s7090_s5 = scalar_lea.vmem %s60_s17, 32 }
  0x3d   :  { %p7087_p13 = scmp.ne.s32.totalorder %s60_s17, %s7086_s4  ;;  %p7091_p0 = scmp.lt.s32.totalorder %s60_s17, %s60_s17 }
  0x3e   :  { %p7092_p1 = scmp.lt.s32.totalorder %s7090_s5, %s7086_s4 }
  0x40   :  { %p7093_p2 = por %p7092_p1, %p7091_p0 }
  0x42   :  { %p7094_p3 = pnand %p7093_p2, %p7087_p13 }
  0x44   :  { %7097 = shalt.err (!%p7094_p3)
}
  0x45   :  { %62 = dma.hbm_to_vmem [thread:$0]  %s9763_s6, 16, %s60_s17, [#allocation10]  }
  0x46   :  { %7098 = dma.done.wait [#allocation5], 16  }
  0x47   :  { %7099 = vsyncadd [#allocation5], 4294967280 }
  0x48   :  { %7100 = dma.done.wait [#allocation7], 18448  }
  0x49   :  { %7101 = vsyncadd [#allocation7], 4294948848 }
  0x4a   :  { %7102 = dma.done.wait [#allocation10], 16  }
  0x4b   :  { %7103 = vsyncadd [#allocation10], 4294967280  ;;  %v9765_v0 = vmov 0.0|0.0   ;;  %v7111_v1 = vmov 0.0   ;;  %v824_v2 = vld [vmem:[%s9758_s1] sm:$0xff]  ;;  %v825_v3 = vld [vmem:[%s9758_s1 + $0x8] sm:$0xff] }
  0x4c   :  { %5828 = vmatprep.subr.bf16.mxu0 %v9765_v0  ;;  %80 = vst [vmem:[#allocation2 + $0x28] sm:$0xff] %v7111_v1  ;;  %81 = vst [vmem:[#allocation2 + $0x30] sm:$0xff] %v7111_v1  ;;  %v826_v4 = vld [vmem:[%s9758_s1 + $0x10] sm:$0xff]  ;;  %v5829_v5 = vpack.c.bf16 %v825_v3, %v824_v2  ;;  %v827_v6 = vld [vmem:[%s9758_s1 + $0x18] sm:$0xff]  ;;  %vm150_vm0 = vcmask 113664   ;;  %vm1924_vm1 = vcmask 130048  }
  0x4d   :  { %75 = vst [vmem:[#allocation2] sm:$0xff] %v7111_v1  ;;  %76 = vst [vmem:[#allocation2 + $0x8] sm:$0xff] %v7111_v1  ;;  %v5832_v7 = vpack.c.bf16 %v827_v6, %v826_v4  ;;  %v828_v8 = vld [vmem:[%s9758_s1 + $0x20] sm:$0xff]  ;;  %v829_v9 = vld [vmem:[%s9758_s1 + $0x28] sm:$0xff]  ;;  %vm3697_vm2 = vcmask 523264  }
  0x4e   :  { %77 = vst [vmem:[#allocation2 + $0x10] sm:$0xff] %v7111_v1  ;;  %78 = vst [vmem:[#allocation2 + $0x18] sm:$0xff] %v7111_v1  ;;  %5830 = vmatpush1.bf16.msra.mxu0 %v5829_v5  ;;  %v5835_v10 = vpack.c.bf16 %v829_v9, %v828_v8  ;;  %v830_v11 = vld [vmem:[%s9758_s1 + $0x30] sm:$0xff]  ;;  %v831_v12 = vld [vmem:[%s9758_s1 + $0x38] sm:$0xff] }
  0x4f   :  { %79 = vst [vmem:[#allocation2 + $0x20] sm:$0x3] %v7111_v1  ;;  %82 = vst [vmem:[#allocation2 + $0x38] sm:$0xff] %v7111_v1  ;;  %5831 = vmatprep.subr.bf16.mxu0 %v9765_v0  ;;  %v125_v13 = vld [vmem:[%s9757_s0] sm:$0xff]  ;;  %v5838_v14 = vpack.c.bf16 %v831_v12, %v830_v11  ;;  %v126_v15 = vld [vmem:[%s9757_s0 + $0x8] sm:$0xff] }
  0x50   :  { %83 = vst [vmem:[#allocation2 + $0x40] sm:$0xff] %v7111_v1  ;;  %84 = vst [vmem:[#allocation2 + $0x48] sm:$0x3] %v7111_v1  ;;  %v832_v16 = vld [vmem:[%s9758_s1 + $0x40] sm:$0xff]  ;;  %v833_v17 = vld [vmem:[%s9758_s1 + $0x48] sm:$0xff] }
  0x51   :  { %85 = vst [vmem:[#allocation2 + $0x50] sm:$0xff] %v7111_v1  ;;  %86 = vst [vmem:[#allocation2 + $0x58] sm:$0xff] %v7111_v1  ;;  %v127_v18 = vld [vmem:[%s9757_s0 + $0x10] sm:$0xff]  ;;  %v128_v19 = vld [vmem:[%s9757_s0 + $0x18] sm:$0xff]  ;;  %v5841_v22 = vpack.c.bf16 %v833_v17, %v832_v16 }
  0x52   :  { %87 = vst [vmem:[#allocation2 + $0x60] sm:$0xff] %v7111_v1  ;;  %88 = vst [vmem:[#allocation2 + $0x68] sm:$0xff] %v7111_v1  ;;  %5833 = vmatpush1.bf16.msra.mxu0 %v5832_v7  ;;  %v129_v20 = vld [vmem:[%s9757_s0 + $0x20] sm:$0xff]  ;;  %v130_v21 = vld [vmem:[%s9757_s0 + $0x28] sm:$0xff] }
  0x53   :  { %89 = vst [vmem:[#allocation2 + $0x70] sm:$0x3] %v7111_v1  ;;  %90 = vst [vmem:[#allocation2 + $0x78] sm:$0xff] %v7111_v1  ;;  %5834 = vmatprep.subr.bf16.mxu0 %v9765_v0  ;;  %v834_v23 = vld [vmem:[%s9758_s1 + $0x50] sm:$0xff]  ;;  %v835_v25 = vld [vmem:[%s9758_s1 + $0x58] sm:$0xff] }
  0x54   :  { %91 = vst [vmem:[#allocation2 + $0x80] sm:$0xff] %v7111_v1  ;;  %92 = vst [vmem:[#allocation2 + $0x88] sm:$0xff] %v7111_v1  ;;  %v131_v24 = vld [vmem:[%s9757_s0 + $0x30] sm:$0xff]  ;;  %v132_v26 = vld [vmem:[%s9757_s0 + $0x38] sm:$0xff]  ;;  %v5844_v30 = vpack.c.bf16 %v835_v25, %v834_v23 }
  0x55   :  { %93 = vst [vmem:[#allocation2 + $0x90] sm:$0xff] %v7111_v1  ;;  %94 = vst [vmem:[#allocation2 + $0x98] sm:$0x3] %v7111_v1  ;;  %v133_v27 = vld [vmem:[%s9757_s0 + $0x40] sm:$0xff]  ;;  %v134_v28 = vld [vmem:[%s9757_s0 + $0x48] sm:$0xff] }
  0x56   :  { %95 = vst [vmem:[#allocation2 + $0xa0] sm:$0xff] %v7111_v1  ;;  %96 = vst [vmem:[#allocation2 + $0xa8] sm:$0xff] %v7111_v1  ;;  %5836 = vmatpush1.bf16.msra.mxu0 %v5835_v10  ;;  %v135_v31 = vld [vmem:[%s9757_s0 + $0x50] sm:$0xff]  ;;  %v136_v32 = vld [vmem:[%s9757_s0 + $0x58] sm:$0xff] }
  0x57   :  { %97 = vst [vmem:[#allocation2 + $0xb0] sm:$0xff] %v7111_v1  ;;  %98 = vst [vmem:[#allocation2 + $0xb8] sm:$0xff] %v7111_v1  ;;  %5837 = vmatprep.subr.bf16.mxu0 %v9765_v0  ;;  %v836_v33 = vld [vmem:[%s9758_s1 + $0x60] sm:$0xff]  ;;  %v837_v34 = vld [vmem:[%s9758_s1 + $0x68] sm:$0xff] }
  0x58   :  { %99 = vst [vmem:[#allocation2 + $0xc0] sm:$0x3] %v7111_v1  ;;  %100 = vst [vmem:[#allocation2 + $0xc8] sm:$0xff] %v7111_v1  ;;  %v137_v35 = vld [vmem:[%s9757_s0 + $0x60] sm:$0xff]  ;;  %v5847_v36 = vpack.c.bf16 %v837_v34, %v836_v33  ;;  %v138_v37 = vld [vmem:[%s9757_s0 + $0x68] sm:$0xff] }
  0x59   :  { %101 = vst [vmem:[#allocation2 + $0xd0] sm:$0xff] %v7111_v1  ;;  %102 = vst [vmem:[#allocation2 + $0xd8] sm:$0xff] %v7111_v1  ;;  %v139_v38 = vld [vmem:[%s9757_s0 + $0x70] sm:$0xff]  ;;  %v839_v40 = vld [vmem:[%s9758_s1 + $0x78] sm:$0xff] }
  0x5a   :  { %103 = vst [vmem:[#allocation2 + $0xe0] sm:$0xff] %v7111_v1  ;;  %104 = vst [vmem:[#allocation2 + $0xe8] sm:$0x3] %v7111_v1  ;;  %5839 = vmatpush1.bf16.msra.mxu0 %v5838_v14  ;;  %v838_v39 = vld [vmem:[%s9758_s1 + $0x70] sm:$0xff]  ;;  %v140_v41 = vld [vmem:[%s9757_s0 + $0x78] sm:$0xff] }
  0x5b   :  { %105 = vst [vmem:[#allocation2 + $0xf0] sm:$0xff] %v7111_v1  ;;  %106 = vst [vmem:[#allocation2 + $0xf8] sm:$0xff] %v7111_v1  ;;  %5840 = vmatprep.subr.bf16.mxu0 %v9765_v0  ;;  %v141_v42 = vld [vmem:[%s9757_s0 + $0x80] sm:$0xff]  ;;  %v5850_v43 = vpack.c.bf16 %v839_v40, %v838_v39  ;;  %v142_v44 = vld [vmem:[%s9757_s0 + $0x88] sm:$0xff] }
  0x5c   :  { %107 = vst [vmem:[#allocation2 + $0x100] sm:$0xff] %v7111_v1  ;;  %108 = vst [vmem:[#allocation2 + $0x108] sm:$0xff] %v7111_v1  ;;  %v840_v45 = vld [vmem:[%s9758_s1 + $0x80] sm:$0xff]  ;;  %v841_v46 = vld [vmem:[%s9758_s1 + $0x88] sm:$0xff] }
  0x5d   :  { %109 = vst [vmem:[#allocation2 + $0x110] sm:$0x3] %v7111_v1  ;;  %110 = vst [vmem:[#allocation2 + $0x118] sm:$0xff] %v7111_v1  ;;  %v143_v47 = vld [vmem:[%s9757_s0 + $0x90] sm:$0xff]  ;;  %v144_v48 = vld [vmem:[%s9757_s0 + $0x98] sm:$0xff]  ;;  %v5853_v50 = vpack.c.bf16 %v841_v46, %v840_v45 }
  0x5e   :  { %111 = vst [vmem:[#allocation2 + $0x120] sm:$0xff] %v7111_v1  ;;  %112 = vst [vmem:[#allocation2 + $0x128] sm:$0xff] %v7111_v1  ;;  %5842 = vmatpush1.bf16.msra.mxu0 %v5841_v22  ;;  %v145_v49 = vld [vmem:[%s9757_s0 + $0xa0] sm:$0xff]  ;;  %v842_v51 = vld [vmem:[%s9758_s1 + $0x90] sm:$0xff] }
  0x5f   :  { %113 = vst [vmem:[#allocation2 + $0x130] sm:$0xff] %v7111_v1  ;;  %114 = vst [vmem:[#allocation2 + $0x138] sm:$0x3] %v7111_v1  ;;  %5843 = vmatprep.subr.bf16.mxu0 %v9765_v0  ;;  %v843_v52 = vld [vmem:[%s9758_s1 + $0x98] sm:$0xff]  ;;  %v146_v53 = vld [vmem:[%s9757_s0 + $0xa8] sm:$0xff] }
  0x60   :  { %115 = vst [vmem:[#allocation2 + $0x140] sm:$0xff] %v7111_v1  ;;  %116 = vst [vmem:[#allocation2 + $0x148] sm:$0xff] %v7111_v1  ;;  %v147_v54 = vld [vmem:[%s9757_s0 + $0xb0] sm:$0xff]  ;;  %v148_v55 = vld [vmem:[%s9757_s0 + $0xb8] sm:$0xff]  ;;  %v5856_v56 = vpack.c.bf16 %v843_v52, %v842_v51 }
  0x61   :  { %117 = vst [vmem:[#allocation2 + $0x150] sm:$0xff] %v7111_v1  ;;  %118 = vst [vmem:[#allocation2 + $0x158] sm:$0xff] %v7111_v1  ;;  %v844_v57 = vld [vmem:[%s9758_s1 + $0xa0] sm:$0xff]  ;;  %v845_v58 = vld [vmem:[%s9758_s1 + $0xa8] sm:$0xff] }
  0x62   :  { %119 = vst [vmem:[#allocation2 + $0x160] sm:$0x3] %v7111_v1  ;;  %120 = vst [vmem:[#allocation2 + $0x168] sm:$0xff] %v7111_v1  ;;  %5845 = vmatpush1.bf16.msra.mxu0 %v5844_v30  ;;  %v5859_v59 = vpack.c.bf16 %v845_v58, %v844_v57  ;;  %v846_v60 = vld [vmem:[%s9758_s1 + $0xb0] sm:$0xff]  ;;  %v847_v61 = vld [vmem:[%s9758_s1 + $0xb8] sm:$0xff] }
  0x63   :  { %121 = vst [vmem:[#allocation2 + $0x170] sm:$0xff] %v7111_v1  ;;  %122 = vst [vmem:[#allocation2 + $0x178] sm:$0xff] %v7111_v1  ;;  %5846 = vmatprep.subr.bf16.mxu0 %v9765_v0  ;;  %v5862_v62 = vpack.c.bf16 %v847_v61, %v846_v60  ;;  %v848_v63 = vld [vmem:[%s9758_s1 + $0xc0] sm:$0xff]  ;;  %v849_v2 = vld [vmem:[%s9758_s1 + $0xc8] sm:$0xff] }
  0x64   :  { %123 = vst [vmem:[#allocation2 + $0x180] sm:$0xff] %v7111_v1  ;;  %124 = vst [vmem:[#allocation2 + $0x188] sm:$0x3] %v7111_v1  ;;  %v5865_v3 = vpack.c.bf16 %v849_v2, %v848_v63  ;;  %v850_v4 = vld [vmem:[%s9758_s1 + $0xd0] sm:$0xff]  ;;  %v851_v5 = vld [vmem:[%s9758_s1 + $0xd8] sm:$0xff] }
  0x65   :  { %151 = vst.msk [vmem:[#allocation2 + $0x29] sm:$0xff] %vm150_vm0, %v125_v13  ;;  %152 = vst.msk [vmem:[#allocation2 + $0x31] sm:$0xff] %vm150_vm0, %v126_v15  ;;  %v5868_v6 = vpack.c.bf16 %v851_v5, %v850_v4  ;;  %v852_v7 = vld [vmem:[%s9758_s1 + $0xe0] sm:$0xff]  ;;  %v853_v8 = vld [vmem:[%s9758_s1 + $0xe8] sm:$0xff] }
  0x66   :  { %153 = vst.msk [vmem:[#allocation2 + $0x39] sm:$0xff] %vm150_vm0, %v127_v18  ;;  %154 = vst.msk [vmem:[#allocation2 + $0x41] sm:$0xff] %vm150_vm0, %v128_v19  ;;  %5848 = vmatpush1.bf16.msra.mxu0 %v5847_v36  ;;  %v5871_v9 = vpack.c.bf16 %v853_v8, %v852_v7  ;;  %v854_v10 = vld [vmem:[%s9758_s1 + $0xf0] sm:$0xff]  ;;  %v855_v11 = vld [vmem:[%s9758_s1 + $0xf8] sm:$0xff] }
  0x67   :  { %155 = vst.msk [vmem:[#allocation2 + $0x51] sm:$0xff] %vm150_vm0, %v129_v20  ;;  %156 = vst.msk [vmem:[#allocation2 + $0x59] sm:$0xff] %vm150_vm0, %v130_v21  ;;  %5849 = vmatprep.subr.bf16.mxu0 %v9765_v0  ;;  %v5874_v12 = vpack.c.bf16 %v855_v11, %v854_v10  ;;  %v856_v13 = vld [vmem:[%s9758_s1 + $0x100] sm:$0xff]  ;;  %v857_v14 = vld [vmem:[%s9758_s1 + $0x108] sm:$0xff] }
  0x68   :  { %157 = vst.msk [vmem:[#allocation2 + $0x61] sm:$0xff] %vm150_vm0, %v131_v24  ;;  %158 = vst.msk [vmem:[#allocation2 + $0x69] sm:$0xff] %vm150_vm0, %v132_v26  ;;  %v5877_v15 = vpack.c.bf16 %v857_v14, %v856_v13  ;;  %v858_v17 = vld [vmem:[%s9758_s1 + $0x110] sm:$0xff]  ;;  %v859_v18 = vld [vmem:[%s9758_s1 + $0x118] sm:$0xff] }
  0x69   :  { %159 = vst.msk [vmem:[#allocation2 + $0x79] sm:$0xff] %vm150_vm0, %v133_v27  ;;  %160 = vst.msk [vmem:[#allocation2 + $0x81] sm:$0xff] %vm150_vm0, %v134_v28  ;;  %v5880_v19 = vpack.c.bf16 %v859_v18, %v858_v17  ;;  %v860_v21 = vld [vmem:[%s9758_s1 + $0x120] sm:$0xff]  ;;  %v861_v22 = vld [vmem:[%s9758_s1 + $0x128] sm:$0xff] }
  0x6a   :  { %161 = vst.msk [vmem:[#allocation2 + $0x89] sm:$0xff] %vm150_vm0, %v135_v31  ;;  %162 = vst.msk [vmem:[#allocation2 + $0x91] sm:$0xff] %vm150_vm0, %v136_v32  ;;  %5851 = vmatpush1.bf16.msra.mxu0 %v5850_v43  ;;  %v5883_v23 = vpack.c.bf16 %v861_v22, %v860_v21  ;;  %v862_v25 = vld [vmem:[%s9758_s1 + $0x130] sm:$0xff]  ;;  %v863_v26 = vld [vmem:[%s9758_s1 + $0x138] sm:$0xff] }
  0x6b   :  { %163 = vst.msk [vmem:[#allocation2 + $0xf1] sm:$0xff] %vm150_vm0, %v137_v35  ;;  %164 = vst.msk [vmem:[#allocation2 + $0xf9] sm:$0xff] %vm150_vm0, %v138_v37  ;;  %5852 = vmatprep.subr.bf16.mxu0 %v9765_v0  ;;  %v5886_v27 = vpack.c.bf16 %v863_v26, %v862_v25  ;;  %v864_v30 = vld [vmem:[%s9758_s1 + $0x140] sm:$0xff]  ;;  %v865_v31 = vld [vmem:[%s9758_s1 + $0x148] sm:$0xff] }
  0x6c   :  { %v7330_v29 = vld [vmem:[#allocation2 + $0x28] sm:$0xff]  ;;  %165 = vst.msk [vmem:[#allocation2 + $0x101] sm:$0xff] %vm150_vm0, %v139_v38  ;;  %166 = vst.msk [vmem:[#allocation2 + $0x109] sm:$0xff] %vm150_vm0, %v140_v41  ;;  %v224_v16 = vld [vmem:[#allocation2 + $0x30] sm:$0xff]  ;;  %v5889_v32 = vpack.c.bf16 %v865_v31, %v864_v30 }
  0x6d   :  { %1039 = vmatprep.mubr.f32.mxu0 %v7330_v29  ;;  %167 = vst.msk [vmem:[#allocation2 + $0x119] sm:$0xff] %vm150_vm0, %v141_v42  ;;  %168 = vst.msk [vmem:[#allocation2 + $0x121] sm:$0xff] %vm150_vm0, %v142_v44  ;;  %v225_v20 = vld [vmem:[#allocation2 + $0x38] sm:$0xff]  ;;  %v226_v24 = vld [vmem:[#allocation2 + $0x40] sm:$0xff] }
  0x6e   :  { %169 = vst.msk [vmem:[#allocation2 + $0x129] sm:$0xff] %vm150_vm0, %v143_v47  ;;  %170 = vst.msk [vmem:[#allocation2 + $0x131] sm:$0xff] %vm150_vm0, %v144_v48  ;;  %5854 = vmatpush1.bf16.msra.mxu0 %v5853_v50  ;;  %v7491_v28 = vld [vmem:[#allocation2 + $0x50] sm:$0xff]  ;;  %v7502_v33 = vld [vmem:[#allocation2 + $0x58] sm:$0xff] }
  0x6f   :  { %171 = vst.msk [vmem:[#allocation2 + $0x141] sm:$0xff] %vm150_vm0, %v145_v49  ;;  %172 = vst.msk [vmem:[#allocation2 + $0x149] sm:$0xff] %vm150_vm0, %v146_v53  ;;  %5855 = vmatprep.subr.bf16.mxu0 %v9765_v0  ;;  %v866_v34 = vld [vmem:[%s9758_s1 + $0x150] sm:$0xff]  ;;  %v867_v35 = vld [vmem:[%s9758_s1 + $0x158] sm:$0xff] }
  0x70   :  { %173 = vst.msk [vmem:[#allocation2 + $0x151] sm:$0xff] %vm150_vm0, %v147_v54  ;;  %174 = vst.msk [vmem:[#allocation2 + $0x159] sm:$0xff] %vm150_vm0, %v148_v55  ;;  %v5892_v36 = vpack.c.bf16 %v867_v35, %v866_v34  ;;  %v7513_v37 = vld [vmem:[#allocation2 + $0x60] sm:$0xff]  ;;  %v869_v39 = vld [vmem:[%s9758_s1 + $0x168] sm:$0xff] }
  0x71   :  { %v868_v38 = vld [vmem:[%s9758_s1 + $0x160] sm:$0xff]  ;;  %v7523_v40 = vld [vmem:[#allocation2 + $0x68] sm:$0xff]  ;;  %v870_v41 = vld [vmem:[%s9758_s1 + $0x170] sm:$0xff] }
  0x72   :  { %5857 = vmatpush1.bf16.msra.mxu0 %v5856_v56  ;;  %v871_v42 = vld [vmem:[%s9758_s1 + $0x178] sm:$0xff]  ;;  %v872_v45 = vld [vmem:[%s9758_s1 + $0x180] sm:$0xff]  ;;  %v873_v46 = vld [vmem:[%s9758_s1 + $0x188] sm:$0xff] }
  0x73   :  { %5858 = vmatprep.subr.bf16.mxu0 %v9765_v0  ;;  %v5898_v43 = vpack.c.bf16 %v871_v42, %v870_v41  ;;  %v7533_v44 = vld [vmem:[#allocation2 + $0x78] sm:$0xff]  ;;  %v5901_v47 = vpack.c.bf16 %v873_v46, %v872_v45  ;;  %v7543_v48 = vld [vmem:[#allocation2 + $0x80] sm:$0xff]  ;;  %v874_v49 = vld [vmem:[%s9758_s1 + $0x190] sm:$0xff] }
  0x74   :  { %v875_v50 = vld [vmem:[%s9758_s1 + $0x198] sm:$0xff]  ;;  %v7554_v52 = vld [vmem:[#allocation2 + $0x88] sm:$0xff]  ;;  %v876_v53 = vld [vmem:[%s9758_s1 + $0x1a0] sm:$0xff] }
  0x75   :  { %v5904_v51 = vpack.c.bf16 %v875_v50, %v874_v49  ;;  %v877_v54 = vld [vmem:[%s9758_s1 + $0x1a8] sm:$0xff]  ;;  %v7565_v56 = vld [vmem:[#allocation2 + $0x90] sm:$0xff]  ;;  %v879_v58 = vld [vmem:[%s9758_s1 + $0x1b8] sm:$0xff] }
  0x76   :  { %5860 = vmatpush1.bf16.msra.mxu0 %v5859_v59  ;;  %v5907_v55 = vpack.c.bf16 %v877_v54, %v876_v53  ;;  %v878_v57 = vld [vmem:[%s9758_s1 + $0x1b0] sm:$0xff]  ;;  %v880_v61 = vld [vmem:[%s9758_s1 + $0x1c0] sm:$0xff]  ;;  %v236_v2 = vld [vmem:[#allocation2 + $0xf8] sm:$0xff] }
  0x77   :  { %5861 = vmatprep.subr.bf16.mxu0 %v9765_v0  ;;  %v5910_v59 = vpack.c.bf16 %v879_v58, %v878_v57  ;;  %v235_v60 = vld [vmem:[#allocation2 + $0xf0] sm:$0xff]  ;;  %v883_v4 = vld [vmem:[%s9758_s1 + $0x1d8] sm:$0xff]  ;;  %v884_v7 = vld [vmem:[%s9758_s1 + $0x1e0] sm:$0xff] }
  0x78   :  { %v885_v8 = vld [vmem:[%s9758_s1 + $0x1e8] sm:$0xff]  ;;  %v886_v11 = vld [vmem:[%s9758_s1 + $0x1f0] sm:$0xff]  ;;  %v7608_v14 = vld [vmem:[#allocation2 + $0x118] sm:$0xff] }
  0x79   :  { %v238_v10 = vld [vmem:[#allocation2 + $0x108] sm:$0xff]  ;;  %v7620_v17 = vld [vmem:[#allocation2 + $0x130] sm:$0xff]  ;;  %v7623_v18 = vld [vmem:[#allocation2 + $0x140] sm:$0xff] }
  0x7a   :  { %5863 = vmatpush1.bf16.msra.mxu0 %v5862_v62  ;;  %v881_v62 = vld [vmem:[%s9758_s1 + $0x1c8] sm:$0xff]  ;;  %v7634_v21 = vld [vmem:[#allocation2 + $0x158] sm:$0xff]  ;;  %v892_v34 = vld [vmem:[%s9758_s1 + $0x220] sm:$0xff] }
  0x7b   :  { %5864 = vmatprep.subr.bf16.mxu0 %v9765_v0  ;;  %v5913_v63 = vpack.c.bf16 %v881_v62, %v880_v61  ;;  %v320_v22 = vld [vmem:[#allocation2 + $0x1] sm:$0xff]  ;;  %v321_v26 = vld [vmem:[#allocation2 + $0x9] sm:$0xff]  ;;  %v891_v30 = vld [vmem:[%s9758_s1 + $0x218] sm:$0xff] }
  0x7c   :  { %v893_v35 = vld [vmem:[%s9758_s1 + $0x228] sm:$0xff]  ;;  %v896_v41 = vld [vmem:[%s9758_s1 + $0x240] sm:$0xff]  ;;  %v898_v45 = vld [vmem:[%s9758_s1 + $0x250] sm:$0xff] }
  0x7d   :  { %v897_v42 = vld [vmem:[%s9758_s1 + $0x248] sm:$0xff]  ;;  %v899_v46 = vld [vmem:[%s9758_s1 + $0x258] sm:$0xff]  ;;  %v900_v49 = vld [vmem:[%s9758_s1 + $0x260] sm:$0xff] }
  0x7e   :  { %5866 = vmatpush1.bf16.msra.mxu0 %v5865_v3  ;;  %v882_v3 = vld [vmem:[%s9758_s1 + $0x1d0] sm:$0xff]  ;;  %v901_v50 = vld [vmem:[%s9758_s1 + $0x268] sm:$0xff]  ;;  %v903_v54 = vld [vmem:[%s9758_s1 + $0x278] sm:$0xff] }
  0x7f   :  { %5867 = vmatprep.subr.bf16.mxu0 %v9765_v0  ;;  %v5916_v5 = vpack.c.bf16 %v883_v4, %v882_v3  ;;  %v902_v53 = vld [vmem:[%s9758_s1 + $0x270] sm:$0xff]  ;;  %v904_v57 = vld [vmem:[%s9758_s1 + $0x280] sm:$0xff]  ;;  %v905_v58 = vld [vmem:[%s9758_s1 + $0x288] sm:$0xff] }
  0x80   :  { %v907_v61 = vld [vmem:[%s9758_s1 + $0x298] sm:$0xff]  ;;  %v953_v62 = vld [vmem:[%s9758_s1 + $0x408] sm:$0xff]  ;;  %v908_v4 = vld [vmem:[%s9758_s1 + $0x2a0] sm:$0xff] }
  0x82   :  { %5869 = vmatpush1.bf16.msra.mxu0 %v5868_v6  ;;  %v237_v6 = vld [vmem:[#allocation2 + $0x100] sm:$0xff] }
  0x83   :  { %5870 = vmatprep.subr.bf16.mxu0 %v9765_v0 }
  0x86   :  { %5872 = vmatpush1.bf16.msra.mxu0 %v5871_v9  ;;  %v5919_v9 = vpack.c.bf16 %v885_v8, %v884_v7  ;;  %v955_v7 = vld [vmem:[%s9758_s1 + $0x418] sm:$0xff] }
  0x87   :  { %5873 = vmatprep.subr.bf16.mxu0 %v9765_v0 }
  0x8a   :  { %5875 = vmatpush1.bf16.msra.mxu0 %v5874_v12  ;;  %v887_v12 = vld [vmem:[%s9758_s1 + $0x1f8] sm:$0xff] }
  0x8b   :  { %5876 = vmatprep.subr.bf16.mxu0 %v9765_v0  ;;  %v5922_v13 = vpack.c.bf16 %v887_v12, %v886_v11  ;;  %v910_v11 = vld [vmem:[%s9758_s1 + $0x2b0] sm:$0xff]  ;;  %v911_v12 = vld [vmem:[%s9758_s1 + $0x2b8] sm:$0xff] }
  0x8d   :  { %1040 = vmatmul.mubr.f32.vlgmr.msra.gmra.mrb[0].mxu0 %v7111_v1 }
  0x8e   :  { %5878 = vmatpush1.bf16.msra.mxu0 %v5877_v15  ;;  %1044 = vmatprep.mubr.f32.mxu0 %v224_v16  ;;  %v7613_v15 = vld [vmem:[#allocation2 + $0x120] sm:$0xff] }
  0x8f   :  { %5879 = vmatprep.subr.bf16.mxu0 %v9765_v0 }
  0x91   :  { %1045 = vmatmul.mubr.f32.gmra.mrb[2].mxu0 %v7111_v1 }
  0x92   :  { %1049 = vmatprep.mubr.f32.mxu0 %v225_v20  ;;  %5881 = vmatpush1.bf16.msra.mxu0 %v5880_v19  ;;  %v7626_v19 = vld [vmem:[#allocation2 + $0x148] sm:$0xff] }
  0x93   :  { %5882 = vmatprep.subr.bf16.mxu0 %v9765_v0 }
  0x95   :  { %1050 = vmatmul.mubr.f32.gmra.mrb[4].mxu0 %v7111_v1 }
  0x96   :  { %1054 = vmatprep.mubr.f32.mxu0 %v226_v24  ;;  %5884 = vmatpush1.bf16.msra.mxu0 %v5883_v23  ;;  %v888_v23 = vld [vmem:[%s9758_s1 + $0x200] sm:$0xff] }
  0x97   :  { %5885 = vmatprep.subr.bf16.mxu0 %v9765_v0 }
  0x99   :  { %1055 = vmatmul.mubr.f32.gmra.mrb[6].mxu0 %v7111_v1 }
  0x9a   :  { %1059 = vmatprep.mubr.f32.mxu0 %v7491_v28  ;;  %5887 = vmatpush1.bf16.msra.mxu0 %v5886_v27  ;;  %v890_v27 = vld [vmem:[%s9758_s1 + $0x210] sm:$0xff] }
  0x9b   :  { %5888 = vmatprep.subr.bf16.mxu0 %v9765_v0  ;;  %v5928_v31 = vpack.c.bf16 %v891_v30, %v890_v27  ;;  %v913_v27 = vld [vmem:[%s9758_s1 + $0x2c8] sm:$0xff]  ;;  %v958_v30 = vld [vmem:[%s9758_s1 + $0x430] sm:$0xff] }
  0x9d   :  { %1060 = vmatmul.mubr.f32.gmra.mrb[8].mxu0 %v7330_v29  ;;  %v5895_v29 = vpack.c.bf16 %v869_v39, %v868_v38  ;;  %v894_v38 = vld [vmem:[%s9758_s1 + $0x230] sm:$0xff]  ;;  %v895_v39 = vld [vmem:[%s9758_s1 + $0x238] sm:$0xff] }
  0x9e   :  { %1064 = vmatprep.mubr.f32.mxu0 %v7502_v33  ;;  %5890 = vmatpush1.bf16.msra.mxu0 %v5889_v32  ;;  %v322_v32 = vld [vmem:[#allocation2 + $0x11] sm:$0xff] }
  0x9f   :  { %5891 = vmatprep.subr.bf16.mxu0 %v9765_v0 }
  0xa1   :  { %1065 = vmatmul.mubr.f32.gmra.mrb[10].mxu0 %v224_v16  ;;  %v7617_v16 = vld [vmem:[#allocation2 + $0x128] sm:$0xff] }
  0xa2   :  { %1069 = vmatprep.mubr.f32.mxu0 %v7513_v37  ;;  %5893 = vmatpush1.bf16.msra.mxu0 %v5892_v36  ;;  %v5931_v36 = vpack.c.bf16 %v893_v35, %v892_v34  ;;  %v333_v34 = vld [vmem:[#allocation2 + $0xd1] sm:$0xff] }
  0xa3   :  { %5894 = vmatprep.subr.bf16.mxu0 %v9765_v0 }
  0xa5   :  { %1070 = vmatmul.mubr.f32.gmra.mrb[12].mxu0 %v225_v20  ;;  %v7630_v20 = vld [vmem:[#allocation2 + $0x150] sm:$0xff] }
  0xa6   :  { %1074 = vmatprep.mubr.f32.mxu0 %v7523_v40  ;;  %5896 = vmatpush1.bf16.msra.mxu0 %v5895_v29  ;;  %v5934_v29 = vpack.c.bf16 %v895_v39, %v894_v38  ;;  %v960_v38 = vld [vmem:[%s9758_s1 + $0x440] sm:$0xff] }
  0xa7   :  { %5897 = vmatprep.subr.bf16.mxu0 %v9765_v0 }
  0xa9   :  { %1075 = vmatmul.mubr.f32.gmra.mrb[14].mxu0 %v226_v24  ;;  %v889_v24 = vld [vmem:[%s9758_s1 + $0x208] sm:$0xff] }
  0xaa   :  { %1079 = vmatprep.mubr.f32.mxu0 %v7533_v44  ;;  %5899 = vmatpush1.bf16.msra.mxu0 %v5898_v43  ;;  %v5925_v25 = vpack.c.bf16 %v889_v24, %v888_v23  ;;  %v7679_v43 = vld [vmem:[#allocation2 + $0x31] sm:$0xff]  ;;  %v332_v24 = vld [vmem:[#allocation2 + $0xc9] sm:$0xff] }
  0xab   :  { %5900 = vmatprep.subr.bf16.mxu0 %v9765_v0 }
  0xad   :  { %1080 = vmatmul.mubr.f32.gmra.mrb[16].mxu0 %v7491_v28 }
  0xae   :  { %1084 = vmatprep.mubr.f32.mxu0 %v7543_v48  ;;  %5902 = vmatpush1.bf16.msra.mxu0 %v5901_v47  ;;  %v7690_v47 = vld [vmem:[#allocation2 + $0x39] sm:$0xff] }
  0xaf   :  { %5903 = vmatprep.subr.bf16.mxu0 %v9765_v0 }
  0xb1   :  { %1085 = vmatmul.mubr.f32.gmra.mrb[18].mxu0 %v7502_v33 }
  0xb2   :  { %1089 = vmatprep.mubr.f32.mxu0 %v7554_v52  ;;  %5905 = vmatpush1.bf16.msra.mxu0 %v5904_v51  ;;  %v7701_v51 = vld [vmem:[#allocation2 + $0x41] sm:$0xff] }
  0xb3   :  { %5906 = vmatprep.subr.bf16.mxu0 %v9765_v0 }
  0xb5   :  { %1090 = vmatmul.mubr.f32.gmra.mrb[20].mxu0 %v7513_v37 }
  0xb6   :  { %1094 = vmatprep.mubr.f32.mxu0 %v7565_v56  ;;  %5908 = vmatpush1.bf16.msra.mxu0 %v5907_v55  ;;  %v7712_v55 = vld [vmem:[#allocation2 + $0x51] sm:$0xff] }
  0xb7   :  { %5909 = vmatprep.subr.bf16.mxu0 %v9765_v0 }
  0xb9   :  { %1095 = vmatmul.mubr.f32.gmra.mrb[22].mxu0 %v7523_v40 }
  0xba   :  { %1099 = vmatprep.mubr.f32.mxu0 %v235_v60  ;;  %5911 = vmatpush1.bf16.msra.mxu0 %v5910_v59  ;;  %v5949_v59 = vpack.c.bf16 %v905_v58, %v904_v57  ;;  %v7830_v57 = vld [vmem:[#allocation2 + $0xf1] sm:$0xff] }
  0xbb   :  { %5912 = vmatprep.subr.bf16.mxu0 %v9765_v0  ;;  %v966_v58 = vld [vmem:[%s9758_s1 + $0x470] sm:$0xff] }
  0xbd   :  { %1100 = vmatmul.mubr.f32.gmra.mrb[24].mxu0 %v7111_v1 }
  0xbe   :  { %1104 = vmatprep.mubr.f32.mxu0 %v236_v2  ;;  %5914 = vmatpush1.bf16.msra.mxu0 %v5913_v63 }
  0xbf   :  { %5915 = vmatprep.subr.bf16.mxu0 %v9765_v0 }
  0xc1   :  { %1105 = vmatmul.mubr.f32.gmra.mrb[26].mxu0 %v7111_v1 }
  0xc2   :  { %1109 = vmatprep.mubr.f32.mxu0 %v237_v6  ;;  %5917 = vmatpush1.bf16.msra.mxu0 %v5916_v5  ;;  %v909_v5 = vld [vmem:[%s9758_s1 + $0x2a8] sm:$0xff] }
  0xc3   :  { %5918 = vmatprep.subr.bf16.mxu0 %v9765_v0 }
  0xc5   :  { %1110 = vmatmul.mubr.f32.gmra.mrb[28].mxu0 %v7111_v1 }
  0xc6   :  { %1114 = vmatprep.mubr.f32.mxu0 %v238_v10  ;;  %5920 = vmatpush1.bf16.msra.mxu0 %v5919_v9  ;;  %v7757_v9 = vld [vmem:[#allocation2 + $0x69] sm:$0xff] }
  0xc7   :  { %5921 = vmatprep.subr.bf16.mxu0 %v9765_v0 }
  0xc9   :  { %1115 = vmatmul.mubr.f32.gmra.mrb[30].mxu0 %v7111_v1 }
  0xca   :  { %1119 = vmatprep.mubr.f32.mxu0 %v7608_v14  ;;  %5923 = vmatpush1.bf16.msra.mxu0 %v5922_v13  ;;  %v956_v13 = vld [vmem:[%s9758_s1 + $0x420] sm:$0xff] }
  0xcb   :  { %5924 = vmatprep.subr.bf16.mxu0 %v9765_v0 }
  0xcd   :  { %1120 = vmatmul.mubr.f32.gmra.mrb[32].mxu0 %v235_v60  ;;  %v906_v60 = vld [vmem:[%s9758_s1 + $0x290] sm:$0xff] }
  0xce   :  { %1124 = vmatprep.mubr.f32.mxu0 %v7613_v15  ;;  %v5952_v3 = vpack.c.bf16 %v907_v61, %v906_v60  ;;  %v7844_v61 = vld [vmem:[#allocation2 + $0x52] sm:$0xff] }
  0xcf   :  { %5656 = vmatprep.mubr.f32.mxu1 %v7844_v61 }
  0xd1   :  { %1125 = vmatmul.mubr.f32.gmra.mrb[34].mxu0 %v236_v2  ;;  %v7740_v2 = vld [vmem:[#allocation2 + $0x61] sm:$0xff] }
  0xd2   :  { %1129 = vmatprep.mubr.f32.mxu0 %v7617_v16 }
  0xd5   :  { %1130 = vmatmul.mubr.f32.gmra.mrb[36].mxu0 %v237_v6  ;;  %v954_v6 = vld [vmem:[%s9758_s1 + $0x410] sm:$0xff] }
  0xd6   :  { %1134 = vmatprep.mubr.f32.mxu0 %v7620_v17  ;;  %v6024_v8 = vpack.c.bf16 %v955_v7, %v954_v6  ;;  %v7883_v6 = vld [vmem:[#allocation2 + $0x129] sm:$0xff] }
  0xd7   :  { %v7889_v7 = vld [vmem:[#allocation2 + $0x8a] sm:$0xff] }
  0xd9   :  { %1135 = vmatmul.mubr.f32.gmra.mrb[38].mxu0 %v238_v10  ;;  %v5955_v10 = vpack.c.bf16 %v909_v5, %v908_v4  ;;  %v7873_v4 = vld [vmem:[#allocation2 + $0x7a] sm:$0xff] }
  0xda   :  { %1139 = vmatprep.mubr.f32.mxu0 %v7623_v18  ;;  %v7878_v5 = vld [vmem:[#allocation2] sm:$0xff] }
  0xdd   :  { %1140 = vmatmul.mubr.f32.gmra.mrb[40].mxu0 %v7608_v14 }
  0xde   :  { %1144 = vmatprep.mubr.f32.mxu0 %v7626_v19 }
  0xe1   :  { %1145 = vmatmul.mubr.f32.gmra.mrb[42].mxu0 %v7613_v15 }
  0xe2   :  { %1149 = vmatprep.mubr.f32.mxu0 %v7630_v20 }
  0xe5   :  { %1150 = vmatmul.mubr.f32.gmra.mrb[44].mxu0 %v7617_v16 }
  0xe6   :  { %1154 = vmatprep.mubr.f32.mxu0 %v7634_v21 }
  0xe9   :  { %1155 = vmatmul.mubr.f32.gmra.mrb[46].mxu0 %v7620_v17 }
  0xea   :  { %1224 = vmatprep.mubr.f32.mxu0 %v320_v22  ;;  %v957_v22 = vld [vmem:[%s9758_s1 + $0x428] sm:$0xff] }
  0xeb   :  { %v6028_v23 = vpack.c.bf16 %v957_v22, %v956_v13  ;;  %v922_v13 = vld [vmem:[%s9758_s1 + $0x310] sm:$0xff]  ;;  %v923_v22 = vld [vmem:[%s9758_s1 + $0x318] sm:$0xff] }
  0xed   :  { %1225 = vmatmul.mubr.f32.vlgmr.msra.gmra.mrb[0].mxu0 %v7491_v28  ;;  %v323_v28 = vld [vmem:[#allocation2 + $0x19] sm:$0xff] }
  0xee   :  { %5926 = vmatpush1.bf16.msra.mxu0 %v5925_v25  ;;  %1229 = vmatprep.mubr.f32.mxu0 %v321_v26  ;;  %v5958_v25 = vpack.c.bf16 %v911_v12, %v910_v11  ;;  %v912_v26 = vld [vmem:[%s9758_s1 + $0x2c0] sm:$0xff]  ;;  %v921_v11 = vld [vmem:[%s9758_s1 + $0x308] sm:$0xff] }
  0xef   :  { %5927 = vmatprep.subr.bf16.mxu0 %v9765_v0  ;;  %v5961_v35 = vpack.c.bf16 %v913_v27, %v912_v26  ;;  %v924_v26 = vld [vmem:[%s9758_s1 + $0x320] sm:$0xff]  ;;  %v925_v27 = vld [vmem:[%s9758_s1 + $0x328] sm:$0xff] }
  0xf1   :  { %1230 = vmatmul.mubr.f32.gmra.mrb[2].mxu0 %v7502_v33  ;;  %v7668_v33 = vld [vmem:[#allocation2 + $0x29] sm:$0xff] }
  0xf2   :  { %1234 = vmatprep.mubr.f32.mxu0 %v322_v32  ;;  %5929 = vmatpush1.bf16.msra.mxu0 %v5928_v31  ;;  %v959_v31 = vld [vmem:[%s9758_s1 + $0x438] sm:$0xff] }
  0xf3   :  { %5930 = vmatprep.subr.bf16.mxu0 %v9765_v0  ;;  %v6032_v32 = vpack.c.bf16 %v959_v31, %v958_v30  ;;  %v926_v30 = vld [vmem:[%s9758_s1 + $0x330] sm:$0xff]  ;;  %v927_v31 = vld [vmem:[%s9758_s1 + $0x338] sm:$0xff] }
  0xf5   :  { %1235 = vmatmul.mubr.f32.gmra.mrb[4].mxu0 %v7513_v37  ;;  %v5937_v37 = vpack.c.bf16 %v897_v42, %v896_v41  ;;  %v916_v42 = vld [vmem:[%s9758_s1 + $0x2e0] sm:$0xff] }
  0xf6   :  { %1239 = vmatprep.mubr.f32.mxu0 %v323_v28  ;;  %5932 = vmatpush1.bf16.msra.mxu0 %v5931_v36  ;;  %v914_v36 = vld [vmem:[%s9758_s1 + $0x2d0] sm:$0xff]  ;;  %v915_v28 = vld [vmem:[%s9758_s1 + $0x2d8] sm:$0xff] }
  0xf7   :  { %5933 = vmatprep.subr.bf16.mxu0 %v9765_v0  ;;  %v5964_v41 = vpack.c.bf16 %v915_v28, %v914_v36  ;;  %v928_v36 = vld [vmem:[%s9758_s1 + $0x340] sm:$0xff]  ;;  %v929_v28 = vld [vmem:[%s9758_s1 + $0x348] sm:$0xff] }
  0xf9   :  { %1240 = vmatmul.mubr.f32.gmra.mrb[6].mxu0 %v7523_v40  ;;  %v5940_v40 = vpack.c.bf16 %v899_v46, %v898_v45  ;;  %v962_v45 = vld [vmem:[%s9758_s1 + $0x450] sm:$0xff] }
  0xfa   :  { %1244 = vmatprep.mubr.f32.mxu0 %v7668_v33  ;;  %5935 = vmatpush1.bf16.msra.mxu0 %v5934_v29  ;;  %v334_v29 = vld [vmem:[#allocation2 + $0xd9] sm:$0xff] }
  0xfb   :  { %5936 = vmatprep.subr.bf16.mxu0 %v9765_v0 }
  0xfd   :  { %1245 = vmatmul.mubr.f32.gmra.mrb[8].mxu0 %v7533_v44  ;;  %v5943_v44 = vpack.c.bf16 %v901_v50, %v900_v49  ;;  %v918_v50 = vld [vmem:[%s9758_s1 + $0x2f0] sm:$0xff] }
  0xfe   :  { %1249 = vmatprep.mubr.f32.mxu0 %v7679_v43  ;;  %5938 = vmatpush1.bf16.msra.mxu0 %v5937_v37  ;;  %v917_v37 = vld [vmem:[%s9758_s1 + $0x2e8] sm:$0xff] }
  0xff   :  { %5939 = vmatprep.subr.bf16.mxu0 %v9765_v0  ;;  %v5967_v49 = vpack.c.bf16 %v917_v37, %v916_v42  ;;  %v422_v42 = vld [vmem:[#allocation2 + $0x89] sm:$0xff]  ;;  %v932_v37 = vld [vmem:[%s9758_s1 + $0x360] sm:$0xff] }
 0x101   :  { %1250 = vmatmul.mubr.f32.gmra.mrb[10].mxu0 %v7543_v48  ;;  %v5946_v48 = vpack.c.bf16 %v903_v54, %v902_v53  ;;  %v964_v53 = vld [vmem:[%s9758_s1 + $0x460] sm:$0xff] }
 0x102   :  { %1254 = vmatprep.mubr.f32.mxu0 %v7690_v47  ;;  %5941 = vmatpush1.bf16.msra.mxu0 %v5940_v40  ;;  %v335_v40 = vld [vmem:[#allocation2 + $0xe1] sm:$0xff] }
 0x103   :  { %5942 = vmatprep.subr.bf16.mxu0 %v9765_v0 }
 0x105   :  { %1255 = vmatmul.mubr.f32.gmra.mrb[12].mxu0 %v7554_v52  ;;  %v7723_v52 = vld [vmem:[#allocation2 + $0x59] sm:$0xff] }
 0x106   :  { %1259 = vmatprep.mubr.f32.mxu0 %v7701_v51  ;;  %5944 = vmatpush1.bf16.msra.mxu0 %v5943_v44  ;;  %v919_v44 = vld [vmem:[%s9758_s1 + $0x2f8] sm:$0xff] }
 0x107   :  { %5945 = vmatprep.subr.bf16.mxu0 %v9765_v0 }
 0x109   :  { %1260 = vmatmul.mubr.f32.gmra.mrb[14].mxu0 %v7565_v56  ;;  %v952_v56 = vld [vmem:[%s9758_s1 + $0x400] sm:$0xff] }
 0x10a   :  { %1264 = vmatprep.mubr.f32.mxu0 %v7712_v55  ;;  %5947 = vmatpush1.bf16.msra.mxu0 %v5946_v48  ;;  %v6020_v63 = vpack.c.bf16 %v953_v62, %v952_v56  ;;  %v5970_v48 = vpack.c.bf16 %v919_v44, %v918_v50  ;;  %v7848_v56 = vld [vmem:[#allocation2 + $0x5a] sm:$0xff]  ;;  %v7857_v62 = vld [vmem:[#allocation2 + $0x109] sm:$0xff] }
 0x10b   :  { %5948 = vmatprep.subr.bf16.mxu0 %v9765_v0  ;;  %v424_v44 = vld [vmem:[#allocation2 + $0xa1] sm:$0xff] }
 0x10c   :  { %6021 = vmatprep.subr.bf16.mxu1 %v6020_v63 }
 0x10d   :  { %1265 = vmatmul.mubr.f32.gmra.mrb[16].mxu0 %v7111_v1  ;;  %6023 = vmatpush3.bf16.msra.mxu1 %v6020_v63  ;;  %v7859_v63 = vld [vmem:[#allocation2 + $0x62] sm:$0xff] }
 0x10e   :  { %1269 = vmatprep.mubr.f32.mxu0 %v7723_v52  ;;  %5950 = vmatpush1.bf16.msra.mxu0 %v5949_v59  ;;  %v967_v59 = vld [vmem:[%s9758_s1 + $0x478] sm:$0xff] }
 0x10f   :  { %5951 = vmatprep.subr.bf16.mxu0 %v9765_v0  ;;  %6025 = vmatprep.subr.bf16.mxu1 %v6024_v8  ;;  %v6048_v60 = vpack.c.bf16 %v967_v59, %v966_v58  ;;  %v939_v58 = vld [vmem:[%s9758_s1 + $0x398] sm:$0xff]  ;;  %v7990_v59 = vld [vmem:[#allocation2 + $0x142] sm:$0xff] }
 0x111   :  { %1270 = vmatmul.mubr.f32.gmra.mrb[18].mxu0 %v7111_v1  ;;  %6027 = vmatpush3.bf16.msra.mxu1 %v6024_v8  ;;  %v7892_v8 = vld [vmem:[#allocation2 + $0x92] sm:$0xff] }
 0x112   :  { %1274 = vmatprep.mubr.f32.mxu0 %v7740_v2  ;;  %5953 = vmatpush1.bf16.msra.mxu0 %v5952_v3  ;;  %v7867_v3 = vld [vmem:[#allocation2 + $0x119] sm:$0xff] }
 0x113   :  { %5954 = vmatprep.subr.bf16.mxu0 %v9765_v0  ;;  %6029 = vmatprep.subr.bf16.mxu1 %v6028_v23 }
 0x115   :  { %1275 = vmatmul.mubr.f32.gmra.mrb[20].mxu0 %v7111_v1  ;;  %6031 = vmatpush3.bf16.msra.mxu1 %v6028_v23  ;;  %v568_v23 = vld [vmem:[#allocation2 + $0xa2] sm:$0xff] }
 0x116   :  { %1279 = vmatprep.mubr.f32.mxu0 %v7757_v9  ;;  %5956 = vmatpush1.bf16.msra.mxu0 %v5955_v10  ;;  %v920_v10 = vld [vmem:[%s9758_s1 + $0x300] sm:$0xff] }
 0x117   :  { %5957 = vmatprep.subr.bf16.mxu0 %v9765_v0  ;;  %6033 = vmatprep.subr.bf16.mxu1 %v6032_v32  ;;  %v5973_v12 = vpack.c.bf16 %v921_v11, %v920_v10  ;;  %v426_v10 = vld [vmem:[#allocation2 + $0xb1] sm:$0xff]  ;;  %v940_v11 = vld [vmem:[%s9758_s1 + $0x3a0] sm:$0xff] }
 0x119   :  { %1280 = vmatmul.mubr.f32.gmra.mrb[22].mxu0 %v7111_v1  ;;  %v961_v1 = vld [vmem:[%s9758_s1 + $0x448] sm:$0xff]  ;;  %6035 = vmatpush3.bf16.msra.mxu1 %v6032_v32  ;;  %v570_v32 = vld [vmem:[#allocation2 + $0xb2] sm:$0xff] }
 0x11a   :  { %1284 = vmatprep.mubr.f32.mxu0 %v332_v24  ;;  %5959 = vmatpush1.bf16.msra.mxu0 %v5958_v25  ;;  %v6036_v39 = vpack.c.bf16 %v961_v1, %v960_v38  ;;  %v569_v24 = vld [vmem:[#allocation2 + $0xaa] sm:$0xff]  ;;  %v5976_v25 = vpack.c.bf16 %v923_v22, %v922_v13  ;;  %v421_v38 = vld [vmem:[#allocation2 + $0x81] sm:$0xff]  ;;  %v427_v13 = vld [vmem:[#allocation2 + $0xb9] sm:$0xff] }
 0x11b   :  { %5960 = vmatprep.subr.bf16.mxu0 %v9765_v0  ;;  %v930_v1 = vld [vmem:[%s9758_s1 + $0x350] sm:$0xff] }
 0x11c   :  { %6037 = vmatprep.subr.bf16.mxu1 %v6036_v39 }
 0x11d   :  { %1285 = vmatmul.mubr.f32.gmra.mrb[24].mxu0 %v7608_v14  ;;  %v963_v14 = vld [vmem:[%s9758_s1 + $0x458] sm:$0xff]  ;;  %6039 = vmatpush3.bf16.msra.mxu1 %v6036_v39 }
 0x11e   :  { %1289 = vmatprep.mubr.f32.mxu0 %v333_v34  ;;  %5962 = vmatpush1.bf16.msra.mxu0 %v5961_v35  ;;  %v6040_v46 = vpack.c.bf16 %v963_v14, %v962_v45  ;;  %v571_v34 = vld [vmem:[#allocation2 + $0xba] sm:$0xff]  ;;  %v933_v45 = vld [vmem:[%s9758_s1 + $0x368] sm:$0xff]  ;;  %v423_v14 = vld [vmem:[#allocation2 + $0x91] sm:$0xff] }
 0x11f   :  { %5963 = vmatprep.subr.bf16.mxu0 %v9765_v0  ;;  %v420_v35 = vld [vmem:[#allocation2 + $0x79] sm:$0xff] }
 0x120   :  { %6041 = vmatprep.subr.bf16.mxu1 %v6040_v46  ;;  %v931_v39 = vld [vmem:[%s9758_s1 + $0x358] sm:$0xff] }
 0x121   :  { %1290 = vmatmul.mubr.f32.gmra.mrb[26].mxu0 %v7613_v15  ;;  %v965_v15 = vld [vmem:[%s9758_s1 + $0x468] sm:$0xff]  ;;  %6043 = vmatpush3.bf16.msra.mxu1 %v6040_v46  ;;  %v934_v46 = vld [vmem:[%s9758_s1 + $0x370] sm:$0xff] }
 0x122   :  { %1294 = vmatprep.mubr.f32.mxu0 %v334_v29  ;;  %5965 = vmatpush1.bf16.msra.mxu0 %v5964_v41  ;;  %v6044_v54 = vpack.c.bf16 %v965_v15, %v964_v53  ;;  %v7946_v29 = vld [vmem:[#allocation2 + $0x11a] sm:$0xff]  ;;  %v5988_v41 = vpack.c.bf16 %v931_v39, %v930_v1  ;;  %v937_v15 = vld [vmem:[%s9758_s1 + $0x388] sm:$0xff] }
 0x123   :  { %5966 = vmatprep.subr.bf16.mxu0 %v9765_v0  ;;  %v936_v53 = vld [vmem:[%s9758_s1 + $0x380] sm:$0xff]  ;;  %v951_v1 = vld [vmem:[%s9758_s1 + $0x3f8] sm:$0xff] }
 0x124   :  { %6045 = vmatprep.subr.bf16.mxu1 %v6044_v54  ;;  %v582_v39 = vld [vmem:[#allocation2 + $0x17a] sm:$0xff] }
 0x125   :  { %1295 = vmatmul.mubr.f32.gmra.mrb[28].mxu0 %v7617_v16  ;;  %6047 = vmatpush3.bf16.msra.mxu1 %v6044_v54  ;;  %v7841_v16 = vld [vmem:[#allocation2 + $0xf9] sm:$0xff]  ;;  %v5997_v54 = vpack.c.bf16 %v937_v15, %v936_v53  ;;  %v2635_v15 = vld [vmem:[%s9760_s3 + $0x130] sm:$0xff] }
 0x126   :  { %1299 = vmatprep.mubr.f32.mxu0 %v335_v40  ;;  %5968 = vmatpush1.bf16.msra.mxu0 %v5967_v49  ;;  %v935_v40 = vld [vmem:[%s9758_s1 + $0x378] sm:$0xff]  ;;  %v7968_v49 = vld [vmem:[#allocation2 + $0x12a] sm:$0xff] }
 0x127   :  { %5969 = vmatprep.subr.bf16.mxu0 %v9765_v0  ;;  %6049 = vmatprep.subr.bf16.mxu1 %v6048_v60  ;;  %v5994_v50 = vpack.c.bf16 %v935_v40, %v934_v46  ;;  %v434_v46 = vld [vmem:[#allocation2 + $0x151] sm:$0xff] }
 0x129   :  { %1300 = vmatmul.mubr.f32.gmra.mrb[30].mxu0 %v7620_v17  ;;  %6051 = vmatpush3.bf16.msra.mxu1 %v6048_v60  ;;  %v7852_v17 = vld [vmem:[#allocation2 + $0x101] sm:$0xff]  ;;  %v7993_v60 = vld [vmem:[#allocation2 + $0x14a] sm:$0xff] }
 0x12a   :  { %1304 = vmatprep.mubr.f32.mxu0 %v7830_v57  ;;  %5971 = vmatpush1.bf16.msra.mxu0 %v5970_v48  ;;  %v938_v48 = vld [vmem:[%s9758_s1 + $0x390] sm:$0xff] }
 0x12b   :  { %5972 = vmatprep.subr.bf16.mxu0 %v9765_v0  ;;  %6100 = vmatprep.subr.bf16.mxu1 %v9765_v0 }
 0x12c   :  { %5657 = vmatmul.mubr.f32.vlgmr.msra.gmra.mrb[0].mxu1 %v7848_v56 }
 0x12d   :  { %1305 = vmatmul.mubr.f32.gmra.mrb[32].mxu0 %v7623_v18  ;;  %5659 = vmatprep.mubr.f32.mxu1 %v7859_v63  ;;  %v7863_v18 = vld [vmem:[#allocation2 + $0x6a] sm:$0xff] }
 0x12e   :  { %1309 = vmatprep.mubr.f32.mxu0 %v7841_v16 }
 0x130   :  { %5660 = vmatmul.mubr.f32.gmra.mrb[2].mxu1 %v7863_v18 }
 0x131   :  { %1310 = vmatmul.mubr.f32.gmra.mrb[34].mxu0 %v7626_v19  ;;  %v7871_v19 = vld [vmem:[#allocation2 + $0x121] sm:$0xff]  ;;  %5662 = vmatprep.mubr.f32.mxu1 %v7873_v4 }
 0x132   :  { %1314 = vmatprep.mubr.f32.mxu0 %v7852_v17 }
 0x135   :  { %1315 = vmatmul.mubr.f32.gmra.mrb[36].mxu0 %v7630_v20  ;;  %v7876_v20 = vld [vmem:[#allocation2 + $0x82] sm:$0xff] }
 0x136   :  { %1319 = vmatprep.mubr.f32.mxu0 %v7857_v62  ;;  %5663 = vmatmul.mubr.f32.gmra.mrb[4].mxu1 %v7876_v20 }
 0x137   :  { %5665 = vmatprep.mubr.f32.mxu1 %v7889_v7 }
 0x139   :  { %1320 = vmatmul.mubr.f32.gmra.mrb[38].mxu0 %v7634_v21  ;;  %v7887_v21 = vld [vmem:[#allocation2 + $0x131] sm:$0xff] }
 0x13a   :  { %1324 = vmatprep.mubr.f32.mxu0 %v7867_v3  ;;  %5666 = vmatmul.mubr.f32.gmra.mrb[6].mxu1 %v7892_v8 }
 0x13b   :  { %5668 = vmatprep.mubr.f32.mxu1 %v568_v23  ;;  %v942_v23 = vld [vmem:[%s9758_s1 + $0x3b0] sm:$0xff] }
 0x13d   :  { %1325 = vmatmul.mubr.f32.gmra.mrb[40].mxu0 %v7878_v5 }
 0x13e   :  { %1329 = vmatprep.mubr.f32.mxu0 %v7871_v19  ;;  %5669 = vmatmul.mubr.f32.gmra.mrb[8].mxu1 %v569_v24  ;;  %v943_v24 = vld [vmem:[%s9758_s1 + $0x3b8] sm:$0xff] }
 0x13f   :  { %5671 = vmatprep.mubr.f32.mxu1 %v570_v32  ;;  %v946_v32 = vld [vmem:[%s9758_s1 + $0x3d0] sm:$0xff] }
 0x141   :  { %1330 = vmatmul.mubr.f32.gmra.mrb[42].mxu0 %v7878_v5 }
 0x142   :  { %1334 = vmatprep.mubr.f32.mxu0 %v7883_v6  ;;  %5672 = vmatmul.mubr.f32.gmra.mrb[10].mxu1 %v571_v34  ;;  %v947_v34 = vld [vmem:[%s9758_s1 + $0x3d8] sm:$0xff] }
 0x143   :  { %5674 = vmatprep.mubr.f32.mxu1 %v7946_v29 }
 0x145   :  { %1335 = vmatmul.mubr.f32.gmra.mrb[44].mxu0 %v7878_v5 }
 0x146   :  { %1339 = vmatprep.mubr.f32.mxu0 %v7887_v21 }
 0x149   :  { %1340 = vmatmul.mubr.f32.gmra.mrb[46].mxu0 %v7878_v5 }
 0x14a   :  { %1409 = vmatprep.mubr.f32.mxu0 %v7712_v55 }
 0x14d   :  { %1410 = vmatmul.mubr.f32.vlgmr.msra.gmra.mrb[0].mxu0 %v7668_v33  ;;  %v5979_v33 = vpack.c.bf16 %v925_v27, %v924_v26  ;;  %v8013_v26 = vld [vmem:[#allocation2 + $0x15a] sm:$0xff]  ;;  %v6006_v27 = vpack.c.bf16 %v943_v24, %v942_v23 }
 0x14e   :  { %5974 = vmatpush1.bf16.msra.mxu0 %v5973_v12  ;;  %1414 = vmatprep.mubr.f32.mxu0 %v7723_v52  ;;  %v941_v12 = vld [vmem:[%s9758_s1 + $0x3a8] sm:$0xff] }
 0x14f   :  { %5975 = vmatprep.subr.bf16.mxu0 %v9765_v0  ;;  %v6003_v22 = vpack.c.bf16 %v941_v12, %v940_v11  ;;  %v2640_v11 = vld [vmem:[%s9760_s3 + $0x158] sm:$0xff]  ;;  %v439_v23 = vld [vmem:[#allocation2 + $0x181] sm:$0xff] }
 0x150   :  { %v438_v12 = vld [vmem:[#allocation2 + $0x179] sm:$0xff] }
 0x151   :  { %1415 = vmatmul.mubr.f32.gmra.mrb[2].mxu0 %v7679_v43  ;;  %v5982_v43 = vpack.c.bf16 %v927_v31, %v926_v30  ;;  %v945_v30 = vld [vmem:[%s9758_s1 + $0x3c8] sm:$0xff] }
 0x152   :  { %1419 = vmatprep.mubr.f32.mxu0 %v7740_v2  ;;  %5977 = vmatpush1.bf16.msra.mxu0 %v5976_v25  ;;  %v8010_v25 = vld [vmem:[#allocation2 + $0x152] sm:$0xff] }
 0x153   :  { %5978 = vmatprep.subr.bf16.mxu0 %v9765_v0 }
 0x155   :  { %1420 = vmatmul.mubr.f32.gmra.mrb[4].mxu0 %v7690_v47  ;;  %v5985_v47 = vpack.c.bf16 %v929_v28, %v928_v36  ;;  %v6012_v36 = vpack.c.bf16 %v947_v34, %v946_v32  ;;  %v948_v28 = vld [vmem:[%s9758_s1 + $0x3e0] sm:$0xff]  ;;  %v2598_v32 = vld [vmem:[%s9760_s3 + $0x8] sm:$0xff] }
 0x156   :  { %1424 = vmatprep.mubr.f32.mxu0 %v7757_v9  ;;  %5980 = vmatpush1.bf16.msra.mxu0 %v5979_v33  ;;  %v944_v33 = vld [vmem:[%s9758_s1 + $0x3c0] sm:$0xff] }
 0x157   :  { %5981 = vmatprep.subr.bf16.mxu0 %v9765_v0  ;;  %v6009_v31 = vpack.c.bf16 %v945_v30, %v944_v33  ;;  %v2644_v33 = vld [vmem:[%s9760_s3 + $0x178] sm:$0xff]  ;;  %v512_v30 = vld [vmem:[#allocation2 + $0x2a] sm:$0xff] }
 0x159   :  { %1425 = vmatmul.mubr.f32.gmra.mrb[6].mxu0 %v7701_v51  ;;  %v7950_v51 = vld [vmem:[#allocation2 + $0x122] sm:$0xff] }
 0x15a   :  { %1429 = vmatprep.mubr.f32.mxu0 %v420_v35  ;;  %5983 = vmatpush1.bf16.msra.mxu0 %v5982_v43  ;;  %v580_v43 = vld [vmem:[#allocation2 + $0x16a] sm:$0xff] }
 0x15b   :  { %5984 = vmatprep.subr.bf16.mxu0 %v9765_v0  ;;  %5675 = vmatmul.mubr.f32.gmra.mrb[12].mxu1 %v7950_v51 }
 0x15c   :  { %5677 = vmatprep.mubr.f32.mxu1 %v7968_v49 }
 0x15d   :  { %1430 = vmatmul.mubr.f32.gmra.mrb[8].mxu0 %v7712_v55  ;;  %v5991_v55 = vpack.c.bf16 %v933_v45, %v932_v37  ;;  %v433_v37 = vld [vmem:[#allocation2 + $0x149] sm:$0xff]  ;;  %v2629_v45 = vld [vmem:[%s9760_s3 + $0x100] sm:$0xff] }
 0x15e   :  { %1434 = vmatprep.mubr.f32.mxu0 %v421_v38  ;;  %5986 = vmatpush1.bf16.msra.mxu0 %v5985_v47  ;;  %v949_v47 = vld [vmem:[%s9758_s1 + $0x3e8] sm:$0xff] }
 0x15f   :  { %5987 = vmatprep.subr.bf16.mxu0 %v9765_v0 }
 0x161   :  { %1435 = vmatmul.mubr.f32.gmra.mrb[10].mxu0 %v7723_v52  ;;  %v7972_v52 = vld [vmem:[#allocation2 + $0x132] sm:$0xff] }
 0x162   :  { %1439 = vmatprep.mubr.f32.mxu0 %v422_v42  ;;  %5989 = vmatpush1.bf16.msra.mxu0 %v5988_v41  ;;  %v583_v41 = vld [vmem:[#allocation2 + $0x182] sm:$0xff] }
 0x163   :  { %5990 = vmatprep.subr.bf16.mxu0 %v9765_v0  ;;  %5678 = vmatmul.mubr.f32.gmra.mrb[14].mxu1 %v7972_v52 }
 0x164   :  { %5680 = vmatprep.mubr.f32.mxu1 %v7990_v59 }
 0x165   :  { %1440 = vmatmul.mubr.f32.gmra.mrb[12].mxu0 %v7740_v2  ;;  %v425_v2 = vld [vmem:[#allocation2 + $0xa9] sm:$0xff] }
 0x166   :  { %1444 = vmatprep.mubr.f32.mxu0 %v423_v14  ;;  %5992 = vmatpush1.bf16.msra.mxu0 %v5991_v55 }
 0x167   :  { %5993 = vmatprep.subr.bf16.mxu0 %v9765_v0  ;;  %5681 = vmatmul.mubr.f32.gmra.mrb[16].mxu1 %v7993_v60 }
 0x168   :  { %5683 = vmatprep.mubr.f32.mxu1 %v8010_v25 }
 0x169   :  { %1445 = vmatmul.mubr.f32.gmra.mrb[14].mxu0 %v7757_v9  ;;  %v6000_v9 = vpack.c.bf16 %v939_v58, %v938_v48  ;;  %v2637_v48 = vld [vmem:[%s9760_s3 + $0x140] sm:$0xff]  ;;  %v2638_v58 = vld [vmem:[%s9760_s3 + $0x148] sm:$0xff] }
 0x16a   :  { %1449 = vmatprep.mubr.f32.mxu0 %v424_v44  ;;  %5995 = vmatpush1.bf16.msra.mxu0 %v5994_v50  ;;  %v2633_v50 = vld [vmem:[%s9760_s3 + $0x120] sm:$0xff] }
 0x16b   :  { %5996 = vmatprep.subr.bf16.mxu0 %v9765_v0  ;;  %5684 = vmatmul.mubr.f32.gmra.mrb[18].mxu1 %v8013_v26  ;;  %v435_v44 = vld [vmem:[#allocation2 + $0x159] sm:$0xff] }
 0x16c   :  { %5686 = vmatprep.mubr.f32.mxu1 %v580_v43  ;;  %v464_v43 = vld [vmem:[#allocation2 + $0x2] sm:$0xff] }
 0x16d   :  { %1450 = vmatmul.mubr.f32.gmra.mrb[16].mxu0 %v420_v35  ;;  %v581_v35 = vld [vmem:[#allocation2 + $0x172] sm:$0xff] }
 0x16e   :  { %1454 = vmatprep.mubr.f32.mxu0 %v425_v2  ;;  %5998 = vmatpush1.bf16.msra.mxu0 %v5997_v54  ;;  %v2636_v2 = vld [vmem:[%s9760_s3 + $0x138] sm:$0xff]  ;;  %v436_v54 = vld [vmem:[#allocation2 + $0x169] sm:$0xff] }
 0x16f   :  { %5999 = vmatprep.subr.bf16.mxu0 %v9765_v0  ;;  %5687 = vmatmul.mubr.f32.gmra.mrb[20].mxu1 %v581_v35 }
 0x170   :  { %5689 = vmatprep.mubr.f32.mxu1 %v582_v39  ;;  %v2601_v39 = vld [vmem:[%s9760_s3 + $0x20] sm:$0xff] }
 0x171   :  { %1455 = vmatmul.mubr.f32.gmra.mrb[18].mxu0 %v421_v38  ;;  %v950_v38 = vld [vmem:[%s9758_s1 + $0x3f0] sm:$0xff] }
 0x172   :  { %1459 = vmatprep.mubr.f32.mxu0 %v426_v10  ;;  %6001 = vmatpush1.bf16.msra.mxu0 %v6000_v9  ;;  %v437_v9 = vld [vmem:[#allocation2 + $0x171] sm:$0xff] }
 0x173   :  { %6002 = vmatprep.subr.bf16.mxu0 %v9765_v0  ;;  %5690 = vmatmul.mubr.f32.gmra.mrb[22].mxu1 %v583_v41  ;;  %v2639_v10 = vld [vmem:[%s9760_s3 + $0x150] sm:$0xff]  ;;  %v2602_v41 = vld [vmem:[%s9760_s3 + $0x28] sm:$0xff] }
 0x175   :  { %1460 = vmatmul.mubr.f32.gmra.mrb[20].mxu0 %v422_v42  ;;  %v432_v42 = vld [vmem:[#allocation2 + $0x141] sm:$0xff] }
 0x176   :  { %1464 = vmatprep.mubr.f32.mxu0 %v427_v13  ;;  %6004 = vmatpush1.bf16.msra.mxu0 %v6003_v22  ;;  %v6116_v13 = vpack.c.bf16 %v2640_v11, %v2639_v10  ;;  %v2642_v22 = vld [vmem:[%s9760_s3 + $0x168] sm:$0xff]  ;;  %v2615_v10 = vld [vmem:[%s9760_s3 + $0x90] sm:$0xff]  ;;  %v2616_v11 = vld [vmem:[%s9760_s3 + $0x98] sm:$0xff] }
 0x177   :  { %6005 = vmatprep.subr.bf16.mxu0 %v9765_v0 }
 0x179   :  { %1465 = vmatmul.mubr.f32.gmra.mrb[22].mxu0 %v423_v14  ;;  %v2632_v14 = vld [vmem:[%s9760_s3 + $0x118] sm:$0xff] }
 0x17a   :  { %1469 = vmatprep.mubr.f32.mxu0 %v7867_v3  ;;  %6007 = vmatpush1.bf16.msra.mxu0 %v6006_v27  ;;  %v2643_v27 = vld [vmem:[%s9760_s3 + $0x170] sm:$0xff] }
 0x17b   :  { %6008 = vmatprep.subr.bf16.mxu0 %v9765_v0  ;;  %v6122_v34 = vpack.c.bf16 %v2644_v33, %v2643_v27  ;;  %v526_v27 = vld [vmem:[#allocation2 + $0x102] sm:$0xff] }
 0x17c   :  { %v479_v33 = vld [vmem:[#allocation2 + $0xe2] sm:$0xff] }
 0x17d   :  { %1470 = vmatmul.mubr.f32.gmra.mrb[24].mxu0 %v7830_v57  ;;  %v6015_v57 = vpack.c.bf16 %v949_v47, %v948_v28  ;;  %v2599_v28 = vld [vmem:[%s9760_s3 + $0x10] sm:$0xff]  ;;  %v2600_v47 = vld [vmem:[%s9760_s3 + $0x18] sm:$0xff] }
 0x17e   :  { %1474 = vmatprep.mubr.f32.mxu0 %v7871_v19  ;;  %6010 = vmatpush1.bf16.msra.mxu0 %v6009_v31  ;;  %v2597_v31 = vld [vmem:[%s9760_s3] sm:$0xff] }
 0x17f   :  { %6011 = vmatprep.subr.bf16.mxu0 %v9765_v0  ;;  %v6053_v35 = vpack.c.bf16 %v2598_v32, %v2597_v31  ;;  %v2621_v32 = vld [vmem:[%s9760_s3 + $0xc0] sm:$0xff] }
 0x181   :  { %1475 = vmatmul.mubr.f32.gmra.mrb[26].mxu0 %v7841_v16  ;;  %v6018_v16 = vpack.c.bf16 %v951_v1, %v950_v38  ;;  %v6056_v38 = vpack.c.bf16 %v2600_v47, %v2599_v28  ;;  %v514_v1 = vld [vmem:[#allocation2 + $0x3a] sm:$0xff] }
 0x182   :  { %1479 = vmatprep.mubr.f32.mxu0 %v7883_v6  ;;  %6013 = vmatpush1.bf16.msra.mxu0 %v6012_v36  ;;  %v513_v36 = vld [vmem:[#allocation2 + $0x32] sm:$0xff] }
 0x183   :  { %6014 = vmatprep.subr.bf16.mxu0 %v9765_v0 }
 0x185   :  { %1480 = vmatmul.mubr.f32.gmra.mrb[28].mxu0 %v7852_v17  ;;  %v2630_v17 = vld [vmem:[%s9760_s3 + $0x108] sm:$0xff] }
 0x186   :  { %1484 = vmatprep.mubr.f32.mxu0 %v7887_v21  ;;  %6016 = vmatpush1.bf16.msra.mxu0 %v6015_v57  ;;  %v6101_v55 = vpack.c.bf16 %v2630_v17, %v2629_v45  ;;  %v465_v57 = vld [vmem:[#allocation2 + $0xa] sm:$0xff]  ;;  %v2604_v17 = vld [vmem:[%s9760_s3 + $0x38] sm:$0xff] }
 0x187   :  { %6017 = vmatprep.subr.bf16.mxu0 %v9765_v0  ;;  %v2603_v45 = vld [vmem:[%s9760_s3 + $0x30] sm:$0xff] }
 0x188   :  { %6102 = vmatpush1.bf16.msra.mxu1 %v6101_v55  ;;  %v467_v55 = vld [vmem:[#allocation2 + $0x1a] sm:$0xff] }
 0x189   :  { %1485 = vmatmul.mubr.f32.gmra.mrb[30].mxu0 %v7857_v62  ;;  %v2631_v62 = vld [vmem:[%s9760_s3 + $0x110] sm:$0xff]  ;;  %6103 = vmatprep.subr.bf16.mxu1 %v9765_v0 }
 0x18a   :  { %1489 = vmatprep.mubr.f32.mxu0 %v432_v42  ;;  %6019 = vmatpush1.bf16.msra.mxu0 %v6018_v16  ;;  %v6104_v40 = vpack.c.bf16 %v2632_v14, %v2631_v62  ;;  %v466_v16 = vld [vmem:[#allocation2 + $0x12] sm:$0xff]  ;;  %v6062_v62 = vpack.c.bf16 %v2604_v17, %v2603_v45  ;;  %v2605_v14 = vld [vmem:[%s9760_s3 + $0x40] sm:$0xff] }
 0x18b   :  { %6052 = vmatprep.subr.bf16.mxu0 %v9765_v0  ;;  %v2628_v45 = vld [vmem:[%s9760_s3 + $0xf8] sm:$0xff] }
 0x18c   :  { %6105 = vmatpush1.bf16.msra.mxu1 %v6104_v40 }
 0x18d   :  { %1490 = vmatmul.mubr.f32.gmra.mrb[32].mxu0 %v7867_v3  ;;  %v2634_v3 = vld [vmem:[%s9760_s3 + $0x128] sm:$0xff]  ;;  %6106 = vmatprep.subr.bf16.mxu1 %v9765_v0 }
 0x18e   :  { %1494 = vmatprep.mubr.f32.mxu0 %v433_v37  ;;  %v6107_v53 = vpack.c.bf16 %v2634_v3, %v2633_v50  ;;  %v2607_v50 = vld [vmem:[%s9760_s3 + $0x50] sm:$0xff]  ;;  %v2608_v3 = vld [vmem:[%s9760_s3 + $0x58] sm:$0xff] }
 0x190   :  { %6108 = vmatpush1.bf16.msra.mxu1 %v6107_v53  ;;  %v2609_v53 = vld [vmem:[%s9760_s3 + $0x60] sm:$0xff] }
 0x191   :  { %1495 = vmatmul.mubr.f32.gmra.mrb[34].mxu0 %v7871_v19  ;;  %v6110_v19 = vpack.c.bf16 %v2636_v2, %v2635_v15  ;;  %6109 = vmatprep.subr.bf16.mxu1 %v9765_v0  ;;  %v2610_v15 = vld [vmem:[%s9760_s3 + $0x68] sm:$0xff] }
 0x192   :  { %1499 = vmatprep.mubr.f32.mxu0 %v434_v46  ;;  %v6071_v2 = vpack.c.bf16 %v2610_v15, %v2609_v53  ;;  %v2657_v53 = vld [vmem:[%s9760_s3 + $0x1e0] sm:$0xff]  ;;  %v2658_v15 = vld [vmem:[%s9760_s3 + $0x1e8] sm:$0xff] }
 0x194   :  { %6111 = vmatpush1.bf16.msra.mxu1 %v6110_v19  ;;  %v2612_v19 = vld [vmem:[%s9760_s3 + $0x78] sm:$0xff] }
 0x195   :  { %1500 = vmatmul.mubr.f32.gmra.mrb[36].mxu0 %v7883_v6  ;;  %v6113_v6 = vpack.c.bf16 %v2638_v58, %v2637_v48  ;;  %6112 = vmatprep.subr.bf16.mxu1 %v9765_v0  ;;  %v2613_v58 = vld [vmem:[%s9760_s3 + $0x80] sm:$0xff] }
 0x196   :  { %1504 = vmatprep.mubr.f32.mxu0 %v435_v44 }
 0x198   :  { %6114 = vmatpush1.bf16.msra.mxu1 %v6113_v6 }
 0x199   :  { %1505 = vmatmul.mubr.f32.gmra.mrb[38].mxu0 %v7887_v21  ;;  %6115 = vmatprep.subr.bf16.mxu1 %v9765_v0  ;;  %v2641_v21 = vld [vmem:[%s9760_s3 + $0x160] sm:$0xff] }
 0x19a   :  { %1509 = vmatprep.mubr.f32.mxu0 %v436_v54  ;;  %v6119_v24 = vpack.c.bf16 %v2642_v22, %v2641_v21  ;;  %v2611_v54 = vld [vmem:[%s9760_s3 + $0x70] sm:$0xff]  ;;  %v2620_v21 = vld [vmem:[%s9760_s3 + $0xb8] sm:$0xff] }
 0x19b   :  { %v6074_v48 = vpack.c.bf16 %v2612_v19, %v2611_v54  ;;  %v524_v22 = vld [vmem:[#allocation2 + $0xf2] sm:$0xff] }
 0x19c   :  { %6117 = vmatpush1.bf16.msra.mxu1 %v6116_v13  ;;  %v2618_v13 = vld [vmem:[%s9760_s3 + $0xa8] sm:$0xff] }
 0x19d   :  { %1510 = vmatmul.mubr.f32.gmra.mrb[40].mxu0 %v432_v42  ;;  %6118 = vmatprep.subr.bf16.mxu1 %v9765_v0  ;;  %v6059_v42 = vpack.c.bf16 %v2602_v41, %v2601_v39 }
 0x19e   :  { %1514 = vmatprep.mubr.f32.mxu0 %v437_v9  ;;  %v2614_v9 = vld [vmem:[%s9760_s3 + $0x88] sm:$0xff] }
 0x19f   :  { %v6077_v6 = vpack.c.bf16 %v2614_v9, %v2613_v58  ;;  %v2660_v58 = vld [vmem:[%s9760_s3 + $0x1f8] sm:$0xff] }
 0x1a0   :  { %6120 = vmatpush1.bf16.msra.mxu1 %v6119_v24  ;;  %v477_v24 = vld [vmem:[#allocation2 + $0xd2] sm:$0xff] }
 0x1a1   :  { %1515 = vmatmul.mubr.f32.gmra.mrb[42].mxu0 %v433_v37  ;;  %6121 = vmatprep.subr.bf16.mxu1 %v9765_v0  ;;  %v515_v37 = vld [vmem:[#allocation2 + $0x42] sm:$0xff] }
 0x1a2   :  { %1519 = vmatprep.mubr.f32.mxu0 %v438_v12  ;;  %v6080_v12 = vpack.c.bf16 %v2616_v11, %v2615_v10 }
 0x1a4   :  { %6123 = vmatpush1.bf16.msra.mxu1 %v6122_v34  ;;  %v2647_v34 = vld [vmem:[%s9760_s3 + $0x190] sm:$0xff] }
 0x1a5   :  { %1520 = vmatmul.mubr.f32.gmra.mrb[44].mxu0 %v434_v46  ;;  %6124 = vmatprep.subr.bf16.mxu1 %v9765_v0  ;;  %v2606_v46 = vld [vmem:[%s9760_s3 + $0x48] sm:$0xff] }
 0x1a6   :  { %1524 = vmatprep.mubr.f32.mxu0 %v439_v23  ;;  %v6065_v40 = vpack.c.bf16 %v2606_v46, %v2605_v14  ;;  %v525_v23 = vld [vmem:[#allocation2 + $0xfa] sm:$0xff] }
 0x1a9   :  { %1525 = vmatmul.mubr.f32.gmra.mrb[46].mxu0 %v435_v44  ;;  %v6068_v44 = vpack.c.bf16 %v2608_v3, %v2607_v50  ;;  %v2655_v50 = vld [vmem:[%s9760_s3 + $0x1d0] sm:$0xff]  ;;  %v2656_v3 = vld [vmem:[%s9760_s3 + $0x1d8] sm:$0xff] }
 0x1aa   :  { %1594 = vmatprep.mubr.f32.mxu0 %v512_v30 }
 0x1ad   :  { %1595 = vmatmul.mubr.f32.vlgmr.msra.gmra.mrb[0].mxu0 %v464_v43 }
 0x1ae   :  { %1599 = vmatprep.mubr.f32.mxu0 %v513_v36  ;;  %6054 = vmatpush1.bf16.msra.mxu0 %v6053_v35 }
 0x1af   :  { %6055 = vmatprep.subr.bf16.mxu0 %v9765_v0 }
 0x1b1   :  { %1600 = vmatmul.mubr.f32.gmra.mrb[2].mxu0 %v465_v57  ;;  %v2650_v57 = vld [vmem:[%s9760_s3 + $0x1a8] sm:$0xff] }
 0x1b2   :  { %1604 = vmatprep.mubr.f32.mxu0 %v514_v1  ;;  %6057 = vmatpush1.bf16.msra.mxu0 %v6056_v38 }
 0x1b3   :  { %6058 = vmatprep.subr.bf16.mxu0 %v9765_v0 }
 0x1b5   :  { %1605 = vmatmul.mubr.f32.gmra.mrb[4].mxu0 %v466_v16  ;;  %v2652_v16 = vld [vmem:[%s9760_s3 + $0x1b8] sm:$0xff] }
 0x1b6   :  { %1609 = vmatprep.mubr.f32.mxu0 %v515_v37  ;;  %6060 = vmatpush1.bf16.msra.mxu0 %v6059_v42 }
 0x1b7   :  { %6061 = vmatprep.subr.bf16.mxu0 %v9765_v0 }
 0x1b9   :  { %1610 = vmatmul.mubr.f32.gmra.mrb[6].mxu0 %v467_v55  ;;  %v2653_v55 = vld [vmem:[%s9760_s3 + $0x1c0] sm:$0xff] }
 0x1ba   :  { %1614 = vmatprep.mubr.f32.mxu0 %v7844_v61  ;;  %6063 = vmatpush1.bf16.msra.mxu0 %v6062_v62  ;;  %v2654_v62 = vld [vmem:[%s9760_s3 + $0x1c8] sm:$0xff] }
 0x1bb   :  { %6064 = vmatprep.subr.bf16.mxu0 %v9765_v0  ;;  %v6137_v14 = vpack.c.bf16 %v2654_v62, %v2653_v55  ;;  %v2730_v55 = vld [vmem:[%s9760_s3 + $0x428] sm:$0xff] }
 0x1bd   :  { %1615 = vmatmul.mubr.f32.gmra.mrb[8].mxu0 %v512_v30  ;;  %v2646_v30 = vld [vmem:[%s9760_s3 + $0x188] sm:$0xff] }
 0x1be   :  { %1619 = vmatprep.mubr.f32.mxu0 %v7848_v56  ;;  %6066 = vmatpush1.bf16.msra.mxu0 %v6065_v40 }
 0x1bf   :  { %6067 = vmatprep.subr.bf16.mxu0 %v9765_v0 }
 0x1c1   :  { %1620 = vmatmul.mubr.f32.gmra.mrb[10].mxu0 %v513_v36  ;;  %v2624_v36 = vld [vmem:[%s9760_s3 + $0xd8] sm:$0xff] }
 0x1c2   :  { %1624 = vmatprep.mubr.f32.mxu0 %v7859_v63  ;;  %6069 = vmatpush1.bf16.msra.mxu0 %v6068_v44  ;;  %v6140_v44 = vpack.c.bf16 %v2656_v3, %v2655_v50 }
 0x1c3   :  { %6070 = vmatprep.subr.bf16.mxu0 %v9765_v0 }
 0x1c5   :  { %1625 = vmatmul.mubr.f32.gmra.mrb[12].mxu0 %v514_v1  ;;  %v2625_v1 = vld [vmem:[%s9760_s3 + $0xe0] sm:$0xff] }
 0x1c6   :  { %1629 = vmatprep.mubr.f32.mxu0 %v7863_v18  ;;  %6072 = vmatpush1.bf16.msra.mxu0 %v6071_v2  ;;  %v6143_v2 = vpack.c.bf16 %v2658_v15, %v2657_v53  ;;  %v2731_v15 = vld [vmem:[%s9760_s3 + $0x430] sm:$0xff] }
 0x1c7   :  { %6073 = vmatprep.subr.bf16.mxu0 %v9765_v0 }
 0x1c9   :  { %1630 = vmatmul.mubr.f32.gmra.mrb[14].mxu0 %v515_v37 }
 0x1ca   :  { %1634 = vmatprep.mubr.f32.mxu0 %v7873_v4  ;;  %6075 = vmatpush1.bf16.msra.mxu0 %v6074_v48  ;;  %v2617_v4 = vld [vmem:[%s9760_s3 + $0xa0] sm:$0xff]  ;;  %v2659_v48 = vld [vmem:[%s9760_s3 + $0x1f0] sm:$0xff] }
 0x1cb   :  { %6076 = vmatprep.subr.bf16.mxu0 %v9765_v0  ;;  %v6146_v9 = vpack.c.bf16 %v2660_v58, %v2659_v48 }
 0x1cd   :  { %1635 = vmatmul.mubr.f32.gmra.mrb[16].mxu0 %v7844_v61  ;;  %v6083_v61 = vpack.c.bf16 %v2618_v13, %v2617_v4 }
 0x1ce   :  { %1639 = vmatprep.mubr.f32.mxu0 %v7876_v20  ;;  %6078 = vmatpush1.bf16.msra.mxu0 %v6077_v6  ;;  %v2619_v20 = vld [vmem:[%s9760_s3 + $0xb0] sm:$0xff]  ;;  %v2093_v6 = vld [vmem:[#allocation2 + $0x1] sm:$0xff] }
 0x1cf   :  { %6079 = vmatprep.subr.bf16.mxu0 %v9765_v0  ;;  %2997 = vmatprep.mubr.f32.mxu1 %v2093_v6 }
 0x1d1   :  { %1640 = vmatmul.mubr.f32.gmra.mrb[18].mxu0 %v7848_v56  ;;  %v6086_v56 = vpack.c.bf16 %v2620_v21, %v2619_v20 }
 0x1d2   :  { %1644 = vmatprep.mubr.f32.mxu0 %v7889_v7  ;;  %6081 = vmatpush1.bf16.msra.mxu0 %v6080_v12  ;;  %v476_v7 = vld [vmem:[#allocation2 + $0xca] sm:$0xff] }
 0x1d3   :  { %6082 = vmatprep.subr.bf16.mxu0 %v9765_v0 }
 0x1d5   :  { %1645 = vmatmul.mubr.f32.gmra.mrb[20].mxu0 %v7859_v63  ;;  %v478_v63 = vld [vmem:[#allocation2 + $0xda] sm:$0xff] }
 0x1d6   :  { %1649 = vmatprep.mubr.f32.mxu0 %v7892_v8  ;;  %6084 = vmatpush1.bf16.msra.mxu0 %v6083_v61  ;;  %v527_v8 = vld [vmem:[#allocation2 + $0x10a] sm:$0xff] }
 0x1d7   :  { %6085 = vmatprep.subr.bf16.mxu0 %v9765_v0 }
 0x1d9   :  { %1650 = vmatmul.mubr.f32.gmra.mrb[22].mxu0 %v7863_v18  ;;  %v2645_v18 = vld [vmem:[%s9760_s3 + $0x180] sm:$0xff] }
 0x1da   :  { %1654 = vmatprep.mubr.f32.mxu0 %v524_v22  ;;  %6087 = vmatpush1.bf16.msra.mxu0 %v6086_v56  ;;  %v6125_v31 = vpack.c.bf16 %v2646_v30, %v2645_v18 }
 0x1db   :  { %6088 = vmatprep.subr.bf16.mxu0 %v9765_v0 }
 0x1dc   :  { %6126 = vmatpush1.bf16.msra.mxu1 %v6125_v31  ;;  %v8359_v31 = vld [vmem:[#allocation4] ss:$0 sm:$0xff] }
 0x1dd   :  { %1655 = vmatmul.mubr.f32.gmra.mrb[24].mxu0 %v476_v7  ;;  %6127 = vmatprep.subr.bf16.mxu1 %v9765_v0 }
 0x1de   :  { %1659 = vmatprep.mubr.f32.mxu0 %v525_v23 }
 0x1e1   :  { %1660 = vmatmul.mubr.f32.gmra.mrb[26].mxu0 %v477_v24  ;;  %v2725_v24 = vld [vmem:[%s9760_s3 + $0x400] sm:$0xff] }
 0x1e2   :  { %1664 = vmatprep.mubr.f32.mxu0 %v526_v27 }
 0x1e5   :  { %1665 = vmatmul.mubr.f32.gmra.mrb[28].mxu0 %v478_v63 }
 0x1e6   :  { %1669 = vmatprep.mubr.f32.mxu0 %v527_v8 }
 0x1e9   :  { %1670 = vmatmul.mubr.f32.gmra.mrb[30].mxu0 %v479_v33 }
 0x1ea   :  { %1674 = vmatprep.mubr.f32.mxu0 %v7946_v29 }
 0x1ed   :  { %1675 = vmatmul.mubr.f32.gmra.mrb[32].mxu0 %v524_v22 }
 0x1ee   :  { %1679 = vmatprep.mubr.f32.mxu0 %v7950_v51 }
 0x1f1   :  { %1680 = vmatmul.mubr.f32.gmra.mrb[34].mxu0 %v525_v23 }
 0x1f2   :  { %1684 = vmatprep.mubr.f32.mxu0 %v7968_v49 }
 0x1f5   :  { %1685 = vmatmul.mubr.f32.gmra.mrb[36].mxu0 %v526_v27  ;;  %v2726_v27 = vld [vmem:[%s9760_s3 + $0x408] sm:$0xff] }
 0x1f6   :  { %1689 = vmatprep.mubr.f32.mxu0 %v7972_v52  ;;  %v6244_v63 = vpack.c.bf16 %v2726_v27, %v2725_v24 }
 0x1f9   :  { %1690 = vmatmul.mubr.f32.gmra.mrb[38].mxu0 %v527_v8 }
 0x1fa   :  { %1694 = vmatprep.mubr.f32.mxu0 %v7990_v59  ;;  %v2622_v59 = vld [vmem:[%s9760_s3 + $0xc8] sm:$0xff] }
 0x1fd   :  { %1695 = vmatmul.mubr.f32.gmra.mrb[40].mxu0 %v7946_v29  ;;  %v6089_v29 = vpack.c.bf16 %v2622_v59, %v2621_v32 }
 0x1fe   :  { %1699 = vmatprep.mubr.f32.mxu0 %v7993_v60  ;;  %v2648_v60 = vld [vmem:[%s9760_s3 + $0x198] sm:$0xff] }
 0x1ff   :  { %v8238_v43 = vpop.f32.mrb[0].mxu1  ;;  %6090 = vmatpush1.bf16.msra.mxu0 %v6089_v29  ;;  %v6128_v35 = vpack.c.bf16 %v2648_v60, %v2647_v34 }
 0x200   :  { %v8246_v28 = vpop.f32.mrb[1].mxu1  ;;  %6091 = vmatprep.subr.bf16.mxu0 %v9765_v0 }
 0x201   :  { %1700 = vmatmul.mubr.f32.gmra.mrb[42].mxu0 %v7950_v51  ;;  %v2623_v51 = vld [vmem:[%s9760_s3 + $0xd0] sm:$0xff]  ;;  %6129 = vmatpush1.bf16.msra.mxu1 %v6128_v35 }
 0x202   :  { %1704 = vmatprep.mubr.f32.mxu0 %v8010_v25  ;;  %v6092_v47 = vpack.c.bf16 %v2624_v36, %v2623_v51  ;;  %6130 = vmatprep.subr.bf16.mxu1 %v9765_v0  ;;  %v2649_v25 = vld [vmem:[%s9760_s3 + $0x1a0] sm:$0xff] }
 0x203   :  { %v6131_v38 = vpack.c.bf16 %v2650_v57, %v2649_v25  ;;  %v8266_v41 = vpop.f32.mrb[2].mxu1 }
 0x204   :  { %6093 = vmatpush1.bf16.msra.mxu0 %v6092_v47  ;;  %v8275_v42 = vpop.f32.mrb[3].mxu1 }
 0x205   :  { %1705 = vmatmul.mubr.f32.gmra.mrb[44].mxu0 %v7968_v49  ;;  %v2626_v49 = vld [vmem:[%s9760_s3 + $0xe8] sm:$0xff]  ;;  %6094 = vmatprep.subr.bf16.mxu0 %v9765_v0 }
 0x206   :  { %1709 = vmatprep.mubr.f32.mxu0 %v8013_v26  ;;  %v6095_v39 = vpack.c.bf16 %v2626_v49, %v2625_v1  ;;  %6132 = vmatpush1.bf16.msra.mxu1 %v6131_v38  ;;  %v2651_v26 = vld [vmem:[%s9760_s3 + $0x1b0] sm:$0xff] }
 0x207   :  { %6133 = vmatprep.subr.bf16.mxu1 %v9765_v0  ;;  %v6134_v37 = vpack.c.bf16 %v2652_v16, %v2651_v26 }
 0x208   :  { %6096 = vmatpush1.bf16.msra.mxu0 %v6095_v39  ;;  %v2728_v39 = vld [vmem:[%s9760_s3 + $0x418] sm:$0xff] }
 0x209   :  { %1710 = vmatmul.mubr.f32.gmra.mrb[46].mxu0 %v7972_v52  ;;  %v2627_v52 = vld [vmem:[%s9760_s3 + $0xf0] sm:$0xff]  ;;  %6097 = vmatprep.subr.bf16.mxu0 %v9765_v0  ;;  %v8291_v46 = vpop.f32.mrb[4].mxu1 }
 0x20a   :  { %v6098_v17 = vpack.c.bf16 %v2628_v45, %v2627_v52  ;;  %6135 = vmatpush1.bf16.msra.mxu1 %v6134_v37  ;;  %v8293_v40 = vpop.f32.mrb[5].mxu1 }
 0x20b   :  { %6136 = vmatprep.subr.bf16.mxu1 %v9765_v0 }
 0x20c   :  { %6099 = vmatpush1.bf16.msra.mxu0 %v6098_v17  ;;  %v2729_v17 = vld [vmem:[%s9760_s3 + $0x420] sm:$0xff] }
 0x20d   :  { %v8309_v54 = vpop.f32.mrb[6].mxu1  ;;  %6245 = vmatprep.subr.bf16.mxu0 %v6244_v63 }
 0x20e   :  { %6138 = vmatpush1.bf16.msra.mxu1 %v6137_v14  ;;  %v8311_v19 = vpop.f32.mrb[7].mxu1 }
 0x20f   :  { %6139 = vmatprep.subr.bf16.mxu1 %v9765_v0 }
 0x211   :  { %v8321_v10 = vpop.f32.mrb[8].mxu1 }
 0x212   :  { %6141 = vmatpush1.bf16.msra.mxu1 %v6140_v44  ;;  %v8323_v11 = vpop.f32.mrb[9].mxu1  ;;  %v6252_v44 = vpack.c.bf16 %v2730_v55, %v2729_v17 }
 0x213   :  { %6142 = vmatprep.subr.bf16.mxu1 %v9765_v0 }
 0x215   :  { %v8325_v12 = vpop.f32.mrb[10].mxu1 }
 0x216   :  { %6144 = vmatpush1.bf16.msra.mxu1 %v6143_v2  ;;  %v8327_v4 = vpop.f32.mrb[11].mxu1  ;;  %v2732_v2 = vld [vmem:[%s9760_s3 + $0x438] sm:$0xff] }
 0x217   :  { %6145 = vmatprep.subr.bf16.mxu1 %v9765_v0 }
 0x21a   :  { %6147 = vmatpush1.bf16.msra.mxu1 %v6146_v9 }
 0x21b   :  { %6148 = vmatprep.subr.bf16.mxu1 %v9765_v0 }
 0x22e   :  { %v8329_v13 = vpop.f32.mrb[12].mxu1 }
 0x22f   :  { %v8331_v61 = vpop.f32.mrb[13].mxu1 }
 0x236   :  { %v8333_v20 = vpop.f32.mrb[14].mxu1 }
 0x237   :  { %v8335_v21 = vpop.f32.mrb[15].mxu1 }
 0x23a   :  { %v8337_v56 = vpop.f32.mrb[16].mxu1 }
 0x23b   :  { %v8339_v22 = vpop.f32.mrb[17].mxu1 }
 0x23e   :  { %v8341_v7 = vpop.f32.mrb[18].mxu1 }
 0x23f   :  { %v8343_v23 = vpop.f32.mrb[19].mxu1 }
 0x242   :  { %v8351_v8 = vpop.f32.mrb[20].mxu1 }
 0x243   :  { %v8353_v33 = vpop.f32.mrb[21].mxu1 }
 0x246   :  { %v8355_v18 = vpop.f32.mrb[22].mxu1 }
 0x247   :  { %v8357_v30 = vpop.f32.mrb[23].mxu1 }
 0x280   :  { %v1596_v32 = vpop.f32.mrb[0].mxu0 }
 0x281   :  { %v6532_v59 = vadd.f32 %v8359_v31, %v1596_v32  ;;  %v1598_v29 = vpop.f32.mrb[1].mxu0  ;;  %v2734_v32 = vld [vmem:[%s9760_s3 + $0x448] sm:$0xff] }
 0x283   :  { %v1782_v34 = vadd.f32 %v6532_v59, %v8246_v28  ;;  %v2727_v28 = vld [vmem:[%s9760_s3 + $0x410] sm:$0xff] }
 0x284   :  { %v1601_v60 = vpop.f32.mrb[2].mxu0  ;;  %v6248_v45 = vpack.c.bf16 %v2728_v39, %v2727_v28  ;;  %v2094_v28 = vld [vmem:[#allocation2 + $0x9] sm:$0xff] }
 0x285   :  { %v1900_v35 = vmax.f32 %v1782_v34, 0.0  ;;  %v6533_v51 = vadd.f32 %v8359_v31, %v1601_v60  ;;  %v1603_v36 = vpop.f32.mrb[3].mxu0  ;;  %v2663_v39 = vld [vmem:[%s9760_s3 + $0x210] sm:$0xff] }
 0x287   :  { %v1787_v47 = vadd.f32 %v6533_v51, %v8238_v43  ;;  %1925 = vst.msk [vmem:[#allocation2 + $0x29] sm:$0xff] %vm1924_vm1, %v1900_v35  ;;  %v2662_v35 = vld [vmem:[%s9760_s3 + $0x208] sm:$0xff] }
 0x288   :  { %v1606_v25 = vpop.f32.mrb[4].mxu0 }
 0x289   :  { %v1901_v57 = vmax.f32 %v1787_v47, 0.0  ;;  %v6534_v38 = vadd.f32 %v8359_v31, %v1606_v25  ;;  %v1608_v1 = vpop.f32.mrb[5].mxu0  ;;  %v8426_v25 = vld [vmem:[#allocation2] sm:$0xff] }
 0x28b   :  { %v1792_v49 = vadd.f32 %v6534_v38, %v8275_v42  ;;  %1926 = vst.msk [vmem:[#allocation2 + $0x31] sm:$0xff] %vm1924_vm1, %v1901_v57 }
 0x28c   :  { %v1611_v43 = vpop.f32.mrb[6].mxu0 }
 0x28d   :  { %v1902_v26 = vmax.f32 %v1792_v49, 0.0  ;;  %v6535_v16 = vadd.f32 %v8359_v31, %v1611_v43  ;;  %v1613_v37 = vpop.f32.mrb[7].mxu0 }
 0x28e   :  { %v8376_v52 = vld [vmem:[#allocation2 + $0x28] sm:$0xff] }
 0x28f   :  { %v1797_v42 = vadd.f32 %v6535_v16, %v8266_v41  ;;  %2812 = vmatprep.mubr.f32.mxu0 %v8376_v52  ;;  %1927 = vst.msk [vmem:[#allocation2 + $0x39] sm:$0xff] %vm1924_vm1, %v1902_v26  ;;  %v2735_v26 = vld [vmem:[%s9760_s3 + $0x450] sm:$0xff]  ;;  %v2736_v16 = vld [vmem:[%s9760_s3 + $0x458] sm:$0xff] }
 0x290   :  { %v1616_v62 = vpop.f32.mrb[8].mxu0  ;;  %2813 = vmatmul.mubr.f32.vlgmr.msra.gmra.mrb[48].mxu0 %v7878_v5 }
 0x291   :  { %v1903_v14 = vmax.f32 %v1797_v42, 0.0  ;;  %v6536_v50 = vadd.f32 %v8359_v31, %v1616_v62  ;;  %v1618_v3 = vpop.f32.mrb[9].mxu0  ;;  %6247 = vmatpush3.bf16.msra.mxu0 %v6244_v63  ;;  %v2733_v63 = vld [vmem:[%s9760_s3 + $0x440] sm:$0xff]  ;;  %v2095_v62 = vld [vmem:[#allocation2 + $0x11] sm:$0xff] }
 0x292   :  { %v8389_v41 = vld [vmem:[#allocation2 + $0x30] sm:$0xff]  ;;  %6249 = vmatprep.subr.bf16.mxu0 %v6248_v45  ;;  %v6260_v36 = vpack.c.bf16 %v2734_v32, %v2733_v63  ;;  %v6264_v3 = vpack.c.bf16 %v2736_v16, %v2735_v26 }
 0x293   :  { %1928 = vst.msk [vmem:[#allocation2 + $0x41] sm:$0xff] %vm1924_vm1, %v1903_v14  ;;  %v1802_v53 = vadd.f32 %v6536_v50, %v8293_v40  ;;  %2817 = vmatprep.mubr.f32.mxu0 %v8389_v41  ;;  %v6256_v40 = vpack.c.bf16 %v2732_v2, %v2731_v15  ;;  %v2666_v50 = vld [vmem:[%s9760_s3 + $0x228] sm:$0xff] }
 0x294   :  { %v1621_v48 = vpop.f32.mrb[10].mxu0  ;;  %2818 = vmatmul.mubr.f32.gmra.mrb[50].mxu0 %v7878_v5 }
 0x295   :  { %v1904_v58 = vmax.f32 %v1802_v53, 0.0  ;;  %v6537_v9 = vadd.f32 %v8359_v31, %v1621_v48  ;;  %v1623_v6 = vpop.f32.mrb[11].mxu0  ;;  %6251 = vmatpush3.bf16.msra.mxu0 %v6248_v45  ;;  %v2738_v53 = vld [vmem:[%s9760_s3 + $0x468] sm:$0xff] }
 0x296   :  { %v8402_v24 = vld [vmem:[#allocation2 + $0x38] sm:$0xff]  ;;  %6253 = vmatprep.subr.bf16.mxu0 %v6252_v44 }
 0x297   :  { %1929 = vst.msk [vmem:[#allocation2 + $0x51] sm:$0xff] %vm1924_vm1, %v1904_v58  ;;  %v1807_v27 = vadd.f32 %v6537_v9, %v8291_v46  ;;  %2822 = vmatprep.mubr.f32.mxu0 %v8402_v24  ;;  %v2661_v46 = vld [vmem:[%s9760_s3 + $0x200] sm:$0xff] }
 0x298   :  { %v1626_v59 = vpop.f32.mrb[12].mxu0  ;;  %2823 = vmatmul.mubr.f32.gmra.mrb[52].mxu0 %v7878_v5  ;;  %v6149_v57 = vpack.c.bf16 %v2662_v35, %v2661_v46  ;;  %v2096_v6 = vld [vmem:[#allocation2 + $0x19] sm:$0xff] }
 0x299   :  { %v1905_v29 = vmax.f32 %v1807_v27, 0.0  ;;  %v6538_v34 = vadd.f32 %v8359_v31, %v1626_v59  ;;  %v1628_v60 = vpop.f32.mrb[13].mxu0  ;;  %6255 = vmatpush3.bf16.msra.mxu0 %v6252_v44  ;;  %v2737_v44 = vld [vmem:[%s9760_s3 + $0x460] sm:$0xff]  ;;  %v2667_v27 = vld [vmem:[%s9760_s3 + $0x230] sm:$0xff]  ;;  %v2740_v59 = vld [vmem:[%s9760_s3 + $0x478] sm:$0xff] }
 0x29a   :  { %v8421_v51 = vld [vmem:[#allocation2 + $0x40] sm:$0xff]  ;;  %6257 = vmatprep.subr.bf16.mxu0 %v6256_v40  ;;  %v6268_v63 = vpack.c.bf16 %v2738_v53, %v2737_v44 }
 0x29b   :  { %1930 = vst.msk [vmem:[#allocation2 + $0x59] sm:$0xff] %vm1924_vm1, %v1905_v29  ;;  %v1812_v5 = vadd.f32 %v6538_v34, %v8311_v19  ;;  %2827 = vmatprep.mubr.f32.mxu0 %v8421_v51  ;;  %v2664_v19 = vld [vmem:[%s9760_s3 + $0x218] sm:$0xff] }
 0x29c   :  { %v1631_v47 = vpop.f32.mrb[14].mxu0  ;;  %2828 = vmatmul.mubr.f32.gmra.mrb[54].mxu0 %v8426_v25  ;;  %v6152_v14 = vpack.c.bf16 %v2664_v19, %v2663_v39 }
 0x29d   :  { %v1906_v38 = vmax.f32 %v1812_v5, 0.0  ;;  %v6539_v1 = vadd.f32 %v8359_v31, %v1631_v47  ;;  %v1633_v49 = vpop.f32.mrb[15].mxu0  ;;  %6259 = vmatpush3.bf16.msra.mxu0 %v6256_v40 }
 0x29e   :  { %v8436_v43 = vld [vmem:[#allocation2 + $0x50] sm:$0xff]  ;;  %6261 = vmatprep.subr.bf16.mxu0 %v6260_v36 }
 0x29f   :  { %1931 = vst.msk [vmem:[#allocation2 + $0x61] sm:$0xff] %vm1924_vm1, %v1906_v38  ;;  %v1817_v37 = vadd.f32 %v6539_v1, %v8309_v54  ;;  %2832 = vmatprep.mubr.f32.mxu0 %v8436_v43  ;;  %2998 = vmatmul.mubr.f32.vlgmr.msra.gmra.mrb[24].mxu1 %v8436_v43  ;;  %v2665_v54 = vld [vmem:[%s9760_s3 + $0x220] sm:$0xff]  ;;  %v8505_v38 = vld [vmem:[#allocation2 + $0x29] sm:$0xff] }
 0x2a0   :  { %v1636_v45 = vpop.f32.mrb[16].mxu0  ;;  %2833 = vmatmul.mubr.f32.gmra.mrb[56].mxu0 %v8376_v52  ;;  %6150 = vmatpush1.bf16.msra.mxu1 %v6149_v57  ;;  %v6155_v40 = vpack.c.bf16 %v2666_v50, %v2665_v54  ;;  %v8534_v50 = vld [vmem:[#allocation2 + $0x39] sm:$0xff] }
 0x2a1   :  { %v1907_v42 = vmax.f32 %v1817_v37, 0.0  ;;  %v6540_v17 = vadd.f32 %v8359_v31, %v1636_v45  ;;  %v1638_v55 = vpop.f32.mrb[17].mxu0  ;;  %3002 = vmatprep.mubr.f32.mxu1 %v2094_v28  ;;  %6151 = vmatprep.subr.bf16.mxu1 %v9765_v0  ;;  %v8519_v37 = vld [vmem:[#allocation2 + $0x31] sm:$0xff] }
 0x2a2   :  { %v8457_v52 = vld [vmem:[#allocation2 + $0x58] sm:$0xff]  ;;  %6263 = vmatpush3.bf16.msra.mxu0 %v6260_v36 }
 0x2a3   :  { %1932 = vst.msk [vmem:[#allocation2 + $0x69] sm:$0xff] %vm1924_vm1, %v1907_v42  ;;  %v1822_v15 = vadd.f32 %v6540_v17, %v8323_v11  ;;  %2837 = vmatprep.mubr.f32.mxu0 %v8457_v52  ;;  %3003 = vmatmul.mubr.f32.gmra.mrb[26].mxu1 %v8457_v52  ;;  %v2668_v11 = vld [vmem:[%s9760_s3 + $0x238] sm:$0xff] }
 0x2a4   :  { %v1641_v2 = vpop.f32.mrb[18].mxu0  ;;  %2838 = vmatmul.mubr.f32.gmra.mrb[58].mxu0 %v8389_v41  ;;  %3007 = vmatprep.mubr.f32.mxu1 %v2095_v62  ;;  %v2739_v41 = vld [vmem:[%s9760_s3 + $0x470] sm:$0xff]  ;;  %v6158_v36 = vpack.c.bf16 %v2668_v11, %v2667_v27 }
 0x2a5   :  { %v1908_v48 = vmax.f32 %v1822_v15, 0.0  ;;  %v6541_v58 = vadd.f32 %v8359_v31, %v1641_v2  ;;  %v1643_v9 = vpop.f32.mrb[19].mxu0  ;;  %6153 = vmatpush1.bf16.msra.mxu1 %v6152_v14  ;;  %6265 = vmatprep.subr.bf16.mxu0 %v6264_v3  ;;  %v6272_v5 = vpack.c.bf16 %v2740_v59, %v2739_v41  ;;  %v2678_v59 = vld [vmem:[%s9760_s3 + $0x288] sm:$0xff] }
 0x2a6   :  { %v8477_v32 = vld [vmem:[#allocation2 + $0x60] sm:$0xff]  ;;  %6154 = vmatprep.subr.bf16.mxu1 %v9765_v0  ;;  %6267 = vmatpush3.bf16.msra.mxu0 %v6264_v3 }
 0x2a7   :  { %1933 = vst.msk [vmem:[#allocation2 + $0x79] sm:$0xff] %vm1924_vm1, %v1908_v48  ;;  %v1827_v29 = vadd.f32 %v6541_v58, %v8321_v10  ;;  %2842 = vmatprep.mubr.f32.mxu0 %v8477_v32  ;;  %3008 = vmatmul.mubr.f32.gmra.mrb[28].mxu1 %v8477_v32  ;;  %v2669_v10 = vld [vmem:[%s9760_s3 + $0x240] sm:$0xff]  ;;  %v2676_v58 = vld [vmem:[%s9760_s3 + $0x278] sm:$0xff] }
 0x2a8   :  { %v1646_v34 = vpop.f32.mrb[20].mxu0  ;;  %2843 = vmatmul.mubr.f32.gmra.mrb[60].mxu0 %v8402_v24  ;;  %3012 = vmatprep.mubr.f32.mxu1 %v2096_v6  ;;  %v2670_v24 = vld [vmem:[%s9760_s3 + $0x248] sm:$0xff] }
 0x2a9   :  { %v1909_v60 = vmax.f32 %v1827_v29, 0.0  ;;  %v6542_v46 = vadd.f32 %v8359_v31, %v1646_v34  ;;  %v1648_v35 = vpop.f32.mrb[21].mxu0  ;;  %6156 = vmatpush1.bf16.msra.mxu1 %v6155_v40  ;;  %6269 = vmatprep.subr.bf16.mxu0 %v6268_v63  ;;  %v6161_v19 = vpack.c.bf16 %v2670_v24, %v2669_v10  ;;  %v8548_v9 = vld [vmem:[#allocation2 + $0x41] sm:$0xff]  ;;  %v8562_v29 = vld [vmem:[#allocation2 + $0x51] sm:$0xff]  ;;  %v8580_v24 = vld [vmem:[#allocation2 + $0x59] sm:$0xff] }
 0x2aa   :  { %v8492_v47 = vld [vmem:[#allocation2 + $0x68] sm:$0xff]  ;;  %6157 = vmatprep.subr.bf16.mxu1 %v9765_v0  ;;  %6271 = vmatpush3.bf16.msra.mxu0 %v6268_v63 }
 0x2ab   :  { %1934 = vst.msk [vmem:[#allocation2 + $0x81] sm:$0xff] %vm1924_vm1, %v1909_v60  ;;  %v1832_v57 = vadd.f32 %v6542_v46, %v8327_v4  ;;  %2847 = vmatprep.mubr.f32.mxu0 %v8492_v47  ;;  %3013 = vmatmul.mubr.f32.gmra.mrb[30].mxu1 %v8492_v47  ;;  %v2671_v4 = vld [vmem:[%s9760_s3 + $0x250] sm:$0xff] }
 0x2ac   :  { %v1651_v1 = vpop.f32.mrb[22].mxu0  ;;  %2848 = vmatmul.mubr.f32.gmra.mrb[62].mxu0 %v8421_v51  ;;  %3017 = vmatprep.mubr.f32.mxu1 %v8505_v38  ;;  %v2672_v51 = vld [vmem:[%s9760_s3 + $0x258] sm:$0xff] }
 0x2ad   :  { %v1910_v49 = vmax.f32 %v1832_v57, 0.0  ;;  %v6543_v28 = vadd.f32 %v8359_v31, %v1651_v1  ;;  %v1653_v39 = vpop.f32.mrb[23].mxu0  ;;  %6159 = vmatpush1.bf16.msra.mxu1 %v6158_v36  ;;  %6273 = vmatprep.subr.bf16.mxu0 %v6272_v5  ;;  %v6164_v62 = vpack.c.bf16 %v2672_v51, %v2671_v4  ;;  %v8598_v51 = vld [vmem:[#allocation2 + $0x61] sm:$0xff] }
 0x2ae   :  { %v2005_v26 = vld [vmem:[#allocation2 + $0x78] sm:$0xff]  ;;  %6160 = vmatprep.subr.bf16.mxu1 %v9765_v0  ;;  %6275 = vmatpush3.bf16.msra.mxu0 %v6272_v5 }
 0x2af   :  { %1935 = vst.msk [vmem:[#allocation2 + $0x89] sm:$0xff] %vm1924_vm1, %v1910_v49  ;;  %v1837_v16 = vadd.f32 %v6543_v28, %v8325_v12  ;;  %2852 = vmatprep.mubr.f32.mxu0 %v2005_v26  ;;  %3018 = vmatmul.mubr.f32.gmra.mrb[32].mxu1 %v2005_v26  ;;  %v2673_v12 = vld [vmem:[%s9760_s3 + $0x260] sm:$0xff]  ;;  %v2682_v26 = vld [vmem:[%s9760_s3 + $0x2a8] sm:$0xff] }
 0x2b0   :  { %v1656_v45 = vpop.f32.mrb[24].mxu0  ;;  %2853 = vmatmul.mubr.f32.gmra.mrb[64].mxu0 %v8436_v43  ;;  %3022 = vmatprep.mubr.f32.mxu1 %v8519_v37  ;;  %v2674_v43 = vld [vmem:[%s9760_s3 + $0x268] sm:$0xff] }
 0x2b1   :  { %v1911_v42 = vmax.f32 %v1837_v16, 0.0  ;;  %v6544_v17 = vadd.f32 %v8359_v31, %v1656_v45  ;;  %v1658_v55 = vpop.f32.mrb[25].mxu0  ;;  %6162 = vmatpush1.bf16.msra.mxu1 %v6161_v19  ;;  %6420 = vmatprep.subr.bf16.mxu0 %v9765_v0  ;;  %v6167_v2 = vpack.c.bf16 %v2674_v43, %v2673_v12  ;;  %v8616_v43 = vld [vmem:[#allocation2 + $0x69] sm:$0xff] }
 0x2b2   :  { %v2006_v14 = vld [vmem:[#allocation2 + $0x80] sm:$0xff]  ;;  %6163 = vmatprep.subr.bf16.mxu1 %v9765_v0 }
 0x2b3   :  { %1936 = vst.msk [vmem:[#allocation2 + $0x91] sm:$0xff] %vm1924_vm1, %v1911_v42  ;;  %v1842_v54 = vadd.f32 %v6544_v17, %v8331_v61  ;;  %2857 = vmatprep.mubr.f32.mxu0 %v2006_v14  ;;  %3023 = vmatmul.mubr.f32.gmra.mrb[34].mxu1 %v2006_v14  ;;  %v2675_v61 = vld [vmem:[%s9760_s3 + $0x270] sm:$0xff]  ;;  %v2684_v14 = vld [vmem:[%s9760_s3 + $0x2b8] sm:$0xff] }
 0x2b4   :  { %v1661_v3 = vpop.f32.mrb[26].mxu0  ;;  %2858 = vmatmul.mubr.f32.gmra.mrb[66].mxu0 %v8457_v52  ;;  %3027 = vmatprep.mubr.f32.mxu1 %v8534_v50  ;;  %v6170_v63 = vpack.c.bf16 %v2676_v58, %v2675_v61  ;;  %v2686_v61 = vld [vmem:[%s9760_s3 + $0x2c8] sm:$0xff] }
 0x2b5   :  { %v1912_v44 = vmax.f32 %v1842_v54, 0.0  ;;  %v6545_v53 = vadd.f32 %v8359_v31, %v1661_v3  ;;  %v1663_v15 = vpop.f32.mrb[27].mxu0  ;;  %6165 = vmatpush1.bf16.msra.mxu1 %v6164_v62 }
 0x2b6   :  { %v2007_v48 = vld [vmem:[#allocation2 + $0x88] sm:$0xff]  ;;  %6166 = vmatprep.subr.bf16.mxu1 %v9765_v0 }
 0x2b7   :  { %1937 = vst.msk [vmem:[#allocation2 + $0xf1] sm:$0xff] %vm1924_vm1, %v1912_v44  ;;  %v1847_v52 = vadd.f32 %v6545_v53, %v8329_v13  ;;  %2862 = vmatprep.mubr.f32.mxu0 %v2007_v48  ;;  %3028 = vmatmul.mubr.f32.gmra.mrb[36].mxu1 %v2007_v48  ;;  %v2677_v13 = vld [vmem:[%s9760_s3 + $0x280] sm:$0xff]  ;;  %v2105_v15 = vld [vmem:[#allocation2 + $0xc9] sm:$0xff] }
 0x2b8   :  { %v1666_v6 = vpop.f32.mrb[28].mxu0  ;;  %2863 = vmatmul.mubr.f32.gmra.mrb[68].mxu0 %v8477_v32  ;;  %3032 = vmatprep.mubr.f32.mxu1 %v8548_v9  ;;  %v6173_v36 = vpack.c.bf16 %v2678_v59, %v2677_v13  ;;  %v2688_v13 = vld [vmem:[%s9760_s3 + $0x2d8] sm:$0xff] }
 0x2b9   :  { %v1913_v40 = vmax.f32 %v1847_v52, 0.0  ;;  %v6546_v27 = vadd.f32 %v8359_v31, %v1666_v6  ;;  %v1668_v11 = vpop.f32.mrb[29].mxu0  ;;  %6168 = vmatpush1.bf16.msra.mxu1 %v6167_v2 }
 0x2ba   :  { %v2008_v41 = vld [vmem:[#allocation2 + $0x90] sm:$0xff]  ;;  %6169 = vmatprep.subr.bf16.mxu1 %v9765_v0 }
 0x2bb   :  { %1938 = vst.msk [vmem:[#allocation2 + $0xf9] sm:$0xff] %vm1924_vm1, %v1913_v40  ;;  %v1852_v32 = vadd.f32 %v6546_v27, %v8335_v21  ;;  %2867 = vmatprep.mubr.f32.mxu0 %v2008_v41  ;;  %3033 = vmatmul.mubr.f32.gmra.mrb[38].mxu1 %v2008_v41  ;;  %v2679_v21 = vld [vmem:[%s9760_s3 + $0x290] sm:$0xff] }
 0x2bc   :  { %v1671_v34 = vpop.f32.mrb[30].mxu0  ;;  %2868 = vmatmul.mubr.f32.gmra.mrb[70].mxu0 %v8492_v47  ;;  %3037 = vmatprep.mubr.f32.mxu1 %v8562_v29  ;;  %v2680_v47 = vld [vmem:[%s9760_s3 + $0x298] sm:$0xff] }
 0x2bd   :  { %v1914_v60 = vmax.f32 %v1852_v32, 0.0  ;;  %v6547_v46 = vadd.f32 %v8359_v31, %v1671_v34  ;;  %v1673_v35 = vpop.f32.mrb[31].mxu0  ;;  %6171 = vmatpush1.bf16.msra.mxu1 %v6170_v63  ;;  %v6176_v39 = vpack.c.bf16 %v2680_v47, %v2679_v21  ;;  %v2106_v11 = vld [vmem:[#allocation2 + $0xd1] sm:$0xff]  ;;  %v2690_v47 = vld [vmem:[%s9760_s3 + $0x2e8] sm:$0xff] }
 0x2be   :  { %v8567_v5 = vld [vmem:[#allocation2 + $0xf0] sm:$0xff]  ;;  %6172 = vmatprep.subr.bf16.mxu1 %v9765_v0  ;;  %v2107_v35 = vld [vmem:[#allocation2 + $0xd9] sm:$0xff] }
 0x2bf   :  { %1939 = vst.msk [vmem:[#allocation2 + $0x101] sm:$0xff] %vm1924_vm1, %v1914_v60  ;;  %v1857_v10 = vadd.f32 %v6547_v46, %v8333_v20  ;;  %2872 = vmatprep.mubr.f32.mxu0 %v8567_v5  ;;  %3038 = vmatmul.mubr.f32.gmra.mrb[40].mxu1 %v8426_v25  ;;  %v2681_v20 = vld [vmem:[%s9760_s3 + $0x2a0] sm:$0xff] }
 0x2c0   :  { %v1676_v57 = vpop.f32.mrb[32].mxu0  ;;  %2873 = vmatmul.mubr.f32.gmra.mrb[72].mxu0 %v8426_v25  ;;  %3042 = vmatprep.mubr.f32.mxu1 %v8580_v24  ;;  %v6179_v55 = vpack.c.bf16 %v2682_v26, %v2681_v20  ;;  %v2692_v26 = vld [vmem:[%s9760_s3 + $0x2f8] sm:$0xff] }
 0x2c1   :  { %v1915_v1 = vmax.f32 %v1857_v10, 0.0  ;;  %v6548_v49 = vadd.f32 %v8359_v31, %v1676_v57  ;;  %v1678_v28 = vpop.f32.mrb[33].mxu0  ;;  %6174 = vmatpush1.bf16.msra.mxu1 %v6173_v36 }
 0x2c2   :  { %v8585_v19 = vld [vmem:[#allocation2 + $0xf8] sm:$0xff]  ;;  %6175 = vmatprep.subr.bf16.mxu1 %v9765_v0  ;;  %v2108_v28 = vld [vmem:[#allocation2 + $0xe1] sm:$0xff] }
 0x2c3   :  { %1940 = vst.msk [vmem:[#allocation2 + $0x109] sm:$0xff] %vm1924_vm1, %v1915_v1  ;;  %v1862_v4 = vadd.f32 %v6548_v49, %v8339_v22  ;;  %2877 = vmatprep.mubr.f32.mxu0 %v8585_v19  ;;  %3043 = vmatmul.mubr.f32.gmra.mrb[42].mxu1 %v8426_v25  ;;  %v2683_v22 = vld [vmem:[%s9760_s3 + $0x2b0] sm:$0xff] }
 0x2c4   :  { %v1681_v16 = vpop.f32.mrb[34].mxu0  ;;  %2878 = vmatmul.mubr.f32.gmra.mrb[74].mxu0 %v8426_v25  ;;  %3047 = vmatprep.mubr.f32.mxu1 %v8598_v51  ;;  %v6182_v2 = vpack.c.bf16 %v2684_v14, %v2683_v22 }
 0x2c5   :  { %v1916_v45 = vmax.f32 %v1862_v4, 0.0  ;;  %v6549_v42 = vadd.f32 %v8359_v31, %v1681_v16  ;;  %v1683_v17 = vpop.f32.mrb[35].mxu0  ;;  %6177 = vmatpush1.bf16.msra.mxu1 %v6176_v39 }
 0x2c6   :  { %v8603_v62 = vld [vmem:[#allocation2 + $0x100] sm:$0xff]  ;;  %6178 = vmatprep.subr.bf16.mxu1 %v9765_v0 }
 0x2c7   :  { %1941 = vst.msk [vmem:[#allocation2 + $0x119] sm:$0xff] %vm1924_vm1, %v1916_v45  ;;  %v1867_v12 = vadd.f32 %v6549_v42, %v8337_v56  ;;  %2882 = vmatprep.mubr.f32.mxu0 %v8603_v62  ;;  %3048 = vmatmul.mubr.f32.gmra.mrb[44].mxu1 %v8426_v25  ;;  %v2685_v56 = vld [vmem:[%s9760_s3 + $0x2c0] sm:$0xff] }
 0x2c8   :  { %v1686_v54 = vpop.f32.mrb[36].mxu0  ;;  %2883 = vmatmul.mubr.f32.gmra.mrb[76].mxu0 %v8426_v25  ;;  %3052 = vmatprep.mubr.f32.mxu1 %v8616_v43  ;;  %v6185_v63 = vpack.c.bf16 %v2686_v61, %v2685_v56  ;;  %v8698_v61 = vld [vmem:[#allocation2 + $0x52] sm:$0xff] }
 0x2c9   :  { %v1917_v3 = vmax.f32 %v1867_v12, 0.0  ;;  %v6550_v44 = vadd.f32 %v8359_v31, %v1686_v54  ;;  %v1688_v53 = vpop.f32.mrb[37].mxu0  ;;  %6180 = vmatpush1.bf16.msra.mxu1 %v6179_v55 }
 0x2ca   :  { %v8621_v48 = vld [vmem:[#allocation2 + $0x108] sm:$0xff]  ;;  %6181 = vmatprep.subr.bf16.mxu1 %v9765_v0 }
 0x2cb   :  { %1942 = vst.msk [vmem:[#allocation2 + $0x121] sm:$0xff] %vm1924_vm1, %v1917_v3  ;;  %v1872_v58 = vadd.f32 %v6550_v44, %v8343_v23  ;;  %2887 = vmatprep.mubr.f32.mxu0 %v8621_v48  ;;  %3053 = vmatmul.mubr.f32.gmra.mrb[46].mxu1 %v8426_v25  ;;  %v2687_v23 = vld [vmem:[%s9760_s3 + $0x2d0] sm:$0xff]  ;;  %v8684_v44 = vld [vmem:[#allocation2 + $0xf9] sm:$0xff] }
 0x2cc   :  { %v1691_v52 = vpop.f32.mrb[38].mxu0  ;;  %2888 = vmatmul.mubr.f32.gmra.mrb[78].mxu0 %v8426_v25  ;;  %3057 = vmatprep.mubr.f32.mxu1 %v2105_v15  ;;  %v6188_v36 = vpack.c.bf16 %v2688_v13, %v2687_v23  ;;  %v8728_v23 = vld [vmem:[#allocation2 + $0x8a] sm:$0xff]  ;;  %v2693_v13 = vld [vmem:[%s9760_s3 + $0x300] sm:$0xff] }
 0x2cd   :  { %v1918_v6 = vmax.f32 %v1872_v58, 0.0  ;;  %v6551_v40 = vadd.f32 %v8359_v31, %v1691_v52  ;;  %v1693_v27 = vpop.f32.mrb[39].mxu0  ;;  %6183 = vmatpush1.bf16.msra.mxu1 %v6182_v2  ;;  %v8692_v2 = vld [vmem:[#allocation2 + $0x109] sm:$0xff]  ;;  %v8704_v52 = vld [vmem:[#allocation2 + $0x5a] sm:$0xff] }
 0x2ce   :  { %v8636_v41 = vld [vmem:[#allocation2 + $0x118] sm:$0xff]  ;;  %6184 = vmatprep.subr.bf16.mxu1 %v9765_v0  ;;  %v8714_v27 = vld [vmem:[#allocation2 + $0x6a] sm:$0xff] }
 0x2cf   :  { %1943 = vst.msk [vmem:[#allocation2 + $0x129] sm:$0xff] %vm1924_vm1, %v1918_v6  ;;  %v1877_v59 = vadd.f32 %v6551_v40, %v8341_v7  ;;  %2892 = vmatprep.mubr.f32.mxu0 %v8636_v41  ;;  %3058 = vmatmul.mubr.f32.gmra.mrb[48].mxu1 %v8636_v41  ;;  %v2689_v7 = vld [vmem:[%s9760_s3 + $0x2e0] sm:$0xff] }
 0x2d0   :  { %v1696_v32 = vpop.f32.mrb[40].mxu0  ;;  %2893 = vmatmul.mubr.f32.gmra.mrb[80].mxu0 %v8567_v5  ;;  %3062 = vmatprep.mubr.f32.mxu1 %v2106_v11  ;;  %v6191_v39 = vpack.c.bf16 %v2690_v47, %v2689_v7  ;;  %v8695_v56 = vld [vmem:[#allocation2 + $0x119] sm:$0xff]  ;;  %v8708_v6 = vld [vmem:[#allocation2 + $0x62] sm:$0xff] }
 0x2d1   :  { %v1919_v34 = vmax.f32 %v1877_v59, 0.0  ;;  %v6552_v60 = vadd.f32 %v8359_v31, %v1696_v32  ;;  %v1698_v46 = vpop.f32.mrb[41].mxu0  ;;  %6186 = vmatpush1.bf16.msra.mxu1 %v6185_v63  ;;  %v8718_v11 = vld [vmem:[#allocation2 + $0x7a] sm:$0xff]  ;;  %v2694_v59 = vld [vmem:[%s9760_s3 + $0x308] sm:$0xff] }
 0x2d2   :  { %v2014_v21 = vld [vmem:[#allocation2 + $0x120] sm:$0xff]  ;;  %6187 = vmatprep.subr.bf16.mxu1 %v9765_v0  ;;  %v2695_v46 = vld [vmem:[%s9760_s3 + $0x310] sm:$0xff]  ;;  %v2698_v47 = vld [vmem:[%s9760_s3 + $0x328] sm:$0xff] }
 0x2d3   :  { %1944 = vst.msk [vmem:[#allocation2 + $0x131] sm:$0xff] %vm1924_vm1, %v1919_v34  ;;  %v1882_v5 = vadd.f32 %v6552_v60, %v8353_v33  ;;  %2897 = vmatprep.mubr.f32.mxu0 %v2014_v21  ;;  %3063 = vmatmul.mubr.f32.gmra.mrb[50].mxu1 %v2014_v21  ;;  %v2691_v33 = vld [vmem:[%s9760_s3 + $0x2f0] sm:$0xff]  ;;  %v8702_v58 = vld [vmem:[#allocation2 + $0x121] sm:$0xff]  ;;  %v6197_v60 = vpack.c.bf16 %v2694_v59, %v2693_v13  ;;  %v2712_v13 = vld [vmem:[%s9760_s3 + $0x398] sm:$0xff] }
 0x2d4   :  { %v1701_v10 = vpop.f32.mrb[42].mxu0  ;;  %2898 = vmatmul.mubr.f32.gmra.mrb[82].mxu0 %v8585_v19  ;;  %3067 = vmatprep.mubr.f32.mxu1 %v2107_v35  ;;  %v6194_v17 = vpack.c.bf16 %v2692_v26, %v2691_v33  ;;  %v2341_v32 = vld [vmem:[#allocation2 + $0xa2] sm:$0xff]  ;;  %v8738_v34 = vld [vmem:[#allocation2 + $0x92] sm:$0xff] }
 0x2d5   :  { %v1920_v57 = vmax.f32 %v1882_v5, 0.0  ;;  %v6553_v1 = vadd.f32 %v8359_v31, %v1701_v10  ;;  %v1703_v49 = vpop.f32.mrb[43].mxu0  ;;  %6189 = vmatpush1.bf16.msra.mxu1 %v6188_v36  ;;  %v2696_v35 = vld [vmem:[%s9760_s3 + $0x318] sm:$0xff]  ;;  %v2342_v36 = vld [vmem:[#allocation2 + $0xaa] sm:$0xff]  ;;  %v2697_v7 = vld [vmem:[%s9760_s3 + $0x320] sm:$0xff] }
 0x2d6   :  { %v2015_v20 = vld [vmem:[#allocation2 + $0x128] sm:$0xff]  ;;  %6190 = vmatprep.subr.bf16.mxu1 %v9765_v0  ;;  %v2344_v5 = vld [vmem:[#allocation2 + $0xba] sm:$0xff] }
 0x2d7   :  { %1945 = vst.msk [vmem:[#allocation2 + $0x141] sm:$0xff] %vm1924_vm1, %v1920_v57  ;;  %v1887_v19 = vadd.f32 %v6553_v1, %v8351_v8  ;;  %2902 = vmatprep.mubr.f32.mxu0 %v2015_v20  ;;  %3068 = vmatmul.mubr.f32.gmra.mrb[52].mxu1 %v2015_v20  ;;  %v8676_v8 = vld [vmem:[#allocation2 + $0xf1] sm:$0xff]  ;;  %v8712_v40 = vld [vmem:[#allocation2 + $0x129] sm:$0xff]  ;;  %v8759_v10 = vld [vmem:[#allocation2 + $0x11a] sm:$0xff] }
 0x2d8   :  { %v1706_v4 = vpop.f32.mrb[44].mxu0  ;;  %2903 = vmatmul.mubr.f32.gmra.mrb[84].mxu0 %v8603_v62  ;;  %3072 = vmatprep.mubr.f32.mxu1 %v2108_v28  ;;  %v2699_v57 = vld [vmem:[%s9760_s3 + $0x330] sm:$0xff]  ;;  %v2700_v1 = vld [vmem:[%s9760_s3 + $0x338] sm:$0xff] }
 0x2d9   :  { %v1921_v16 = vmax.f32 %v1887_v19, 0.0  ;;  %v6554_v45 = vadd.f32 %v8359_v31, %v1706_v4  ;;  %v1708_v42 = vpop.f32.mrb[45].mxu0  ;;  %6192 = vmatpush1.bf16.msra.mxu1 %v6191_v39  ;;  %v6206_v49 = vpack.c.bf16 %v2700_v1, %v2699_v57  ;;  %v2701_v39 = vld [vmem:[%s9760_s3 + $0x340] sm:$0xff]  ;;  %v2703_v4 = vld [vmem:[%s9760_s3 + $0x350] sm:$0xff]  ;;  %v2720_v57 = vld [vmem:[%s9760_s3 + $0x3d8] sm:$0xff] }
 0x2da   :  { %v2016_v55 = vld [vmem:[#allocation2 + $0x130] sm:$0xff]  ;;  %6193 = vmatprep.subr.bf16.mxu1 %v9765_v0 }
 0x2db   :  { %1946 = vst.msk [vmem:[#allocation2 + $0x149] sm:$0xff] %vm1924_vm1, %v1921_v16  ;;  %v1892_v22 = vadd.f32 %v6554_v45, %v8357_v30  ;;  %2907 = vmatprep.mubr.f32.mxu0 %v2016_v55  ;;  %3073 = vmatmul.mubr.f32.gmra.mrb[54].mxu1 %v2016_v55  ;;  %v8722_v63 = vld [vmem:[#allocation2 + $0x131] sm:$0xff]  ;;  %v2194_v16 = vld [vmem:[#allocation2 + $0x81] sm:$0xff] }
 0x2dc   :  { %v1711_v14 = vpop.f32.mrb[46].mxu0  ;;  %2908 = vmatmul.mubr.f32.gmra.mrb[86].mxu0 %v8621_v48  ;;  %3077 = vmatprep.mubr.f32.mxu1 %v8676_v8  ;;  %v8774_v28 = vld [vmem:[#allocation2 + $0x12a] sm:$0xff]  ;;  %v8785_v33 = vld [vmem:[#allocation2 + $0x132] sm:$0xff] }
 0x2dd   :  { %v1922_v62 = vmax.f32 %v1892_v22, 0.0  ;;  %v6555_v12 = vadd.f32 %v8359_v31, %v1711_v14  ;;  %v1713_v54 = vpop.f32.mrb[47].mxu0  ;;  %6195 = vmatpush1.bf16.msra.mxu1 %v6194_v17  ;;  %v8689_v31 = vld [vmem:[#allocation2 + $0x101] sm:$0xff]  ;;  %v2195_v22 = vld [vmem:[#allocation2 + $0x89] sm:$0xff] }
 0x2de   :  { %v2017_v3 = vld [vmem:[#allocation2 + $0x140] sm:$0xff]  ;;  %6196 = vmatprep.subr.bf16.mxu1 %v9765_v0  ;;  %v2708_v54 = vld [vmem:[%s9760_s3 + $0x378] sm:$0xff]  ;;  %v2353_v1 = vld [vmem:[#allocation2 + $0x16a] sm:$0xff] }
 0x2df   :  { %1947 = vst.msk [vmem:[#allocation2 + $0x151] sm:$0xff] %vm1924_vm1, %v1922_v62  ;;  %v1897_v30 = vadd.f32 %v6555_v12, %v8355_v18  ;;  %2912 = vmatprep.mubr.f32.mxu0 %v2017_v3  ;;  %3078 = vmatmul.mubr.f32.gmra.mrb[56].mxu1 %v2017_v3  ;;  %v2707_v12 = vld [vmem:[%s9760_s3 + $0x370] sm:$0xff] }
 0x2e0   :  { %2913 = vmatmul.mubr.f32.gmra.mrb[88].mxu0 %v8636_v41  ;;  %3082 = vmatprep.mubr.f32.mxu1 %v8684_v44  ;;  %v8724_v41 = vld [vmem:[#allocation2 + $0x82] sm:$0xff]  ;;  %v6218_v3 = vpack.c.bf16 %v2708_v54, %v2707_v12  ;;  %v8901_v54 = vld [vmem:[#allocation2 + $0x3a] sm:$0xff] }
 0x2e1   :  { %v1923_v53 = vmax.f32 %v1897_v30, 0.0  ;;  %v2197_v30 = vld [vmem:[#allocation2 + $0xa1] sm:$0xff] }
 0x2e2   :  { %v2018_v15 = vld [vmem:[#allocation2 + $0x148] sm:$0xff] }
 0x2e3   :  { %1948 = vst.msk [vmem:[#allocation2 + $0x159] sm:$0xff] %vm1924_vm1, %v1923_v53  ;;  %2917 = vmatprep.mubr.f32.mxu0 %v2018_v15  ;;  %3083 = vmatmul.mubr.f32.gmra.mrb[58].mxu1 %v2018_v15  ;;  %v8788_v19 = vld [vmem:[#allocation2 + $0x142] sm:$0xff] }
 0x2e4   :  { %2918 = vmatmul.mubr.f32.gmra.mrb[90].mxu0 %v2014_v21  ;;  %3087 = vmatprep.mubr.f32.mxu1 %v8689_v31  ;;  %v6200_v21 = vpack.c.bf16 %v2696_v35, %v2695_v46  ;;  %v2709_v53 = vld [vmem:[%s9760_s3 + $0x380] sm:$0xff]  ;;  %v2710_v15 = vld [vmem:[%s9760_s3 + $0x388] sm:$0xff] }
 0x2e5   :  { %v2200_v35 = vld [vmem:[#allocation2 + $0xb9] sm:$0xff]  ;;  %v8895_v12 = vld [vmem:[#allocation2 + $0x2] sm:$0xff] }
 0x2e6   :  { %v2019_v18 = vld [vmem:[#allocation2 + $0x150] sm:$0xff] }
 0x2e7   :  { %2922 = vmatprep.mubr.f32.mxu0 %v2019_v18  ;;  %3088 = vmatmul.mubr.f32.gmra.mrb[60].mxu1 %v2019_v18  ;;  %v8799_v45 = vld [vmem:[#allocation2 + $0x14a] sm:$0xff] }
 0x2e8   :  { %2923 = vmatmul.mubr.f32.gmra.mrb[92].mxu0 %v2015_v20  ;;  %3092 = vmatprep.mubr.f32.mxu1 %v8692_v2  ;;  %v2193_v20 = vld [vmem:[#allocation2 + $0x79] sm:$0xff]  ;;  %v2198_v18 = vld [vmem:[#allocation2 + $0xa9] sm:$0xff] }
 0x2ea   :  { %v2020_v48 = vld [vmem:[#allocation2 + $0x158] sm:$0xff] }
 0x2eb   :  { %2927 = vmatprep.mubr.f32.mxu0 %v2020_v48  ;;  %3093 = vmatmul.mubr.f32.gmra.mrb[62].mxu1 %v2020_v48  ;;  %v8802_v17 = vld [vmem:[#allocation2 + $0x152] sm:$0xff]  ;;  %v8813_v14 = vld [vmem:[#allocation2 + $0x15a] sm:$0xff] }
 0x2ec   :  { %2928 = vmatmul.mubr.f32.gmra.mrb[94].mxu0 %v2016_v55  ;;  %3097 = vmatprep.mubr.f32.mxu1 %v8695_v56  ;;  %v2705_v55 = vld [vmem:[%s9760_s3 + $0x360] sm:$0xff]  ;;  %v2711_v48 = vld [vmem:[%s9760_s3 + $0x390] sm:$0xff] }
 0x2ed   :  { %5724 = vmatprep.mubr.f32.mxu0 %v8698_v61  ;;  %v6224_v59 = vpack.c.bf16 %v2712_v13, %v2711_v48  ;;  %v8914_v13 = vld [vmem:[#allocation2 + $0x1a] sm:$0xff] }
 0x2ef   :  { %3098 = vmatmul.mubr.f32.gmra.mrb[64].mxu1 %v8426_v25 }
 0x2f0   :  { %3102 = vmatprep.mubr.f32.mxu1 %v8702_v58  ;;  %5725 = vmatmul.mubr.f32.vlgmr.msra.gmra.mrb[96].mxu0 %v8704_v52 }
 0x2f1   :  { %5727 = vmatprep.mubr.f32.mxu0 %v8708_v6 }
 0x2f3   :  { %3103 = vmatmul.mubr.f32.gmra.mrb[66].mxu1 %v8426_v25 }
 0x2f4   :  { %3107 = vmatprep.mubr.f32.mxu1 %v8712_v40  ;;  %5728 = vmatmul.mubr.f32.gmra.mrb[98].mxu0 %v8714_v27 }
 0x2f5   :  { %5730 = vmatprep.mubr.f32.mxu0 %v8718_v11 }
 0x2f7   :  { %3108 = vmatmul.mubr.f32.gmra.mrb[68].mxu1 %v8426_v25 }
 0x2f8   :  { %3112 = vmatprep.mubr.f32.mxu1 %v8722_v63  ;;  %5731 = vmatmul.mubr.f32.gmra.mrb[100].mxu0 %v8724_v41 }
 0x2f9   :  { %5733 = vmatprep.mubr.f32.mxu0 %v8728_v23 }
 0x2fb   :  { %3113 = vmatmul.mubr.f32.gmra.mrb[70].mxu1 %v8426_v25  ;;  %v2343_v25 = vld [vmem:[#allocation2 + $0xb2] sm:$0xff] }
 0x2fc   :  { %3182 = vmatprep.mubr.f32.mxu1 %v8562_v29  ;;  %5734 = vmatmul.mubr.f32.gmra.mrb[102].mxu0 %v8738_v34 }
 0x2fd   :  { %5736 = vmatprep.mubr.f32.mxu0 %v2341_v32  ;;  %v2199_v32 = vld [vmem:[#allocation2 + $0xb1] sm:$0xff] }
 0x2ff   :  { %3183 = vmatmul.mubr.f32.vlgmr.msra.gmra.mrb[24].mxu1 %v8505_v38  ;;  %v6203_v38 = vpack.c.bf16 %v2698_v47, %v2697_v7  ;;  %v2717_v7 = vld [vmem:[%s9760_s3 + $0x3c0] sm:$0xff]  ;;  %v2718_v47 = vld [vmem:[%s9760_s3 + $0x3c8] sm:$0xff] }
 0x300   :  { %3187 = vmatprep.mubr.f32.mxu1 %v8580_v24  ;;  %6198 = vmatpush1.bf16.msra.mxu1 %v6197_v60  ;;  %v2714_v60 = vld [vmem:[%s9760_s3 + $0x3a8] sm:$0xff] }
 0x301   :  { %5737 = vmatmul.mubr.f32.gmra.mrb[104].mxu0 %v2342_v36  ;;  %6199 = vmatprep.subr.bf16.mxu1 %v9765_v0  ;;  %v2715_v36 = vld [vmem:[%s9760_s3 + $0x3b0] sm:$0xff] }
 0x302   :  { %5739 = vmatprep.mubr.f32.mxu0 %v2343_v25  ;;  %v2716_v25 = vld [vmem:[%s9760_s3 + $0x3b8] sm:$0xff] }
 0x303   :  { %3188 = vmatmul.mubr.f32.gmra.mrb[26].mxu1 %v8519_v37  ;;  %v8771_v37 = vld [vmem:[#allocation2 + $0x122] sm:$0xff] }
 0x304   :  { %3192 = vmatprep.mubr.f32.mxu1 %v8598_v51  ;;  %6201 = vmatpush1.bf16.msra.mxu1 %v6200_v21  ;;  %v6230_v21 = vpack.c.bf16 %v2716_v25, %v2715_v36 }
 0x305   :  { %5740 = vmatmul.mubr.f32.gmra.mrb[106].mxu0 %v2344_v5  ;;  %6202 = vmatprep.subr.bf16.mxu1 %v9765_v0  ;;  %v6233_v5 = vpack.c.bf16 %v2718_v47, %v2717_v7  ;;  %v4376_v7 = vld [vmem:[#allocation8 + $0x30] sm:$0xff]  ;;  %v4377_v47 = vld [vmem:[#allocation8 + $0x38] sm:$0xff] }
 0x306   :  { %5742 = vmatprep.mubr.f32.mxu0 %v8759_v10 }
 0x307   :  { %3193 = vmatmul.mubr.f32.gmra.mrb[28].mxu1 %v8534_v50  ;;  %v2702_v50 = vld [vmem:[%s9760_s3 + $0x348] sm:$0xff] }
 0x308   :  { %3197 = vmatprep.mubr.f32.mxu1 %v8616_v43  ;;  %6204 = vmatpush1.bf16.msra.mxu1 %v6203_v38  ;;  %v6209_v26 = vpack.c.bf16 %v2702_v50, %v2701_v39  ;;  %v2719_v38 = vld [vmem:[%s9760_s3 + $0x3d0] sm:$0xff]  ;;  %v2721_v50 = vld [vmem:[%s9760_s3 + $0x3e0] sm:$0xff] }
 0x309   :  { %5743 = vmatmul.mubr.f32.gmra.mrb[108].mxu0 %v8771_v37  ;;  %6205 = vmatprep.subr.bf16.mxu1 %v9765_v0  ;;  %v6236_v39 = vpack.c.bf16 %v2720_v57, %v2719_v38  ;;  %v4467_v38 = vld [vmem:[#allocation8 + $0x308] sm:$0xff] }
 0x30a   :  { %5745 = vmatprep.mubr.f32.mxu0 %v8774_v28 }
 0x30b   :  { %3198 = vmatmul.mubr.f32.gmra.mrb[30].mxu1 %v8548_v9  ;;  %v2704_v9 = vld [vmem:[%s9760_s3 + $0x358] sm:$0xff] }
 0x30c   :  { %3202 = vmatprep.mubr.f32.mxu1 %v2193_v20  ;;  %6207 = vmatpush1.bf16.msra.mxu1 %v6206_v49  ;;  %v6212_v42 = vpack.c.bf16 %v2704_v9, %v2703_v4  ;;  %v2354_v49 = vld [vmem:[#allocation2 + $0x172] sm:$0xff]  ;;  %v2355_v9 = vld [vmem:[#allocation2 + $0x17a] sm:$0xff] }
 0x30d   :  { %5746 = vmatmul.mubr.f32.gmra.mrb[110].mxu0 %v8785_v33  ;;  %6208 = vmatprep.subr.bf16.mxu1 %v9765_v0  ;;  %v2724_v4 = vld [vmem:[%s9760_s3 + $0x3f8] sm:$0xff] }
 0x30e   :  { %5748 = vmatprep.mubr.f32.mxu0 %v8788_v19 }
 0x30f   :  { %3203 = vmatmul.mubr.f32.gmra.mrb[32].mxu1 %v8562_v29  ;;  %v2706_v29 = vld [vmem:[%s9760_s3 + $0x368] sm:$0xff] }
 0x310   :  { %3207 = vmatprep.mubr.f32.mxu1 %v2194_v16  ;;  %6210 = vmatpush1.bf16.msra.mxu1 %v6209_v26  ;;  %v6215_v62 = vpack.c.bf16 %v2706_v29, %v2705_v55  ;;  %v2723_v26 = vld [vmem:[%s9760_s3 + $0x3f0] sm:$0xff]  ;;  %v2208_v29 = vld [vmem:[#allocation2 + $0x159] sm:$0xff] }
 0x311   :  { %5749 = vmatmul.mubr.f32.gmra.mrb[112].mxu0 %v8799_v45  ;;  %6211 = vmatprep.subr.bf16.mxu1 %v9765_v0  ;;  %v2206_v55 = vld [vmem:[#allocation2 + $0x149] sm:$0xff] }
 0x312   :  { %5751 = vmatprep.mubr.f32.mxu0 %v8802_v17 }
 0x313   :  { %3208 = vmatmul.mubr.f32.gmra.mrb[34].mxu1 %v8580_v24  ;;  %v2196_v24 = vld [vmem:[#allocation2 + $0x91] sm:$0xff] }
 0x314   :  { %3212 = vmatprep.mubr.f32.mxu1 %v2195_v22  ;;  %6213 = vmatpush1.bf16.msra.mxu1 %v6212_v42  ;;  %v2205_v42 = vld [vmem:[#allocation2 + $0x141] sm:$0xff] }
 0x315   :  { %5752 = vmatmul.mubr.f32.gmra.mrb[114].mxu0 %v8813_v14  ;;  %6214 = vmatprep.subr.bf16.mxu1 %v9765_v0 }
 0x316   :  { %5754 = vmatprep.mubr.f32.mxu0 %v2353_v1  ;;  %v4468_v1 = vld [vmem:[#allocation8 + $0x310] sm:$0xff] }
 0x317   :  { %3213 = vmatmul.mubr.f32.gmra.mrb[36].mxu1 %v8598_v51  ;;  %v6221_v51 = vpack.c.bf16 %v2710_v15, %v2709_v53  ;;  %v4370_v53 = vld [vmem:[#allocation8] sm:$0xff]  ;;  %v4371_v15 = vld [vmem:[#allocation8 + $0x8] sm:$0xff] }
 0x318   :  { %3217 = vmatprep.mubr.f32.mxu1 %v2196_v24  ;;  %6216 = vmatpush1.bf16.msra.mxu1 %v6215_v62  ;;  %v2211_v62 = vld [vmem:[#allocation2 + $0x179] sm:$0xff] }
 0x319   :  { %6217 = vmatprep.subr.bf16.mxu1 %v9765_v0  ;;  %5755 = vmatmul.mubr.f32.gmra.mrb[116].mxu0 %v2354_v49  ;;  %v4469_v49 = vld [vmem:[#allocation8 + $0x318] sm:$0xff] }
 0x31a   :  { %5757 = vmatprep.mubr.f32.mxu0 %v2355_v9  ;;  %v4470_v9 = vld [vmem:[#allocation8 + $0x320] sm:$0xff] }
 0x31b   :  { %3218 = vmatmul.mubr.f32.gmra.mrb[38].mxu1 %v8616_v43  ;;  %v2713_v43 = vld [vmem:[%s9760_s3 + $0x3a0] sm:$0xff] }
 0x31c   :  { %3222 = vmatprep.mubr.f32.mxu1 %v2197_v30  ;;  %6219 = vmatpush1.bf16.msra.mxu1 %v6218_v3  ;;  %v6227_v46 = vpack.c.bf16 %v2714_v60, %v2713_v43  ;;  %v8906_v3 = vld [vmem:[#allocation2 + $0x12] sm:$0xff] }
 0x31d   :  { %6220 = vmatprep.subr.bf16.mxu1 %v9765_v0  ;;  %v4373_v43 = vld [vmem:[#allocation8 + $0x18] sm:$0xff]  ;;  %v4374_v60 = vld [vmem:[#allocation8 + $0x20] sm:$0xff] }
 0x31f   :  { %3223 = vmatmul.mubr.f32.gmra.mrb[40].mxu1 %v2193_v20  ;;  %v2722_v20 = vld [vmem:[%s9760_s3 + $0x3e8] sm:$0xff] }
 0x320   :  { %3227 = vmatprep.mubr.f32.mxu1 %v2198_v18  ;;  %6222 = vmatpush1.bf16.msra.mxu1 %v6221_v51  ;;  %v6277_v51 = vpack.c.bf16 %v4371_v15, %v4370_v53  ;;  %v8909_v18 = vld [vmem:[#allocation2 + $0x42] sm:$0xff] }
 0x321   :  { %6223 = vmatprep.subr.bf16.mxu1 %v9765_v0  ;;  %v4383_v53 = vld [vmem:[#allocation8 + $0x68] sm:$0xff] }
 0x323   :  { %3228 = vmatmul.mubr.f32.gmra.mrb[42].mxu1 %v2194_v16  ;;  %v2356_v16 = vld [vmem:[#allocation2 + $0x182] sm:$0xff] }
 0x324   :  { %3232 = vmatprep.mubr.f32.mxu1 %v2199_v32  ;;  %6225 = vmatpush1.bf16.msra.mxu1 %v6224_v59  ;;  %v4372_v32 = vld [vmem:[#allocation8 + $0x10] sm:$0xff] }
 0x325   :  { %6226 = vmatprep.subr.bf16.mxu1 %v9765_v0  ;;  %5758 = vmatmul.mubr.f32.gmra.mrb[118].mxu0 %v2356_v16  ;;  %v4471_v16 = vld [vmem:[#allocation8 + $0x328] sm:$0xff] }
 0x327   :  { %3233 = vmatmul.mubr.f32.gmra.mrb[44].mxu1 %v2195_v22  ;;  %v2209_v22 = vld [vmem:[#allocation2 + $0x169] sm:$0xff] }
 0x328   :  { %3237 = vmatprep.mubr.f32.mxu1 %v2200_v35  ;;  %6228 = vmatpush1.bf16.msra.mxu1 %v6227_v46  ;;  %v6280_v46 = vpack.c.bf16 %v4373_v43, %v4372_v32  ;;  %v4375_v35 = vld [vmem:[#allocation8 + $0x28] sm:$0xff] }
 0x329   :  { %6229 = vmatprep.subr.bf16.mxu1 %v9765_v0 }
 0x32b   :  { %3238 = vmatmul.mubr.f32.gmra.mrb[46].mxu1 %v2196_v24 }
 0x32c   :  { %3242 = vmatprep.mubr.f32.mxu1 %v8695_v56  ;;  %6231 = vmatpush1.bf16.msra.mxu1 %v6230_v21  ;;  %v6283_v21 = vpack.c.bf16 %v4375_v35, %v4374_v60  ;;  %v4384_v60 = vld [vmem:[#allocation8 + $0x70] sm:$0xff] }
 0x32d   :  { %6232 = vmatprep.subr.bf16.mxu1 %v9765_v0 }
 0x32f   :  { %3243 = vmatmul.mubr.f32.gmra.mrb[48].mxu1 %v8676_v8  ;;  %v6239_v8 = vpack.c.bf16 %v2722_v20, %v2721_v50  ;;  %v6286_v20 = vpack.c.bf16 %v4377_v47, %v4376_v7  ;;  %v4386_v47 = vld [vmem:[#allocation8 + $0x80] sm:$0xff] }
 0x330   :  { %3247 = vmatprep.mubr.f32.mxu1 %v8702_v58  ;;  %6234 = vmatpush1.bf16.msra.mxu1 %v6233_v5  ;;  %v4466_v5 = vld [vmem:[#allocation8 + $0x300] sm:$0xff] }
 0x331   :  { %6235 = vmatprep.subr.bf16.mxu1 %v9765_v0  ;;  %v8922_v57 = vpack.c.bf16 %v4467_v38, %v4466_v5  ;;  %v4387_v5 = vld [vmem:[#allocation8 + $0x88] sm:$0xff] }
 0x333   :  { %3248 = vmatmul.mubr.f32.gmra.mrb[50].mxu1 %v8684_v44  ;;  %v6242_v44 = vpack.c.bf16 %v2724_v4, %v2723_v26  ;;  %9783 = vst [vmem:[#allocation14_spill] sm:$0xff] %v8922_v57  ;;  %v4379_v26 = vld [vmem:[#allocation8 + $0x48] sm:$0xff]  ;;  %6422 = vmatpush1.bf16.msra.mxu0 %v8922_v57  ;;  %v8929_v4 = vpack.c.bf16 %v4469_v49, %v4468_v1  ;;  %v4478_v1 = vld [vmem:[#allocation8 + $0x360] sm:$0xff] }
 0x334   :  { %3252 = vmatprep.mubr.f32.mxu1 %v8712_v40  ;;  %6237 = vmatpush1.bf16.msra.mxu1 %v6236_v39  ;;  %v4479_v49 = vld [vmem:[#allocation8 + $0x368] sm:$0xff] }
 0x335   :  { %6238 = vmatprep.subr.bf16.mxu1 %v9765_v0  ;;  %9784 = vst [vmem:[#allocation15_spill] sm:$0xff] %v8929_v4  ;;  %6423 = vmatprep.subr.bf16.mxu0 %v9765_v0 }
 0x337   :  { %3253 = vmatmul.mubr.f32.gmra.mrb[52].mxu1 %v8689_v31  ;;  %v2207_v31 = vld [vmem:[#allocation2 + $0x151] sm:$0xff]  ;;  %6425 = vmatpush1.bf16.msra.mxu0 %v8929_v4 }
 0x338   :  { %3257 = vmatprep.mubr.f32.mxu1 %v8722_v63  ;;  %6240 = vmatpush1.bf16.msra.mxu1 %v6239_v8  ;;  %v4378_v8 = vld [vmem:[#allocation8 + $0x40] sm:$0xff] }
 0x339   :  { %6241 = vmatprep.subr.bf16.mxu1 %v9765_v0  ;;  %6426 = vmatprep.subr.bf16.mxu0 %v9765_v0 }
 0x33b   :  { %3258 = vmatmul.mubr.f32.gmra.mrb[54].mxu1 %v8692_v2  ;;  %v2210_v2 = vld [vmem:[#allocation2 + $0x171] sm:$0xff] }
 0x33c   :  { %3262 = vmatprep.mubr.f32.mxu1 %v2205_v42  ;;  %6243 = vmatpush1.bf16.msra.mxu1 %v6242_v44 }
 0x33d   :  { %6276 = vmatprep.subr.bf16.mxu1 %v9765_v0 }
 0x33f   :  { %3263 = vmatmul.mubr.f32.gmra.mrb[56].mxu1 %v8695_v56  ;;  %v2212_v56 = vld [vmem:[#allocation2 + $0x181] sm:$0xff] }
 0x340   :  { %3267 = vmatprep.mubr.f32.mxu1 %v2206_v55 }
 0x343   :  { %3268 = vmatmul.mubr.f32.gmra.mrb[58].mxu1 %v8702_v58  ;;  %v2285_v58 = vld [vmem:[#allocation2 + $0x2a] sm:$0xff] }
 0x344   :  { %3272 = vmatprep.mubr.f32.mxu1 %v2207_v31 }
 0x347   :  { %3273 = vmatmul.mubr.f32.gmra.mrb[60].mxu1 %v8712_v40  ;;  %v2286_v40 = vld [vmem:[#allocation2 + $0x32] sm:$0xff] }
 0x348   :  { %3277 = vmatprep.mubr.f32.mxu1 %v2208_v29 }
 0x34b   :  { %3278 = vmatmul.mubr.f32.gmra.mrb[62].mxu1 %v8722_v63  ;;  %v8898_v63 = vld [vmem:[#allocation2 + $0xa] sm:$0xff] }
 0x34c   :  { %3282 = vmatprep.mubr.f32.mxu1 %v2209_v22  ;;  %v8937_v22 = vpack.c.bf16 %v4471_v16, %v4470_v9  ;;  %v4480_v9 = vld [vmem:[#allocation8 + $0x370] sm:$0xff]  ;;  %v4481_v16 = vld [vmem:[#allocation8 + $0x378] sm:$0xff] }
 0x34e   :  { %9785 = vst [vmem:[#allocation16_spill] sm:$0xff] %v8937_v22  ;;  %6428 = vmatpush1.bf16.msra.mxu0 %v8937_v22 }
 0x34f   :  { %3283 = vmatmul.mubr.f32.gmra.mrb[64].mxu1 %v2205_v42  ;;  %6429 = vmatprep.subr.bf16.mxu0 %v9765_v0 }
 0x350   :  { %3287 = vmatprep.mubr.f32.mxu1 %v2210_v2  ;;  %v4472_v2 = vld [vmem:[#allocation8 + $0x330] sm:$0xff] }
 0x353   :  { %3288 = vmatmul.mubr.f32.gmra.mrb[66].mxu1 %v2206_v55  ;;  %v6289_v55 = vpack.c.bf16 %v4379_v26, %v4378_v8  ;;  %v4389_v8 = vld [vmem:[#allocation8 + $0x98] sm:$0xff]  ;;  %v8973_v26 = vpack.c.bf16 %v4479_v49, %v4478_v1  ;;  %v4487_v1 = vld [vmem:[#allocation8 + $0x3a8] sm:$0xff] }
 0x354   :  { %3292 = vmatprep.mubr.f32.mxu1 %v2211_v62  ;;  %v4473_v62 = vld [vmem:[#allocation8 + $0x338] sm:$0xff]  ;;  %v2299_v49 = vld [vmem:[#allocation2 + $0x102] sm:$0xff] }
 0x355   :  { %v8946_v15 = vpack.c.bf16 %v4473_v62, %v4472_v2  ;;  %9789 = vst [vmem:[#allocation20_spill] sm:$0xff] %v8973_v26  ;;  %v4482_v2 = vld [vmem:[#allocation8 + $0x380] sm:$0xff]  ;;  %v4483_v62 = vld [vmem:[#allocation8 + $0x388] sm:$0xff] }
 0x357   :  { %3293 = vmatmul.mubr.f32.gmra.mrb[68].mxu1 %v2207_v31  ;;  %v4380_v31 = vld [vmem:[#allocation8 + $0x50] sm:$0xff]  ;;  %9786 = vst [vmem:[#allocation17_spill] sm:$0xff] %v8946_v15  ;;  %6431 = vmatpush1.bf16.msra.mxu0 %v8946_v15 }
 0x358   :  { %3297 = vmatprep.mubr.f32.mxu1 %v2212_v56  ;;  %6432 = vmatprep.subr.bf16.mxu0 %v9765_v0 }
 0x35b   :  { %3298 = vmatmul.mubr.f32.gmra.mrb[70].mxu1 %v2208_v29  ;;  %v4381_v29 = vld [vmem:[#allocation8 + $0x58] sm:$0xff] }
 0x35c   :  { %3367 = vmatprep.mubr.f32.mxu1 %v2285_v58 }
 0x35f   :  { %3368 = vmatmul.mubr.f32.vlgmr.msra.gmra.mrb[24].mxu1 %v8895_v12 }
 0x360   :  { %3372 = vmatprep.mubr.f32.mxu1 %v2286_v40  ;;  %6278 = vmatpush1.bf16.msra.mxu1 %v6277_v51  ;;  %v4474_v51 = vld [vmem:[#allocation8 + $0x340] sm:$0xff] }
 0x361   :  { %6279 = vmatprep.subr.bf16.mxu1 %v9765_v0 }
 0x363   :  { %3373 = vmatmul.mubr.f32.gmra.mrb[26].mxu1 %v8898_v63  ;;  %v8903_v24 = vpop.f32.mrb[48].mxu0 }
 0x364   :  { %3377 = vmatprep.mubr.f32.mxu1 %v8901_v54  ;;  %v2816_v30 = vpop.f32.mrb[49].mxu0  ;;  %6281 = vmatpush1.bf16.msra.mxu1 %v6280_v46  ;;  %v4385_v46 = vld [vmem:[#allocation8 + $0x78] sm:$0xff] }
 0x365   :  { %6282 = vmatprep.subr.bf16.mxu1 %v9765_v0  ;;  %v4382_v30 = vld [vmem:[#allocation8 + $0x60] sm:$0xff] }
 0x366   :  { %v6295_v43 = vpack.c.bf16 %v4383_v53, %v4382_v30  ;;  %v4392_v53 = vld [vmem:[#allocation8 + $0xb0] sm:$0xff] }
 0x367   :  { %3378 = vmatmul.mubr.f32.gmra.mrb[28].mxu1 %v8906_v3  ;;  %v8911_v48 = vpop.f32.mrb[50].mxu0 }
 0x368   :  { %3382 = vmatprep.mubr.f32.mxu1 %v8909_v18  ;;  %v2821_v59 = vpop.f32.mrb[51].mxu0  ;;  %6284 = vmatpush1.bf16.msra.mxu1 %v6283_v21  ;;  %v4477_v21 = vld [vmem:[#allocation8 + $0x358] sm:$0xff] }
 0x369   :  { %6285 = vmatprep.subr.bf16.mxu1 %v9765_v0  ;;  %v4475_v59 = vld [vmem:[#allocation8 + $0x348] sm:$0xff] }
 0x36a   :  { %v8955_v35 = vpack.c.bf16 %v4475_v59, %v4474_v51  ;;  %v4393_v51 = vld [vmem:[#allocation8 + $0xb8] sm:$0xff]  ;;  %v8990_v59 = vpack.c.bf16 %v4483_v62, %v4482_v2 }
 0x36b   :  { %3383 = vmatmul.mubr.f32.gmra.mrb[30].mxu1 %v8914_v13  ;;  %v8918_v36 = vpop.f32.mrb[52].mxu0 }
 0x36c   :  { %3387 = vmatprep.mubr.f32.mxu1 %v8698_v61  ;;  %v2826_v25 = vpop.f32.mrb[53].mxu0  ;;  %6287 = vmatpush1.bf16.msra.mxu1 %v6286_v20  ;;  %9787 = vst [vmem:[#allocation18_spill] sm:$0xff] %v8955_v35  ;;  %v4388_v20 = vld [vmem:[#allocation8 + $0x90] sm:$0xff]  ;;  %9791 = vst [vmem:[#allocation22_spill] sm:$0xff] %v8990_v59 }
 0x36d   :  { %6288 = vmatprep.subr.bf16.mxu1 %v9765_v0  ;;  %v4476_v25 = vld [vmem:[#allocation8 + $0x350] sm:$0xff]  ;;  %6434 = vmatpush1.bf16.msra.mxu0 %v8955_v35 }
 0x36e   :  { %v8964_v38 = vpack.c.bf16 %v4477_v21, %v4476_v25  ;;  %6435 = vmatprep.subr.bf16.mxu0 %v9765_v0  ;;  %v2250_v25 = vld [vmem:[#allocation2 + $0xd2] sm:$0xff]  ;;  %v6310_v21 = vpack.c.bf16 %v4393_v51, %v4392_v53 }
 0x36f   :  { %3388 = vmatmul.mubr.f32.gmra.mrb[32].mxu1 %v2285_v58  ;;  %v8924_v39 = vpop.f32.mrb[54].mxu0 }
 0x370   :  { %3392 = vmatprep.mubr.f32.mxu1 %v8704_v52  ;;  %v2831_v50 = vpop.f32.mrb[55].mxu0  ;;  %6290 = vmatpush1.bf16.msra.mxu1 %v6289_v55  ;;  %9788 = vst [vmem:[#allocation19_spill] sm:$0xff] %v8964_v38  ;;  %v4390_v55 = vld [vmem:[#allocation8 + $0xa0] sm:$0xff] }
 0x371   :  { %6291 = vmatprep.subr.bf16.mxu1 %v9765_v0  ;;  %6437 = vmatpush1.bf16.msra.mxu0 %v8964_v38 }
 0x372   :  { %6438 = vmatprep.subr.bf16.mxu0 %v9765_v0 }
 0x373   :  { %v8932_v44 = vpop.f32.mrb[56].mxu0  ;;  %3393 = vmatmul.mubr.f32.gmra.mrb[34].mxu1 %v2286_v40  ;;  %v6292_v40 = vpack.c.bf16 %v4381_v29, %v4380_v31  ;;  %v4391_v31 = vld [vmem:[#allocation8 + $0xa8] sm:$0xff]  ;;  %v8982_v29 = vpack.c.bf16 %v4481_v16, %v4480_v9  ;;  %v4396_v16 = vld [vmem:[#allocation8 + $0xd0] sm:$0xff] }
 0x374   :  { %v2836_v42 = vpop.f32.mrb[57].mxu0  ;;  %3397 = vmatprep.mubr.f32.mxu1 %v8708_v6  ;;  %v6307_v30 = vpack.c.bf16 %v4391_v31, %v4390_v55  ;;  %v2252_v31 = vld [vmem:[#allocation2 + $0xe2] sm:$0xff] }
 0x375   :  { %6293 = vmatpush1.bf16.msra.mxu1 %v6292_v40  ;;  %6440 = vmatpush1.bf16.msra.mxu0 %v8973_v26  ;;  %9790 = vst [vmem:[#allocation21_spill] sm:$0xff] %v8982_v29  ;;  %v2249_v40 = vld [vmem:[#allocation2 + $0xca] sm:$0xff] }
 0x376   :  { %6294 = vmatprep.subr.bf16.mxu1 %v9765_v0  ;;  %6441 = vmatprep.subr.bf16.mxu0 %v9765_v0 }
 0x377   :  { %v8940_v56 = vpop.f32.mrb[58].mxu0  ;;  %3398 = vmatmul.mubr.f32.gmra.mrb[36].mxu1 %v8901_v54 }
 0x378   :  { %v2841_v58 = vpop.f32.mrb[59].mxu0  ;;  %3402 = vmatprep.mubr.f32.mxu1 %v8714_v27 }
 0x379   :  { %6296 = vmatpush1.bf16.msra.mxu1 %v6295_v43  ;;  %6443 = vmatpush1.bf16.msra.mxu0 %v8982_v29  ;;  %v4485_v43 = vld [vmem:[#allocation8 + $0x398] sm:$0xff] }
 0x37a   :  { %6297 = vmatprep.subr.bf16.mxu1 %v9765_v0  ;;  %6444 = vmatprep.subr.bf16.mxu0 %v9765_v0 }
 0x37b   :  { %v8949_v32 = vpop.f32.mrb[60].mxu0  ;;  %3403 = vmatmul.mubr.f32.gmra.mrb[38].mxu1 %v8909_v18 }
 0x37c   :  { %v2846_v54 = vpop.f32.mrb[61].mxu0  ;;  %3407 = vmatprep.mubr.f32.mxu1 %v8718_v11  ;;  %v6298_v11 = vpack.c.bf16 %v4385_v46, %v4384_v60 }
 0x37d   :  { %v4484_v54 = vld [vmem:[#allocation8 + $0x390] sm:$0xff]  ;;  %6446 = vmatpush1.bf16.msra.mxu0 %v8990_v59 }
 0x37e   :  { %6299 = vmatpush1.bf16.msra.mxu1 %v6298_v11  ;;  %v4395_v11 = vld [vmem:[#allocation8 + $0xc8] sm:$0xff]  ;;  %6447 = vmatprep.subr.bf16.mxu0 %v9765_v0 }
 0x37f   :  { %v8958_v7 = vpop.f32.mrb[62].mxu0  ;;  %3408 = vmatmul.mubr.f32.gmra.mrb[40].mxu1 %v8698_v61  ;;  %6300 = vmatprep.subr.bf16.mxu1 %v9765_v0 }
 0x380   :  { %v2851_v18 = vpop.f32.mrb[63].mxu0  ;;  %3412 = vmatprep.mubr.f32.mxu1 %v8724_v41  ;;  %v6301_v41 = vpack.c.bf16 %v4387_v5, %v4386_v47  ;;  %v8997_v47 = vpack.c.bf16 %v4485_v43, %v4484_v54  ;;  %v4486_v5 = vld [vmem:[#allocation8 + $0x3a0] sm:$0xff] }
 0x381   :  { %v4394_v18 = vld [vmem:[#allocation8 + $0xc0] sm:$0xff]  ;;  %v9004_v9 = vpack.c.bf16 %v4487_v1, %v4486_v5 }
 0x382   :  { %6302 = vmatpush1.bf16.msra.mxu1 %v6301_v41  ;;  %9792 = vst [vmem:[#allocation23_spill] sm:$0xff] %v8997_v47  ;;  %v2251_v41 = vld [vmem:[#allocation2 + $0xda] sm:$0xff]  ;;  %6449 = vmatpush1.bf16.msra.mxu0 %v8997_v47 }
 0x383   :  { %v8967_v50 = vpop.f32.mrb[64].mxu0  ;;  %3413 = vmatmul.mubr.f32.gmra.mrb[42].mxu1 %v8704_v52  ;;  %6303 = vmatprep.subr.bf16.mxu1 %v9765_v0  ;;  %9793 = vst [vmem:[#allocation24_spill] sm:$0xff] %v9004_v9 }
 0x384   :  { %v2856_v61 = vpop.f32.mrb[65].mxu0  ;;  %3417 = vmatprep.mubr.f32.mxu1 %v8728_v23  ;;  %v6304_v23 = vpack.c.bf16 %v4389_v8, %v4388_v20  ;;  %v6313_v8 = vpack.c.bf16 %v4395_v11, %v4394_v18  ;;  %6450 = vmatprep.subr.bf16.mxu0 %v9765_v0  ;;  %v4488_v18 = vld [vmem:[#allocation8 + $0x3b0] sm:$0xff]  ;;  %v4489_v11 = vld [vmem:[#allocation8 + $0x3b8] sm:$0xff] }
 0x385   :  { %v9032_v5 = vpack.c.bf16 %v4489_v11, %v4488_v18 }
 0x386   :  { %6305 = vmatpush1.bf16.msra.mxu1 %v6304_v23  ;;  %v2300_v23 = vld [vmem:[#allocation2 + $0x10a] sm:$0xff]  ;;  %6452 = vmatpush1.bf16.msra.mxu0 %v9004_v9  ;;  %v9109_v9 = vld [vmem:[#allocation6] ss:$0 sm:$0xff] }
 0x387   :  { %v8976_v42 = vpop.f32.mrb[66].mxu0  ;;  %3418 = vmatmul.mubr.f32.gmra.mrb[44].mxu1 %v8708_v6  ;;  %v2297_v6 = vld [vmem:[#allocation2 + $0xf2] sm:$0xff]  ;;  %6306 = vmatprep.subr.bf16.mxu1 %v9765_v0  ;;  %9794 = vst [vmem:[#allocation25_spill] sm:$0xff] %v9032_v5  ;;  %v2815_v47 = vadd.f32 %v9109_v9, %v8903_v24  ;;  %v2820_v38 = vadd.f32 %v9109_v9, %v8911_v48 }
 0x388   :  { %v2861_v52 = vpop.f32.mrb[67].mxu0  ;;  %3422 = vmatprep.mubr.f32.mxu1 %v8738_v34  ;;  %6453 = vmatprep.subr.bf16.mxu0 %v9765_v0  ;;  %v2830_v48 = vadd.f32 %v9109_v9, %v8924_v39  ;;  %v4500_v39 = vld [vmem:[#allocation8 + $0x410] sm:$0xff] }
 0x389   :  { %v4397_v52 = vld [vmem:[#allocation8 + $0xd8] sm:$0xff] }
 0x38a   :  { %6308 = vmatpush1.bf16.msra.mxu1 %v6307_v30  ;;  %v6316_v62 = vpack.c.bf16 %v4397_v52, %v4396_v16  ;;  %6455 = vmatpush1.bf16.msra.mxu0 %v9032_v5  ;;  %v4493_v52 = vld [vmem:[#allocation8 + $0x3d8] sm:$0xff] }
 0x38b   :  { %v8985_v58 = vpop.f32.mrb[68].mxu0  ;;  %3423 = vmatmul.mubr.f32.gmra.mrb[46].mxu1 %v8714_v27  ;;  %v2298_v27 = vld [vmem:[#allocation2 + $0xfa] sm:$0xff]  ;;  %6309 = vmatprep.subr.bf16.mxu1 %v9765_v0 }
 0x38c   :  { %v2866_v34 = vpop.f32.mrb[69].mxu0  ;;  %3427 = vmatprep.mubr.f32.mxu1 %v2297_v6  ;;  %6456 = vmatprep.subr.bf16.mxu0 %v9765_v0 }
 0x38e   :  { %6311 = vmatpush1.bf16.msra.mxu1 %v6310_v21 }
 0x38f   :  { %v8993_v60 = vpop.f32.mrb[70].mxu0  ;;  %3428 = vmatmul.mubr.f32.gmra.mrb[48].mxu1 %v2249_v40  ;;  %6312 = vmatprep.subr.bf16.mxu1 %v9765_v0 }
 0x390   :  { %v2871_v46 = vpop.f32.mrb[71].mxu0  ;;  %3432 = vmatprep.mubr.f32.mxu1 %v2298_v27 }
 0x392   :  { %6314 = vmatpush1.bf16.msra.mxu1 %v6313_v8  ;;  %v4399_v8 = vld [vmem:[#allocation8 + $0xe8] sm:$0xff] }
 0x393   :  { %3433 = vmatmul.mubr.f32.gmra.mrb[50].mxu1 %v2250_v25  ;;  %v9000_v61 = vpop.f32.mrb[72].mxu0  ;;  %6315 = vmatprep.subr.bf16.mxu1 %v9765_v0 }
 0x394   :  { %3437 = vmatprep.mubr.f32.mxu1 %v2299_v49  ;;  %v2876_v20 = vpop.f32.mrb[73].mxu0 }
 0x396   :  { %6317 = vmatpush1.bf16.msra.mxu1 %v6316_v62  ;;  %v4494_v62 = vld [vmem:[#allocation8 + $0x3e0] sm:$0xff] }
 0x397   :  { %3438 = vmatmul.mubr.f32.gmra.mrb[52].mxu1 %v2251_v41  ;;  %v9007_v55 = vpop.f32.mrb[74].mxu0  ;;  %6318 = vmatprep.subr.bf16.mxu1 %v9765_v0 }
 0x398   :  { %3442 = vmatprep.mubr.f32.mxu1 %v2300_v23  ;;  %v2881_v2 = vpop.f32.mrb[75].mxu0 }
 0x39b   :  { %3443 = vmatmul.mubr.f32.gmra.mrb[54].mxu1 %v2252_v31  ;;  %v9012_v34 = vpop.f32.mrb[76].mxu0 }
 0x39c   :  { %3447 = vmatprep.mubr.f32.mxu1 %v8759_v10  ;;  %v2886_v40 = vpop.f32.mrb[77].mxu0 }
 0x39f   :  { %3448 = vmatmul.mubr.f32.gmra.mrb[56].mxu1 %v2297_v6  ;;  %v9016_v30 = vpop.f32.mrb[78].mxu0 }
 0x3a0   :  { %3452 = vmatprep.mubr.f32.mxu1 %v8771_v37  ;;  %v2891_v53 = vpop.f32.mrb[79].mxu0 }
 0x3a1   :  { %v4495_v53 = vld [vmem:[#allocation8 + $0x3e8] sm:$0xff] }
 0x3a3   :  { %v9019_v51 = vpop.f32.mrb[80].mxu0  ;;  %3453 = vmatmul.mubr.f32.gmra.mrb[58].mxu1 %v2298_v27 }
 0x3a4   :  { %v2896_v54 = vpop.f32.mrb[81].mxu0  ;;  %3457 = vmatprep.mubr.f32.mxu1 %v8774_v28 }
 0x3a7   :  { %v9022_v43 = vpop.f32.mrb[82].mxu0  ;;  %3458 = vmatmul.mubr.f32.gmra.mrb[60].mxu1 %v2299_v49 }
 0x3a8   :  { %v2901_v46 = vpop.f32.mrb[83].mxu0  ;;  %3462 = vmatprep.mubr.f32.mxu1 %v8785_v33 }
 0x3a9   :  { %v9058_v46 = vpack.c.bf16 %v4495_v53, %v4494_v62  ;;  %v4498_v62 = vld [vmem:[#allocation8 + $0x400] sm:$0xff] }
 0x3ab   :  { %v9025_v25 = vpop.f32.mrb[84].mxu0  ;;  %3463 = vmatmul.mubr.f32.gmra.mrb[62].mxu1 %v2300_v23  ;;  %9798 = vst [vmem:[#allocation29_spill] sm:$0xff] %v9058_v46 }
 0x3ac   :  { %v2906_v6 = vpop.f32.mrb[85].mxu0  ;;  %3467 = vmatprep.mubr.f32.mxu1 %v8788_v19  ;;  %v4490_v19 = vld [vmem:[#allocation8 + $0x3c0] sm:$0xff] }
 0x3ad   :  { %v4496_v6 = vld [vmem:[#allocation8 + $0x3f0] sm:$0xff] }
 0x3af   :  { %v9028_v21 = vpop.f32.mrb[86].mxu0  ;;  %3468 = vmatmul.mubr.f32.gmra.mrb[64].mxu1 %v8759_v10  ;;  %v4491_v10 = vld [vmem:[#allocation8 + $0x3c8] sm:$0xff] }
 0x3b0   :  { %v2911_v27 = vpop.f32.mrb[87].mxu0  ;;  %3472 = vmatprep.mubr.f32.mxu1 %v8799_v45  ;;  %v9040_v41 = vpack.c.bf16 %v4491_v10, %v4490_v19 }
 0x3b1   :  { %v4497_v27 = vld [vmem:[#allocation8 + $0x3f8] sm:$0xff] }
 0x3b2   :  { %9795 = vst [vmem:[#allocation26_spill] sm:$0xff] %v9040_v41  ;;  %6458 = vmatpush1.bf16.msra.mxu0 %v9040_v41  ;;  %v9063_v18 = vpack.c.bf16 %v4497_v27, %v4496_v6 }
 0x3b3   :  { %v9034_v1 = vpop.f32.mrb[88].mxu0  ;;  %3473 = vmatmul.mubr.f32.gmra.mrb[66].mxu1 %v8771_v37  ;;  %v4398_v37 = vld [vmem:[#allocation8 + $0xe0] sm:$0xff]  ;;  %6459 = vmatprep.subr.bf16.mxu0 %v9765_v0 }
 0x3b4   :  { %v2916_v49 = vpop.f32.mrb[89].mxu0  ;;  %3477 = vmatprep.mubr.f32.mxu1 %v8802_v17  ;;  %v4492_v17 = vld [vmem:[#allocation8 + $0x3d0] sm:$0xff]  ;;  %v6319_v16 = vpack.c.bf16 %v4399_v8, %v4398_v37  ;;  %9799 = vst [vmem:[#allocation30_spill] sm:$0xff] %v9063_v18 }
 0x3b5   :  { %v9051_v31 = vpack.c.bf16 %v4493_v52, %v4492_v17 }
 0x3b6   :  { %6320 = vmatpush1.bf16.msra.mxu1 %v6319_v16 }
 0x3b7   :  { %v9042_v45 = vpop.f32.mrb[90].mxu0  ;;  %3478 = vmatmul.mubr.f32.gmra.mrb[68].mxu1 %v8774_v28  ;;  %9796 = vst [vmem:[#allocation27_spill] sm:$0xff] %v9051_v31  ;;  %6461 = vmatpush1.bf16.msra.mxu0 %v9051_v31  ;;  %v4400_v28 = vld [vmem:[#allocation8 + $0xf0] sm:$0xff] }
 0x3b8   :  { %v2921_v20 = vpop.f32.mrb[91].mxu0  ;;  %3482 = vmatprep.mubr.f32.mxu1 %v8813_v14  ;;  %6321 = vmatprep.subr.bf16.mxu1 %v9765_v0  ;;  %v4401_v14 = vld [vmem:[#allocation8 + $0xf8] sm:$0xff] }
 0x3b9   :  { %v6322_v40 = vpack.c.bf16 %v4401_v14, %v4400_v28  ;;  %6462 = vmatprep.subr.bf16.mxu0 %v9765_v0 }
 0x3bb   :  { %v9048_v23 = vpop.f32.mrb[92].mxu0  ;;  %3483 = vmatmul.mubr.f32.gmra.mrb[70].mxu1 %v8785_v33  ;;  %6464 = vmatpush1.bf16.msra.mxu0 %v9058_v46 }
 0x3bc   :  { %v2926_v2 = vpop.f32.mrb[93].mxu0  ;;  %6323 = vmatpush1.bf16.msra.mxu1 %v6322_v40  ;;  %6465 = vmatprep.subr.bf16.mxu0 %v9765_v0  ;;  %v4499_v40 = vld [vmem:[#allocation8 + $0x408] sm:$0xff] }
 0x3bd   :  { %6324 = vmatprep.subr.bf16.mxu1 %v9765_v0 }
 0x3bf   :  { %v9056_v54 = vpop.f32.mrb[94].mxu0  ;;  %6467 = vmatpush1.bf16.msra.mxu0 %v9063_v18 }
 0x3c0   :  { %9797 = vst [vmem:[#allocation28_spill] sm:$0xff] %v9056_v54  ;;  %v2931_v33 = vpop.f32.mrb[95].mxu0 }
 0x3c1   :  { %v9086_v33 = vpack.c.bf16 %v4499_v40, %v4498_v62 }
 0x3c3   :  { %v5726_v11 = vpop.f32.mrb[96].mxu0  ;;  %6469 = vmatprep.subr.bf16.mxu0 %v9086_v33 }
 0x3c4   :  { %v3554_v49 = vpop.f32.mrb[97].mxu0 }
 0x3c7   :  { %v5729_v19 = vpop.f32.mrb[98].mxu0 }
 0x3c8   :  { %v3564_v10 = vpop.f32.mrb[99].mxu0 }
 0x3cb   :  { %v9066_v20 = vpop.f32.mrb[100].mxu0 }
 0x3cc   :  { %v9068_v37 = vpop.f32.mrb[101].mxu0 }
 0x3cf   :  { %v9070_v8 = vpop.f32.mrb[102].mxu0 }
 0x3d0   :  { %v9072_v17 = vpop.f32.mrb[103].mxu0 }
 0x3d4   :  { %v9074_v16 = vpop.f32.mrb[104].mxu0 }
 0x3d5   :  { %v9076_v52 = vpop.f32.mrb[105].mxu0 }
 0x3d8   :  { %v9078_v2 = vpop.f32.mrb[106].mxu0 }
 0x3d9   :  { %v9080_v28 = vpop.f32.mrb[107].mxu0 }
 0x3dc   :  { %v9082_v14 = vpop.f32.mrb[108].mxu0 }
 0x3dd   :  { %v9084_v53 = vpop.f32.mrb[109].mxu0 }
 0x3e0   :  { %v9089_v6 = vpop.f32.mrb[110].mxu0 }
 0x3e1   :  { %v9091_v27 = vpop.f32.mrb[111].mxu0 }
 0x3e4   :  { %v9093_v0 = vpop.f32.mrb[112].mxu0 }
 0x3e5   :  { %v9095_v18 = vpop.f32.mrb[113].mxu0 }
 0x3e8   :  { %v9097_v46 = vpop.f32.mrb[114].mxu0 }
 0x3e9   :  { %v9099_v31 = vpop.f32.mrb[115].mxu0 }
 0x3ec   :  { %v9101_v41 = vpop.f32.mrb[116].mxu0 }
 0x3ed   :  { %9800 = vst [vmem:[#allocation31_spill] sm:$0xff] %v9101_v41  ;;  %v9103_v5 = vpop.f32.mrb[117].mxu0 }
 0x3f8   :  { %v9105_v62 = vpop.f32.mrb[118].mxu0 }
 0x3f9   :  { %9801 = vst [vmem:[#allocation32_spill] sm:$0xff] %v9105_v62  ;;  %v9107_v40 = vpop.f32.mrb[119].mxu0  ;;  %v2825_v62 = vadd.f32 %v9109_v9, %v8918_v36 }
 0x3fa   :  { %9802 = vst [vmem:[#allocation33_spill] sm:$0xff] %v9107_v40 }
 0x432   :  { %v3369_v59 = vpop.f32.mrb[24].mxu1 }
 0x433   :  { %v6557_v29 = vadd.f32 %v3369_v59, %v2815_v47  ;;  %v3371_v26 = vpop.f32.mrb[25].mxu1  ;;  %v4403_v47 = vld [vmem:[#allocation8 + $0x108] sm:$0xff] }
 0x434   :  { %v4402_v26 = vld [vmem:[#allocation8 + $0x100] sm:$0xff] }
 0x435   :  { %v3555_v35 = vadd.f32 %v6557_v29, %v3554_v49  ;;  %v6325_v36 = vpack.c.bf16 %v4403_v47, %v4402_v26  ;;  %v4406_v47 = vld [vmem:[#allocation8 + $0x120] sm:$0xff] }
 0x436   :  { %v3374_v15 = vpop.f32.mrb[26].mxu1 }
 0x437   :  { %v3673_v22 = vmax.f32 %v3555_v35, 0.0  ;;  %v6559_v4 = vadd.f32 %v3374_v15, %v2820_v38  ;;  %v3376_v57 = vpop.f32.mrb[27].mxu1 }
 0x439   :  { %v3560_v40 = vadd.f32 %v6559_v4, %v5726_v11  ;;  %3698 = vst.msk [vmem:[#allocation2 + $0x29] sm:$0xff] %vm3697_vm2, %v3673_v22  ;;  %v4404_v22 = vld [vmem:[#allocation8 + $0x110] sm:$0xff]  ;;  %v4405_v11 = vld [vmem:[#allocation8 + $0x118] sm:$0xff] }
 0x43a   :  { %v3379_v54 = vpop.f32.mrb[28].mxu1  ;;  %v6328_v26 = vpack.c.bf16 %v4405_v11, %v4404_v22 }
 0x43b   :  { %v3674_v24 = vmax.f32 %v3560_v40, 0.0  ;;  %v6561_v41 = vadd.f32 %v3379_v54, %v2825_v62  ;;  %v3381_v59 = vpop.f32.mrb[29].mxu1  ;;  %v2835_v54 = vadd.f32 %v9109_v9, %v8932_v44  ;;  %v9127_v62 = vld [vmem:[#allocation2] sm:$0xff] }
 0x43d   :  { %v3565_v29 = vadd.f32 %v6561_v41, %v3564_v10  ;;  %3699 = vst.msk [vmem:[#allocation2 + $0x31] sm:$0xff] %vm3697_vm2, %v3674_v24  ;;  %v4501_v41 = vld [vmem:[#allocation8 + $0x418] sm:$0xff] }
 0x43e   :  { %v3384_v15 = vpop.f32.mrb[30].mxu1 }
 0x43f   :  { %v3675_v57 = vmax.f32 %v3565_v29, 0.0  ;;  %v6563_v35 = vadd.f32 %v3384_v15, %v2830_v48  ;;  %v3386_v38 = vpop.f32.mrb[31].mxu1  ;;  %v4407_v29 = vld [vmem:[#allocation8 + $0x128] sm:$0xff]  ;;  %v6472_v15 = vpack.c.bf16 %v4501_v41, %v4500_v39  ;;  %v4408_v39 = vld [vmem:[#allocation8 + $0x130] sm:$0xff] }
 0x440   :  { %v9121_v4 = vld [vmem:[#allocation2 + $0x28] sm:$0xff]  ;;  %v4502_v38 = vld [vmem:[#allocation8 + $0x420] sm:$0xff] }
 0x441   :  { %v3570_v49 = vadd.f32 %v6563_v35, %v5729_v19  ;;  %4585 = vmatprep.mubr.f32.mxu1 %v9121_v4  ;;  %3700 = vst.msk [vmem:[#allocation2 + $0x39] sm:$0xff] %vm3697_vm2, %v3675_v57  ;;  %v9803_v19 = vmov 0.0|0.0   ;;  %v2840_v57 = vadd.f32 %v9109_v9, %v8940_v56  ;;  %v6331_v56 = vpack.c.bf16 %v4407_v29, %v4406_v47 }
 0x442   :  { %v3389_v10 = vpop.f32.mrb[32].mxu1  ;;  %4586 = vmatmul.mubr.f32.vlgmr.msra.gmra.mrb[72].mxu1 %v9127_v62 }
 0x443   :  { %v3676_v40 = vmax.f32 %v3570_v49, 0.0  ;;  %v6565_v24 = vadd.f32 %v3389_v10, %v2835_v54  ;;  %v3391_v59 = vpop.f32.mrb[33].mxu1  ;;  %6326 = vmatpush1.bf16.msra.mxu1 %v6325_v36  ;;  %v4503_v36 = vld [vmem:[#allocation8 + $0x428] sm:$0xff]  ;;  %v4409_v10 = vld [vmem:[#allocation8 + $0x138] sm:$0xff] }
 0x444   :  { %v9130_v48 = vld [vmem:[#allocation2 + $0x30] sm:$0xff]  ;;  %6327 = vmatprep.subr.bf16.mxu1 %v9803_v19  ;;  %v4504_v59 = vld [vmem:[#allocation8 + $0x430] sm:$0xff] }
 0x445   :  { %v9132_v44 = vld [vmem:[#allocation2 + $0x2a] sm:$0xff]  ;;  %3701 = vst.msk [vmem:[#allocation2 + $0x41] sm:$0xff] %vm3697_vm2, %v3676_v40  ;;  %v3575_v35 = vadd.f32 %v6565_v24, %v9068_v37  ;;  %4590 = vmatprep.mubr.f32.mxu1 %v9130_v48  ;;  %v6476_v40 = vpack.c.bf16 %v4503_v36, %v4502_v38  ;;  %v4411_v36 = vld [vmem:[#allocation8 + $0x148] sm:$0xff] }
 0x446   :  { %5140 = vmatprep.mubr.f32.mxu0 %v9132_v44  ;;  %v3394_v22 = vpop.f32.mrb[34].mxu1  ;;  %4591 = vmatmul.mubr.f32.gmra.mrb[74].mxu1 %v9127_v62 }
 0x447   :  { %5141 = vmatmul.mubr.f32.vlgmr.msra.gmra.mrb[120].mxu0 %v8895_v12  ;;  %v3677_v11 = vmax.f32 %v3575_v35, 0.0  ;;  %v6567_v54 = vadd.f32 %v3394_v22, %v2840_v57  ;;  %v3396_v49 = vpop.f32.mrb[35].mxu1  ;;  %6329 = vmatpush1.bf16.msra.mxu1 %v6328_v26  ;;  %v2845_v12 = vadd.f32 %v9109_v9, %v8949_v32  ;;  %v4505_v26 = vld [vmem:[#allocation8 + $0x438] sm:$0xff]  ;;  %v6334_v32 = vpack.c.bf16 %v4409_v10, %v4408_v39  ;;  %v4410_v35 = vld [vmem:[#allocation8 + $0x140] sm:$0xff] }
 0x448   :  { %6471 = vmatpush3.bf16.msra.mxu0 %v9086_v33  ;;  %v9144_v37 = vld [vmem:[#allocation2 + $0x38] sm:$0xff]  ;;  %6330 = vmatprep.subr.bf16.mxu1 %v9803_v19  ;;  %v4413_v10 = vld [vmem:[#allocation8 + $0x158] sm:$0xff] }
 0x449   :  { %v9146_v41 = vld [vmem:[#allocation2 + $0x32] sm:$0xff]  ;;  %6473 = vmatprep.subr.bf16.mxu0 %v6472_v15  ;;  %3702 = vst.msk [vmem:[#allocation2 + $0x51] sm:$0xff] %vm3697_vm2, %v3677_v11  ;;  %v3580_v24 = vadd.f32 %v6567_v54, %v9066_v20  ;;  %4595 = vmatprep.mubr.f32.mxu1 %v9144_v37 }
 0x44a   :  { %5145 = vmatprep.mubr.f32.mxu0 %v9146_v41  ;;  %v3399_v33 = vpop.f32.mrb[36].mxu1  ;;  %4596 = vmatmul.mubr.f32.gmra.mrb[76].mxu1 %v9127_v62 }
 0x44b   :  { %5146 = vmatmul.mubr.f32.gmra.mrb[122].mxu0 %v8898_v63  ;;  %v3678_v47 = vmax.f32 %v3580_v24, 0.0  ;;  %v6569_v29 = vadd.f32 %v3399_v33, %v2845_v12  ;;  %v3401_v57 = vpop.f32.mrb[37].mxu1  ;;  %6332 = vmatpush1.bf16.msra.mxu1 %v6331_v56  ;;  %v2850_v63 = vadd.f32 %v9109_v9, %v8958_v7  ;;  %v6337_v7 = vpack.c.bf16 %v4411_v36, %v4410_v35  ;;  %v4506_v24 = vld [vmem:[#allocation8 + $0x440] sm:$0xff]  ;;  %v4507_v33 = vld [vmem:[#allocation8 + $0x448] sm:$0xff]  ;;  %v4508_v36 = vld [vmem:[#allocation8 + $0x450] sm:$0xff] }
 0x44c   :  { %6475 = vmatpush3.bf16.msra.mxu0 %v6472_v15  ;;  %v9157_v38 = vld [vmem:[#allocation2 + $0x40] sm:$0xff]  ;;  %6333 = vmatprep.subr.bf16.mxu1 %v9803_v19  ;;  %v6480_v15 = vpack.c.bf16 %v4505_v26, %v4504_v59 }
 0x44d   :  { %v9159_v20 = vld [vmem:[#allocation2 + $0x3a] sm:$0xff]  ;;  %6477 = vmatprep.subr.bf16.mxu0 %v6476_v40  ;;  %3703 = vst.msk [vmem:[#allocation2 + $0x59] sm:$0xff] %vm3697_vm2, %v3678_v47  ;;  %v3585_v22 = vadd.f32 %v6569_v29, %v9072_v17  ;;  %4600 = vmatprep.mubr.f32.mxu1 %v9157_v38  ;;  %v9170_v54 = vld [vmem:[#allocation2 + $0x42] sm:$0xff] }
 0x44e   :  { %5150 = vmatprep.mubr.f32.mxu0 %v9159_v20  ;;  %v3404_v11 = vpop.f32.mrb[38].mxu1  ;;  %4601 = vmatmul.mubr.f32.gmra.mrb[78].mxu1 %v9127_v62  ;;  %v4412_v17 = vld [vmem:[#allocation8 + $0x150] sm:$0xff]  ;;  %v4415_v35 = vld [vmem:[#allocation8 + $0x168] sm:$0xff] }
 0x44f   :  { %5151 = vmatmul.mubr.f32.gmra.mrb[124].mxu0 %v8906_v3  ;;  %v3679_v49 = vmax.f32 %v3585_v22, 0.0  ;;  %v6571_v56 = vadd.f32 %v3404_v11, %v2850_v63  ;;  %v3406_v39 = vpop.f32.mrb[39].mxu1  ;;  %6335 = vmatpush1.bf16.msra.mxu1 %v6334_v32  ;;  %v2855_v3 = vadd.f32 %v9109_v9, %v8967_v50  ;;  %v6340_v57 = vpack.c.bf16 %v4413_v10, %v4412_v17  ;;  %v4414_v32 = vld [vmem:[#allocation8 + $0x160] sm:$0xff]  ;;  %v4509_v22 = vld [vmem:[#allocation8 + $0x458] sm:$0xff] }
 0x450   :  { %5155 = vmatprep.mubr.f32.mxu0 %v9170_v54  ;;  %v9173_v12 = vld [vmem:[#allocation2 + $0x50] sm:$0xff]  ;;  %6336 = vmatprep.subr.bf16.mxu1 %v9803_v19  ;;  %v6484_v50 = vpack.c.bf16 %v4507_v33, %v4506_v24  ;;  %v6343_v39 = vpack.c.bf16 %v4415_v35, %v4414_v32  ;;  %v4511_v33 = vld [vmem:[#allocation8 + $0x468] sm:$0xff] }
 0x451   :  { %6479 = vmatpush3.bf16.msra.mxu0 %v6476_v40  ;;  %3704 = vst.msk [vmem:[#allocation2 + $0x61] sm:$0xff] %vm3697_vm2, %v3679_v49  ;;  %v3590_v59 = vadd.f32 %v6571_v56, %v9070_v8  ;;  %4605 = vmatprep.mubr.f32.mxu1 %v9173_v12  ;;  %v4417_v10 = vld [vmem:[#allocation8 + $0x178] sm:$0xff]  ;;  %v4510_v24 = vld [vmem:[#allocation8 + $0x460] sm:$0xff]  ;;  %v4419_v35 = vld [vmem:[#allocation8 + $0x188] sm:$0xff] }
 0x452   :  { %6481 = vmatprep.subr.bf16.mxu0 %v6480_v15  ;;  %v3409_v26 = vpop.f32.mrb[40].mxu1  ;;  %4606 = vmatmul.mubr.f32.gmra.mrb[80].mxu1 %v9121_v4 }
 0x453   :  { %5156 = vmatmul.mubr.f32.gmra.mrb[126].mxu0 %v8914_v13  ;;  %v3680_v47 = vmax.f32 %v3590_v59, 0.0  ;;  %v6573_v29 = vadd.f32 %v3409_v26, %v2855_v3  ;;  %v3411_v40 = vpop.f32.mrb[41].mxu1  ;;  %6338 = vmatpush1.bf16.msra.mxu1 %v6337_v7  ;;  %v2860_v13 = vadd.f32 %v9109_v9, %v8976_v42  ;;  %v4416_v7 = vld [vmem:[#allocation8 + $0x170] sm:$0xff]  ;;  %v6488_v42 = vpack.c.bf16 %v4509_v22, %v4508_v36 }
 0x454   :  { %v9183_v63 = vld [vmem:[#allocation2 + $0x58] sm:$0xff]  ;;  %6339 = vmatprep.subr.bf16.mxu1 %v9803_v19  ;;  %v4512_v40 = vld [vmem:[#allocation8 + $0x470] sm:$0xff] }
 0x455   :  { %v9185_v8 = vld [vmem:[#allocation2 + $0x52] sm:$0xff]  ;;  %6483 = vmatpush3.bf16.msra.mxu0 %v6480_v15  ;;  %3705 = vst.msk [vmem:[#allocation2 + $0x69] sm:$0xff] %vm3697_vm2, %v3680_v47  ;;  %v3595_v4 = vadd.f32 %v6573_v29, %v9076_v52  ;;  %4610 = vmatprep.mubr.f32.mxu1 %v9183_v63 }
 0x456   :  { %5160 = vmatprep.mubr.f32.mxu0 %v9185_v8  ;;  %v3414_v11 = vpop.f32.mrb[42].mxu1  ;;  %4611 = vmatmul.mubr.f32.gmra.mrb[82].mxu1 %v9130_v48  ;;  %v2865_v48 = vadd.f32 %v9109_v9, %v8985_v58  ;;  %v6346_v58 = vpack.c.bf16 %v4417_v10, %v4416_v7  ;;  %v4418_v29 = vld [vmem:[#allocation8 + $0x180] sm:$0xff] }
 0x457   :  { %5161 = vmatmul.mubr.f32.gmra.mrb[128].mxu0 %v9132_v44  ;;  %v3681_v49 = vmax.f32 %v3595_v4, 0.0  ;;  %v6575_v56 = vadd.f32 %v3414_v11, %v2860_v13  ;;  %v3416_v15 = vpop.f32.mrb[43].mxu1  ;;  %6341 = vmatpush1.bf16.msra.mxu1 %v6340_v57 }
 0x458   :  { %6485 = vmatprep.subr.bf16.mxu0 %v6484_v50  ;;  %v9196_v17 = vld [vmem:[#allocation2 + $0x60] sm:$0xff]  ;;  %6342 = vmatprep.subr.bf16.mxu1 %v9803_v19  ;;  %v4421_v15 = vld [vmem:[#allocation8 + $0x198] sm:$0xff] }
 0x459   :  { %v9198_v52 = vld [vmem:[#allocation2 + $0x5a] sm:$0xff]  ;;  %6487 = vmatpush3.bf16.msra.mxu0 %v6484_v50  ;;  %3706 = vst.msk [vmem:[#allocation2 + $0x79] sm:$0xff] %vm3697_vm2, %v3681_v49  ;;  %v3600_v44 = vadd.f32 %v6575_v56, %v9074_v16  ;;  %4615 = vmatprep.mubr.f32.mxu1 %v9196_v17  ;;  %v4513_v16 = vld [vmem:[#allocation8 + $0x478] sm:$0xff]  ;;  %v4420_v56 = vld [vmem:[#allocation8 + $0x190] sm:$0xff] }
 0x45a   :  { %5165 = vmatprep.mubr.f32.mxu0 %v9198_v52  ;;  %v3419_v3 = vpop.f32.mrb[44].mxu1  ;;  %4616 = vmatmul.mubr.f32.gmra.mrb[84].mxu1 %v9144_v37  ;;  %v6492_v37 = vpack.c.bf16 %v4511_v33, %v4510_v24  ;;  %v6496_v49 = vpack.c.bf16 %v4513_v16, %v4512_v40  ;;  %v2880_v33 = vadd.f32 %v9109_v9, %v9007_v55  ;;  %v4424_v55 = vld [vmem:[#allocation8 + $0x1b0] sm:$0xff] }
 0x45b   :  { %5166 = vmatmul.mubr.f32.gmra.mrb[130].mxu0 %v9146_v41  ;;  %v3682_v59 = vmax.f32 %v3600_v44, 0.0  ;;  %v6577_v26 = vadd.f32 %v3419_v3, %v2865_v48  ;;  %v3421_v47 = vpop.f32.mrb[45].mxu1  ;;  %6344 = vmatpush1.bf16.msra.mxu1 %v6343_v39  ;;  %v2870_v41 = vadd.f32 %v9109_v9, %v8993_v60  ;;  %v6349_v60 = vpack.c.bf16 %v4419_v35, %v4418_v29  ;;  %v4422_v44 = vld [vmem:[#allocation8 + $0x1a0] sm:$0xff] }
 0x45c   :  { %6489 = vmatprep.subr.bf16.mxu0 %v6488_v42  ;;  %v9209_v57 = vld [vmem:[#allocation2 + $0x68] sm:$0xff]  ;;  %6345 = vmatprep.subr.bf16.mxu1 %v9803_v19  ;;  %v6352_v48 = vpack.c.bf16 %v4421_v15, %v4420_v56  ;;  %v2885_v16 = vadd.f32 %v9109_v9, %v9012_v34 }
 0x45d   :  { %v9211_v32 = vld [vmem:[#allocation2 + $0x62] sm:$0xff]  ;;  %6491 = vmatpush3.bf16.msra.mxu0 %v6488_v42  ;;  %3707 = vst.msk [vmem:[#allocation2 + $0x81] sm:$0xff] %vm3697_vm2, %v3682_v59  ;;  %v3605_v50 = vadd.f32 %v6577_v26, %v9080_v28  ;;  %4620 = vmatprep.mubr.f32.mxu1 %v9209_v57  ;;  %v9222_v22 = vld [vmem:[#allocation2 + $0x6a] sm:$0xff] }
 0x45e   :  { %5170 = vmatprep.mubr.f32.mxu0 %v9211_v32  ;;  %v3424_v36 = vpop.f32.mrb[46].mxu1  ;;  %4621 = vmatmul.mubr.f32.gmra.mrb[86].mxu1 %v9157_v38  ;;  %v2875_v38 = vadd.f32 %v9109_v9, %v9000_v61 }
 0x45f   :  { %5171 = vmatmul.mubr.f32.gmra.mrb[132].mxu0 %v9159_v20  ;;  %v3683_v13 = vmax.f32 %v3605_v50, 0.0  ;;  %v6579_v4 = vadd.f32 %v3424_v36, %v2870_v41  ;;  %v3426_v11 = vpop.f32.mrb[47].mxu1  ;;  %6347 = vmatpush1.bf16.msra.mxu1 %v6346_v58 }
 0x460   :  { %5175 = vmatprep.mubr.f32.mxu0 %v9222_v22  ;;  %v9225_v28 = vld [vmem:[#allocation2 + $0x78] sm:$0xff]  ;;  %6348 = vmatprep.subr.bf16.mxu1 %v9803_v19 }
 0x461   :  { %6493 = vmatprep.subr.bf16.mxu0 %v6492_v37  ;;  %3708 = vst.msk [vmem:[#allocation2 + $0x89] sm:$0xff] %vm3697_vm2, %v3683_v13  ;;  %v3610_v20 = vadd.f32 %v6579_v4, %v9078_v2  ;;  %4625 = vmatprep.mubr.f32.mxu1 %v9225_v28  ;;  %v4423_v2 = vld [vmem:[#allocation8 + $0x1a8] sm:$0xff]  ;;  %v4426_v4 = vld [vmem:[#allocation8 + $0x1c0] sm:$0xff] }
 0x462   :  { %6495 = vmatpush3.bf16.msra.mxu0 %v6492_v37  ;;  %v3429_v39 = vpop.f32.mrb[48].mxu1  ;;  %4626 = vmatmul.mubr.f32.gmra.mrb[88].mxu1 %v9173_v12  ;;  %v6355_v58 = vpack.c.bf16 %v4423_v2, %v4422_v44 }
 0x463   :  { %5176 = vmatmul.mubr.f32.gmra.mrb[134].mxu0 %v9170_v54  ;;  %v3684_v7 = vmax.f32 %v3610_v20, 0.0  ;;  %v6581_v42 = vadd.f32 %v3429_v39, %v2875_v38  ;;  %v3431_v10 = vpop.f32.mrb[49].mxu1  ;;  %6350 = vmatpush1.bf16.msra.mxu1 %v6349_v60  ;;  %v2890_v60 = vadd.f32 %v9109_v9, %v9016_v30 }
 0x464   :  { %6497 = vmatprep.subr.bf16.mxu0 %v6496_v49  ;;  %v9235_v61 = vld [vmem:[#allocation2 + $0x80] sm:$0xff]  ;;  %6351 = vmatprep.subr.bf16.mxu1 %v9803_v19  ;;  %v2895_v10 = vadd.f32 %v9109_v9, %v9019_v51 }
 0x465   :  { %v9237_v24 = vld [vmem:[#allocation2 + $0x7a] sm:$0xff]  ;;  %3709 = vst.msk [vmem:[#allocation2 + $0x91] sm:$0xff] %vm3697_vm2, %v3684_v7  ;;  %v3615_v54 = vadd.f32 %v6581_v42, %v9084_v53  ;;  %4630 = vmatprep.mubr.f32.mxu1 %v9235_v61  ;;  %v4425_v53 = vld [vmem:[#allocation8 + $0x1b8] sm:$0xff] }
 0x466   :  { %5180 = vmatprep.mubr.f32.mxu0 %v9237_v24  ;;  %v3434_v3 = vpop.f32.mrb[50].mxu1  ;;  %4631 = vmatmul.mubr.f32.gmra.mrb[90].mxu1 %v9183_v63  ;;  %v6358_v13 = vpack.c.bf16 %v4425_v53, %v4424_v55  ;;  %v4429_v42 = vld [vmem:[#allocation8 + $0x1d8] sm:$0xff] }
 0x467   :  { %5181 = vmatmul.mubr.f32.gmra.mrb[136].mxu0 %v9185_v8  ;;  %v3685_v59 = vmax.f32 %v3615_v54, 0.0  ;;  %v6583_v26 = vadd.f32 %v3434_v3, %v2880_v33  ;;  %v3436_v47 = vpop.f32.mrb[51].mxu1  ;;  %6353 = vmatpush1.bf16.msra.mxu1 %v6352_v48  ;;  %v4022_v3 = vld [vmem:[#allocation2 + $0xca] sm:$0xff] }
 0x468   :  { %6499 = vmatpush3.bf16.msra.mxu0 %v6496_v49  ;;  %v9248_v29 = vld [vmem:[#allocation2 + $0x88] sm:$0xff]  ;;  %6354 = vmatprep.subr.bf16.mxu1 %v9803_v19 }
 0x469   :  { %v9250_v40 = vld [vmem:[#allocation2 + $0x82] sm:$0xff]  ;;  %3710 = vst.msk [vmem:[#allocation2 + $0xf1] sm:$0xff] %vm3697_vm2, %v3685_v59  ;;  %v3620_v35 = vadd.f32 %v6583_v26, %v9082_v14  ;;  %4635 = vmatprep.mubr.f32.mxu1 %v9248_v29  ;;  %v4430_v26 = vld [vmem:[#allocation8 + $0x1e0] sm:$0xff] }
 0x46a   :  { %5185 = vmatprep.mubr.f32.mxu0 %v9250_v40  ;;  %v3439_v37 = vpop.f32.mrb[52].mxu1  ;;  %4636 = vmatmul.mubr.f32.gmra.mrb[92].mxu1 %v9196_v17  ;;  %v4427_v14 = vld [vmem:[#allocation8 + $0x1c8] sm:$0xff] }
 0x46b   :  { %5186 = vmatmul.mubr.f32.gmra.mrb[138].mxu0 %v9198_v52  ;;  %v3686_v41 = vmax.f32 %v3620_v35, 0.0  ;;  %v6585_v50 = vadd.f32 %v3439_v37, %v2885_v16  ;;  %v3441_v36 = vpop.f32.mrb[53].mxu1  ;;  %6356 = vmatpush1.bf16.msra.mxu1 %v6355_v58  ;;  %v6361_v30 = vpack.c.bf16 %v4427_v14, %v4426_v4  ;;  %v2900_v58 = vadd.f32 %v9109_v9, %v9022_v43 }
 0x46c   :  { %v9261_v34 = vld [vmem:[#allocation2 + $0x90] sm:$0xff]  ;;  %6357 = vmatprep.subr.bf16.mxu1 %v9803_v19  ;;  %v4432_v36 = vld [vmem:[#allocation8 + $0x1f0] sm:$0xff]  ;;  %v2905_v4 = vadd.f32 %v9109_v9, %v9025_v25 }
 0x46d   :  { %v9263_v11 = vld [vmem:[#allocation2 + $0x8a] sm:$0xff]  ;;  %3711 = vst.msk [vmem:[#allocation2 + $0xf9] sm:$0xff] %vm3697_vm2, %v3686_v41  ;;  %v3625_v49 = vadd.f32 %v6585_v50, %v9091_v27  ;;  %4640 = vmatprep.mubr.f32.mxu1 %v9261_v34  ;;  %v9274_v15 = vld [vmem:[#allocation2 + $0x92] sm:$0xff] }
 0x46e   :  { %5190 = vmatprep.mubr.f32.mxu0 %v9263_v11  ;;  %v3444_v56 = vpop.f32.mrb[54].mxu1  ;;  %4641 = vmatmul.mubr.f32.gmra.mrb[94].mxu1 %v9209_v57  ;;  %v4428_v27 = vld [vmem:[#allocation8 + $0x1d0] sm:$0xff]  ;;  %v4023_v41 = vld [vmem:[#allocation2 + $0xd2] sm:$0xff] }
 0x46f   :  { %5191 = vmatmul.mubr.f32.gmra.mrb[140].mxu0 %v9211_v32  ;;  %v3687_v38 = vmax.f32 %v3625_v49, 0.0  ;;  %v6587_v20 = vadd.f32 %v3444_v56, %v2890_v60  ;;  %v3446_v39 = vpop.f32.mrb[55].mxu1  ;;  %6359 = vmatpush1.bf16.msra.mxu1 %v6358_v13  ;;  %v6364_v59 = vpack.c.bf16 %v4429_v42, %v4428_v27 }
 0x470   :  { %5195 = vmatprep.mubr.f32.mxu0 %v9274_v15  ;;  %v9277_v7 = vld [vmem:[#allocation2 + $0xf0] sm:$0xff]  ;;  %6360 = vmatprep.subr.bf16.mxu1 %v9803_v19 }
 0x471   :  { %3712 = vst.msk [vmem:[#allocation2 + $0x101] sm:$0xff] %vm3697_vm2, %v3687_v38  ;;  %v3630_v48 = vadd.f32 %v6587_v20, %v9089_v6  ;;  %4645 = vmatprep.mubr.f32.mxu1 %v9277_v7  ;;  %v4431_v6 = vld [vmem:[#allocation8 + $0x1e8] sm:$0xff] }
 0x472   :  { %v3449_v44 = vpop.f32.mrb[56].mxu1  ;;  %4646 = vmatmul.mubr.f32.gmra.mrb[96].mxu1 %v9127_v62  ;;  %v6367_v50 = vpack.c.bf16 %v4431_v6, %v4430_v26 }
 0x473   :  { %5196 = vmatmul.mubr.f32.gmra.mrb[142].mxu0 %v9222_v22  ;;  %v3688_v2 = vmax.f32 %v3630_v48, 0.0  ;;  %v6589_v33 = vadd.f32 %v3449_v44, %v2895_v10  ;;  %v3451_v54 = vpop.f32.mrb[57].mxu1  ;;  %6362 = vmatpush1.bf16.msra.mxu1 %v6361_v30 }
 0x474   :  { %v9287_v47 = vld [vmem:[#allocation2 + $0xf8] sm:$0xff]  ;;  %6363 = vmatprep.subr.bf16.mxu1 %v9803_v19 }
 0x475   :  { %v4070_v51 = vld [vmem:[#allocation2 + $0xf2] sm:$0xff]  ;;  %3713 = vst.msk [vmem:[#allocation2 + $0x109] sm:$0xff] %vm3697_vm2, %v3688_v2  ;;  %v3635_v55 = vadd.f32 %v6589_v33, %v9095_v18  ;;  %4650 = vmatprep.mubr.f32.mxu1 %v9287_v47 }
 0x476   :  { %5200 = vmatprep.mubr.f32.mxu0 %v4070_v51  ;;  %v3454_v53 = vpop.f32.mrb[58].mxu1  ;;  %4651 = vmatmul.mubr.f32.gmra.mrb[98].mxu1 %v9127_v62  ;;  %v4433_v18 = vld [vmem:[#allocation8 + $0x1f8] sm:$0xff] }
 0x477   :  { %5201 = vmatmul.mubr.f32.gmra.mrb[144].mxu0 %v4022_v3  ;;  %v3689_v16 = vmax.f32 %v3635_v55, 0.0  ;;  %v6591_v35 = vadd.f32 %v3454_v53, %v2900_v58  ;;  %v3456_v37 = vpop.f32.mrb[59].mxu1  ;;  %6365 = vmatpush1.bf16.msra.mxu1 %v6364_v59  ;;  %v6370_v20 = vpack.c.bf16 %v4433_v18, %v4432_v36  ;;  %v4114_v3 = vld [vmem:[#allocation2 + $0xa2] sm:$0xff]  ;;  %v4115_v51 = vld [vmem:[#allocation2 + $0xaa] sm:$0xff]  ;;  %v4116_v58 = vld [vmem:[#allocation2 + $0xb2] sm:$0xff] }
 0x478   :  { %v9296_v13 = vld [vmem:[#allocation2 + $0x100] sm:$0xff]  ;;  %6366 = vmatprep.subr.bf16.mxu1 %v9803_v19  ;;  %v9806_v53 = vld [vmem:[#allocation33_spill] sm:$0xff] }
 0x479   :  { %v4071_v43 = vld [vmem:[#allocation2 + $0xfa] sm:$0xff]  ;;  %3714 = vst.msk [vmem:[#allocation2 + $0x119] sm:$0xff] %vm3697_vm2, %v3689_v16  ;;  %v3640_v14 = vadd.f32 %v6591_v35, %v9093_v0  ;;  %4655 = vmatprep.mubr.f32.mxu1 %v9296_v13  ;;  %v2910_v0 = vadd.f32 %v9109_v9, %v9028_v21  ;;  %v2915_v21 = vadd.f32 %v9109_v9, %v9034_v1 }
 0x47a   :  { %5205 = vmatprep.mubr.f32.mxu0 %v4071_v43  ;;  %v3459_v60 = vpop.f32.mrb[60].mxu1  ;;  %4656 = vmatmul.mubr.f32.gmra.mrb[100].mxu1 %v9127_v62  ;;  %v2920_v1 = vadd.f32 %v9109_v9, %v9042_v45  ;;  %v2925_v45 = vadd.f32 %v9109_v9, %v9048_v23  ;;  %v9805_v23 = vld [vmem:[#allocation28_spill] sm:$0xff] }
 0x47b   :  { %5206 = vmatmul.mubr.f32.gmra.mrb[146].mxu0 %v4023_v41  ;;  %v3690_v49 = vmax.f32 %v3640_v14, 0.0  ;;  %v6593_v56 = vadd.f32 %v3459_v60, %v2905_v4  ;;  %v3461_v38 = vpop.f32.mrb[61].mxu1  ;;  %6368 = vmatpush1.bf16.msra.mxu1 %v6367_v50  ;;  %v2930_v55 = vadd.f32 %v9109_v9, %v9805_v23  ;;  %v4117_v50 = vld [vmem:[#allocation2 + $0xba] sm:$0xff] }
 0x47c   :  { %5792 = vmatprep.mubr.f32.mxu0 %v9185_v8  ;;  %v3785_v39 = vld [vmem:[#allocation2 + $0x108] sm:$0xff]  ;;  %6369 = vmatprep.subr.bf16.mxu1 %v9803_v19 }
 0x47d   :  { %3715 = vst.msk [vmem:[#allocation2 + $0x121] sm:$0xff] %vm3697_vm2, %v3690_v49  ;;  %v3645_v25 = vadd.f32 %v6593_v56, %v9099_v31  ;;  %4660 = vmatprep.mubr.f32.mxu1 %v3785_v39 }
 0x47e   :  { %v3464_v30 = vpop.f32.mrb[62].mxu1  ;;  %4661 = vmatmul.mubr.f32.gmra.mrb[102].mxu1 %v9127_v62 }
 0x47f   :  { %5793 = vmatmul.mubr.f32.vlgmr.msra.gmra.mrb[148].mxu0 %v9198_v52  ;;  %v3691_v27 = vmax.f32 %v3645_v25, 0.0  ;;  %v6595_v8 = vadd.f32 %v3464_v30, %v2910_v0  ;;  %v3466_v42 = vpop.f32.mrb[63].mxu1  ;;  %6371 = vmatpush1.bf16.msra.mxu1 %v6370_v20  ;;  %v3866_v20 = vld [vmem:[#allocation2 + $0x1] sm:$0xff]  ;;  %v4434_v0 = vld [vmem:[#allocation8 + $0x200] sm:$0xff] }
 0x480   :  { %5795 = vmatprep.mubr.f32.mxu0 %v9211_v32  ;;  %v9314_v10 = vld [vmem:[#allocation2 + $0x118] sm:$0xff]  ;;  %6372 = vmatprep.subr.bf16.mxu1 %v9803_v19  ;;  %v3867_v42 = vld [vmem:[#allocation2 + $0x9] sm:$0xff] }
 0x481   :  { %3716 = vst.msk [vmem:[#allocation2 + $0x129] sm:$0xff] %vm3697_vm2, %v3691_v27  ;;  %v3650_v31 = vadd.f32 %v6595_v8, %v9097_v46  ;;  %4665 = vmatprep.mubr.f32.mxu1 %v9314_v10  ;;  %v4435_v25 = vld [vmem:[#allocation8 + $0x208] sm:$0xff] }
 0x482   :  { %v3469_v52 = vpop.f32.mrb[64].mxu1  ;;  %4666 = vmatmul.mubr.f32.gmra.mrb[104].mxu1 %v9277_v7  ;;  %v6373_v8 = vpack.c.bf16 %v4435_v25, %v4434_v0  ;;  %v3878_v25 = vld [vmem:[#allocation2 + $0xc9] sm:$0xff] }
 0x483   :  { %5796 = vmatmul.mubr.f32.gmra.mrb[150].mxu0 %v9222_v22  ;;  %v3692_v32 = vmax.f32 %v3650_v31, 0.0  ;;  %v6597_v48 = vadd.f32 %v3469_v52, %v2915_v21  ;;  %v3471_v44 = vpop.f32.mrb[65].mxu1  ;;  %v4436_v21 = vld [vmem:[#allocation8 + $0x210] sm:$0xff]  ;;  %v4437_v31 = vld [vmem:[#allocation8 + $0x218] sm:$0xff] }
 0x484   :  { %5798 = vmatprep.mubr.f32.mxu0 %v9237_v24  ;;  %v9325_v2 = vld [vmem:[#allocation2 + $0x120] sm:$0xff]  ;;  %v4438_v44 = vld [vmem:[#allocation8 + $0x220] sm:$0xff] }
 0x485   :  { %3717 = vst.msk [vmem:[#allocation2 + $0x131] sm:$0xff] %vm3697_vm2, %v3692_v32  ;;  %v3655_v46 = vadd.f32 %v6597_v48, %v9103_v5  ;;  %4670 = vmatprep.mubr.f32.mxu1 %v9325_v2  ;;  %v9804_v5 = vld [vmem:[#allocation31_spill] sm:$0xff]  ;;  %v6376_v32 = vpack.c.bf16 %v4437_v31, %v4436_v21  ;;  %v3868_v48 = vld [vmem:[#allocation2 + $0x11] sm:$0xff] }
 0x486   :  { %v3474_v33 = vpop.f32.mrb[66].mxu1  ;;  %4671 = vmatmul.mubr.f32.gmra.mrb[106].mxu1 %v9287_v47  ;;  %v9357_v43 = vld [vmem:[#allocation2 + $0x11a] sm:$0xff]  ;;  %v3879_v31 = vld [vmem:[#allocation2 + $0xd1] sm:$0xff] }
 0x487   :  { %5799 = vmatmul.mubr.f32.gmra.mrb[152].mxu0 %v9250_v40  ;;  %v3693_v22 = vmax.f32 %v3655_v46, 0.0  ;;  %v6599_v7 = vadd.f32 %v3474_v33, %v2920_v1  ;;  %v3476_v54 = vpop.f32.mrb[67].mxu1  ;;  %v4439_v1 = vld [vmem:[#allocation8 + $0x228] sm:$0xff] }
 0x488   :  { %5801 = vmatprep.mubr.f32.mxu0 %v9263_v11  ;;  %v9335_v24 = vld [vmem:[#allocation2 + $0x128] sm:$0xff]  ;;  %v6379_v46 = vpack.c.bf16 %v4439_v1, %v4438_v44  ;;  %v3869_v33 = vld [vmem:[#allocation2 + $0x19] sm:$0xff] }
 0x489   :  { %3718 = vst.msk [vmem:[#allocation2 + $0x141] sm:$0xff] %vm3697_vm2, %v3693_v22  ;;  %v3660_v59 = vadd.f32 %v6599_v7, %v9804_v5  ;;  %4675 = vmatprep.mubr.f32.mxu1 %v9335_v24  ;;  %v9364_v14 = vld [vmem:[#allocation2 + $0x122] sm:$0xff]  ;;  %v4442_v54 = vld [vmem:[#allocation8 + $0x240] sm:$0xff] }
 0x48a   :  { %v3479_v26 = vpop.f32.mrb[68].mxu1  ;;  %4676 = vmatmul.mubr.f32.gmra.mrb[108].mxu1 %v9296_v13  ;;  %v9807_v13 = vld [vmem:[#allocation32_spill] sm:$0xff]  ;;  %v3880_v1 = vld [vmem:[#allocation2 + $0xd9] sm:$0xff] }
 0x48b   :  { %5802 = vmatmul.mubr.f32.gmra.mrb[154].mxu0 %v9274_v15  ;;  %v3694_v40 = vmax.f32 %v3660_v59, 0.0  ;;  %v6601_v47 = vadd.f32 %v3479_v26, %v2925_v45  ;;  %v3481_v11 = vpop.f32.mrb[69].mxu1  ;;  %v4440_v22 = vld [vmem:[#allocation8 + $0x230] sm:$0xff]  ;;  %v4445_v59 = vld [vmem:[#allocation8 + $0x258] sm:$0xff] }
 0x48c   :  { %5804 = vmatprep.mubr.f32.mxu0 %v4114_v3  ;;  %v9344_v6 = vld [vmem:[#allocation2 + $0x130] sm:$0xff]  ;;  %v4443_v3 = vld [vmem:[#allocation8 + $0x248] sm:$0xff]  ;;  %v4444_v5 = vld [vmem:[#allocation8 + $0x250] sm:$0xff] }
 0x48d   :  { %3719 = vst.msk [vmem:[#allocation2 + $0x149] sm:$0xff] %vm3697_vm2, %v3694_v40  ;;  %v3665_v16 = vadd.f32 %v6601_v47, %v9806_v53  ;;  %4680 = vmatprep.mubr.f32.mxu1 %v9344_v6  ;;  %v9368_v60 = vld [vmem:[#allocation2 + $0x12a] sm:$0xff]  ;;  %v9374_v56 = vld [vmem:[#allocation2 + $0x132] sm:$0xff]  ;;  %v6385_v45 = vpack.c.bf16 %v4443_v3, %v4442_v54  ;;  %v6388_v26 = vpack.c.bf16 %v4445_v59, %v4444_v5  ;;  %v4447_v40 = vld [vmem:[#allocation8 + $0x268] sm:$0xff] }
 0x48e   :  { %v3484_v35 = vpop.f32.mrb[70].mxu1  ;;  %4681 = vmatmul.mubr.f32.gmra.mrb[110].mxu1 %v3785_v39  ;;  %v9411_v47 = vld [vmem:[#allocation2 + $0x39] sm:$0xff]  ;;  %v9421_v53 = vld [vmem:[#allocation2 + $0x51] sm:$0xff] }
 0x48f   :  { %5805 = vmatmul.mubr.f32.gmra.mrb[156].mxu0 %v4115_v51  ;;  %v3695_v15 = vmax.f32 %v3665_v16, 0.0  ;;  %v6603_v37 = vadd.f32 %v3484_v35, %v2930_v55  ;;  %v3486_v41 = vpop.f32.mrb[71].mxu1  ;;  %v4449_v51 = vld [vmem:[#allocation8 + $0x278] sm:$0xff]  ;;  %v4451_v55 = vld [vmem:[#allocation8 + $0x288] sm:$0xff] }
 0x490   :  { %5807 = vmatprep.mubr.f32.mxu0 %v4116_v58  ;;  %v9351_v36 = vld [vmem:[#allocation2 + $0x140] sm:$0xff]  ;;  %v4453_v35 = vld [vmem:[#allocation8 + $0x298] sm:$0xff] }
 0x491   :  { %3720 = vst.msk [vmem:[#allocation2 + $0x151] sm:$0xff] %vm3697_vm2, %v3695_v15  ;;  %v3670_v9 = vadd.f32 %v6603_v37, %v9807_v13  ;;  %4685 = vmatprep.mubr.f32.mxu1 %v9351_v36  ;;  %v9416_v58 = vld [vmem:[#allocation2 + $0x41] sm:$0xff]  ;;  %v9426_v15 = vld [vmem:[#allocation2 + $0x59] sm:$0xff]  ;;  %v9449_v54 = vld [vmem:[#allocation2 + $0xf1] sm:$0xff] }
 0x492   :  { %4686 = vmatmul.mubr.f32.gmra.mrb[112].mxu1 %v9314_v10  ;;  %v4455_v41 = vld [vmem:[#allocation8 + $0x2a8] sm:$0xff]  ;;  %v4126_v5 = vld [vmem:[#allocation2 + $0x16a] sm:$0xff] }
 0x493   :  { %5808 = vmatmul.mubr.f32.gmra.mrb[158].mxu0 %v4117_v50  ;;  %v3696_v18 = vmax.f32 %v3670_v9, 0.0  ;;  %v9431_v50 = vld [vmem:[#allocation2 + $0x61] sm:$0xff]  ;;  %v9466_v3 = vld [vmem:[#allocation2 + $0x119] sm:$0xff] }
 0x494   :  { %5810 = vmatprep.mubr.f32.mxu0 %v9357_v43  ;;  %v9360_v4 = vld [vmem:[#allocation2 + $0x148] sm:$0xff]  ;;  %v4128_v59 = vld [vmem:[#allocation2 + $0x17a] sm:$0xff] }
 0x495   :  { %3721 = vst.msk [vmem:[#allocation2 + $0x159] sm:$0xff] %vm3697_vm2, %v3696_v18  ;;  %4690 = vmatprep.mubr.f32.mxu1 %v9360_v4  ;;  %v9378_v38 = vld [vmem:[#allocation2 + $0x142] sm:$0xff]  ;;  %v4457_v18 = vld [vmem:[#allocation8 + $0x2b8] sm:$0xff] }
 0x496   :  { %4691 = vmatmul.mubr.f32.gmra.mrb[114].mxu1 %v9325_v2  ;;  %v4456_v9 = vld [vmem:[#allocation8 + $0x2b0] sm:$0xff] }
 0x497   :  { %5811 = vmatmul.mubr.f32.gmra.mrb[160].mxu0 %v9364_v14  ;;  %v6406_v0 = vpack.c.bf16 %v4457_v18, %v4456_v9 }
 0x498   :  { %5813 = vmatprep.mubr.f32.mxu0 %v9368_v60  ;;  %v9371_v49 = vld [vmem:[#allocation2 + $0x150] sm:$0xff] }
 0x499   :  { %4695 = vmatprep.mubr.f32.mxu1 %v9371_v49  ;;  %v9384_v30 = vld [vmem:[#allocation2 + $0x14a] sm:$0xff] }
 0x49a   :  { %4696 = vmatmul.mubr.f32.gmra.mrb[116].mxu1 %v9335_v24 }
 0x49b   :  { %5814 = vmatmul.mubr.f32.gmra.mrb[162].mxu0 %v9374_v56 }
 0x49c   :  { %5816 = vmatprep.mubr.f32.mxu0 %v9378_v38  ;;  %v9381_v39 = vld [vmem:[#allocation2 + $0x158] sm:$0xff] }
 0x49d   :  { %4700 = vmatprep.mubr.f32.mxu1 %v9381_v39  ;;  %v9388_v27 = vld [vmem:[#allocation2 + $0x152] sm:$0xff]  ;;  %v9391_v52 = vld [vmem:[#allocation2 + $0x15a] sm:$0xff] }
 0x49e   :  { %4701 = vmatmul.mubr.f32.gmra.mrb[118].mxu1 %v9344_v6 }
 0x49f   :  { %5817 = vmatmul.mubr.f32.gmra.mrb[164].mxu0 %v9384_v30  ;;  %4770 = vmatprep.mubr.f32.mxu1 %v3866_v20  ;;  %v9436_v20 = vld [vmem:[#allocation2 + $0x69] sm:$0xff] }
 0x4a0   :  { %5819 = vmatprep.mubr.f32.mxu0 %v9388_v27 }
 0x4a2   :  { %4771 = vmatmul.mubr.f32.vlgmr.msra.gmra.mrb[72].mxu1 %v9173_v12  ;;  %v4441_v12 = vld [vmem:[#allocation8 + $0x238] sm:$0xff] }
 0x4a3   :  { %5820 = vmatmul.mubr.f32.gmra.mrb[166].mxu0 %v9391_v52  ;;  %6374 = vmatpush1.bf16.msra.mxu1 %v6373_v8  ;;  %v6382_v7 = vpack.c.bf16 %v4441_v12, %v4440_v22  ;;  %v4458_v8 = vld [vmem:[#allocation8 + $0x2c0] sm:$0xff]  ;;  %v3881_v22 = vld [vmem:[#allocation2 + $0xe1] sm:$0xff] }
 0x4a4   :  { %4775 = vmatprep.mubr.f32.mxu1 %v3867_v42  ;;  %6375 = vmatprep.subr.bf16.mxu1 %v9803_v19  ;;  %v4459_v42 = vld [vmem:[#allocation8 + $0x2c8] sm:$0xff]  ;;  %v4464_v12 = vld [vmem:[#allocation8 + $0x2f0] sm:$0xff] }
 0x4a5   :  { %v6409_v21 = vpack.c.bf16 %v4459_v42, %v4458_v8  ;;  %5822 = vmatprep.mubr.f32.mxu0 %v4126_v5  ;;  %v9818_v42 = vld [vmem:[#allocation24_spill] sm:$0xff] }
 0x4a6   :  { %4776 = vmatmul.mubr.f32.gmra.mrb[74].mxu1 %v9183_v63  ;;  %v9401_v63 = vld [vmem:[#allocation2 + $0x29] sm:$0xff] }
 0x4a7   :  { %4780 = vmatprep.mubr.f32.mxu1 %v3868_v48  ;;  %6377 = vmatpush1.bf16.msra.mxu1 %v6376_v32  ;;  %v4460_v32 = vld [vmem:[#allocation8 + $0x2d0] sm:$0xff]  ;;  %v4461_v48 = vld [vmem:[#allocation8 + $0x2d8] sm:$0xff] }
 0x4a8   :  { %6378 = vmatprep.subr.bf16.mxu1 %v9803_v19  ;;  %v6412_v44 = vpack.c.bf16 %v4461_v48, %v4460_v32  ;;  %v9819_v32 = vld [vmem:[#allocation25_spill] sm:$0xff] }
 0x4aa   :  { %4781 = vmatmul.mubr.f32.gmra.mrb[76].mxu1 %v9196_v17  ;;  %v9406_v17 = vld [vmem:[#allocation2 + $0x31] sm:$0xff] }
 0x4ab   :  { %4785 = vmatprep.mubr.f32.mxu1 %v3869_v33  ;;  %6380 = vmatpush1.bf16.msra.mxu1 %v6379_v46  ;;  %v4462_v46 = vld [vmem:[#allocation8 + $0x2e0] sm:$0xff]  ;;  %v4463_v33 = vld [vmem:[#allocation8 + $0x2e8] sm:$0xff] }
 0x4ac   :  { %6381 = vmatprep.subr.bf16.mxu1 %v9803_v19 }
 0x4ae   :  { %4786 = vmatmul.mubr.f32.gmra.mrb[78].mxu1 %v9209_v57  ;;  %v4446_v57 = vld [vmem:[#allocation8 + $0x260] sm:$0xff] }
 0x4af   :  { %4790 = vmatprep.mubr.f32.mxu1 %v9401_v63  ;;  %6383 = vmatpush1.bf16.msra.mxu1 %v6382_v7  ;;  %v6391_v11 = vpack.c.bf16 %v4447_v40, %v4446_v57  ;;  %v4465_v7 = vld [vmem:[#allocation8 + $0x2f8] sm:$0xff]  ;;  %v4129_v57 = vld [vmem:[#allocation2 + $0x182] sm:$0xff] }
 0x4b0   :  { %6384 = vmatprep.subr.bf16.mxu1 %v9803_v19  ;;  %v9809_v40 = vld [vmem:[#allocation15_spill] sm:$0xff] }
 0x4b2   :  { %4791 = vmatmul.mubr.f32.gmra.mrb[80].mxu1 %v9225_v28  ;;  %v4448_v28 = vld [vmem:[#allocation8 + $0x270] sm:$0xff] }
 0x4b3   :  { %4795 = vmatprep.mubr.f32.mxu1 %v9406_v17  ;;  %6386 = vmatpush1.bf16.msra.mxu1 %v6385_v45  ;;  %v6394_v23 = vpack.c.bf16 %v4449_v51, %v4448_v28  ;;  %v9469_v45 = vld [vmem:[#allocation2 + $0x121] sm:$0xff]  ;;  %v9811_v28 = vld [vmem:[#allocation17_spill] sm:$0xff]  ;;  %v9812_v51 = vld [vmem:[#allocation18_spill] sm:$0xff] }
 0x4b4   :  { %6387 = vmatprep.subr.bf16.mxu1 %v9803_v19 }
 0x4b6   :  { %4796 = vmatmul.mubr.f32.gmra.mrb[82].mxu1 %v9235_v61  ;;  %v4450_v61 = vld [vmem:[#allocation8 + $0x280] sm:$0xff] }
 0x4b7   :  { %4800 = vmatprep.mubr.f32.mxu1 %v9411_v47  ;;  %6389 = vmatpush1.bf16.msra.mxu1 %v6388_v26  ;;  %v6397_v16 = vpack.c.bf16 %v4451_v55, %v4450_v61  ;;  %v9808_v26 = vld [vmem:[#allocation14_spill] sm:$0xff] }
 0x4b8   :  { %6390 = vmatprep.subr.bf16.mxu1 %v9803_v19  ;;  %v3969_v61 = vld [vmem:[#allocation2 + $0x91] sm:$0xff] }
 0x4ba   :  { %4801 = vmatmul.mubr.f32.gmra.mrb[84].mxu1 %v9248_v29  ;;  %v4452_v29 = vld [vmem:[#allocation8 + $0x290] sm:$0xff] }
 0x4bb   :  { %4805 = vmatprep.mubr.f32.mxu1 %v9416_v58  ;;  %6392 = vmatpush1.bf16.msra.mxu1 %v6391_v11  ;;  %v6400_v37 = vpack.c.bf16 %v4453_v35, %v4452_v29  ;;  %v3966_v11 = vld [vmem:[#allocation2 + $0x79] sm:$0xff] }
 0x4bc   :  { %6393 = vmatprep.subr.bf16.mxu1 %v9803_v19 }
 0x4be   :  { %4806 = vmatmul.mubr.f32.gmra.mrb[86].mxu1 %v9261_v34  ;;  %v4454_v34 = vld [vmem:[#allocation8 + $0x2a0] sm:$0xff] }
 0x4bf   :  { %4810 = vmatprep.mubr.f32.mxu1 %v9421_v53  ;;  %6395 = vmatpush1.bf16.msra.mxu1 %v6394_v23  ;;  %v6403_v13 = vpack.c.bf16 %v4455_v41, %v4454_v34  ;;  %v9813_v23 = vld [vmem:[#allocation19_spill] sm:$0xff] }
 0x4c0   :  { %6396 = vmatprep.subr.bf16.mxu1 %v9803_v19 }
 0x4c2   :  { %4811 = vmatmul.mubr.f32.gmra.mrb[88].mxu1 %v9127_v62 }
 0x4c3   :  { %4815 = vmatprep.mubr.f32.mxu1 %v9426_v15  ;;  %6398 = vmatpush1.bf16.msra.mxu1 %v6397_v16  ;;  %v3970_v16 = vld [vmem:[#allocation2 + $0xa1] sm:$0xff] }
 0x4c4   :  { %6399 = vmatprep.subr.bf16.mxu1 %v9803_v19 }
 0x4c6   :  { %4816 = vmatmul.mubr.f32.gmra.mrb[90].mxu1 %v9127_v62 }
 0x4c7   :  { %4820 = vmatprep.mubr.f32.mxu1 %v9431_v50  ;;  %6401 = vmatpush1.bf16.msra.mxu1 %v6400_v37  ;;  %v3971_v37 = vld [vmem:[#allocation2 + $0xa9] sm:$0xff] }
 0x4c8   :  { %6402 = vmatprep.subr.bf16.mxu1 %v9803_v19 }
 0x4ca   :  { %4821 = vmatmul.mubr.f32.gmra.mrb[92].mxu1 %v9127_v62 }
 0x4cb   :  { %4825 = vmatprep.mubr.f32.mxu1 %v9436_v20  ;;  %6404 = vmatpush1.bf16.msra.mxu1 %v6403_v13  ;;  %v3972_v13 = vld [vmem:[#allocation2 + $0xb1] sm:$0xff] }
 0x4cc   :  { %6405 = vmatprep.subr.bf16.mxu1 %v9803_v19 }
 0x4ce   :  { %4826 = vmatmul.mubr.f32.gmra.mrb[94].mxu1 %v9127_v62  ;;  %v6415_v62 = vpack.c.bf16 %v4463_v33, %v4462_v46 }
 0x4cf   :  { %4830 = vmatprep.mubr.f32.mxu1 %v3878_v25  ;;  %6407 = vmatpush1.bf16.msra.mxu1 %v6406_v0  ;;  %v3973_v0 = vld [vmem:[#allocation2 + $0xb9] sm:$0xff] }
 0x4d0   :  { %6408 = vmatprep.subr.bf16.mxu1 %v9803_v19 }
 0x4d2   :  { %4831 = vmatmul.mubr.f32.gmra.mrb[96].mxu1 %v9314_v10  ;;  %v6418_v10 = vpack.c.bf16 %v4465_v7, %v4464_v12  ;;  %v9822_v7 = vld [vmem:[#allocation29_spill] sm:$0xff] }
 0x4d3   :  { %4835 = vmatprep.mubr.f32.mxu1 %v3879_v31  ;;  %6410 = vmatpush1.bf16.msra.mxu1 %v6409_v21 }
 0x4d4   :  { %6411 = vmatprep.subr.bf16.mxu1 %v9803_v19 }
 0x4d6   :  { %4836 = vmatmul.mubr.f32.gmra.mrb[98].mxu1 %v9325_v2  ;;  %v9454_v2 = vld [vmem:[#allocation2 + $0xf9] sm:$0xff] }
 0x4d7   :  { %4840 = vmatprep.mubr.f32.mxu1 %v3880_v1  ;;  %6413 = vmatpush1.bf16.msra.mxu1 %v6412_v44  ;;  %v9820_v1 = vld [vmem:[#allocation26_spill] sm:$0xff] }
 0x4d8   :  { %6414 = vmatprep.subr.bf16.mxu1 %v9803_v19 }
 0x4da   :  { %4841 = vmatmul.mubr.f32.gmra.mrb[100].mxu1 %v9335_v24  ;;  %v9458_v24 = vld [vmem:[#allocation2 + $0x101] sm:$0xff] }
 0x4db   :  { %4845 = vmatprep.mubr.f32.mxu1 %v3881_v22  ;;  %6416 = vmatpush1.bf16.msra.mxu1 %v6415_v62  ;;  %v9821_v62 = vld [vmem:[#allocation27_spill] sm:$0xff] }
 0x4dc   :  { %6417 = vmatprep.subr.bf16.mxu1 %v9803_v19 }
 0x4de   :  { %4846 = vmatmul.mubr.f32.gmra.mrb[102].mxu1 %v9344_v6  ;;  %v9462_v6 = vld [vmem:[#allocation2 + $0x109] sm:$0xff] }
 0x4df   :  { %4850 = vmatprep.mubr.f32.mxu1 %v9449_v54  ;;  %6419 = vmatpush1.bf16.msra.mxu1 %v6418_v10 }
 0x4e0   :  { %6500 = vmatprep.subr.bf16.mxu1 %v9803_v19 }
 0x4e2   :  { %4851 = vmatmul.mubr.f32.gmra.mrb[104].mxu1 %v9351_v36  ;;  %v7009_v36 = vld [vmem:[#allocation2] sm:$0xff] }
 0x4e3   :  { %4855 = vmatprep.mubr.f32.mxu1 %v9454_v2 }
 0x4e6   :  { %4856 = vmatmul.mubr.f32.gmra.mrb[106].mxu1 %v9360_v4  ;;  %v9472_v4 = vld [vmem:[#allocation2 + $0x129] sm:$0xff] }
 0x4e7   :  { %4860 = vmatprep.mubr.f32.mxu1 %v9458_v24 }
 0x4ea   :  { %4861 = vmatmul.mubr.f32.gmra.mrb[108].mxu1 %v9371_v49  ;;  %v9475_v49 = vld [vmem:[#allocation2 + $0x131] sm:$0xff] }
 0x4eb   :  { %4865 = vmatprep.mubr.f32.mxu1 %v9462_v6 }
 0x4ee   :  { %4866 = vmatmul.mubr.f32.gmra.mrb[110].mxu1 %v9381_v39  ;;  %v4127_v39 = vld [vmem:[#allocation2 + $0x172] sm:$0xff] }
 0x4ef   :  { %4870 = vmatprep.mubr.f32.mxu1 %v9466_v3  ;;  %5823 = vmatmul.mubr.f32.gmra.mrb[168].mxu0 %v4127_v39  ;;  %v3979_v39 = vld [vmem:[#allocation2 + $0x149] sm:$0xff] }
 0x4f0   :  { %5825 = vmatprep.mubr.f32.mxu0 %v4128_v59 }
 0x4f2   :  { %4871 = vmatmul.mubr.f32.gmra.mrb[112].mxu1 %v7009_v36 }
 0x4f3   :  { %4875 = vmatprep.mubr.f32.mxu1 %v9469_v45  ;;  %5826 = vmatmul.mubr.f32.gmra.mrb[170].mxu0 %v4129_v57  ;;  %v3981_v57 = vld [vmem:[#allocation2 + $0x159] sm:$0xff] }
 0x4f6   :  { %4876 = vmatmul.mubr.f32.gmra.mrb[114].mxu1 %v7009_v36 }
 0x4f7   :  { %4880 = vmatprep.mubr.f32.mxu1 %v9472_v4 }
 0x4fa   :  { %4881 = vmatmul.mubr.f32.gmra.mrb[116].mxu1 %v7009_v36 }
 0x4fb   :  { %4885 = vmatprep.mubr.f32.mxu1 %v9475_v49 }
 0x4fe   :  { %4886 = vmatmul.mubr.f32.gmra.mrb[118].mxu1 %v7009_v36  ;;  %v9823_v36 = vld [vmem:[#allocation30_spill] sm:$0xff] }
 0x4ff   :  { %4955 = vmatprep.mubr.f32.mxu1 %v9421_v53 }
 0x502   :  { %4956 = vmatmul.mubr.f32.vlgmr.msra.gmra.mrb[72].mxu1 %v9401_v63  ;;  %v9810_v63 = vld [vmem:[#allocation16_spill] sm:$0xff] }
 0x503   :  { %4960 = vmatprep.mubr.f32.mxu1 %v9426_v15  ;;  %6516 = vmatpush1.bf16.msra.mxu1 %v9808_v26  ;;  %v3980_v26 = vld [vmem:[#allocation2 + $0x151] sm:$0xff] }
 0x504   :  { %6501 = vmatprep.subr.bf16.mxu1 %v9803_v19 }
 0x506   :  { %4961 = vmatmul.mubr.f32.gmra.mrb[74].mxu1 %v9406_v17  ;;  %v3967_v17 = vld [vmem:[#allocation2 + $0x81] sm:$0xff] }
 0x507   :  { %4965 = vmatprep.mubr.f32.mxu1 %v9431_v50  ;;  %6517 = vmatpush1.bf16.msra.mxu1 %v9809_v40 }
 0x508   :  { %6502 = vmatprep.subr.bf16.mxu1 %v9803_v19 }
 0x50a   :  { %4966 = vmatmul.mubr.f32.gmra.mrb[76].mxu1 %v9411_v47  ;;  %v3968_v47 = vld [vmem:[#allocation2 + $0x89] sm:$0xff] }
 0x50b   :  { %4970 = vmatprep.mubr.f32.mxu1 %v9436_v20  ;;  %6518 = vmatpush1.bf16.msra.mxu1 %v9810_v63  ;;  %v3982_v63 = vld [vmem:[#allocation2 + $0x169] sm:$0xff] }
 0x50c   :  { %6503 = vmatprep.subr.bf16.mxu1 %v9803_v19 }
 0x50e   :  { %4971 = vmatmul.mubr.f32.gmra.mrb[78].mxu1 %v9416_v58 }
 0x50f   :  { %4975 = vmatprep.mubr.f32.mxu1 %v3966_v11  ;;  %6519 = vmatpush1.bf16.msra.mxu1 %v9811_v28  ;;  %v3983_v28 = vld [vmem:[#allocation2 + $0x171] sm:$0xff] }
 0x510   :  { %6504 = vmatprep.subr.bf16.mxu1 %v9803_v19 }
 0x512   :  { %4976 = vmatmul.mubr.f32.gmra.mrb[80].mxu1 %v9421_v53  ;;  %v9814_v53 = vld [vmem:[#allocation20_spill] sm:$0xff] }
 0x513   :  { %4980 = vmatprep.mubr.f32.mxu1 %v3967_v17  ;;  %6520 = vmatpush1.bf16.msra.mxu1 %v9812_v51  ;;  %v3984_v51 = vld [vmem:[#allocation2 + $0x179] sm:$0xff] }
 0x514   :  { %6505 = vmatprep.subr.bf16.mxu1 %v9803_v19 }
 0x516   :  { %4981 = vmatmul.mubr.f32.gmra.mrb[82].mxu1 %v9426_v15  ;;  %v9815_v15 = vld [vmem:[#allocation21_spill] sm:$0xff] }
 0x517   :  { %4985 = vmatprep.mubr.f32.mxu1 %v3968_v47  ;;  %6521 = vmatpush1.bf16.msra.mxu1 %v9813_v23  ;;  %v3985_v23 = vld [vmem:[#allocation2 + $0x181] sm:$0xff] }
 0x518   :  { %6506 = vmatprep.subr.bf16.mxu1 %v9803_v19 }
 0x51a   :  { %v9500_v58 = vpop.f32.mrb[120].mxu0  ;;  %4986 = vmatmul.mubr.f32.gmra.mrb[84].mxu1 %v9431_v50  ;;  %v9816_v50 = vld [vmem:[#allocation22_spill] sm:$0xff] }
 0x51b   :  { %v5144_v55 = vpop.f32.mrb[121].mxu0  ;;  %4990 = vmatprep.mubr.f32.mxu1 %v3969_v61  ;;  %6522 = vmatpush1.bf16.msra.mxu1 %v9814_v53 }
 0x51c   :  { %6507 = vmatprep.subr.bf16.mxu1 %v9803_v19 }
 0x51e   :  { %v9505_v29 = vpop.f32.mrb[122].mxu0  ;;  %4991 = vmatmul.mubr.f32.gmra.mrb[86].mxu1 %v9436_v20  ;;  %v9817_v20 = vld [vmem:[#allocation23_spill] sm:$0xff] }
 0x51f   :  { %v5149_v35 = vpop.f32.mrb[123].mxu0  ;;  %4995 = vmatprep.mubr.f32.mxu1 %v3970_v16  ;;  %6523 = vmatpush1.bf16.msra.mxu1 %v9815_v15  ;;  %v4072_v16 = vld [vmem:[#allocation2 + $0x102] sm:$0xff] }
 0x520   :  { %6508 = vmatprep.subr.bf16.mxu1 %v9803_v19  ;;  %v4024_v35 = vld [vmem:[#allocation2 + $0xda] sm:$0xff] }
 0x522   :  { %v9510_v34 = vpop.f32.mrb[124].mxu0  ;;  %4996 = vmatmul.mubr.f32.gmra.mrb[88].mxu1 %v3966_v11 }
 0x523   :  { %v5154_v41 = vpop.f32.mrb[125].mxu0  ;;  %5000 = vmatprep.mubr.f32.mxu1 %v3971_v37  ;;  %6524 = vmatpush1.bf16.msra.mxu1 %v9816_v50  ;;  %v4073_v37 = vld [vmem:[#allocation2 + $0x10a] sm:$0xff]  ;;  %v4025_v50 = vld [vmem:[#allocation2 + $0xe2] sm:$0xff] }
 0x524   :  { %6509 = vmatprep.subr.bf16.mxu1 %v9803_v19 }
 0x526   :  { %v9514_v9 = vpop.f32.mrb[126].mxu0  ;;  %5001 = vmatmul.mubr.f32.gmra.mrb[90].mxu1 %v3967_v17 }
 0x527   :  { %v5159_v18 = vpop.f32.mrb[127].mxu0  ;;  %5005 = vmatprep.mubr.f32.mxu1 %v3972_v13  ;;  %6525 = vmatpush1.bf16.msra.mxu1 %v9817_v20 }
 0x528   :  { %6510 = vmatprep.subr.bf16.mxu1 %v9803_v19 }
 0x52a   :  { %v9518_v25 = vpop.f32.mrb[128].mxu0  ;;  %5006 = vmatmul.mubr.f32.gmra.mrb[92].mxu1 %v3968_v47 }
 0x52b   :  { %v5164_v8 = vpop.f32.mrb[129].mxu0  ;;  %5010 = vmatprep.mubr.f32.mxu1 %v3973_v0  ;;  %6526 = vmatpush1.bf16.msra.mxu1 %v9818_v42  ;;  %v4026_v0 = vld [vmem:[#allocation2 + $0xf2] sm:$0xff] }
 0x52c   :  { %6511 = vmatprep.subr.bf16.mxu1 %v9803_v19 }
 0x52e   :  { %v9522_v21 = vpop.f32.mrb[130].mxu0  ;;  %5011 = vmatmul.mubr.f32.gmra.mrb[94].mxu1 %v3969_v61 }
 0x52f   :  { %v5169_v31 = vpop.f32.mrb[131].mxu0  ;;  %5015 = vmatprep.mubr.f32.mxu1 %v9466_v3  ;;  %6527 = vmatpush1.bf16.msra.mxu1 %v9819_v32 }
 0x530   :  { %6512 = vmatprep.subr.bf16.mxu1 %v9803_v19  ;;  %v4027_v31 = vld [vmem:[#allocation2 + $0xfa] sm:$0xff] }
 0x532   :  { %v9527_v48 = vpop.f32.mrb[132].mxu0  ;;  %5016 = vmatmul.mubr.f32.gmra.mrb[96].mxu1 %v9449_v54 }
 0x533   :  { %v5174_v44 = vpop.f32.mrb[133].mxu0  ;;  %5020 = vmatprep.mubr.f32.mxu1 %v9469_v45  ;;  %6528 = vmatpush1.bf16.msra.mxu1 %v9820_v1 }
 0x534   :  { %6513 = vmatprep.subr.bf16.mxu1 %v9803_v19 }
 0x536   :  { %v9533_v46 = vpop.f32.mrb[134].mxu0  ;;  %5021 = vmatmul.mubr.f32.gmra.mrb[98].mxu1 %v9454_v2  ;;  %v3978_v2 = vld [vmem:[#allocation2 + $0x141] sm:$0xff] }
 0x537   :  { %v5179_v33 = vpop.f32.mrb[135].mxu0  ;;  %5025 = vmatprep.mubr.f32.mxu1 %v9472_v4  ;;  %6529 = vmatpush1.bf16.msra.mxu1 %v9821_v62 }
 0x538   :  { %6514 = vmatprep.subr.bf16.mxu1 %v9803_v19 }
 0x53a   :  { %v9539_v22 = vpop.f32.mrb[136].mxu0  ;;  %5026 = vmatmul.mubr.f32.gmra.mrb[100].mxu1 %v9458_v24 }
 0x53b   :  { %v5184_v12 = vpop.f32.mrb[137].mxu0  ;;  %5030 = vmatprep.mubr.f32.mxu1 %v9475_v49  ;;  %6530 = vmatpush1.bf16.msra.mxu1 %v9822_v7 }
 0x53c   :  { %6515 = vmatprep.subr.bf16.mxu1 %v9803_v19 }
 0x53e   :  { %v9545_v10 = vpop.f32.mrb[138].mxu0  ;;  %5031 = vmatmul.mubr.f32.gmra.mrb[102].mxu1 %v9462_v6 }
 0x53f   :  { %v5189_v54 = vpop.f32.mrb[139].mxu0  ;;  %5035 = vmatprep.mubr.f32.mxu1 %v3978_v2  ;;  %6531 = vmatpush1.bf16.msra.mxu1 %v9823_v36 }
 0x540   :  { %v9617_v54 = vld [vmem:[#allocation9] ss:$0 sm:$0xff] }
 0x542   :  { %v9549_v5 = vpop.f32.mrb[140].mxu0  ;;  %5036 = vmatmul.mubr.f32.gmra.mrb[104].mxu1 %v9466_v3 }
 0x543   :  { %v5194_v24 = vpop.f32.mrb[141].mxu0  ;;  %5040 = vmatprep.mubr.f32.mxu1 %v3979_v39 }
 0x546   :  { %v9552_v59 = vpop.f32.mrb[142].mxu0  ;;  %5041 = vmatmul.mubr.f32.gmra.mrb[106].mxu1 %v9469_v45 }
 0x547   :  { %v5199_v19 = vpop.f32.mrb[143].mxu0  ;;  %5045 = vmatprep.mubr.f32.mxu1 %v3980_v26 }
 0x54a   :  { %v9555_v6 = vpop.f32.mrb[144].mxu0  ;;  %5046 = vmatmul.mubr.f32.gmra.mrb[108].mxu1 %v9472_v4 }
 0x54b   :  { %v5204_v40 = vpop.f32.mrb[145].mxu0  ;;  %5050 = vmatprep.mubr.f32.mxu1 %v3981_v57 }
 0x54e   :  { %v9558_v11 = vpop.f32.mrb[146].mxu0  ;;  %5051 = vmatmul.mubr.f32.gmra.mrb[110].mxu1 %v9475_v49 }
 0x54f   :  { %v5209_v3 = vpop.f32.mrb[147].mxu0  ;;  %5055 = vmatprep.mubr.f32.mxu1 %v3982_v63 }
 0x552   :  { %v9561_v17 = vpop.f32.mrb[148].mxu0  ;;  %5056 = vmatmul.mubr.f32.gmra.mrb[112].mxu1 %v3978_v2 }
 0x553   :  { %v9563_v45 = vpop.f32.mrb[149].mxu0  ;;  %5060 = vmatprep.mubr.f32.mxu1 %v3983_v28 }
 0x556   :  { %v9565_v47 = vpop.f32.mrb[150].mxu0  ;;  %5061 = vmatmul.mubr.f32.gmra.mrb[114].mxu1 %v3979_v39 }
 0x557   :  { %v9567_v4 = vpop.f32.mrb[151].mxu0  ;;  %5065 = vmatprep.mubr.f32.mxu1 %v3984_v51 }
 0x55a   :  { %v9569_v61 = vpop.f32.mrb[152].mxu0  ;;  %5066 = vmatmul.mubr.f32.gmra.mrb[116].mxu1 %v3980_v26 }
 0x55b   :  { %v9571_v49 = vpop.f32.mrb[153].mxu0  ;;  %5070 = vmatprep.mubr.f32.mxu1 %v3985_v23 }
 0x55e   :  { %v9573_v55 = vpop.f32.mrb[154].mxu0  ;;  %5071 = vmatmul.mubr.f32.gmra.mrb[118].mxu1 %v3981_v57 }
 0x55f   :  { %v9575_v53 = vpop.f32.mrb[155].mxu0  ;;  %5210 = vmatprep.mubr.f32.mxu1 %v4072_v16 }
 0x562   :  { %v9577_v15 = vpop.f32.mrb[156].mxu0  ;;  %5211 = vmatmul.mubr.f32.vlgmr.msra.gmra.mrb[100].mxu1 %v4024_v35 }
 0x563   :  { %v9579_v41 = vpop.f32.mrb[157].mxu0  ;;  %5215 = vmatprep.mubr.f32.mxu1 %v4073_v37 }
 0x566   :  { %v9581_v13 = vpop.f32.mrb[158].mxu0  ;;  %5216 = vmatmul.mubr.f32.gmra.mrb[102].mxu1 %v4025_v50 }
 0x567   :  { %v9583_v18 = vpop.f32.mrb[159].mxu0  ;;  %5220 = vmatprep.mubr.f32.mxu1 %v9357_v43 }
 0x56a   :  { %v9586_v20 = vpop.f32.mrb[160].mxu0  ;;  %5221 = vmatmul.mubr.f32.gmra.mrb[104].mxu1 %v4026_v0 }
 0x56b   :  { %v9588_v8 = vpop.f32.mrb[161].mxu0  ;;  %5225 = vmatprep.mubr.f32.mxu1 %v9364_v14 }
 0x56e   :  { %v9591_v42 = vpop.f32.mrb[162].mxu0  ;;  %5226 = vmatmul.mubr.f32.gmra.mrb[106].mxu1 %v4027_v31 }
 0x56f   :  { %v9593_v32 = vpop.f32.mrb[163].mxu0  ;;  %5230 = vmatprep.mubr.f32.mxu1 %v9368_v60 }
 0x572   :  { %v9596_v44 = vpop.f32.mrb[164].mxu0  ;;  %5231 = vmatmul.mubr.f32.gmra.mrb[108].mxu1 %v4072_v16 }
 0x573   :  { %v9598_v1 = vpop.f32.mrb[165].mxu0  ;;  %5235 = vmatprep.mubr.f32.mxu1 %v9374_v56 }
 0x576   :  { %v9601_v33 = vpop.f32.mrb[166].mxu0  ;;  %5236 = vmatmul.mubr.f32.gmra.mrb[110].mxu1 %v4073_v37 }
 0x577   :  { %v9603_v62 = vpop.f32.mrb[167].mxu0  ;;  %5240 = vmatprep.mubr.f32.mxu1 %v9378_v38 }
 0x57a   :  { %5241 = vmatmul.mubr.f32.gmra.mrb[112].mxu1 %v9357_v43 }
 0x57b   :  { %5245 = vmatprep.mubr.f32.mxu1 %v9384_v30 }
 0x57e   :  { %5246 = vmatmul.mubr.f32.gmra.mrb[114].mxu1 %v9364_v14 }
 0x57f   :  { %5250 = vmatprep.mubr.f32.mxu1 %v9388_v27 }
 0x582   :  { %5251 = vmatmul.mubr.f32.gmra.mrb[116].mxu1 %v9368_v60 }
 0x583   :  { %5255 = vmatprep.mubr.f32.mxu1 %v9391_v52 }
 0x586   :  { %5256 = vmatmul.mubr.f32.gmra.mrb[118].mxu1 %v9374_v56 }
 0x5c2   :  { %v9613_v12 = vpop.f32.mrb[168].mxu0 }
 0x5c3   :  { %v9615_v7 = vpop.f32.mrb[169].mxu0 }
 0x5c6   :  { %v9621_v2 = vpop.f32.mrb[170].mxu0 }
 0x5c7   :  { %v9623_v60 = vpop.f32.mrb[171].mxu0 }
 0x5d5   :  { %v4957_v38 = vpop.f32.mrb[72].mxu1 }
 0x5d6   :  { %v6604_v43 = vadd.f32 %v9617_v54, %v4957_v38  ;;  %v4959_v30 = vpop.f32.mrb[73].mxu1 }
 0x5d8   :  { %v6605_v14 = vadd.f32 %v6604_v43, %v9500_v58 }
 0x5d9   :  { %v4962_v27 = vpop.f32.mrb[74].mxu1 }
 0x5da   :  { %v5328_v52 = vadd.f32 %v6605_v14, %v9563_v45  ;;  %v6606_v56 = vadd.f32 %v9617_v54, %v4962_v27  ;;  %v4964_v36 = vpop.f32.mrb[75].mxu1 }
 0x5dc   :  { %v5446_v24 = vmax.f32 %v5328_v52, 0.0  ;;  %v6607_v39 = vadd.f32 %v6606_v56, %v9505_v29 }
 0x5dd   :  { %v4967_v19 = vpop.f32.mrb[76].mxu1 }
 0x5de   :  { %5470 = vst [vmem:[%s9764_s7] sm:$0xff] %v5446_v24  ;;  %v5333_v58 = vadd.f32 %v6607_v39, %v9561_v17  ;;  %v6608_v26 = vadd.f32 %v9617_v54, %v4967_v19  ;;  %v4969_v57 = vpop.f32.mrb[77].mxu1 }
 0x5e0   :  { %v5447_v40 = vmax.f32 %v5333_v58, 0.0  ;;  %v6609_v63 = vadd.f32 %v6608_v26, %v9510_v34 }
 0x5e1   :  { %v4972_v3 = vpop.f32.mrb[78].mxu1 }
 0x5e2   :  { %5471 = vst [vmem:[%s9764_s7 + $0x8] sm:$0xff] %v5447_v40  ;;  %v5338_v29 = vadd.f32 %v6609_v63, %v9567_v4  ;;  %v6610_v28 = vadd.f32 %v9617_v54, %v4972_v3  ;;  %v4974_v45 = vpop.f32.mrb[79].mxu1 }
 0x5e4   :  { %v5448_v51 = vmax.f32 %v5338_v29, 0.0  ;;  %v6611_v23 = vadd.f32 %v6610_v28, %v9514_v9 }
 0x5e5   :  { %v4977_v17 = vpop.f32.mrb[80].mxu1 }
 0x5e6   :  { %5472 = vst [vmem:[%s9764_s7 + $0x10] sm:$0xff] %v5448_v51  ;;  %v5343_v34 = vadd.f32 %v6611_v23, %v9565_v47  ;;  %v6612_v16 = vadd.f32 %v9617_v54, %v4977_v17  ;;  %v4979_v35 = vpop.f32.mrb[81].mxu1 }
 0x5e8   :  { %v5449_v37 = vmax.f32 %v5343_v34, 0.0  ;;  %v6613_v50 = vadd.f32 %v6612_v16, %v9518_v25 }
 0x5e9   :  { %v4982_v4 = vpop.f32.mrb[82].mxu1 }
 0x5ea   :  { %5473 = vst [vmem:[%s9764_s7 + $0x18] sm:$0xff] %v5449_v37  ;;  %v5348_v9 = vadd.f32 %v6613_v50, %v9571_v49  ;;  %v6614_v0 = vadd.f32 %v9617_v54, %v4982_v4  ;;  %v4984_v31 = vpop.f32.mrb[83].mxu1 }
 0x5ec   :  { %v5450_v38 = vmax.f32 %v5348_v9, 0.0  ;;  %v6615_v43 = vadd.f32 %v6614_v0, %v9522_v21 }
 0x5ed   :  { %v4987_v47 = vpop.f32.mrb[84].mxu1 }
 0x5ee   :  { %5474 = vst [vmem:[%s9764_s7 + $0x20] sm:$0xff] %v5450_v38  ;;  %v5353_v25 = vadd.f32 %v6615_v43, %v9569_v61  ;;  %v6616_v30 = vadd.f32 %v9617_v54, %v4987_v47  ;;  %v4989_v14 = vpop.f32.mrb[85].mxu1 }
 0x5f0   :  { %v5451_v27 = vmax.f32 %v5353_v25, 0.0  ;;  %v6617_v52 = vadd.f32 %v6616_v30, %v9527_v48 }
 0x5f1   :  { %v4992_v49 = vpop.f32.mrb[86].mxu1 }
 0x5f2   :  { %5475 = vst [vmem:[%s9764_s7 + $0x28] sm:$0xff] %v5451_v27  ;;  %v5358_v21 = vadd.f32 %v6617_v52, %v9575_v53  ;;  %v6618_v56 = vadd.f32 %v9617_v54, %v4992_v49  ;;  %v4994_v36 = vpop.f32.mrb[87].mxu1 }
 0x5f4   :  { %v5452_v24 = vmax.f32 %v5358_v21, 0.0  ;;  %v6619_v39 = vadd.f32 %v6618_v56, %v9533_v46 }
 0x5f5   :  { %v4997_v61 = vpop.f32.mrb[88].mxu1 }
 0x5f6   :  { %5476 = vst [vmem:[%s9764_s7 + $0x30] sm:$0xff] %v5452_v24  ;;  %v5363_v48 = vadd.f32 %v6619_v39, %v9573_v55  ;;  %v6620_v19 = vadd.f32 %v9617_v54, %v4997_v61  ;;  %v4999_v58 = vpop.f32.mrb[89].mxu1 }
 0x5f8   :  { %v5453_v26 = vmax.f32 %v5363_v48, 0.0  ;;  %v6621_v57 = vadd.f32 %v6620_v19, %v9539_v22 }
 0x5f9   :  { %v5002_v53 = vpop.f32.mrb[90].mxu1 }
 0x5fa   :  { %5477 = vst [vmem:[%s9764_s7 + $0x38] sm:$0xff] %v5453_v26  ;;  %v5368_v46 = vadd.f32 %v6621_v57, %v9579_v41  ;;  %v6622_v40 = vadd.f32 %v9617_v54, %v5002_v53  ;;  %v5004_v63 = vpop.f32.mrb[91].mxu1 }
 0x5fc   :  { %v5454_v3 = vmax.f32 %v5368_v46, 0.0  ;;  %v6623_v29 = vadd.f32 %v6622_v40, %v9545_v10 }
 0x5fd   :  { %v5007_v55 = vpop.f32.mrb[92].mxu1 }
 0x5fe   :  { %5478 = vst [vmem:[%s9764_s7 + $0x40] sm:$0xff] %v5454_v3  ;;  %v5373_v22 = vadd.f32 %v6623_v29, %v9577_v15  ;;  %v6624_v28 = vadd.f32 %v9617_v54, %v5007_v55  ;;  %v5009_v45 = vpop.f32.mrb[93].mxu1 }
 0x600   :  { %v5455_v51 = vmax.f32 %v5373_v22, 0.0  ;;  %v6625_v23 = vadd.f32 %v6624_v28, %v9549_v5 }
 0x601   :  { %v5012_v41 = vpop.f32.mrb[94].mxu1 }
 0x602   :  { %5479 = vst [vmem:[%s9764_s7 + $0x48] sm:$0xff] %v5455_v51  ;;  %v5378_v10 = vadd.f32 %v6625_v23, %v9583_v18  ;;  %v6626_v17 = vadd.f32 %v9617_v54, %v5012_v41  ;;  %v5014_v34 = vpop.f32.mrb[95].mxu1 }
 0x604   :  { %v5456_v16 = vmax.f32 %v5378_v10, 0.0  ;;  %v6627_v35 = vadd.f32 %v6626_v17, %v9552_v59 }
 0x605   :  { %v5017_v15 = vpop.f32.mrb[96].mxu1 }
 0x606   :  { %5480 = vst [vmem:[%s9764_s7 + $0x50] sm:$0xff] %v5456_v16  ;;  %v5383_v5 = vadd.f32 %v6627_v35, %v9581_v13  ;;  %v6628_v37 = vadd.f32 %v9617_v54, %v5017_v15  ;;  %v5019_v50 = vpop.f32.mrb[97].mxu1 }
 0x608   :  { %v5457_v4 = vmax.f32 %v5383_v5, 0.0  ;;  %v6629_v9 = vadd.f32 %v6628_v37, %v9555_v6 }
 0x609   :  { %v5022_v18 = vpop.f32.mrb[98].mxu1 }
 0x60a   :  { %5481 = vst [vmem:[%s9764_s7 + $0x58] sm:$0xff] %v5457_v4  ;;  %v5388_v59 = vadd.f32 %v6629_v9, %v9588_v8  ;;  %v6630_v0 = vadd.f32 %v9617_v54, %v5022_v18  ;;  %v5024_v31 = vpop.f32.mrb[99].mxu1 }
 0x60c   :  { %v5458_v38 = vmax.f32 %v5388_v59, 0.0  ;;  %v6631_v43 = vadd.f32 %v6630_v0, %v9558_v11 }
 0x60e   :  { %5482 = vst [vmem:[%s9764_s7 + $0x60] sm:$0xff] %v5458_v38  ;;  %v5393_v13 = vadd.f32 %v6631_v43, %v9586_v20 }
 0x610   :  { %v5459_v6 = vmax.f32 %v5393_v13, 0.0 }
 0x612   :  { %5483 = vst [vmem:[%s9764_s7 + $0x68] sm:$0xff] %v5459_v6 }
 0x635   :  { %v5212_v47 = vpop.f32.mrb[100].mxu1 }
 0x636   :  { %v6632_v8 = vadd.f32 %v9617_v54, %v5212_v47  ;;  %v5214_v25 = vpop.f32.mrb[101].mxu1 }
 0x638   :  { %v5398_v30 = vadd.f32 %v6632_v8, %v9593_v32 }
 0x639   :  { %v5217_v14 = vpop.f32.mrb[102].mxu1 }
 0x63a   :  { %v5460_v27 = vmax.f32 %v5398_v30, 0.0  ;;  %v6633_v11 = vadd.f32 %v9617_v54, %v5217_v14  ;;  %v5219_v52 = vpop.f32.mrb[103].mxu1 }
 0x63c   :  { %5484 = vst [vmem:[%s9764_s7 + $0x70] sm:$0xff] %v5460_v27  ;;  %v5403_v20 = vadd.f32 %v6633_v11, %v9591_v42 }
 0x63d   :  { %v5222_v49 = vpop.f32.mrb[104].mxu1 }
 0x63e   :  { %v5461_v21 = vmax.f32 %v5403_v20, 0.0  ;;  %v6634_v56 = vadd.f32 %v9617_v54, %v5222_v49  ;;  %v5224_v36 = vpop.f32.mrb[105].mxu1 }
 0x640   :  { %5485 = vst [vmem:[%s9764_s7 + $0x78] sm:$0xff] %v5461_v21  ;;  %v5408_v32 = vadd.f32 %v6634_v56, %v9598_v1 }
 0x641   :  { %v5227_v24 = vpop.f32.mrb[106].mxu1 }
 0x642   :  { %v5462_v39 = vmax.f32 %v5408_v32, 0.0  ;;  %v6635_v61 = vadd.f32 %v9617_v54, %v5227_v24  ;;  %v5229_v48 = vpop.f32.mrb[107].mxu1 }
 0x644   :  { %5486 = vst [vmem:[%s9764_s7 + $0x80] sm:$0xff] %v5462_v39  ;;  %v5413_v42 = vadd.f32 %v6635_v61, %v9596_v44 }
 0x645   :  { %v5232_v19 = vpop.f32.mrb[108].mxu1 }
 0x646   :  { %v5463_v58 = vmax.f32 %v5413_v42, 0.0  ;;  %v6636_v26 = vadd.f32 %v9617_v54, %v5232_v19  ;;  %v5234_v57 = vpop.f32.mrb[109].mxu1 }
 0x648   :  { %5487 = vst [vmem:[%s9764_s7 + $0x88] sm:$0xff] %v5463_v58  ;;  %v5418_v1 = vadd.f32 %v6636_v26, %v9603_v62 }
 0x649   :  { %v5237_v53 = vpop.f32.mrb[110].mxu1 }
 0x64a   :  { %v5464_v46 = vmax.f32 %v5418_v1, 0.0  ;;  %v6637_v40 = vadd.f32 %v9617_v54, %v5237_v53  ;;  %v5239_v63 = vpop.f32.mrb[111].mxu1 }
 0x64c   :  { %5488 = vst [vmem:[%s9764_s7 + $0x90] sm:$0xff] %v5464_v46  ;;  %v5423_v44 = vadd.f32 %v6637_v40, %v9601_v33 }
 0x64d   :  { %v5242_v3 = vpop.f32.mrb[112].mxu1 }
 0x64e   :  { %v5465_v29 = vmax.f32 %v5423_v44, 0.0  ;;  %v6638_v55 = vadd.f32 %v9617_v54, %v5242_v3  ;;  %v5244_v22 = vpop.f32.mrb[113].mxu1 }
 0x650   :  { %5489 = vst [vmem:[%s9764_s7 + $0x98] sm:$0xff] %v5465_v29  ;;  %v5428_v62 = vadd.f32 %v6638_v55, %v9615_v7 }
 0x651   :  { %v5247_v28 = vpop.f32.mrb[114].mxu1 }
 0x652   :  { %v5466_v45 = vmax.f32 %v5428_v62, 0.0  ;;  %v6639_v51 = vadd.f32 %v9617_v54, %v5247_v28  ;;  %v5249_v23 = vpop.f32.mrb[115].mxu1 }
 0x654   :  { %5490 = vst [vmem:[%s9764_s7 + $0xa0] sm:$0xff] %v5466_v45  ;;  %v5433_v33 = vadd.f32 %v6639_v51, %v9613_v12 }
 0x655   :  { %v5252_v41 = vpop.f32.mrb[116].mxu1 }
 0x656   :  { %v5467_v10 = vmax.f32 %v5433_v33, 0.0  ;;  %v6640_v17 = vadd.f32 %v9617_v54, %v5252_v41  ;;  %v5254_v34 = vpop.f32.mrb[117].mxu1 }
 0x658   :  { %5491 = vst [vmem:[%s9764_s7 + $0xa8] sm:$0xff] %v5467_v10  ;;  %v5438_v7 = vadd.f32 %v6640_v17, %v9623_v60 }
 0x659   :  { %v5257_v16 = vpop.f32.mrb[118].mxu1 }
 0x65a   :  { %v5468_v35 = vmax.f32 %v5438_v7, 0.0  ;;  %v6641_v15 = vadd.f32 %v9617_v54, %v5257_v16  ;;  %v5259_v5 = vpop.f32.mrb[119].mxu1 }
 0x65c   :  { %5492 = vst [vmem:[%s9764_s7 + $0xb0] sm:$0xff] %v5468_v35  ;;  %v5443_v12 = vadd.f32 %v6641_v15, %v9621_v2 }
 0x65e   :  { %v5469_v37 = vmax.f32 %v5443_v12, 0.0 }
 0x660   :  { %5493 = vst [vmem:[%s9764_s7 + $0xb8] sm:$0xff] %v5469_v37 }
 0x661   :  { %5498 = vsyncpa [#allocation5], 1 }
 0x662   :  { %5499 = vsyncpa [#allocation7], 1 }
 0x663   :  { %5500 = vsyncpa [#allocation10], 1 }

</bundles_post_ra>
